<compile_context>
chip_gen: v7x
topology: tpu7x:2x2x1
jax: 0.10.0
libtpu: 0.0.40
codegen_flags: <defaults>
</compile_context>

<pallas_src>
import functools

import jax
import jax.numpy as jnp
from jax.experimental import pallas as pl
from jax.experimental.pallas import tpu as pltpu

VOCAB = 101
VOCAB_PAD = 128   # pad the embedding vocab to a full 128-lane tile


# ----------------------------------------------------------------------------
# Fused forward kernel (one grid step == TILE_B batch elements)
# ----------------------------------------------------------------------------
def _fused_forward_kernel(
    # per-step activations
    histf_ref, idx_ref, gf_ref,
    # block-1 temporal conv (paths fused on lanes, embedding folded in)
    w1h_ref, mbe_ref, b1_ref,
    # block-1 graph conv (shared A_k, block-diagonal theta)
    a1_ref, th1_ref, bg1_ref,
    # block-2 temporal conv (block-diagonal per-tap weights)
    w2_ref, b2_ref,
    # block-2 graph conv
    a2_ref, th2_ref, bg2_ref,
    # global-feature embed + fused output head
    gw_ref, gb_ref, wf_ref, wfg_ref, ob_ref,
    # output
    out_ref,
    *, kt, ks, T, To1, To2, F1, TBV):
  f32, bf16 = jnp.float32, jnp.bfloat16

  # ---- summed one-hot of the built-environment indices --------------------
  # (f32 VPU accumulation; indices outside [0,128) contribute the zero row)
  idx = idx_ref[0]                                           # (T*TBV, F1) i32
  iota = jax.lax.broadcasted_iota(jnp.int32, (T * TBV, VOCAB_PAD), 1)
  oh = (idx[:, 0:1] == iota).astype(f32)
  for fcol in range(1, F1):
    oh = oh + (idx[:, fcol:fcol + 1] == iota).astype(f32)    # (T*TBV, 128)

  # ---- block-1 temporal conv, both GDL paths fused on lanes ---------------
  # hist path (kt taps pre-folded in the wrapper) -> output lanes [0, 64)
  acc = jnp.dot(histf_ref[0].astype(bf16), w1h_ref[...],
                preferred_element_type=f32)
  # BE path: embedding table folded into the per-tap weights -> lanes [64,128)
  for dt in range(kt):
    ohs = oh[dt * TBV:(dt + To1) * TBV, :].astype(bf16)
    acc = acc + jnp.dot(ohs, mbe_ref[dt], preferred_element_type=f32)
  y = jnp.maximum(acc + b1_ref[...], 0.0)                    # (To1*TBV, 128)

  # ---- block-1 Chebyshev graph conv ---------------------------------------
  # one shared A_k row-mix per k; block-diagonal theta keeps paths separate
  yb = y.astype(bf16)
  acc = None
  for k in range(ks):
    z = jnp.dot(a1_ref[k], yb, preferred_element_type=f32)
    p = jnp.dot(z.astype(bf16), th1_ref[k], preferred_element_type=f32)
    acc = p if acc is None else acc + p
  y = jnp.maximum(acc + bg1_ref[...], 0.0)                   # (To1*TBV, 256)

  # ---- block-2 temporal conv (kt taps accumulated; K=256 per dot) ---------
  acc = None
  for dt in range(kt):
    xs = y[dt * TBV:(dt + To2) * TBV, :].astype(bf16)
    p = jnp.dot(xs, w2_ref[dt], preferred_element_type=f32)
    acc = p if acc is None else acc + p
  y = jnp.maximum(acc + b2_ref[...], 0.0)                    # (To2*TBV, 128)

  # ---- block-2 Chebyshev graph conv ---------------------------------------
  yb = y.astype(bf16)
  acc = None
  for k in range(ks):
    z = jnp.dot(a2_ref[k], yb, preferred_element_type=f32)
    p = jnp.dot(z.astype(bf16), th2_ref[k], preferred_element_type=f32)
    acc = p if acc is None else acc + p
  st = jnp.maximum(acc + bg2_ref[...], 0.0)                  # (To2*TBV, 32)
  # lanes [0,16) = st_x path, lanes [16,32) = st_be path

  # ---- global static-feature embed ----------------------------------------
  egf = jnp.maximum(
      jnp.dot(gf_ref[0].astype(bf16), gw_ref[...],
              preferred_element_type=f32) + gb_ref[...], 0.0)   # (TBV, out_c)

  # ---- fused linear output head (pure VPU epilogue) ------------------------
  # No gf tiling/concat (head weights for the global term pre-summed over t),
  # no N=1 matmul: sublane adds over t + lane reduces over channels.
  prod = st * wf_ref[...]                                    # (To2*TBV, 32)
  per_node = prod[0:TBV, :]
  for t in range(1, To2):
    per_node = per_node + prod[t * TBV:(t + 1) * TBV, :]     # (TBV, 32)
  total = (jnp.sum(per_node, axis=-1, keepdims=True)
           + jnp.sum(egf * wfg_ref[...], axis=-1, keepdims=True)
           + ob_ref[...])                                    # (TBV, 1)
  # Only TILE_B*V scalars per step -> the store path is immaterial here;
  # keep the known-good (1, TBV, 1) block layout.
  out_ref[0] = total


# ----------------------------------------------------------------------------
# Batch-independent operand preparation (hoisted out of the per-call wrapper)
# ----------------------------------------------------------------------------
def _blockdiag(a, b):
  """Block-diagonal stack on the last two dims."""
  oa, ob = a.shape[-1], b.shape[-1]
  top = jnp.concatenate([a, jnp.zeros(a.shape[:-1] + (ob,), a.dtype)], axis=-1)
  bot = jnp.concatenate([jnp.zeros(b.shape[:-1] + (oa,), b.dtype), b], axis=-1)
  return jnp.concatenate([top, bot], axis=-2)


def _kron_eye(n, lk):
  """I_n (x) Lk[k] for every k: (ks, V, V) -> (ks, n*V, n*V)."""
  ks, v, _ = lk.shape
  eye = jnp.eye(n, dtype=lk.dtype)
  return jnp.einsum("tu,kij->ktiuj", eye, lk).reshape(ks, n * v, n * v)


def _pick_tile_b(b, max_tile=8):
  """Largest divisor of b (<= max_tile) that still leaves >= 2 grid steps."""
  best = 1
  for t in range(1, min(b, max_tile) + 1):
    if b % t == 0 and (b // t >= 2 or b == 1):
      best = t
  return best


def prepare_operands(params, cfg, tile_b):
  f32, bf16 = jnp.float32, jnp.bfloat16
  T, kt, ks, V = cfg["timesteps"], cfg["kt"], cfg["ks"], cfg["nodes"]
  To1 = T - (kt - 1)
  To2 = cfg["out_timestep"]
  TBV = tile_b * V

  bx1, bx2 = params["gdl_x"]
  be1, be2 = params["gdl_sbe"]
  out_c = bx2["theta"].shape[2]

  emb_pad = jnp.zeros((VOCAB_PAD, params["eb_sbe"].shape[1]), f32)
  emb_pad = emb_pad.at[:VOCAB].set(params["eb_sbe"].astype(f32))

  # block-1 temporal conv: hist taps folded along K -> lanes [0, 64)
  c_h1 = bx1["wt"].shape[2]
  f0 = bx1["wt"].shape[1]
  w1h = jnp.concatenate(
      [bx1["wt"].astype(f32).reshape(kt * f0, c_h1),
       jnp.zeros((kt * f0, c_h1), f32)], axis=1)              # (kt*f0, 128)
  # BE half: embedding table pre-multiplied into each tap -> lanes [64, 128)
  mbe = jnp.einsum("pe,keh->kph", emb_pad, be1["wt"].astype(f32))
  mbe = jnp.concatenate([jnp.zeros_like(mbe), mbe], axis=2)   # (kt, 128, 128)
  b1 = jnp.concatenate([bx1["bt"], be1["bt"]]).reshape(1, -1).astype(f32)

  # graph operators shared by both lane-fused paths
  lk = params["Lk"].astype(f32)
  a1 = _kron_eye(To1 * tile_b, lk)                            # (ks, To1*TBV, ..)
  a2 = _kron_eye(To2 * tile_b, lk)

  th1 = _blockdiag(bx1["theta"].astype(f32), be1["theta"].astype(f32))
  bg1 = jnp.concatenate([bx1["bg"], be1["bg"]]).reshape(1, -1).astype(f32)

  w2 = _blockdiag(bx2["wt"].astype(f32), be2["wt"].astype(f32))   # (kt,256,128)
  b2 = jnp.concatenate([bx2["bt"], be2["bt"]]).reshape(1, -1).astype(f32)

  th2 = _blockdiag(bx2["theta"].astype(f32), be2["theta"].astype(f32))
  bg2 = jnp.concatenate([bx2["bg"], be2["bg"]]).reshape(1, -1).astype(f32)

  gw = params["gw"].astype(f32)
  gb = params["gb"].reshape(1, -1).astype(f32)
  ow = params["ow"].astype(f32)                               # (To2, 3*out_c)
  wf = jnp.repeat(ow[:, :2 * out_c], TBV, axis=0)             # (To2*TBV, 32)
  wfg = jnp.sum(ow[:, 2 * out_c:], axis=0, keepdims=True)     # (1, out_c)
  ob = params["ob"].reshape(1, 1).astype(f32)

  bfc = lambda w: w.astype(bf16)      # bf16 strictly for MXU operands
  return (bfc(w1h), bfc(mbe), b1, bfc(a1), bfc(th1), bg1,
          bfc(w2), b2, bfc(a2), bfc(th2), bg2,
          bfc(gw), gb, wf, wfg, ob)


# ----------------------------------------------------------------------------
# Forward wrapper (layout plumbing only; all compute is in the kernel)
# ----------------------------------------------------------------------------
def gdlbe_eb_forward(x, shared_ops, cfg, tile_b):
  f32 = jnp.float32
  b, _, f, v = x.shape
  T, kt, ks = cfg["timesteps"], cfg["kt"], cfg["ks"]
  cut0, cut1, cut2 = cfg["x_cut"]
  To1 = T - (kt - 1)
  To2 = cfg["out_timestep"]
  f0, F1, f2 = cut0 // T, cut1 // T, cut2
  V = v
  assert b % tile_b == 0
  steps = b // tile_b
  TBV = tile_b * V

  # rows within a grid step are ordered (t, bb, v): a temporal tap is a row
  # shift of TBV and the graph operator is I_{To*tile_b} (x) Lk.
  def to_rows(seg, nchan, nt):
    s = seg.reshape(steps, tile_b, nchan, nt, V)
    return s.transpose(0, 3, 1, 4, 2).reshape(steps, nt * TBV, nchan)

  hist = to_rows(x[:, 0, :cut0, :].astype(f32), f0, T)
  idx = jnp.round(
      to_rows(x[:, 0, cut0:cut0 + cut1, :].astype(f32), F1, T)
  ).astype(jnp.int32)                     # round (not truncate) -> indices
  gf = (x[:, 0, f - cut2:, :].astype(f32)
        .reshape(steps, tile_b, f2, V).transpose(0, 1, 3, 2)
        .reshape(steps, TBV, f2))

  # pre-fold the kt temporal taps of the historical features (layout only)
  h3 = hist.reshape(steps, T, TBV, f0)
  histf = jnp.concatenate([h3[:, dt:dt + To1] for dt in range(kt)], axis=-1)
  histf = histf.reshape(steps, To1 * TBV, kt * f0)

  per_batch = (histf, idx, gf)

  def batched(arr):
    n = arr.ndim
    return pl.BlockSpec((1,) + arr.shape[1:],
                        lambda i: (i,) + (0,) * (n - 1))

  def shared(arr):
    n = arr.ndim
    return pl.BlockSpec(arr.shape, lambda i: (0,) * n)

  in_specs = ([batched(a) for a in per_batch] +
              [shared(a) for a in shared_ops])

  kernel = functools.partial(
      _fused_forward_kernel,
      kt=kt, ks=ks, T=T, To1=To1, To2=To2, F1=F1, TBV=TBV)

  out = pl.pallas_call(
      kernel,
      out_shape=jax.ShapeDtypeStruct((steps, TBV, 1), f32),
      grid=(steps,),
      in_specs=in_specs,
      out_specs=pl.BlockSpec((1, TBV, 1), lambda i: (i, 0, 0)),
      compiler_params=pltpu.CompilerParams(
          dimension_semantics=("parallel",)),
  )(*per_batch, *shared_ops)

  # rows are (bb, v) per step -> (b, 1, 1, V)
  return out.reshape(b, V).reshape(b, 1, 1, V)


# ----------------------------------------------------------------------------
# Deterministic parameter initialization
# ----------------------------------------------------------------------------
def init_params(key, cfg):
  kt, ks, nodes = cfg["kt"], cfg["ks"], cfg["nodes"]
  f0, f1, f2 = cfg["fea_channel"]
  To2 = cfg["out_timestep"]
  keys = iter(jax.random.split(key, 64))

  def nrm(shape, scale=0.1):
    return (scale * jax.random.normal(next(keys), shape)).astype(jnp.float32)

  def gdl_blocks(ch_iho):
    blocks = []
    for (cin, chid, cout) in ch_iho:
      blocks.append(dict(
          wt=nrm((kt, cin, chid)), bt=nrm((chid,)),
          theta=nrm((ks, chid, cout)), bg=nrm((cout,))))
    return blocks

  ch_iho_x = [[f0, 64, 128], [128, 64, 16]]
  ch_iho_be = [[32, 64, 128], [128, 64, 16]]
  out_c = ch_iho_x[-1][-1]

  return dict(
      eb_sbe=nrm((VOCAB, 32)),
      Lk=nrm((ks, nodes, nodes)),
      gdl_x=gdl_blocks(ch_iho_x),
      gdl_sbe=gdl_blocks(ch_iho_be),
      gw=nrm((f2, out_c)), gb=nrm((out_c,)),
      ow=nrm((To2, out_c * 3)), ob=nrm((1,)),
  )


# ----------------------------------------------------------------------------
if __name__ == "__main__":
  timesteps, nodes, kt, ks_ = 12, 8, 3, 3
  fea_channel = [2, 3, 4]
  num_blocks = 2
  cfg = dict(
      timesteps=timesteps, nodes=nodes, kt=kt, ks=ks_,
      fea_channel=fea_channel,
      x_cut=[timesteps * fea_channel[0], timesteps * fea_channel[1],
             fea_channel[2]],
      out_timestep=timesteps - (kt - 1) * num_blocks,
  )

  key = jax.random.PRNGKey(0)
  kp, kx, kbe = jax.random.split(key, 3)
  params = init_params(kp, cfg)

  b = 8
  f_total = sum(cfg["x_cut"])                          # 24 + 36 + 4 = 64
  x = 0.5 * jax.random.normal(kx, (b, 1, f_total, nodes), jnp.float32)
  # the built-environment segment must hold integer indices in [0, 100]
  be_ints = jax.random.randint(
      kbe, (b, 1, cfg["x_cut"][1], nodes), 0, 101).astype(jnp.float32)
  x = x.at[:, :, cfg["x_cut"][0]:cfg["x_cut"][0] + cfg["x_cut"][1], :].set(
      be_ints)

  tile_b = _pick_tile_b(b)                    # b=8 -> TILE_B=4, grid of 2 steps
  shared_ops = prepare_operands(params, cfg, tile_b)   # hoisted: built once

  fwd = jax.jit(lambda xx: gdlbe_eb_forward(xx, shared_ops, cfg, tile_b))
  out = fwd(x)
  jax.block_until_ready(out)
  assert out.shape == (b, 1, 1, nodes)
  print("KERNEL_OK")
</pallas_src>

<mosaic_0001>
module attributes {stable_mosaic.version = 11 : i64} {
  func.func @_fused_forward_kernel(%arg0: i32, %arg1: memref<1x320x6xf32, #tpu.memory_space<vmem>>, %arg2: memref<1x384x3xi32, #tpu.memory_space<vmem>>, %arg3: memref<1x32x4xf32, #tpu.memory_space<vmem>>, %arg4: memref<6x128xbf16, #tpu.memory_space<vmem>>, %arg5: memref<3x128x128xbf16, #tpu.memory_space<vmem>>, %arg6: memref<1x128xf32, #tpu.memory_space<vmem>>, %arg7: memref<3x320x320xbf16, #tpu.memory_space<vmem>>, %arg8: memref<3x128x256xbf16, #tpu.memory_space<vmem>>, %arg9: memref<1x256xf32, #tpu.memory_space<vmem>>, %arg10: memref<3x256x128xbf16, #tpu.memory_space<vmem>>, %arg11: memref<1x128xf32, #tpu.memory_space<vmem>>, %arg12: memref<3x256x256xbf16, #tpu.memory_space<vmem>>, %arg13: memref<3x128x32xbf16, #tpu.memory_space<vmem>>, %arg14: memref<1x32xf32, #tpu.memory_space<vmem>>, %arg15: memref<4x16xbf16, #tpu.memory_space<vmem>>, %arg16: memref<1x16xf32, #tpu.memory_space<vmem>>, %arg17: memref<256x32xf32, #tpu.memory_space<vmem>>, %arg18: memref<1x16xf32, #tpu.memory_space<vmem>>, %arg19: memref<1x1xf32, #tpu.memory_space<vmem>>, %arg20: memref<1x32x1xf32, #tpu.memory_space<vmem>>) attributes {dimension_semantics = [#tpu.dimension_semantics<parallel>], iteration_bounds = array<i64: 2>, scalar_prefetch = 0 : i64, scratch_operands = 0 : i64, tpu.core_type = #tpu.core_type<tc>, window_params = [{transform_indices = @transform_0, window_bounds = array<i64: 1, 320, 6>}, {transform_indices = @transform_1, window_bounds = array<i64: 1, 384, 3>}, {transform_indices = @transform_2, window_bounds = array<i64: 1, 32, 4>}, {pipeline_mode = #tpu.pipeline_mode<synchronous>, transform_indices = @transform_3, window_bounds = array<i64: 6, 128>}, {pipeline_mode = #tpu.pipeline_mode<synchronous>, transform_indices = @transform_4, window_bounds = array<i64: 3, 128, 128>}, {pipeline_mode = #tpu.pipeline_mode<synchronous>, transform_indices = @transform_5, window_bounds = array<i64: 1, 128>}, {pipeline_mode = #tpu.pipeline_mode<synchronous>, transform_indices = @transform_6, window_bounds = array<i64: 3, 320, 320>}, {pipeline_mode = #tpu.pipeline_mode<synchronous>, transform_indices = @transform_7, window_bounds = array<i64: 3, 128, 256>}, {pipeline_mode = #tpu.pipeline_mode<synchronous>, transform_indices = @transform_8, window_bounds = array<i64: 1, 256>}, {pipeline_mode = #tpu.pipeline_mode<synchronous>, transform_indices = @transform_9, window_bounds = array<i64: 3, 256, 128>}, {pipeline_mode = #tpu.pipeline_mode<synchronous>, transform_indices = @transform_10, window_bounds = array<i64: 1, 128>}, {pipeline_mode = #tpu.pipeline_mode<synchronous>, transform_indices = @transform_11, window_bounds = array<i64: 3, 256, 256>}, {pipeline_mode = #tpu.pipeline_mode<synchronous>, transform_indices = @transform_12, window_bounds = array<i64: 3, 128, 32>}, {pipeline_mode = #tpu.pipeline_mode<synchronous>, transform_indices = @transform_13, window_bounds = array<i64: 1, 32>}, {pipeline_mode = #tpu.pipeline_mode<synchronous>, transform_indices = @transform_14, window_bounds = array<i64: 4, 16>}, {pipeline_mode = #tpu.pipeline_mode<synchronous>, transform_indices = @transform_15, window_bounds = array<i64: 1, 16>}, {pipeline_mode = #tpu.pipeline_mode<synchronous>, transform_indices = @transform_16, window_bounds = array<i64: 256, 32>}, {pipeline_mode = #tpu.pipeline_mode<synchronous>, transform_indices = @transform_17, window_bounds = array<i64: 1, 16>}, {pipeline_mode = #tpu.pipeline_mode<synchronous>, transform_indices = @transform_18, window_bounds = array<i64: 1, 1>}, {transform_indices = @transform_19, window_bounds = array<i64: 1, 32, 1>}]} {
    %c0 = arith.constant 0 : index
    %c0_0 = arith.constant 0 : index
    %c0_1 = arith.constant 0 : index
    %0 = vector.load %arg2[%c0, %c0_0, %c0_1] : memref<1x384x3xi32, #tpu.memory_space<vmem>>, vector<1x384x3xi32>
    %1 = vector.shape_cast %0 : vector<1x384x3xi32> to vector<384x3xi32>
    %2 = tpu.iota {dimensions = array<i32: 1>} : vector<384x128xi32>
    %3 = vector.extract_strided_slice %1 {offsets = [0, 0], sizes = [384, 1], strides = [1, 1]} : vector<384x3xi32> to vector<384x1xi32>
    %4 = vector.broadcast %3 : vector<384x1xi32> to vector<384x128xi32>
    %5 = arith.cmpi eq, %4, %2 : vector<384x128xi32>
    %6 = arith.extui %5 : vector<384x128xi1> to vector<384x128xi32>
    %7 = arith.sitofp %6 : vector<384x128xi32> to vector<384x128xf32>
    %8 = vector.extract_strided_slice %1 {offsets = [0, 1], sizes = [384, 1], strides = [1, 1]} : vector<384x3xi32> to vector<384x1xi32>
    %9 = vector.broadcast %8 : vector<384x1xi32> to vector<384x128xi32>
    %10 = arith.cmpi eq, %9, %2 : vector<384x128xi32>
    %11 = arith.extui %10 : vector<384x128xi1> to vector<384x128xi32>
    %12 = arith.sitofp %11 : vector<384x128xi32> to vector<384x128xf32>
    %13 = arith.addf %7, %12 : vector<384x128xf32>
    %14 = vector.extract_strided_slice %1 {offsets = [0, 2], sizes = [384, 1], strides = [1, 1]} : vector<384x3xi32> to vector<384x1xi32>
    %15 = vector.broadcast %14 : vector<384x1xi32> to vector<384x128xi32>
    %16 = arith.cmpi eq, %15, %2 : vector<384x128xi32>
    %17 = arith.extui %16 : vector<384x128xi1> to vector<384x128xi32>
    %18 = arith.sitofp %17 : vector<384x128xi32> to vector<384x128xf32>
    %19 = arith.addf %13, %18 : vector<384x128xf32>
    %c0_2 = arith.constant 0 : index
    %c0_3 = arith.constant 0 : index
    %c0_4 = arith.constant 0 : index
    %20 = vector.load %arg1[%c0_2, %c0_3, %c0_4] : memref<1x320x6xf32, #tpu.memory_space<vmem>>, vector<1x320x6xf32>
    %21 = vector.shape_cast %20 : vector<1x320x6xf32> to vector<320x6xf32>
    %22 = arith.truncf %21 : vector<320x6xf32> to vector<320x6xbf16>
    %c0_5 = arith.constant 0 : index
    %c0_6 = arith.constant 0 : index
    %23 = vector.load %arg4[%c0_5, %c0_6] : memref<6x128xbf16, #tpu.memory_space<vmem>>, vector<6x128xbf16>
    %cst = arith.constant dense<0.000000e+00> : vector<320x128xf32>
    %24 = tpu.matmul %22, %23, %cst {dimension_numbers = #tpu.dot_dimension_numbers<[1], [0], [0], [1], [0, 0, 1, 1], [], []>} : vector<320x6xbf16>, vector<6x128xbf16>, vector<320x128xf32> -> vector<320x128xf32>
    %25 = vector.extract_strided_slice %19 {offsets = [0, 0], sizes = [320, 128], strides = [1, 1]} : vector<384x128xf32> to vector<320x128xf32>
    %26 = arith.truncf %25 : vector<320x128xf32> to vector<320x128xbf16>
    %c0_7 = arith.constant 0 : index
    %c0_8 = arith.constant 0 : index
    %c0_9 = arith.constant 0 : index
    %27 = vector.load %arg5[%c0_7, %c0_8, %c0_9] : memref<3x128x128xbf16, #tpu.memory_space<vmem>>, vector<1x128x128xbf16>
    %28 = vector.shape_cast %27 : vector<1x128x128xbf16> to vector<128x128xbf16>
    %cst_10 = arith.constant dense<0.000000e+00> : vector<320x128xf32>
    %29 = tpu.matmul %26, %28, %cst_10 {dimension_numbers = #tpu.dot_dimension_numbers<[1], [0], [0], [1], [0, 0, 1, 1], [], []>} : vector<320x128xbf16>, vector<128x128xbf16>, vector<320x128xf32> -> vector<320x128xf32>
    %30 = arith.addf %24, %29 : vector<320x128xf32>
    %31 = vector.extract_strided_slice %19 {offsets = [32, 0], sizes = [320, 128], strides = [1, 1]} : vector<384x128xf32> to vector<320x128xf32>
    %32 = arith.truncf %31 : vector<320x128xf32> to vector<320x128xbf16>
    %c1 = arith.constant 1 : index
    %c0_11 = arith.constant 0 : index
    %c0_12 = arith.constant 0 : index
    %33 = vector.load %arg5[%c1, %c0_11, %c0_12] : memref<3x128x128xbf16, #tpu.memory_space<vmem>>, vector<1x128x128xbf16>
    %34 = vector.shape_cast %33 : vector<1x128x128xbf16> to vector<128x128xbf16>
    %cst_13 = arith.constant dense<0.000000e+00> : vector<320x128xf32>
    %35 = tpu.matmul %32, %34, %cst_13 {dimension_numbers = #tpu.dot_dimension_numbers<[1], [0], [0], [1], [0, 0, 1, 1], [], []>} : vector<320x128xbf16>, vector<128x128xbf16>, vector<320x128xf32> -> vector<320x128xf32>
    %36 = arith.addf %30, %35 : vector<320x128xf32>
    %37 = vector.extract_strided_slice %19 {offsets = [64, 0], sizes = [320, 128], strides = [1, 1]} : vector<384x128xf32> to vector<320x128xf32>
    %38 = arith.truncf %37 : vector<320x128xf32> to vector<320x128xbf16>
    %c2 = arith.constant 2 : index
    %c0_14 = arith.constant 0 : index
    %c0_15 = arith.constant 0 : index
    %39 = vector.load %arg5[%c2, %c0_14, %c0_15] : memref<3x128x128xbf16, #tpu.memory_space<vmem>>, vector<1x128x128xbf16>
    %40 = vector.shape_cast %39 : vector<1x128x128xbf16> to vector<128x128xbf16>
    %cst_16 = arith.constant dense<0.000000e+00> : vector<320x128xf32>
    %41 = tpu.matmul %38, %40, %cst_16 {dimension_numbers = #tpu.dot_dimension_numbers<[1], [0], [0], [1], [0, 0, 1, 1], [], []>} : vector<320x128xbf16>, vector<128x128xbf16>, vector<320x128xf32> -> vector<320x128xf32>
    %42 = arith.addf %36, %41 : vector<320x128xf32>
    %c0_17 = arith.constant 0 : index
    %c0_18 = arith.constant 0 : index
    %43 = vector.load %arg6[%c0_17, %c0_18] : memref<1x128xf32, #tpu.memory_space<vmem>>, vector<1x128xf32>
    %44 = vector.broadcast %43 : vector<1x128xf32> to vector<320x128xf32>
    %45 = arith.addf %42, %44 : vector<320x128xf32>
    %cst_19 = arith.constant 0.000000e+00 : f32
    %46 = vector.broadcast %cst_19 : f32 to vector<320x128xf32>
    %47 = arith.maximumf %45, %46 : vector<320x128xf32>
    %48 = arith.truncf %47 : vector<320x128xf32> to vector<320x128xbf16>
    %c0_20 = arith.constant 0 : index
    %c0_21 = arith.constant 0 : index
    %c0_22 = arith.constant 0 : index
    %49 = vector.load %arg7[%c0_20, %c0_21, %c0_22] : memref<3x320x320xbf16, #tpu.memory_space<vmem>>, vector<1x320x320xbf16>
    %50 = vector.shape_cast %49 : vector<1x320x320xbf16> to vector<320x320xbf16>
    %cst_23 = arith.constant dense<0.000000e+00> : vector<320x128xf32>
    %51 = tpu.matmul %50, %48, %cst_23 {dimension_numbers = #tpu.dot_dimension_numbers<[1], [0], [0], [1], [0, 0, 1, 1], [], []>} : vector<320x320xbf16>, vector<320x128xbf16>, vector<320x128xf32> -> vector<320x128xf32>
    %52 = arith.truncf %51 : vector<320x128xf32> to vector<320x128xbf16>
    %c0_24 = arith.constant 0 : index
    %c0_25 = arith.constant 0 : index
    %c0_26 = arith.constant 0 : index
    %53 = vector.load %arg8[%c0_24, %c0_25, %c0_26] : memref<3x128x256xbf16, #tpu.memory_space<vmem>>, vector<1x128x256xbf16>
    %54 = vector.shape_cast %53 : vector<1x128x256xbf16> to vector<128x256xbf16>
    %cst_27 = arith.constant dense<0.000000e+00> : vector<320x256xf32>
    %55 = tpu.matmul %52, %54, %cst_27 {dimension_numbers = #tpu.dot_dimension_numbers<[1], [0], [0], [1], [0, 0, 1, 1], [], []>} : vector<320x128xbf16>, vector<128x256xbf16>, vector<320x256xf32> -> vector<320x256xf32>
    %c1_28 = arith.constant 1 : index
    %c0_29 = arith.constant 0 : index
    %c0_30 = arith.constant 0 : index
    %56 = vector.load %arg7[%c1_28, %c0_29, %c0_30] : memref<3x320x320xbf16, #tpu.memory_space<vmem>>, vector<1x320x320xbf16>
    %57 = vector.shape_cast %56 : vector<1x320x320xbf16> to vector<320x320xbf16>
    %cst_31 = arith.constant dense<0.000000e+00> : vector<320x128xf32>
    %58 = tpu.matmul %57, %48, %cst_31 {dimension_numbers = #tpu.dot_dimension_numbers<[1], [0], [0], [1], [0, 0, 1, 1], [], []>} : vector<320x320xbf16>, vector<320x128xbf16>, vector<320x128xf32> -> vector<320x128xf32>
    %59 = arith.truncf %58 : vector<320x128xf32> to vector<320x128xbf16>
    %c1_32 = arith.constant 1 : index
    %c0_33 = arith.constant 0 : index
    %c0_34 = arith.constant 0 : index
    %60 = vector.load %arg8[%c1_32, %c0_33, %c0_34] : memref<3x128x256xbf16, #tpu.memory_space<vmem>>, vector<1x128x256xbf16>
    %61 = vector.shape_cast %60 : vector<1x128x256xbf16> to vector<128x256xbf16>
    %cst_35 = arith.constant dense<0.000000e+00> : vector<320x256xf32>
    %62 = tpu.matmul %59, %61, %cst_35 {dimension_numbers = #tpu.dot_dimension_numbers<[1], [0], [0], [1], [0, 0, 1, 1], [], []>} : vector<320x128xbf16>, vector<128x256xbf16>, vector<320x256xf32> -> vector<320x256xf32>
    %63 = arith.addf %55, %62 : vector<320x256xf32>
    %c2_36 = arith.constant 2 : index
    %c0_37 = arith.constant 0 : index
    %c0_38 = arith.constant 0 : index
    %64 = vector.load %arg7[%c2_36, %c0_37, %c0_38] : memref<3x320x320xbf16, #tpu.memory_space<vmem>>, vector<1x320x320xbf16>
    %65 = vector.shape_cast %64 : vector<1x320x320xbf16> to vector<320x320xbf16>
    %cst_39 = arith.constant dense<0.000000e+00> : vector<320x128xf32>
    %66 = tpu.matmul %65, %48, %cst_39 {dimension_numbers = #tpu.dot_dimension_numbers<[1], [0], [0], [1], [0, 0, 1, 1], [], []>} : vector<320x320xbf16>, vector<320x128xbf16>, vector<320x128xf32> -> vector<320x128xf32>
    %67 = arith.truncf %66 : vector<320x128xf32> to vector<320x128xbf16>
    %c2_40 = arith.constant 2 : index
    %c0_41 = arith.constant 0 : index
    %c0_42 = arith.constant 0 : index
    %68 = vector.load %arg8[%c2_40, %c0_41, %c0_42] : memref<3x128x256xbf16, #tpu.memory_space<vmem>>, vector<1x128x256xbf16>
    %69 = vector.shape_cast %68 : vector<1x128x256xbf16> to vector<128x256xbf16>
    %cst_43 = arith.constant dense<0.000000e+00> : vector<320x256xf32>
    %70 = tpu.matmul %67, %69, %cst_43 {dimension_numbers = #tpu.dot_dimension_numbers<[1], [0], [0], [1], [0, 0, 1, 1], [], []>} : vector<320x128xbf16>, vector<128x256xbf16>, vector<320x256xf32> -> vector<320x256xf32>
    %71 = arith.addf %63, %70 : vector<320x256xf32>
    %c0_44 = arith.constant 0 : index
    %c0_45 = arith.constant 0 : index
    %72 = vector.load %arg9[%c0_44, %c0_45] : memref<1x256xf32, #tpu.memory_space<vmem>>, vector<1x256xf32>
    %73 = vector.broadcast %72 : vector<1x256xf32> to vector<320x256xf32>
    %74 = arith.addf %71, %73 : vector<320x256xf32>
    %cst_46 = arith.constant 0.000000e+00 : f32
    %75 = vector.broadcast %cst_46 : f32 to vector<320x256xf32>
    %76 = arith.maximumf %74, %75 : vector<320x256xf32>
    %77 = vector.extract_strided_slice %76 {offsets = [0, 0], sizes = [256, 256], strides = [1, 1]} : vector<320x256xf32> to vector<256x256xf32>
    %78 = arith.truncf %77 : vector<256x256xf32> to vector<256x256xbf16>
    %c0_47 = arith.constant 0 : index
    %c0_48 = arith.constant 0 : index
    %c0_49 = arith.constant 0 : index
    %79 = vector.load %arg10[%c0_47, %c0_48, %c0_49] : memref<3x256x128xbf16, #tpu.memory_space<vmem>>, vector<1x256x128xbf16>
    %80 = vector.shape_cast %79 : vector<1x256x128xbf16> to vector<256x128xbf16>
    %cst_50 = arith.constant dense<0.000000e+00> : vector<256x128xf32>
    %81 = tpu.matmul %78, %80, %cst_50 {dimension_numbers = #tpu.dot_dimension_numbers<[1], [0], [0], [1], [0, 0, 1, 1], [], []>} : vector<256x256xbf16>, vector<256x128xbf16>, vector<256x128xf32> -> vector<256x128xf32>
    %82 = vector.extract_strided_slice %76 {offsets = [32, 0], sizes = [256, 256], strides = [1, 1]} : vector<320x256xf32> to vector<256x256xf32>
    %83 = arith.truncf %82 : vector<256x256xf32> to vector<256x256xbf16>
    %c1_51 = arith.constant 1 : index
    %c0_52 = arith.constant 0 : index
    %c0_53 = arith.constant 0 : index
    %84 = vector.load %arg10[%c1_51, %c0_52, %c0_53] : memref<3x256x128xbf16, #tpu.memory_space<vmem>>, vector<1x256x128xbf16>
    %85 = vector.shape_cast %84 : vector<1x256x128xbf16> to vector<256x128xbf16>
    %cst_54 = arith.constant dense<0.000000e+00> : vector<256x128xf32>
    %86 = tpu.matmul %83, %85, %cst_54 {dimension_numbers = #tpu.dot_dimension_numbers<[1], [0], [0], [1], [0, 0, 1, 1], [], []>} : vector<256x256xbf16>, vector<256x128xbf16>, vector<256x128xf32> -> vector<256x128xf32>
    %87 = arith.addf %81, %86 : vector<256x128xf32>
    %88 = vector.extract_strided_slice %76 {offsets = [64, 0], sizes = [256, 256], strides = [1, 1]} : vector<320x256xf32> to vector<256x256xf32>
    %89 = arith.truncf %88 : vector<256x256xf32> to vector<256x256xbf16>
    %c2_55 = arith.constant 2 : index
    %c0_56 = arith.constant 0 : index
    %c0_57 = arith.constant 0 : index
    %90 = vector.load %arg10[%c2_55, %c0_56, %c0_57] : memref<3x256x128xbf16, #tpu.memory_space<vmem>>, vector<1x256x128xbf16>
    %91 = vector.shape_cast %90 : vector<1x256x128xbf16> to vector<256x128xbf16>
    %cst_58 = arith.constant dense<0.000000e+00> : vector<256x128xf32>
    %92 = tpu.matmul %89, %91, %cst_58 {dimension_numbers = #tpu.dot_dimension_numbers<[1], [0], [0], [1], [0, 0, 1, 1], [], []>} : vector<256x256xbf16>, vector<256x128xbf16>, vector<256x128xf32> -> vector<256x128xf32>
    %93 = arith.addf %87, %92 : vector<256x128xf32>
    %c0_59 = arith.constant 0 : index
    %c0_60 = arith.constant 0 : index
    %94 = vector.load %arg11[%c0_59, %c0_60] : memref<1x128xf32, #tpu.memory_space<vmem>>, vector<1x128xf32>
    %95 = vector.broadcast %94 : vector<1x128xf32> to vector<256x128xf32>
    %96 = arith.addf %93, %95 : vector<256x128xf32>
    %cst_61 = arith.constant 0.000000e+00 : f32
    %97 = vector.broadcast %cst_61 : f32 to vector<256x128xf32>
    %98 = arith.maximumf %96, %97 : vector<256x128xf32>
    %99 = arith.truncf %98 : vector<256x128xf32> to vector<256x128xbf16>
    %c0_62 = arith.constant 0 : index
    %c0_63 = arith.constant 0 : index
    %c0_64 = arith.constant 0 : index
    %100 = vector.load %arg12[%c0_62, %c0_63, %c0_64] : memref<3x256x256xbf16, #tpu.memory_space<vmem>>, vector<1x256x256xbf16>
    %101 = vector.shape_cast %100 : vector<1x256x256xbf16> to vector<256x256xbf16>
    %cst_65 = arith.constant dense<0.000000e+00> : vector<256x128xf32>
    %102 = tpu.matmul %101, %99, %cst_65 {dimension_numbers = #tpu.dot_dimension_numbers<[1], [0], [0], [1], [0, 0, 1, 1], [], []>} : vector<256x256xbf16>, vector<256x128xbf16>, vector<256x128xf32> -> vector<256x128xf32>
    %103 = arith.truncf %102 : vector<256x128xf32> to vector<256x128xbf16>
    %c0_66 = arith.constant 0 : index
    %c0_67 = arith.constant 0 : index
    %c0_68 = arith.constant 0 : index
    %104 = vector.load %arg13[%c0_66, %c0_67, %c0_68] : memref<3x128x32xbf16, #tpu.memory_space<vmem>>, vector<1x128x32xbf16>
    %105 = vector.shape_cast %104 : vector<1x128x32xbf16> to vector<128x32xbf16>
    %cst_69 = arith.constant dense<0.000000e+00> : vector<256x32xf32>
    %106 = tpu.matmul %103, %105, %cst_69 {dimension_numbers = #tpu.dot_dimension_numbers<[1], [0], [0], [1], [0, 0, 1, 1], [], []>} : vector<256x128xbf16>, vector<128x32xbf16>, vector<256x32xf32> -> vector<256x32xf32>
    %c1_70 = arith.constant 1 : index
    %c0_71 = arith.constant 0 : index
    %c0_72 = arith.constant 0 : index
    %107 = vector.load %arg12[%c1_70, %c0_71, %c0_72] : memref<3x256x256xbf16, #tpu.memory_space<vmem>>, vector<1x256x256xbf16>
    %108 = vector.shape_cast %107 : vector<1x256x256xbf16> to vector<256x256xbf16>
    %cst_73 = arith.constant dense<0.000000e+00> : vector<256x128xf32>
    %109 = tpu.matmul %108, %99, %cst_73 {dimension_numbers = #tpu.dot_dimension_numbers<[1], [0], [0], [1], [0, 0, 1, 1], [], []>} : vector<256x256xbf16>, vector<256x128xbf16>, vector<256x128xf32> -> vector<256x128xf32>
    %110 = arith.truncf %109 : vector<256x128xf32> to vector<256x128xbf16>
    %c1_74 = arith.constant 1 : index
    %c0_75 = arith.constant 0 : index
    %c0_76 = arith.constant 0 : index
    %111 = vector.load %arg13[%c1_74, %c0_75, %c0_76] : memref<3x128x32xbf16, #tpu.memory_space<vmem>>, vector<1x128x32xbf16>
    %112 = vector.shape_cast %111 : vector<1x128x32xbf16> to vector<128x32xbf16>
    %cst_77 = arith.constant dense<0.000000e+00> : vector<256x32xf32>
    %113 = tpu.matmul %110, %112, %cst_77 {dimension_numbers = #tpu.dot_dimension_numbers<[1], [0], [0], [1], [0, 0, 1, 1], [], []>} : vector<256x128xbf16>, vector<128x32xbf16>, vector<256x32xf32> -> vector<256x32xf32>
    %114 = arith.addf %106, %113 : vector<256x32xf32>
    %c2_78 = arith.constant 2 : index
    %c0_79 = arith.constant 0 : index
    %c0_80 = arith.constant 0 : index
    %115 = vector.load %arg12[%c2_78, %c0_79, %c0_80] : memref<3x256x256xbf16, #tpu.memory_space<vmem>>, vector<1x256x256xbf16>
    %116 = vector.shape_cast %115 : vector<1x256x256xbf16> to vector<256x256xbf16>
    %cst_81 = arith.constant dense<0.000000e+00> : vector<256x128xf32>
    %117 = tpu.matmul %116, %99, %cst_81 {dimension_numbers = #tpu.dot_dimension_numbers<[1], [0], [0], [1], [0, 0, 1, 1], [], []>} : vector<256x256xbf16>, vector<256x128xbf16>, vector<256x128xf32> -> vector<256x128xf32>
    %118 = arith.truncf %117 : vector<256x128xf32> to vector<256x128xbf16>
    %c2_82 = arith.constant 2 : index
    %c0_83 = arith.constant 0 : index
    %c0_84 = arith.constant 0 : index
    %119 = vector.load %arg13[%c2_82, %c0_83, %c0_84] : memref<3x128x32xbf16, #tpu.memory_space<vmem>>, vector<1x128x32xbf16>
    %120 = vector.shape_cast %119 : vector<1x128x32xbf16> to vector<128x32xbf16>
    %cst_85 = arith.constant dense<0.000000e+00> : vector<256x32xf32>
    %121 = tpu.matmul %118, %120, %cst_85 {dimension_numbers = #tpu.dot_dimension_numbers<[1], [0], [0], [1], [0, 0, 1, 1], [], []>} : vector<256x128xbf16>, vector<128x32xbf16>, vector<256x32xf32> -> vector<256x32xf32>
    %122 = arith.addf %114, %121 : vector<256x32xf32>
    %c0_86 = arith.constant 0 : index
    %c0_87 = arith.constant 0 : index
    %123 = vector.load %arg14[%c0_86, %c0_87] : memref<1x32xf32, #tpu.memory_space<vmem>>, vector<1x32xf32>
    %124 = vector.broadcast %123 : vector<1x32xf32> to vector<256x32xf32>
    %125 = arith.addf %122, %124 : vector<256x32xf32>
    %cst_88 = arith.constant 0.000000e+00 : f32
    %126 = vector.broadcast %cst_88 : f32 to vector<256x32xf32>
    %127 = arith.maximumf %125, %126 : vector<256x32xf32>
    %c0_89 = arith.constant 0 : index
    %c0_90 = arith.constant 0 : index
    %c0_91 = arith.constant 0 : index
    %128 = vector.load %arg3[%c0_89, %c0_90, %c0_91] : memref<1x32x4xf32, #tpu.memory_space<vmem>>, vector<1x32x4xf32>
    %129 = vector.shape_cast %128 : vector<1x32x4xf32> to vector<32x4xf32>
    %130 = arith.truncf %129 : vector<32x4xf32> to vector<32x4xbf16>
    %c0_92 = arith.constant 0 : index
    %c0_93 = arith.constant 0 : index
    %131 = vector.load %arg15[%c0_92, %c0_93] : memref<4x16xbf16, #tpu.memory_space<vmem>>, vector<4x16xbf16>
    %cst_94 = arith.constant dense<0.000000e+00> : vector<32x16xf32>
    %132 = tpu.matmul %130, %131, %cst_94 {dimension_numbers = #tpu.dot_dimension_numbers<[1], [0], [0], [1], [0, 0, 1, 1], [], []>} : vector<32x4xbf16>, vector<4x16xbf16>, vector<32x16xf32> -> vector<32x16xf32>
    %c0_95 = arith.constant 0 : index
    %c0_96 = arith.constant 0 : index
    %133 = vector.load %arg16[%c0_95, %c0_96] : memref<1x16xf32, #tpu.memory_space<vmem>>, vector<1x16xf32>
    %134 = vector.broadcast %133 : vector<1x16xf32> to vector<32x16xf32>
    %135 = arith.addf %132, %134 : vector<32x16xf32>
    %cst_97 = arith.constant 0.000000e+00 : f32
    %136 = vector.broadcast %cst_97 : f32 to vector<32x16xf32>
    %137 = arith.maximumf %135, %136 : vector<32x16xf32>
    %c0_98 = arith.constant 0 : index
    %c0_99 = arith.constant 0 : index
    %138 = vector.load %arg17[%c0_98, %c0_99] : memref<256x32xf32, #tpu.memory_space<vmem>>, vector<256x32xf32>
    %139 = arith.mulf %127, %138 : vector<256x32xf32>
    %140 = vector.extract_strided_slice %139 {offsets = [0, 0], sizes = [32, 32], strides = [1, 1]} : vector<256x32xf32> to vector<32x32xf32>
    %141 = vector.extract_strided_slice %139 {offsets = [32, 0], sizes = [32, 32], strides = [1, 1]} : vector<256x32xf32> to vector<32x32xf32>
    %142 = arith.addf %140, %141 : vector<32x32xf32>
    %143 = vector.extract_strided_slice %139 {offsets = [64, 0], sizes = [32, 32], strides = [1, 1]} : vector<256x32xf32> to vector<32x32xf32>
    %144 = arith.addf %142, %143 : vector<32x32xf32>
    %145 = vector.extract_strided_slice %139 {offsets = [96, 0], sizes = [32, 32], strides = [1, 1]} : vector<256x32xf32> to vector<32x32xf32>
    %146 = arith.addf %144, %145 : vector<32x32xf32>
    %147 = vector.extract_strided_slice %139 {offsets = [128, 0], sizes = [32, 32], strides = [1, 1]} : vector<256x32xf32> to vector<32x32xf32>
    %148 = arith.addf %146, %147 : vector<32x32xf32>
    %149 = vector.extract_strided_slice %139 {offsets = [160, 0], sizes = [32, 32], strides = [1, 1]} : vector<256x32xf32> to vector<32x32xf32>
    %150 = arith.addf %148, %149 : vector<32x32xf32>
    %151 = vector.extract_strided_slice %139 {offsets = [192, 0], sizes = [32, 32], strides = [1, 1]} : vector<256x32xf32> to vector<32x32xf32>
    %152 = arith.addf %150, %151 : vector<32x32xf32>
    %153 = vector.extract_strided_slice %139 {offsets = [224, 0], sizes = [32, 32], strides = [1, 1]} : vector<256x32xf32> to vector<32x32xf32>
    %154 = arith.addf %152, %153 : vector<32x32xf32>
    %cst_100 = arith.constant dense<0.000000e+00> : vector<32xf32>
    %155 = vector.multi_reduction <add>, %154, %cst_100 [1] : vector<32x32xf32> to vector<32xf32>
    %156 = vector.shape_cast %155 : vector<32xf32> to vector<32x1xf32>
    %c0_101 = arith.constant 0 : index
    %c0_102 = arith.constant 0 : index
    %157 = vector.load %arg18[%c0_101, %c0_102] : memref<1x16xf32, #tpu.memory_space<vmem>>, vector<1x16xf32>
    %158 = vector.broadcast %157 : vector<1x16xf32> to vector<32x16xf32>
    %159 = arith.mulf %137, %158 : vector<32x16xf32>
    %cst_103 = arith.constant dense<0.000000e+00> : vector<32xf32>
    %160 = vector.multi_reduction <add>, %159, %cst_103 [1] : vector<32x16xf32> to vector<32xf32>
    %161 = vector.shape_cast %160 : vector<32xf32> to vector<32x1xf32>
    %162 = arith.addf %156, %161 : vector<32x1xf32>
    %c0_104 = arith.constant 0 : index
    %c0_105 = arith.constant 0 : index
    %163 = vector.load %arg19[%c0_104, %c0_105] : memref<1x1xf32, #tpu.memory_space<vmem>>, vector<1x1xf32>
    %164 = vector.broadcast %163 : vector<1x1xf32> to vector<32x1xf32>
    %165 = arith.addf %162, %164 : vector<32x1xf32>
    %c0_106 = arith.constant 0 : index
    %c0_107 = arith.constant 0 : index
    %c0_108 = arith.constant 0 : index
    %166 = vector.load %arg20[%c0_106, %c0_107, %c0_108] : memref<1x32x1xf32, #tpu.memory_space<vmem>>, vector<1x32x1xf32>
    %167 = vector.shape_cast %166 : vector<1x32x1xf32> to vector<32x1xf32>
    %168 = vector.shape_cast %165 : vector<32x1xf32> to vector<1x32x1xf32>
    tpu.vector_store %arg20[%c0_106, %c0_107, %c0_108], %168 {strides = array<i32>} : memref<1x32x1xf32, #tpu.memory_space<vmem>>, vector<1x32x1xf32>,
    return
  }
  func.func @transform_0(%arg0: i32) -> (i32, i32, i32) {
    %c0_i32 = arith.constant 0 : i32
    %c0_i32_0 = arith.constant 0 : i32
    %c0_i32_1 = arith.constant 0 : i32
    return %arg0, %c0_i32, %c0_i32_0 : i32, i32, i32
  }
  func.func @transform_1(%arg0: i32) -> (i32, i32, i32) {
    %c0_i32 = arith.constant 0 : i32
    %c0_i32_0 = arith.constant 0 : i32
    %c0_i32_1 = arith.constant 0 : i32
    return %arg0, %c0_i32, %c0_i32_0 : i32, i32, i32
  }
  func.func @transform_2(%arg0: i32) -> (i32, i32, i32) {
    %c0_i32 = arith.constant 0 : i32
    %c0_i32_0 = arith.constant 0 : i32
    %c0_i32_1 = arith.constant 0 : i32
    return %arg0, %c0_i32, %c0_i32_0 : i32, i32, i32
  }
  func.func @transform_3(%arg0: i32) -> (i32, i32) {
    %c0_i32 = arith.constant 0 : i32
    %c0_i32_0 = arith.constant 0 : i32
    %c0_i32_1 = arith.constant 0 : i32
    return %c0_i32, %c0_i32_0 : i32, i32
  }
  func.func @transform_4(%arg0: i32) -> (i32, i32, i32) {
    %c0_i32 = arith.constant 0 : i32
    %c0_i32_0 = arith.constant 0 : i32
    %c0_i32_1 = arith.constant 0 : i32
    %c0_i32_2 = arith.constant 0 : i32
    return %c0_i32, %c0_i32_0, %c0_i32_1 : i32, i32, i32
  }
  func.func @transform_5(%arg0: i32) -> (i32, i32) {
    %c0_i32 = arith.constant 0 : i32
    %c0_i32_0 = arith.constant 0 : i32
    %c0_i32_1 = arith.constant 0 : i32
    return %c0_i32, %c0_i32_0 : i32, i32
  }
  func.func @transform_6(%arg0: i32) -> (i32, i32, i32) {
    %c0_i32 = arith.constant 0 : i32
    %c0_i32_0 = arith.constant 0 : i32
    %c0_i32_1 = arith.constant 0 : i32
    %c0_i32_2 = arith.constant 0 : i32
    return %c0_i32, %c0_i32_0, %c0_i32_1 : i32, i32, i32
  }
  func.func @transform_7(%arg0: i32) -> (i32, i32, i32) {
    %c0_i32 = arith.constant 0 : i32
    %c0_i32_0 = arith.constant 0 : i32
    %c0_i32_1 = arith.constant 0 : i32
    %c0_i32_2 = arith.constant 0 : i32
    return %c0_i32, %c0_i32_0, %c0_i32_1 : i32, i32, i32
  }
  func.func @transform_8(%arg0: i32) -> (i32, i32) {
    %c0_i32 = arith.constant 0 : i32
    %c0_i32_0 = arith.constant 0 : i32
    %c0_i32_1 = arith.constant 0 : i32
    return %c0_i32, %c0_i32_0 : i32, i32
  }
  func.func @transform_9(%arg0: i32) -> (i32, i32, i32) {
    %c0_i32 = arith.constant 0 : i32
    %c0_i32_0 = arith.constant 0 : i32
    %c0_i32_1 = arith.constant 0 : i32
    %c0_i32_2 = arith.constant 0 : i32
    return %c0_i32, %c0_i32_0, %c0_i32_1 : i32, i32, i32
  }
  func.func @transform_10(%arg0: i32) -> (i32, i32) {
    %c0_i32 = arith.constant 0 : i32
    %c0_i32_0 = arith.constant 0 : i32
    %c0_i32_1 = arith.constant 0 : i32
    return %c0_i32, %c0_i32_0 : i32, i32
  }
  func.func @transform_11(%arg0: i32) -> (i32, i32, i32) {
    %c0_i32 = arith.constant 0 : i32
    %c0_i32_0 = arith.constant 0 : i32
    %c0_i32_1 = arith.constant 0 : i32
    %c0_i32_2 = arith.constant 0 : i32
    return %c0_i32, %c0_i32_0, %c0_i32_1 : i32, i32, i32
  }
  func.func @transform_12(%arg0: i32) -> (i32, i32, i32) {
    %c0_i32 = arith.constant 0 : i32
    %c0_i32_0 = arith.constant 0 : i32
    %c0_i32_1 = arith.constant 0 : i32
    %c0_i32_2 = arith.constant 0 : i32
    return %c0_i32, %c0_i32_0, %c0_i32_1 : i32, i32, i32
  }
  func.func @transform_13(%arg0: i32) -> (i32, i32) {
    %c0_i32 = arith.constant 0 : i32
    %c0_i32_0 = arith.constant 0 : i32
    %c0_i32_1 = arith.constant 0 : i32
    return %c0_i32, %c0_i32_0 : i32, i32
  }
  func.func @transform_14(%arg0: i32) -> (i32, i32) {
    %c0_i32 = arith.constant 0 : i32
    %c0_i32_0 = arith.constant 0 : i32
    %c0_i32_1 = arith.constant 0 : i32
    return %c0_i32, %c0_i32_0 : i32, i32
  }
  func.func @transform_15(%arg0: i32) -> (i32, i32) {
    %c0_i32 = arith.constant 0 : i32
    %c0_i32_0 = arith.constant 0 : i32
    %c0_i32_1 = arith.constant 0 : i32
    return %c0_i32, %c0_i32_0 : i32, i32
  }
  func.func @transform_16(%arg0: i32) -> (i32, i32) {
    %c0_i32 = arith.constant 0 : i32
    %c0_i32_0 = arith.constant 0 : i32
    %c0_i32_1 = arith.constant 0 : i32
    return %c0_i32, %c0_i32_0 : i32, i32
  }
  func.func @transform_17(%arg0: i32) -> (i32, i32) {
    %c0_i32 = arith.constant 0 : i32
    %c0_i32_0 = arith.constant 0 : i32
    %c0_i32_1 = arith.constant 0 : i32
    return %c0_i32, %c0_i32_0 : i32, i32
  }
  func.func @transform_18(%arg0: i32) -> (i32, i32) {
    %c0_i32 = arith.constant 0 : i32
    %c0_i32_0 = arith.constant 0 : i32
    %c0_i32_1 = arith.constant 0 : i32
    return %c0_i32, %c0_i32_0 : i32, i32
  }
  func.func @transform_19(%arg0: i32) -> (i32, i32, i32) {
    %c0_i32 = arith.constant 0 : i32
    %c0_i32_0 = arith.constant 0 : i32
    %c0_i32_1 = arith.constant 0 : i32
    return %arg0, %c0_i32, %c0_i32_0 : i32, i32, i32
  }
}

</mosaic_0001>

<bundles_post_ra>
// kernel: squeeze.3
= control target key start
LH: loop header
LB: loop body
LE: loop exit
PB: predicated region body
PF: predicated region fallthrough
CT: control target
= control target key end

     0   :  { %vm3_vm0 = vcmask 97280   ;;  %s649_s12 = smov 116   ;;  %s908_s0 = inlined_call_operand.vmem [shape: f32[8,1,24,8], index: 0, kind: input, shape index: {}]   ;;  %s909_s1 = inlined_call_operand.vmem [shape: f32[2,4,2,12,8], index: 1, kind: output, shape index: {}]  }
   0x1   :  { %v579_v0 = vld [vmem:[%s908_s0 + $0x10] sm:$0xff]   ;;  %v55_v1 = vld [vmem:[%s908_s0] sm:$0xff]   ;;  %v580_v2 = vld [vmem:[%s908_s0 + $0x18] sm:$0xff]  }
   0x2   :  { %74 = vrot.lane.b32.xlu1 %v579_v0, %s649_s12  ;;  %56 = vrot.lane.b32.xlu0 %v55_v1, %s649_s12  ;;  %v578_v3 = vld [vmem:[%s908_s0 + $0x8] sm:$0xff]   ;;  %17 = vst.msk [vmem:[#allocation0 + $0x80] ss:$8 sm:$0xf] %vm3_vm0, %v579_v0   ;;  %v581_v5 = vld [vmem:[%s908_s0 + $0x20] sm:$0xff]  }
   0x3   :  { %v582_v4 = vld [vmem:[%s908_s0 + $0x28] sm:$0xff]   ;;  %19 = vst.msk [vmem:[#allocation0 + $0x80] ss:$8 sm:$0xf0] %vm3_vm0, %v579_v0   ;;  %v584_v6 = vld [vmem:[%s908_s0 + $0x38] sm:$0xff]   ;;  %v583_v7 = vld [vmem:[%s908_s0 + $0x30] sm:$0xff]  }
   0x4   :  { %4 = vst.msk [vmem:[#allocation0] ss:$8 sm:$0xf] %vm3_vm0, %v55_v1   ;;  %5 = vst.msk [vmem:[#allocation0] ss:$8 sm:$0xf0] %vm3_vm0, %v55_v1  }
   0x5   :  { %24 = vst.msk [vmem:[#allocation0 + $0xc0] ss:$8 sm:$0xf] %vm3_vm0, %v580_v2   ;;  %26 = vst.msk [vmem:[#allocation0 + $0xc0] ss:$8 sm:$0xf0] %vm3_vm0, %v580_v2  }
   0x6   :  { %10 = vst.msk [vmem:[#allocation0 + $0x40] ss:$8 sm:$0xf] %vm3_vm0, %v578_v3   ;;  %12 = vst.msk [vmem:[#allocation0 + $0x40] ss:$8 sm:$0xf0] %vm3_vm0, %v578_v3   ;;  %83 = vrot.lane.b32.xlu1 %v580_v2, %s649_s12  ;;  %65 = vrot.lane.b32.xlu0 %v578_v3, %s649_s12 }
   0x7   :  { %38 = vst.msk [vmem:[#allocation0 + $0x140] ss:$8 sm:$0xf] %vm3_vm0, %v582_v4   ;;  %40 = vst.msk [vmem:[#allocation0 + $0x140] ss:$8 sm:$0xf0] %vm3_vm0, %v582_v4  }
   0x8   :  { %31 = vst.msk [vmem:[#allocation0 + $0x100] ss:$8 sm:$0xf] %vm3_vm0, %v581_v5   ;;  %33 = vst.msk [vmem:[#allocation0 + $0x100] ss:$8 sm:$0xf0] %vm3_vm0, %v581_v5  }
   0x9   :  { %52 = vst.msk [vmem:[#allocation0 + $0x1c0] ss:$8 sm:$0xf] %vm3_vm0, %v584_v6   ;;  %54 = vst.msk [vmem:[#allocation0 + $0x1c0] ss:$8 sm:$0xf0] %vm3_vm0, %v584_v6  }
   0xa   :  { %45 = vst.msk [vmem:[#allocation0 + $0x180] ss:$8 sm:$0xf] %vm3_vm0, %v583_v7   ;;  %47 = vst.msk [vmem:[#allocation0 + $0x180] ss:$8 sm:$0xf0] %vm3_vm0, %v583_v7   ;;  %101 = vrot.lane.b32.xlu1 %v582_v4, %s649_s12  ;;  %92 = vrot.lane.b32.xlu0 %v581_v5, %s649_s12 }
   0xe   :  { %119 = vrot.lane.b32.xlu1 %v584_v6, %s649_s12  ;;  %110 = vrot.lane.b32.xlu0 %v583_v7, %s649_s12 }
  0x74   :  { %v75_v8 = vpop.permute.xlu1 %74   ;;  %v57_v9 = vpop.permute.xlu0 %56  }
  0x75   :  { %78 = vst.msk [vmem:[#allocation0 + $0x81] ss:$8 sm:$0xf] %vm3_vm0, %v75_v8   ;;  %80 = vst.msk [vmem:[#allocation0 + $0x81] ss:$8 sm:$0xf0] %vm3_vm0, %v75_v8  }
  0x76   :  { %60 = vst.msk [vmem:[#allocation0 + $0x1] ss:$8 sm:$0xf] %vm3_vm0, %v57_v9   ;;  %62 = vst.msk [vmem:[#allocation0 + $0x1] ss:$8 sm:$0xf0] %vm3_vm0, %v57_v9  }
  0x78   :  { %v84_v10 = vpop.permute.xlu1 %83   ;;  %v66_v11 = vpop.permute.xlu0 %65  }
  0x79   :  { %87 = vst.msk [vmem:[#allocation0 + $0xc1] ss:$8 sm:$0xf] %vm3_vm0, %v84_v10   ;;  %89 = vst.msk [vmem:[#allocation0 + $0xc1] ss:$8 sm:$0xf0] %vm3_vm0, %v84_v10  }
  0x7a   :  { %69 = vst.msk [vmem:[#allocation0 + $0x41] ss:$8 sm:$0xf] %vm3_vm0, %v66_v11   ;;  %71 = vst.msk [vmem:[#allocation0 + $0x41] ss:$8 sm:$0xf0] %vm3_vm0, %v66_v11  }
  0x7c   :  { %v222_v12 = vld [vmem:[#allocation0 + $0x80] sm:$0x3]  ;;  %v228_v13 = vld [vmem:[#allocation0 + $0x88] sm:$0x3]  ;;  %v234_v14 = vld [vmem:[#allocation0 + $0x90] sm:$0x3]  ;;  %v102_v15 = vpop.permute.xlu1 %101   ;;  %v93_v16 = vpop.permute.xlu0 %92  }
  0x7d   :  { %600 = vst [vmem:[%s909_s1 + $0x20] sm:$0x3] %v222_v12  ;;  %601 = vst [vmem:[%s909_s1 + $0x22] sm:$0x3] %v228_v13  ;;  %v240_v17 = vld [vmem:[#allocation0 + $0x98] sm:$0x3] }
  0x7e   :  { %602 = vst [vmem:[%s909_s1 + $0x24] sm:$0x3] %v234_v14  ;;  %v246_v18 = vld [vmem:[#allocation0 + $0xa0] sm:$0x3]  ;;  %v252_v19 = vld [vmem:[#allocation0 + $0xa8] sm:$0x3] }
  0x7f   :  { %105 = vst.msk [vmem:[#allocation0 + $0x141] ss:$8 sm:$0xf] %vm3_vm0, %v102_v15   ;;  %107 = vst.msk [vmem:[#allocation0 + $0x141] ss:$8 sm:$0xf0] %vm3_vm0, %v102_v15  }
  0x80   :  { %96 = vst.msk [vmem:[#allocation0 + $0x101] ss:$8 sm:$0xf] %vm3_vm0, %v93_v16   ;;  %98 = vst.msk [vmem:[#allocation0 + $0x101] ss:$8 sm:$0xf0] %vm3_vm0, %v93_v16   ;;  %v120_v29 = vpop.permute.xlu1 %119   ;;  %v111_v30 = vpop.permute.xlu0 %110  }
  0x81   :  { %603 = vst [vmem:[%s909_s1 + $0x26] sm:$0x3] %v240_v17  ;;  %604 = vst [vmem:[%s909_s1 + $0x28] sm:$0x3] %v246_v18  ;;  %v258_v20 = vld [vmem:[#allocation0 + $0xb0] sm:$0x3] }
  0x82   :  { %605 = vst [vmem:[%s909_s1 + $0x2a] sm:$0x3] %v252_v19  ;;  %v264_v21 = vld [vmem:[#allocation0 + $0xb8] sm:$0x3]  ;;  %v129_v22 = vld [vmem:[#allocation0] sm:$0x3] }
  0x83   :  { %606 = vst [vmem:[%s909_s1 + $0x2c] sm:$0x3] %v258_v20  ;;  %607 = vst [vmem:[%s909_s1 + $0x2e] sm:$0x3] %v264_v21  ;;  %v133_v23 = vld [vmem:[#allocation0 + $0x8] sm:$0x3] }
  0x84   :  { %131 = vst [vmem:[%s909_s1] sm:$0x3] %v129_v22  ;;  %v138_v24 = vld [vmem:[#allocation0 + $0x10] sm:$0x3]  ;;  %v144_v25 = vld [vmem:[#allocation0 + $0x18] sm:$0x3] }
  0x85   :  { %585 = vst [vmem:[%s909_s1 + $0x2] sm:$0x3] %v133_v23  ;;  %586 = vst [vmem:[%s909_s1 + $0x4] sm:$0x3] %v138_v24  ;;  %v150_v26 = vld [vmem:[#allocation0 + $0x20] sm:$0x3] }
  0x86   :  { %587 = vst [vmem:[%s909_s1 + $0x6] sm:$0x3] %v144_v25  ;;  %v156_v27 = vld [vmem:[#allocation0 + $0x28] sm:$0x3]  ;;  %v162_v28 = vld [vmem:[#allocation0 + $0x30] sm:$0x3] }
  0x87   :  { %588 = vst [vmem:[%s909_s1 + $0x8] sm:$0x3] %v150_v26  ;;  %589 = vst [vmem:[%s909_s1 + $0xa] sm:$0x3] %v156_v27  ;;  %v168_v31 = vld [vmem:[#allocation0 + $0x38] sm:$0x3] }
  0x88   :  { %590 = vst [vmem:[%s909_s1 + $0xc] sm:$0x3] %v162_v28  ;;  %v270_v32 = vld [vmem:[#allocation0 + $0xc0] sm:$0x3]  ;;  %v276_v33 = vld [vmem:[#allocation0 + $0xc8] sm:$0x3] }
  0x89   :  { %123 = vst.msk [vmem:[#allocation0 + $0x1c1] ss:$8 sm:$0xf] %vm3_vm0, %v120_v29   ;;  %125 = vst.msk [vmem:[#allocation0 + $0x1c1] ss:$8 sm:$0xf0] %vm3_vm0, %v120_v29  }
  0x8a   :  { %114 = vst.msk [vmem:[#allocation0 + $0x181] ss:$8 sm:$0xf] %vm3_vm0, %v111_v30   ;;  %116 = vst.msk [vmem:[#allocation0 + $0x181] ss:$8 sm:$0xf0] %vm3_vm0, %v111_v30  }
  0x8b   :  { %591 = vst [vmem:[%s909_s1 + $0xe] sm:$0x3] %v168_v31  ;;  %608 = vst [vmem:[%s909_s1 + $0x30] sm:$0x3] %v270_v32  ;;  %v282_v34 = vld [vmem:[#allocation0 + $0xd0] sm:$0x3] }
  0x8c   :  { %609 = vst [vmem:[%s909_s1 + $0x32] sm:$0x3] %v276_v33  ;;  %v288_v35 = vld [vmem:[#allocation0 + $0xd8] sm:$0x3]  ;;  %v294_v36 = vld [vmem:[#allocation0 + $0xe0] sm:$0x3] }
  0x8d   :  { %610 = vst [vmem:[%s909_s1 + $0x34] sm:$0x3] %v282_v34  ;;  %611 = vst [vmem:[%s909_s1 + $0x36] sm:$0x3] %v288_v35  ;;  %v300_v37 = vld [vmem:[#allocation0 + $0xe8] sm:$0x3] }
  0x8e   :  { %612 = vst [vmem:[%s909_s1 + $0x38] sm:$0x3] %v294_v36  ;;  %v306_v38 = vld [vmem:[#allocation0 + $0xf0] sm:$0x3]  ;;  %v312_v39 = vld [vmem:[#allocation0 + $0xf8] sm:$0x3] }
  0x8f   :  { %613 = vst [vmem:[%s909_s1 + $0x3a] sm:$0x3] %v300_v37  ;;  %614 = vst [vmem:[%s909_s1 + $0x3c] sm:$0x3] %v306_v38  ;;  %v174_v40 = vld [vmem:[#allocation0 + $0x40] sm:$0x3] }
  0x90   :  { %615 = vst [vmem:[%s909_s1 + $0x3e] sm:$0x3] %v312_v39  ;;  %v180_v41 = vld [vmem:[#allocation0 + $0x48] sm:$0x3]  ;;  %v186_v42 = vld [vmem:[#allocation0 + $0x50] sm:$0x3] }
  0x91   :  { %592 = vst [vmem:[%s909_s1 + $0x10] sm:$0x3] %v174_v40  ;;  %593 = vst [vmem:[%s909_s1 + $0x12] sm:$0x3] %v180_v41  ;;  %v192_v43 = vld [vmem:[#allocation0 + $0x58] sm:$0x3] }
  0x92   :  { %594 = vst [vmem:[%s909_s1 + $0x14] sm:$0x3] %v186_v42  ;;  %v198_v44 = vld [vmem:[#allocation0 + $0x60] sm:$0x3]  ;;  %v204_v45 = vld [vmem:[#allocation0 + $0x68] sm:$0x3] }
  0x93   :  { %595 = vst [vmem:[%s909_s1 + $0x16] sm:$0x3] %v192_v43  ;;  %596 = vst [vmem:[%s909_s1 + $0x18] sm:$0x3] %v198_v44  ;;  %v210_v46 = vld [vmem:[#allocation0 + $0x70] sm:$0x3] }
  0x94   :  { %597 = vst [vmem:[%s909_s1 + $0x1a] sm:$0x3] %v204_v45  ;;  %v216_v47 = vld [vmem:[#allocation0 + $0x78] sm:$0x3]  ;;  %v366_v48 = vld [vmem:[#allocation0 + $0x140] sm:$0x3] }
  0x95   :  { %598 = vst [vmem:[%s909_s1 + $0x1c] sm:$0x3] %v210_v46  ;;  %599 = vst [vmem:[%s909_s1 + $0x1e] sm:$0x3] %v216_v47  ;;  %v372_v49 = vld [vmem:[#allocation0 + $0x148] sm:$0x3] }
  0x96   :  { %624 = vst [vmem:[%s909_s1 + $0x50] sm:$0x3] %v366_v48  ;;  %v378_v50 = vld [vmem:[#allocation0 + $0x150] sm:$0x3]  ;;  %v384_v51 = vld [vmem:[#allocation0 + $0x158] sm:$0x3] }
  0x97   :  { %625 = vst [vmem:[%s909_s1 + $0x52] sm:$0x3] %v372_v49  ;;  %626 = vst [vmem:[%s909_s1 + $0x54] sm:$0x3] %v378_v50  ;;  %v390_v52 = vld [vmem:[#allocation0 + $0x160] sm:$0x3] }
  0x98   :  { %627 = vst [vmem:[%s909_s1 + $0x56] sm:$0x3] %v384_v51  ;;  %v396_v53 = vld [vmem:[#allocation0 + $0x168] sm:$0x3]  ;;  %v402_v54 = vld [vmem:[#allocation0 + $0x170] sm:$0x3] }
  0x99   :  { %628 = vst [vmem:[%s909_s1 + $0x58] sm:$0x3] %v390_v52  ;;  %629 = vst [vmem:[%s909_s1 + $0x5a] sm:$0x3] %v396_v53  ;;  %v408_v55 = vld [vmem:[#allocation0 + $0x178] sm:$0x3] }
  0x9a   :  { %630 = vst [vmem:[%s909_s1 + $0x5c] sm:$0x3] %v402_v54  ;;  %v318_v56 = vld [vmem:[#allocation0 + $0x100] sm:$0x3]  ;;  %v324_v57 = vld [vmem:[#allocation0 + $0x108] sm:$0x3] }
  0x9b   :  { %631 = vst [vmem:[%s909_s1 + $0x5e] sm:$0x3] %v408_v55  ;;  %616 = vst [vmem:[%s909_s1 + $0x40] sm:$0x3] %v318_v56  ;;  %v330_v58 = vld [vmem:[#allocation0 + $0x110] sm:$0x3] }
  0x9c   :  { %617 = vst [vmem:[%s909_s1 + $0x42] sm:$0x3] %v324_v57  ;;  %v336_v59 = vld [vmem:[#allocation0 + $0x118] sm:$0x3]  ;;  %v342_v60 = vld [vmem:[#allocation0 + $0x120] sm:$0x3] }
  0x9d   :  { %618 = vst [vmem:[%s909_s1 + $0x44] sm:$0x3] %v330_v58  ;;  %619 = vst [vmem:[%s909_s1 + $0x46] sm:$0x3] %v336_v59  ;;  %v348_v61 = vld [vmem:[#allocation0 + $0x128] sm:$0x3] }
  0x9e   :  { %620 = vst [vmem:[%s909_s1 + $0x48] sm:$0x3] %v342_v60  ;;  %v354_v62 = vld [vmem:[#allocation0 + $0x130] sm:$0x3]  ;;  %v360_v63 = vld [vmem:[#allocation0 + $0x138] sm:$0x3] }
  0x9f   :  { %621 = vst [vmem:[%s909_s1 + $0x4a] sm:$0x3] %v348_v61  ;;  %622 = vst [vmem:[%s909_s1 + $0x4c] sm:$0x3] %v354_v62  ;;  %v462_v0 = vld [vmem:[#allocation0 + $0x1c0] sm:$0x3] }
  0xa0   :  { %623 = vst [vmem:[%s909_s1 + $0x4e] sm:$0x3] %v360_v63  ;;  %v468_v1 = vld [vmem:[#allocation0 + $0x1c8] sm:$0x3]  ;;  %v474_v2 = vld [vmem:[#allocation0 + $0x1d0] sm:$0x3] }
  0xa1   :  { %640 = vst [vmem:[%s909_s1 + $0x70] sm:$0x3] %v462_v0  ;;  %641 = vst [vmem:[%s909_s1 + $0x72] sm:$0x3] %v468_v1  ;;  %v480_v3 = vld [vmem:[#allocation0 + $0x1d8] sm:$0x3] }
  0xa2   :  { %642 = vst [vmem:[%s909_s1 + $0x74] sm:$0x3] %v474_v2  ;;  %v486_v4 = vld [vmem:[#allocation0 + $0x1e0] sm:$0x3]  ;;  %v492_v5 = vld [vmem:[#allocation0 + $0x1e8] sm:$0x3] }
  0xa3   :  { %643 = vst [vmem:[%s909_s1 + $0x76] sm:$0x3] %v480_v3  ;;  %644 = vst [vmem:[%s909_s1 + $0x78] sm:$0x3] %v486_v4  ;;  %v498_v6 = vld [vmem:[#allocation0 + $0x1f0] sm:$0x3] }
  0xa4   :  { %645 = vst [vmem:[%s909_s1 + $0x7a] sm:$0x3] %v492_v5  ;;  %v504_v7 = vld [vmem:[#allocation0 + $0x1f8] sm:$0x3]  ;;  %v414_v8 = vld [vmem:[#allocation0 + $0x180] sm:$0x3] }
  0xa5   :  { %646 = vst [vmem:[%s909_s1 + $0x7c] sm:$0x3] %v498_v6  ;;  %647 = vst [vmem:[%s909_s1 + $0x7e] sm:$0x3] %v504_v7  ;;  %v420_v9 = vld [vmem:[#allocation0 + $0x188] sm:$0x3] }
  0xa6   :  { %632 = vst [vmem:[%s909_s1 + $0x60] sm:$0x3] %v414_v8  ;;  %v426_v10 = vld [vmem:[#allocation0 + $0x190] sm:$0x3]  ;;  %v432_v11 = vld [vmem:[#allocation0 + $0x198] sm:$0x3] }
  0xa7   :  { %633 = vst [vmem:[%s909_s1 + $0x62] sm:$0x3] %v420_v9  ;;  %634 = vst [vmem:[%s909_s1 + $0x64] sm:$0x3] %v426_v10  ;;  %v438_v12 = vld [vmem:[#allocation0 + $0x1a0] sm:$0x3] }
  0xa8   :  { %635 = vst [vmem:[%s909_s1 + $0x66] sm:$0x3] %v432_v11  ;;  %v444_v13 = vld [vmem:[#allocation0 + $0x1a8] sm:$0x3]  ;;  %v450_v14 = vld [vmem:[#allocation0 + $0x1b0] sm:$0x3] }
  0xa9   :  { %636 = vst [vmem:[%s909_s1 + $0x68] sm:$0x3] %v438_v12  ;;  %637 = vst [vmem:[%s909_s1 + $0x6a] sm:$0x3] %v444_v13  ;;  %v456_v15 = vld [vmem:[#allocation0 + $0x1b8] sm:$0x3] }
  0xaa   :  { %638 = vst [vmem:[%s909_s1 + $0x6c] sm:$0x3] %v450_v14  ;;  %639 = vst [vmem:[%s909_s1 + $0x6e] sm:$0x3] %v456_v15 }

// kernel: _lambda_.1
= control target key start
LH: loop header
LB: loop body
LE: loop exit
PB: predicated region body
PF: predicated region fallthrough
CT: control target
= control target key end

     0   :  { %s13584_s20 = smov 0   ;;  %s17782_s0 = inlined_call_operand.vmem [shape: f32[2,320,6], index: 0, kind: input, shape index: {}]   ;;  %s17783_s1 = inlined_call_operand.vmem [shape: s32[2,384,3], index: 1, kind: input, shape index: {}]   ;;  %s17784_s2 = inlined_call_operand.vmem [shape: f32[2,32,4], index: 2, kind: input, shape index: {}]   ;;  %s17785_s3 = inlined_call_operand.vmem [shape: bf16[6,128], index: 3, kind: input, shape index: {}]   ;;  %s17786_s4 = inlined_call_operand.vmem [shape: bf16[3,128,128], index: 4, kind: input, shape index: {}]   ;;  %s17787_s5 = inlined_call_operand.vmem [shape: f32[1,128], index: 5, kind: input, shape index: {}]   ;;  %s17788_s6 = inlined_call_operand.vmem [shape: bf16[3,320,320], index: 6, kind: input, shape index: {}]   ;;  %s17789_s7 = inlined_call_operand.vmem [shape: bf16[3,128,256], index: 7, kind: input, shape index: {}]   ;;  %s17790_s8 = inlined_call_operand.vmem [shape: f32[1,256], index: 8, kind: input, shape index: {}]   ;;  %s17791_s9 = inlined_call_operand.vmem [shape: bf16[3,256,128], index: 9, kind: input, shape index: {}]   ;;  %s17792_s10 = inlined_call_operand.vmem [shape: f32[1,128], index: 10, kind: input, shape index: {}]   ;;  %s17793_s11 = inlined_call_operand.vmem [shape: bf16[3,256,256], index: 11, kind: input, shape index: {}]   ;;  %s17794_s12 = inlined_call_operand.vmem [shape: bf16[3,128,32], index: 12, kind: input, shape index: {}]   ;;  %s17795_s13 = inlined_call_operand.vmem [shape: f32[1,32], index: 13, kind: input, shape index: {}]   ;;  %s17796_s14 = inlined_call_operand.vmem [shape: bf16[4,16], index: 14, kind: input, shape index: {}]   ;;  %s17797_s15 = inlined_call_operand.vmem [shape: f32[1,16], index: 15, kind: input, shape index: {}]   ;;  %s17798_s16 = inlined_call_operand.vmem [shape: f32[256,32], index: 16, kind: input, shape index: {}]   ;;  %s17799_s17 = inlined_call_operand.vmem [shape: f32[1,16], index: 17, kind: input, shape index: {}]   ;;  %s17800_s18 = inlined_call_operand.<no memory space> [shape: f32[1,1], index: 18, kind: input, shape index: {}]   ;;  %s17801_s19 = inlined_call_operand.vmem [shape: f32[2,32,1], index: 19, kind: output, shape index: {}]  }
   0x1   :  { %17822 = sst [smem:[#allocation27_spill]] %s17782_s0  ;;  %v24_v0 = vstv %s17800_s18 }
   0x2   :  { %17823 = sst [smem:[#allocation28_spill]] %s17783_s1  ;;  %25 = vst [vmem:[#allocation2] sm:$0x1] %v24_v0 }
   0x3   :  { %17824 = sst [smem:[#allocation29_spill]] %s17784_s2 }
   0x4   :  { %17825 = sst [smem:[#allocation30_spill]] %s17785_s3 }
   0x5 LB: > { %s9964_s21 = sadd.s32 4294967295, %s13475_s20   ;;  %p9968_p0 = scmp.ge.s32.totalorder %s13475_s20, 1  ;;  %s13475_s20 = sphi %s13584_s20, %s31_s20  }
   0x6   : > { %p559_p1 = scmp.lt.s32.totalorder %s13475_s20, 3 }
   0x8   : > { %p560_p2 = pnand %p9968_p0, %p559_p1 }
   0xa   : > { %563 = sbr.rel (%p560_p2) target bundleno = 3229 (0xc9d), region = 96 }
  0x11   : > { %p625_p3 = scmp.lt.s32.totalorder %s9964_s21, 1  ;;  %v13477_v1 = vmov 1   ;;  %s17826_s2 = sld [smem:[#allocation28_spill]]  ;;  %v17803_v9 = vmov 0   ;;  %v13479_v12 = vmov 2   ;;  %v12908_v24 = vld [vmem:[%s17786_s4] sm:$0xff]  }
  0x12   : > { %12840 = vset.pattern.permute.xlu0 %v13477_v1  ;;  %12838 = vset.pattern.permute.xlu1 %v13477_v1  ;;  %v12909_v26 = vld [vmem:[%s17786_s4 + $0x8] sm:$0xff]   ;;  %v12910_v28 = vld [vmem:[%s17786_s4 + $0x10] sm:$0xff]   ;;  %v12911_v29 = vld [vmem:[%s17786_s4 + $0x18] sm:$0xff]   ;;  %s17827_s29 = sld [smem:[#allocation30_spill]]  ;;  %vm2055_vm0 = vcmask 1042432   ;;  %vm1994_vm1 = vcmask 48128  }
  0x13   : > { %s17934_s21 = smov (!%p625_p3, %s9964_s21), 1  ;;  %11939 = vmatprep.subr.bf16.mxu0 %v12908_v24  ;;  %v12912_v31 = vld [vmem:[%s17786_s4 + $0x20] sm:$0xff]   ;;  %v12913_v32 = vld [vmem:[%s17786_s4 + $0x28] sm:$0xff]   ;;  %v12914_v33 = vld [vmem:[%s17786_s4 + $0x30] sm:$0xff]  }
  0x14   : > { %s12825_s18 = smul.u32 384, %s17934_s21  ;;  %11940 = vmatpush3.bf16.msra.mxu0 %v12908_v24  ;;  %v12915_v34 = vld [vmem:[%s17786_s4 + $0x38] sm:$0xff]  }
  0x15   : > { %11941 = vmatprep.subr.bf16.mxu0 %v12909_v26  ;;  %s12824_s26 = smul.u32 320, %s17934_s21 }
  0x17   : > { %s13600_s23 = scalar_lea.vmem %s17826_s2, %s12825_s18  ;;  %s17828_s18 = sld [smem:[#allocation27_spill]] }
  0x18   : > { %v13603_v2 = vld [vmem:[%s13600_s23 + $0x10] sm:$0xff]  ;;  %v13606_v3 = vld [vmem:[%s13600_s23] sm:$0xff]  ;;  %v651_v4 = vld [vmem:[%s13600_s23 + $0x28] sm:$0xff]  ;;  %11942 = vmatpush3.bf16.msra.mxu0 %v12909_v26 }
  0x19   : > { %991 = vperm.xlu0 %12840, %v13603_v2   ;;  %985 = vperm.xlu1 %12838, %v13606_v3   ;;  %v13612_v5 = vld [vmem:[%s13600_s23 + $0x8] sm:$0xff]  ;;  %v652_v6 = vld [vmem:[%s13600_s23 + $0x30] sm:$0xff]  ;;  %v649_v7 = vld [vmem:[%s13600_s23 + $0x18] sm:$0xff] }
  0x1a   : > { %v13618_v8 = vld [vmem:[%s13600_s23 + $0x50] sm:$0xff]  ;;  %v13622_v10 = vld [vmem:[%s13600_s23 + $0x68] sm:$0xff]  ;;  %v13636_v13 = vld [vmem:[%s13600_s23 + $0x20] sm:$0xff]  ;;  %11943 = vmatprep.subr.bf16.mxu0 %v12910_v28 }
  0x1b   : > { %v13627_v11 = vld [vmem:[%s13600_s23 + $0x70] sm:$0xff]  ;;  %v653_v14 = vld [vmem:[%s13600_s23 + $0x38] sm:$0xff]  ;;  %v13643_v15 = vld [vmem:[%s13600_s23 + $0x48] sm:$0xff] }
  0x1c   : > { %v13647_v16 = vld [vmem:[%s13600_s23 + $0x60] sm:$0xff]  ;;  %v13652_v17 = vld [vmem:[%s13600_s23 + $0x78] sm:$0xff]  ;;  %v13657_v18 = vld [vmem:[%s13600_s23 + $0x88] sm:$0xff]  ;;  %11944 = vmatpush3.bf16.msra.mxu0 %v12910_v28  ;;  %v17802_v28 = vlaneseq }
  0x1d   : > { %1000 = vperm.xlu0 %12840, %v651_v4   ;;  %988 = vperm.xlu1 %12838, %v13612_v5   ;;  %v13661_v19 = vld [vmem:[%s13600_s23 + $0xa0] sm:$0xff]  ;;  %v669_v20 = vld [vmem:[%s13600_s23 + $0xb8] sm:$0xff]  ;;  %v13669_v21 = vld [vmem:[%s13600_s23 + $0xc8] sm:$0xff]  ;;  %s13825_s1 = scalar_lea.vmem %s17828_s18, %s12824_s26  ;;  %s11013_s26 = sshll.u32 %s17934_s21, 5 }
  0x1e   : > { %v13672_v22 = vld [vmem:[%s13600_s23 + $0xe0] sm:$0xff]  ;;  %v677_v25 = vld [vmem:[%s13600_s23 + $0xf8] sm:$0xff]  ;;  %v13686_v27 = vld [vmem:[%s13600_s23 + $0x108] sm:$0xff]  ;;  %11945 = vmatprep.subr.bf16.mxu0 %v12911_v29  ;;  %s644_s3 = scalar_lea.vmem %s17801_s19, %s11013_s26 }
  0x1f   : > { %v654_v23 = vld [vmem:[%s13600_s23 + $0x40] sm:$0xff]  ;;  %v657_v30 = vld [vmem:[%s13600_s23 + $0x58] sm:$0xff]  ;;  %v664_v35 = vld [vmem:[%s13600_s23 + $0x90] sm:$0xff] }
  0x20   : > { %11946 = vmatpush3.bf16.msra.mxu0 %v12911_v29  ;;  %v13733_v36 = vld [vmem:[%s13600_s23 + $0xd0] sm:$0xff]  ;;  %v662_v40 = vld [vmem:[%s13600_s23 + $0x80] sm:$0xff]  ;;  %v13770_v48 = vld [vmem:[%s13600_s23 + $0xa8] sm:$0xff] }
  0x21   : > { %1003 = vperm.xlu0 %12840, %v652_v6   ;;  %12839 = vset.pattern.permute.xlu1 %v17803_v9  ;;  %v680_v39 = vld [vmem:[%s13600_s23 + $0x110] sm:$0xff]  ;;  %v13755_v43 = vld [vmem:[%s13600_s23 + $0x120] sm:$0xff]  ;;  %v665_v50 = vld [vmem:[%s13600_s23 + $0x98] sm:$0xff] }
  0x22   : > { %706 = vperm.xlu1 %12839, %v649_v7   ;;  %11947 = vmatprep.subr.bf16.mxu0 %v12912_v31  ;;  %v13779_v52 = vld [vmem:[%s13600_s23 + $0xb0] sm:$0xff]  ;;  %v13794_v57 = vld [vmem:[%s13600_s23 + $0xe8] sm:$0xff] }
  0x23   : > { %v13806_v61 = vld [vmem:[%s13600_s23 + $0xf0] sm:$0xff]  ;;  %v13814_v0 = vld [vmem:[%s13600_s23 + $0x128] sm:$0xff] }
  0x24   : > { %11948 = vmatpush3.bf16.msra.mxu0 %v12912_v31  ;;  %v13883_v31 = vld [vmem:[%s13600_s23 + $0x138] sm:$0xff] }
  0x25   : > { %1015 = vperm.xlu0 %12840, %v13618_v8   ;;  %11949 = vmatprep.subr.bf16.mxu0 %v12913_v32 }
  0x26   : > { %12841 = vset.pattern.permute.xlu1 %v13477_v1 }
  0x27   : > { %994 = vperm.xlu1 %12841, %v649_v7  }
  0x28   : > { %11950 = vmatpush3.bf16.msra.mxu0 %v12913_v32  ;;  %v13887_v32 = vand.u32 127, %v17802_v28 }
  0x29   : > { %1024 = vperm.xlu0 %12840, %v13622_v10   ;;  %11951 = vmatprep.subr.bf16.mxu0 %v12914_v33 }
  0x2b   : > { %12842 = vset.pattern.permute.xlu1 %v13479_v12 }
  0x2c   : > { %1321 = vperm.xlu1 %12842, %v13606_v3   ;;  %11952 = vmatpush3.bf16.msra.mxu0 %v12914_v33 }
  0x2d   : > { %1027 = vperm.xlu0 %12840, %v13627_v11   ;;  %11953 = vmatprep.subr.bf16.mxu0 %v12915_v34 }
  0x30   : > { %1327 = vperm.xlu1 %12842, %v13603_v2   ;;  %11954 = vmatpush3.bf16.msra.mxu0 %v12915_v34  ;;  %v13893_v34 = vld [vmem:[%s13600_s23 + $0xc0] sm:$0xff] }
  0x31   : > { %12856 = vset.pattern.permute.xlu0 %v13479_v12 }
  0x32   : > { %1324 = vperm.xlu0 %12856, %v13612_v5  }
  0x34   : > { %1330 = vperm.xlu1 %12842, %v649_v7   ;;  %v1673_v7 = vld [vmem:[%s13825_s1 + $0x88] sm:$0xff] }
  0x36   : > { %1333 = vperm.xlu0 %12856, %v13636_v13  }
  0x38   : > { %12843 = vset.pattern.permute.xlu1 %v17803_v9 }
  0x39   : > { %712 = vperm.xlu1 %12843, %v651_v4  }
  0x3a   : > { %1342 = vperm.xlu0 %12856, %v653_v14  }
  0x3d   : > { %12844 = vset.pattern.permute.xlu1 %v13477_v1 }
  0x3e   : > { %1348 = vperm.xlu0 %12856, %v13643_v15   ;;  %997 = vperm.xlu1 %12844, %v13636_v13  }
  0x42   : > { %1357 = vperm.xlu0 %12856, %v13647_v16   ;;  %12845 = vset.pattern.permute.xlu1 %v17803_v9 }
  0x43   : > { %715 = vperm.xlu1 %12845, %v652_v6  }
  0x46   : > { %1366 = vperm.xlu0 %12856, %v13652_v17  }
  0x47   : > { %718 = vperm.xlu1 %12845, %v653_v14  }
  0x4a   : > { %1372 = vperm.xlu0 %12856, %v13657_v18  }
  0x4b   : > { %12846 = vset.pattern.permute.xlu1 %v13477_v1 }
  0x4c   : > { %1006 = vperm.xlu1 %12846, %v653_v14  }
  0x4e   : > { %1381 = vperm.xlu0 %12856, %v13661_v19  }
  0x50   : > { %12847 = vset.pattern.permute.xlu1 %v13479_v12 }
  0x51   : > { %1336 = vperm.xlu1 %12847, %v651_v4  }
  0x52   : > { %1390 = vperm.xlu0 %12856, %v669_v20  }
  0x55   : > { %1339 = vperm.xlu1 %12847, %v652_v6   ;;  %v1672_v6 = vld [vmem:[%s13825_s1 + $0x80] sm:$0xff] }
  0x56   : > { %1396 = vperm.xlu0 %12856, %v13669_v21  }
  0x59   : > { %12848 = vset.pattern.permute.xlu1 %v17803_v9 }
  0x5a   : > { %1405 = vperm.xlu0 %12856, %v13672_v22   ;;  %721 = vperm.xlu1 %12848, %v654_v23  }
  0x5e   : > { %1414 = vperm.xlu0 %12856, %v677_v25   ;;  %12849 = vset.pattern.permute.xlu1 %v13477_v1 }
  0x5f   : > { %1009 = vperm.xlu1 %12849, %v654_v23  }
  0x62   : > { %1420 = vperm.xlu0 %12856, %v13686_v27  }
  0x63   : > { %1012 = vperm.xlu1 %12849, %v13643_v15  }
  0x66   : > { %12884 = vset.pattern.permute.xlu0 %v17803_v9 }
  0x67   : > { %697 = vperm.xlu0 %12884, %v13606_v3   ;;  %12850 = vset.pattern.permute.xlu1 %v17803_v9  ;;  %v1716_v3 = vld [vmem:[%s17827_s29] sm:$0x7]  ;;  %s17931_s29 = sld [smem:[#allocation29_spill]] }
  0x68   : > { %730 = vperm.xlu1 %12850, %v657_v30   ;;  %12822 = vmatprep.subr.msk.bf16.mxu1 %vm2055_vm0, %v1716_v3 }
  0x69   : > { %12821 = vmatprep.subr.msk.bf16.mxu0 %vm2055_vm0, %v1716_v3 }
  0x6b   : > { %700 = vperm.xlu0 %12884, %v13612_v5   ;;  %v13829_v5 = vsel %vm2055_vm0, %v1716_v3, 0  ;;  %v13480_v3 = vmov 0.0  }
  0x6c   : > { %12851 = vset.pattern.permute.xlu1 %v13477_v1  ;;  %12444 = vmatpush3.bf16.msra.mxu1 %v13829_v5 }
  0x6d   : > { %1018 = vperm.xlu1 %12851, %v657_v30   ;;  %12445 = vmatprep.subr.bf16.mxu1 %v17803_v9  ;;  %s639_s0 = scalar_lea.vmem %s17931_s29, %s11013_s26 }
  0x6f   : > { %703 = vperm.xlu0 %12884, %v13603_v2  }
  0x71   : > { %12852 = vset.pattern.permute.xlu1 %v13479_v12 }
  0x72   : > { %1345 = vperm.xlu1 %12852, %v654_v23   ;;  %v13461_v23 = vld [vmem:[%s13600_s23 + $0xb8] sm:$0xff] }
  0x73   : > { %709 = vperm.xlu0 %12884, %v13636_v13   ;;  %v1675_v13 = vld [vmem:[%s13825_s1 + $0x98] sm:$0xff] }
  0x76   : > { %1351 = vperm.xlu1 %12852, %v13618_v8  }
  0x77   : > { %724 = vperm.xlu0 %12884, %v13643_v15  }
  0x7a   : > { %1354 = vperm.xlu1 %12852, %v657_v30  }
  0x7b   : > { %727 = vperm.xlu0 %12884, %v13618_v8   ;;  %v13835_v8 = vld [vmem:[%s13600_s23 + $0x130] sm:$0xff] }
  0x7e   : > { %12853 = vset.pattern.permute.xlu1 %v17803_v9 }
  0x7f   : > { %736 = vperm.xlu1 %12853, %v13622_v10   ;;  %733 = vperm.xlu0 %12884, %v13647_v16  }
  0x83   : > { %12854 = vset.pattern.permute.xlu1 %v13477_v1  ;;  %748 = vperm.xlu0 %12884, %v13657_v18  }
  0x84   : > { %1021 = vperm.xlu1 %12854, %v13647_v16  }
  0x87   : > { %751 = vperm.xlu0 %12884, %v664_v35  }
  0x88   : > { %12855 = vset.pattern.permute.xlu1 %v17803_v9 }
  0x89   : > { %739 = vperm.xlu1 %12855, %v13627_v11  }
  0x8b   : > { %757 = vperm.xlu0 %12884, %v13661_v19  }
  0x8d   : > { %742 = vperm.xlu1 %12855, %v13652_v17  }
  0x8f   : > { %772 = vperm.xlu0 %12884, %v13669_v21  }
  0x91   : > { %12857 = vset.pattern.permute.xlu1 %v13477_v1 }
  0x92   : > { %1030 = vperm.xlu1 %12857, %v13652_v17  }
  0x93   : > { %775 = vperm.xlu0 %12884, %v13733_v36  }
  0x96   : > { %12858 = vset.pattern.permute.xlu1 %v13479_v12 }
  0x97   : > { %1360 = vperm.xlu1 %12858, %v13622_v10   ;;  %781 = vperm.xlu0 %12884, %v13672_v22   ;;  %v1704_v10 = vpack.c.bf16 %v1673_v7, %v1672_v6 }
  0x98   : > { %v13742_v37 = vpop.permute.xlu1 %985  ;;  %v13744_v38 = vpop.permute.xlu0 %991 }
  0x99   : > { %12013 = vmatprep.mubr.msk.bf16.mxu1 %vm1994_vm1, %v1704_v10  ;;  %vm1128_vm2 = vcmp.eq.s32.totalorder %v13742_v37, %v13887_v32  ;;  %vm1130_vm3 = vcmp.eq.s32.totalorder %v13744_v38, %v13887_v32 }
  0x9a   : > { %v10023_v6 = vsel %vm1128_vm2, 1.0, %v13480_v3 }
  0x9b   : > { %1363 = vperm.xlu1 %12858, %v13627_v11   ;;  %796 = vperm.xlu0 %12884, %v13686_v27   ;;  %v1674_v11 = vld [vmem:[%s13825_s1 + $0x90] sm:$0xff] }
  0x9c   : > { %v13750_v41 = vpop.permute.xlu1 %988  ;;  %v13752_v42 = vpop.permute.xlu0 %1000  ;;  %v1705_v14 = vpack.c.bf16 %v1675_v13, %v1674_v11 }
  0x9d   : > { %vm1129_vm4 = vcmp.eq.s32.totalorder %v13750_v41, %v13887_v32  ;;  %vm1133_vm5 = vcmp.eq.s32.totalorder %v13752_v42, %v13887_v32 }
  0x9e   : > { %12014 = vmatmul.mubr.msk.bf16.vlgmr.msra.gmra.mrb[0].mxu1 %vm1994_vm1, %v1705_v14  ;;  %v10024_v10 = vsel %vm1129_vm4, 1.0, %v13480_v3 }
  0x9f   : > { %12859 = vset.pattern.permute.xlu1 %v17803_v9  ;;  %799 = vperm.xlu0 %12884, %v680_v39  }
  0xa0   : > { %745 = vperm.xlu1 %12859, %v662_v40   ;;  %v13758_v44 = vpop.permute.xlu0 %1003 }
  0xa1   : > { %v13760_v45 = vpop.permute.xlu1 %706  ;;  %vm1134_vm10 = vcmp.eq.s32.totalorder %v13758_v44, %v13887_v32 }
  0xa2   : > { %vm843_vm6 = vcmp.eq.s32.totalorder %v13760_v45, %v13887_v32  ;;  %v10025_v45 = vsel %vm1130_vm3, 1.0, %v13480_v3 }
  0xa3   : > { %805 = vperm.xlu0 %12884, %v13755_v43   ;;  %v9978_v13 = vsel %vm843_vm6, 1.0, %v13480_v3 }
  0xa4   : > { %12860 = vset.pattern.permute.xlu1 %v13477_v1  ;;  %v13764_v46 = vpop.permute.xlu0 %1015 }
  0xa5   : > { %1033 = vperm.xlu1 %12860, %v662_v40   ;;  %vm1138_vm4 = vcmp.eq.s32.totalorder %v13764_v46, %v13887_v32 }
  0xa6   : > { %v13766_v47 = vpop.permute.xlu1 %994 }
  0xa7   : > { %12885 = vset.pattern.permute.xlu0 %v13477_v1  ;;  %vm1131_vm7 = vcmp.eq.s32.totalorder %v13766_v47, %v13887_v32  ;;  %v10029_v47 = vsel %vm1134_vm10, 1.0, %v13480_v3 }
  0xa8   : > { %v13772_v49 = vpop.permute.xlu0 %1024  ;;  %1039 = vperm.xlu0 %12885, %v664_v35   ;;  %v10026_v38 = vsel %vm1131_vm7, 1.0, %v13480_v3 }
  0xa9   : > { %1036 = vperm.xlu1 %12860, %v13657_v18   ;;  %v13460_v18 = vld [vmem:[%s13600_s23 + $0xa0] sm:$0xff] }
  0xab   : > { %v13776_v51 = vpop.permute.xlu1 %1321 }
  0xac   : > { %v13781_v53 = vpop.permute.xlu0 %1027  ;;  %1048 = vperm.xlu0 %12885, %v13770_v48   ;;  %vm1464_vm12 = vcmp.eq.s32.totalorder %v13776_v51, %v13887_v32 }
  0xad   : > { %12861 = vset.pattern.permute.xlu1 %v17803_v9 }
  0xae   : > { %754 = vperm.xlu1 %12861, %v665_v50  }
  0xaf   : > { %v13785_v54 = vpop.permute.xlu1 %1327 }
  0xb0   : > { %1051 = vperm.xlu0 %12885, %v13779_v52   ;;  %vm1466_vm13 = vcmp.eq.s32.totalorder %v13785_v54, %v13887_v32  ;;  %v13462_v54 = vld [vmem:[%s13600_s23 + $0xc8] sm:$0xff] }
  0xb1   : > { %v13788_v55 = vpop.permute.xlu0 %1324 }
  0xb2   : > { %12862 = vset.pattern.permute.xlu1 %v13477_v1  ;;  %vm1465_vm11 = vcmp.eq.s32.totalorder %v13788_v55, %v13887_v32  ;;  %v1275_v55 = vadd.f32 %v10026_v38, %v9978_v13  ;;  %v13997_v38 = vld [vmem:[%s13600_s23 + $0xd8] sm:$0xff] }
  0xb3   : > { %1042 = vperm.xlu1 %12862, %v665_v50   ;;  %v13791_v56 = vpop.permute.xlu1 %1330 }
  0xb4   : > { %1063 = vperm.xlu0 %12885, %v13733_v36   ;;  %vm1467_vm8 = vcmp.eq.s32.totalorder %v13791_v56, %v13887_v32  ;;  %v10028_v56 = vsel %vm1133_vm5, 1.0, %v13480_v3 }
  0xb5   : > { %v13797_v58 = vpop.permute.xlu0 %1333  ;;  %v10074_v41 = vsel %vm1467_vm8, 1.0, %v13480_v3 }
  0xb6   : > { %vm1468_vm15 = vcmp.eq.s32.totalorder %v13797_v58, %v13887_v32  ;;  %v10071_v58 = vsel %vm1464_vm12, 1.0, %v13480_v3 }
  0xb7   : > { %12863 = vset.pattern.permute.xlu1 %v13479_v12 }
  0xb8   : > { %1369 = vperm.xlu1 %12863, %v662_v40   ;;  %v13800_v59 = vpop.permute.xlu1 %712  ;;  %1072 = vperm.xlu0 %12885, %v13794_v57   ;;  %v1677_v40 = vld [vmem:[%s13825_s1 + $0xa8] sm:$0xff] }
  0xb9   : > { %v13803_v60 = vpop.permute.xlu0 %1342  ;;  %vm845_vm14 = vcmp.eq.s32.totalorder %v13800_v59, %v13887_v32  ;;  %v10072_v59 = vsel %vm1465_vm11, 1.0, %v13480_v3 }
  0xba   : > { %vm1471_vm7 = vcmp.eq.s32.totalorder %v13803_v60, %v13887_v32 }
  0xbc   : > { %1375 = vperm.xlu1 %12863, %v664_v35   ;;  %1075 = vperm.xlu0 %12885, %v13806_v61  }
  0xbd   : > { %v13809_v62 = vpop.permute.xlu1 %997  ;;  %v13811_v63 = vpop.permute.xlu0 %1348 }
  0xbe   : > { %vm1132_vm3 = vcmp.eq.s32.totalorder %v13809_v62, %v13887_v32  ;;  %vm1473_vm11 = vcmp.eq.s32.totalorder %v13811_v63, %v13887_v32 }
  0xc0   : > { %1378 = vperm.xlu1 %12863, %v665_v50   ;;  %1087 = vperm.xlu0 %12885, %v680_v39   ;;  %v1676_v39 = vld [vmem:[%s13825_s1 + $0xa0] sm:$0xff]  ;;  %v1679_v50 = vld [vmem:[%s13825_s1 + $0xb8] sm:$0xff] }
  0xc1   : > { %v13817_v2 = vpop.permute.xlu0 %1357 }
  0xc2   : > { %v13827_v4 = vpop.permute.xlu1 %715 }
  0xc3   : > { %vm846_vm0 = vcmp.eq.s32.totalorder %v13827_v4, %v13887_v32 }
  0xc4   : > { %12864 = vset.pattern.permute.xlu1 %v17803_v9  ;;  %1096 = vperm.xlu0 %12885, %v13814_v0   ;;  %v9981_v51 = vsel %vm846_vm0, 1.0, %v13480_v3 }
  0xc5   : > { %760 = vperm.xlu1 %12864, %v13770_v48   ;;  %v13842_v15 = vpop.permute.xlu0 %1366 }
  0xc6   : > { %v13845_v16 = vpop.permute.xlu1 %718 }
  0xc7   : > { %vm847_vm5 = vcmp.eq.s32.totalorder %v13845_v16, %v13887_v32 }
  0xc8   : > { %1099 = vperm.xlu0 %12885, %v13835_v8  }
  0xc9   : > { %12865 = vset.pattern.permute.xlu1 %v13477_v1  ;;  %v13851_v17 = vpop.permute.xlu0 %1372 }
  0xca   : > { %1045 = vperm.xlu1 %12865, %v13460_v18  }
  0xcb   : > { %v13854_v19 = vpop.permute.xlu1 %1006 }
  0xcc   : > { %12890 = vset.pattern.permute.xlu0 %v13479_v12  ;;  %vm1135_vm8 = vcmp.eq.s32.totalorder %v13854_v19, %v13887_v32  ;;  %v1278_v19 = vadd.f32 %v10029_v47, %v9981_v51 }
  0xcd   : > { %v13857_v20 = vpop.permute.xlu0 %1381  ;;  %1429 = vperm.xlu0 %12890, %v13755_v43   ;;  %v1706_v43 = vpack.c.bf16 %v1677_v40, %v1676_v39  ;;  %v9980_v39 = vsel %vm845_vm14, 1.0, %v13480_v3 }
  0xce   : > { %12866 = vset.pattern.permute.xlu1 %v17803_v9 }
  0xcf   : > { %763 = vperm.xlu1 %12866, %v13779_v52   ;;  %12017 = vmatprep.mubr.msk.bf16.mxu1 %vm1994_vm1, %v1706_v43  ;;  %v1611_v43 = vadd.f32 %v10074_v41, %v1275_v55  ;;  %v9982_v41 = vsel %vm847_vm5, 1.0, %v13480_v3 }
  0xd0   : > { %v13862_v21 = vpop.permute.xlu1 %1336 }
  0xd1   : > { %v13864_v22 = vpop.permute.xlu0 %1390  ;;  %1438 = vperm.xlu0 %12890, %v13883_v31  }
  0xd3   : > { %766 = vperm.xlu1 %12866, %v13461_v23  }
  0xd4   : > { %v13867_v24 = vpop.permute.xlu1 %1339 }
  0xd5   : > { %v13869_v25 = vpop.permute.xlu0 %1396  ;;  %12893 = vset.pattern.permute.xlu0 %v17803_v9  ;;  %vm1470_vm10 = vcmp.eq.s32.totalorder %v13867_v24, %v13887_v32  ;;  %v10078_v24 = vsel %vm1471_vm7, 1.0, %v13480_v3 }
  0xd6   : > { %v10077_v16 = vsel %vm1470_vm10, 1.0, %v13480_v3  ;;  %vm1141_vm10 = vcmp.eq.s32.totalorder %v13772_v49, %v13887_v32 }
  0xd7   : > { %12867 = vset.pattern.permute.xlu1 %v13477_v1  ;;  %v1614_v51 = vadd.f32 %v10077_v16, %v1278_v19 }
  0xd8   : > { %1054 = vperm.xlu1 %12867, %v13461_v23   ;;  %v10073_v23 = vsel %vm1466_vm13, 1.0, %v13480_v3 }
  0xd9   : > { %v13872_v26 = vpop.permute.xlu1 %721  ;;  %v13874_v27 = vpop.permute.xlu0 %1405 }
  0xda   : > { %vm848_vm14 = vcmp.eq.s32.totalorder %v13872_v26, %v13887_v32 }
  0xdb   : > { %v9983_v60 = vsel %vm848_vm14, 1.0, %v13480_v3  ;;  %vm1142_vm14 = vcmp.eq.s32.totalorder %v13781_v53, %v13887_v32 }
  0xdc   : > { %12868 = vset.pattern.permute.xlu1 %v13479_v12 }
  0xdd   : > { %1384 = vperm.xlu1 %12868, %v13770_v48   ;;  %v13878_v29 = vpop.permute.xlu0 %1414  ;;  %v1678_v48 = vld [vmem:[%s13825_s1 + $0xb0] sm:$0xff] }
  0xde   : > { %v13880_v30 = vpop.permute.xlu1 %1009 }
  0xdf   : > { %vm1136_vm12 = vcmp.eq.s32.totalorder %v13880_v30, %v13887_v32 }
  0xe1   : > { %1387 = vperm.xlu1 %12868, %v13779_v52   ;;  %v13890_v33 = vpop.permute.xlu0 %1420  ;;  %v1707_v52 = vpack.c.bf16 %v1679_v50, %v1678_v48  ;;  %v10075_v48 = vsel %vm1468_vm15, 1.0, %v13480_v3 }
  0xe2   : > { %v13895_v35 = vpop.permute.xlu1 %1012 }
  0xe3   : > { %12018 = vmatmul.mubr.msk.bf16.gmra.mrb[4].mxu1 %vm1994_vm1, %v1707_v52  ;;  %vm1137_vm15 = vcmp.eq.s32.totalorder %v13895_v35, %v13887_v32  ;;  %v10033_v35 = vsel %vm1138_vm4, 1.0, %v13480_v3 }
  0xe4   : > { %v10032_v63 = vsel %vm1137_vm15, 1.0, %v13480_v3 }
  0xe5   : > { %12869 = vset.pattern.permute.xlu1 %v17803_v9 }
  0xe6   : > { %v698_v37 = vpop.permute.xlu0 %697  ;;  %769 = vperm.xlu1 %12869, %v13893_v34  }
  0xe7   : > { %vm840_vm9 = vcmp.eq.s32.totalorder %v698_v37, %v13887_v32  ;;  %v13921_v7 = vpop.permute.xlu1 %730 }
  0xe8   : > { %v9975_v11 = vsel %vm840_vm9, 1.0, %v13480_v3  ;;  %vm1469_vm9 = vcmp.eq.s32.totalorder %v13862_v21, %v13887_v32 }
  0xe9   : > { %v1272_v44 = vadd.f32 %v10023_v6, %v9975_v11  ;;  %v1277_v6 = vadd.f32 %v10028_v56, %v9980_v39  ;;  %v10027_v56 = vsel %vm1132_vm3, 1.0, %v13480_v3  ;;  %v10076_v62 = vsel %vm1469_vm9, 1.0, %v13480_v3 }
  0xea   : > { %v701_v42 = vpop.permute.xlu0 %700  ;;  %12870 = vset.pattern.permute.xlu1 %v13477_v1 }
  0xeb   : > { %vm841_vm2 = vcmp.eq.s32.totalorder %v701_v42, %v13887_v32  ;;  %1057 = vperm.xlu1 %12870, %v13893_v34   ;;  %v1608_v52 = vadd.f32 %v10071_v58, %v1272_v44 }
  0xec   : > { %v9976_v14 = vsel %vm841_vm2, 1.0, %v13480_v3  ;;  %v13963_v18 = vpop.permute.xlu1 %1018 }
  0xed   : > { %v1273_v40 = vadd.f32 %v10024_v10, %v9976_v14  ;;  %v10080_v14 = vsel %vm1473_vm11, 1.0, %v13480_v3  ;;  %vm1139_vm3 = vcmp.eq.s32.totalorder %v13963_v18, %v13887_v32 }
  0xee   : > { %v704_v50 = vpop.permute.xlu0 %703 }
  0xef   : > { %vm842_vm6 = vcmp.eq.s32.totalorder %v704_v50, %v13887_v32  ;;  %1060 = vperm.xlu1 %12870, %v13462_v54   ;;  %v1609_v37 = vadd.f32 %v10072_v59, %v1273_v40  ;;  %v1613_v40 = vadd.f32 %v10076_v62, %v1277_v6 }
  0xf0   : > { %v9977_v4 = vsel %vm842_vm6, 1.0, %v13480_v3  ;;  %vm851_vm6 = vcmp.eq.s32.totalorder %v13921_v7, %v13887_v32 }
  0xf1   : > { %v1274_v10 = vadd.f32 %v10025_v45, %v9977_v4  ;;  %v1346_v11 = vpop.permute.xlu1 %1345  ;;  %v1717_v13 = vpack.c.bf16 %v1609_v37, %v1608_v52  ;;  %v10030_v45 = vsel %vm1135_vm8, 1.0, %v13480_v3  ;;  %v9986_v7 = vsel %vm851_vm6, 1.0, %v13480_v3 }
  0xf2   : > { %v710_v42 = vpop.permute.xlu0 %709  ;;  %vm1472_vm0 = vcmp.eq.s32.totalorder %v1346_v11, %v13887_v32  ;;  %v1279_v58 = vadd.f32 %v10030_v45, %v9982_v41 }
  0xf3   : > { %v1610_v44 = vadd.f32 %v10073_v23, %v1274_v10  ;;  %vm844_vm13 = vcmp.eq.s32.totalorder %v710_v42, %v13887_v32  ;;  %12871 = vset.pattern.permute.xlu1 %v17803_v9  ;;  %11955 = vmatprep.mubr.bf16.mxu0 %v1717_v13  ;;  %v10031_v23 = vsel %vm1136_vm12, 1.0, %v13480_v3  ;;  %v10079_v30 = vsel %vm1472_vm0, 1.0, %v13480_v3 }
  0xf4   : > { %v9979_v47 = vsel %vm844_vm13, 1.0, %v13480_v3  ;;  %778 = vperm.xlu1 %12871, %v13997_v38   ;;  %v1615_v37 = vadd.f32 %v10078_v24, %v1279_v58  ;;  %v10034_v13 = vsel %vm1139_vm3, 1.0, %v13480_v3  ;;  %v1681_v24 = vld [vmem:[%s13825_s1 + $0xc8] sm:$0xff]  ;;  %v1682_v58 = vld [vmem:[%s13825_s1 + $0xd0] sm:$0xff]  ;;  %vm1476_vm12 = vcmp.eq.s32.totalorder %v13817_v2, %v13887_v32 }
  0xf5   : > { %v1276_v55 = vadd.f32 %v10027_v56, %v9979_v47  ;;  %v1352_v21 = vpop.permute.xlu1 %1351  ;;  %v1718_v59 = vpack.c.bf16 %v1611_v43, %v1610_v44  ;;  %v1283_v45 = vadd.f32 %v10034_v13, %v9986_v7  ;;  %v10083_v2 = vsel %vm1476_vm12, 1.0, %v13480_v3  ;;  %v13464_v13 = vld [vmem:[%s13600_s23 + $0xf8] sm:$0xff] }
  0xf6   : > { %v725_v39 = vpop.permute.xlu0 %724  ;;  %v14070_v11 = vpack.c.bf16 %v1615_v37, %v1614_v51  ;;  %vm1474_vm4 = vcmp.eq.s32.totalorder %v1352_v21, %v13887_v32 }
  0xf7   : > { %v1612_v43 = vadd.f32 %v10075_v48, %v1276_v55  ;;  %vm849_vm2 = vcmp.eq.s32.totalorder %v725_v39, %v13887_v32  ;;  %11956 = vmatmul.mubr.bf16.vlgmr.msra.gmra.mrb[0].mxu0 %v1718_v59  ;;  %v1280_v48 = vadd.f32 %v10031_v23, %v9983_v60  ;;  %v10081_v41 = vsel %vm1474_vm4, 1.0, %v13480_v3  ;;  %v1680_v59 = vld [vmem:[%s13825_s1 + $0xc0] sm:$0xff]  ;;  %v1683_v23 = vld [vmem:[%s13825_s1 + $0xd8] sm:$0xff] }
  0xf8   : > { %v9984_v50 = vsel %vm849_vm2, 1.0, %v13480_v3  ;;  %12872 = vset.pattern.permute.xlu1 %v13477_v1  ;;  %11996 = vmatpush3.bf16.msra.mxu0 %v13829_v5  ;;  %vm1479_vm2 = vcmp.eq.s32.totalorder %v13842_v15, %v13887_v32 }
  0xf9   : > { %v1281_v54 = vadd.f32 %v10032_v63, %v9984_v50  ;;  %1066 = vperm.xlu1 %12872, %v13997_v38   ;;  %v1355_v26 = vpop.permute.xlu1 %1354  ;;  %v14057_v52 = vpack.c.bf16 %v1613_v40, %v1612_v43  ;;  %v1616_v4 = vadd.f32 %v10079_v30, %v1280_v48  ;;  %v13463_v40 = vld [vmem:[%s13600_s23 + $0xe0] sm:$0xff]  ;;  %v10036_v30 = vsel %vm1141_vm10, 1.0, %v13480_v3 }
  0xfa   : > { %v728_v6 = vpop.permute.xlu0 %727  ;;  %vm1475_vm7 = vcmp.eq.s32.totalorder %v1355_v26, %v13887_v32  ;;  %v10086_v15 = vsel %vm1479_vm2, 1.0, %v13480_v3 }
  0xfb   : > { %v1617_v10 = vadd.f32 %v10080_v14, %v1281_v54  ;;  %vm850_vm5 = vcmp.eq.s32.totalorder %v728_v6, %v13887_v32  ;;  %11959 = vmatprep.mubr.bf16.mxu0 %v14057_v52  ;;  %v10082_v42 = vsel %vm1475_vm7, 1.0, %v13480_v3  ;;  %v1708_v14 = vpack.c.bf16 %v1681_v24, %v1680_v59 }
  0xfc   : > { %v9985_v5 = vsel %vm850_vm5, 1.0, %v13480_v3  ;;  %v1619_v62 = vadd.f32 %v10082_v42, %v1283_v45 }
  0xfd   : > { %v1282_v46 = vadd.f32 %v10033_v35, %v9985_v5  ;;  %12873 = vset.pattern.permute.xlu1 %v13479_v12  ;;  %v14075_v18 = vpack.c.bf16 %v1617_v10, %v1616_v4  ;;  %12021 = vmatprep.mubr.msk.bf16.mxu1 %vm1994_vm1, %v1708_v14  ;;  %v10037_v35 = vsel %vm1142_vm14, 1.0, %v13480_v3  ;;  %v14155_v14 = vld [vmem:[%s13600_s23 + $0x100] sm:$0xff] }
  0xfe   : > { %1393 = vperm.xlu1 %12873, %v13893_v34   ;;  %v737_v56 = vpop.permute.xlu1 %736  ;;  %v734_v19 = vpop.permute.xlu0 %733 }
  0xff   : > { %11960 = vmatmul.mubr.bf16.gmra.mrb[4].mxu0 %v14070_v11  ;;  %v1618_v44 = vadd.f32 %v10081_v41, %v1282_v46  ;;  %vm852_vm8 = vcmp.eq.s32.totalorder %v734_v19, %v13887_v32  ;;  %vm853_vm11 = vcmp.eq.s32.totalorder %v737_v56, %v13887_v32 }
 0x100   : > { %11963 = vmatprep.mubr.bf16.mxu0 %v14075_v18  ;;  %v9987_v60 = vsel %vm852_vm8, 1.0, %v13480_v3  ;;  %v9988_v50 = vsel %vm853_vm11, 1.0, %v13480_v3  ;;  %vm1481_vm8 = vcmp.eq.s32.totalorder %v13851_v17, %v13887_v32 }
 0x101   : > { %v14087_v47 = vpack.c.bf16 %v1619_v62, %v1618_v44  ;;  %v1285_v26 = vadd.f32 %v10036_v30, %v9988_v50 }
 0x102   : > { %1399 = vperm.xlu1 %12873, %v13733_v36   ;;  %v14085_v34 = vpop.permute.xlu0 %748  ;;  %v1709_v36 = vpack.c.bf16 %v1683_v23, %v1682_v58  ;;  %v1684_v23 = vld [vmem:[%s13825_s1 + $0xe0] sm:$0xff] }
 0x103   : > { %v1022_v16 = vpop.permute.xlu1 %1021  ;;  %vm857_vm6 = vcmp.eq.s32.totalorder %v14085_v34, %v13887_v32  ;;  %v14185_v34 = vld [vmem:[%s13600_s23 + $0x150] sm:$0xff] }
 0x104   : > { %12022 = vmatmul.mubr.msk.bf16.gmra.mrb[8].mxu1 %vm1994_vm1, %v1709_v36  ;;  %vm1140_vm9 = vcmp.eq.s32.totalorder %v1022_v16, %v13887_v32  ;;  %v1685_v36 = vld [vmem:[%s13825_s1 + $0xe8] sm:$0xff]  ;;  %v9992_v50 = vsel %vm857_vm6, 1.0, %v13480_v3 }
 0x105   : > { %v10035_v63 = vsel %vm1140_vm9, 1.0, %v13480_v3 }
 0x106   : > { %1402 = vperm.xlu1 %12873, %v13997_v38   ;;  %v14090_v55 = vpop.permute.xlu0 %751  ;;  %v1284_v49 = vadd.f32 %v10035_v63, %v9987_v60 }
 0x107   : > { %11964 = vmatmul.mubr.bf16.gmra.mrb[8].mxu0 %v14087_v47  ;;  %vm858_vm10 = vcmp.eq.s32.totalorder %v14090_v55, %v13887_v32 }
 0x108   : > { %v740_v21 = vpop.permute.xlu1 %739  ;;  %v1620_v10 = vadd.f32 %v10083_v2, %v1284_v49  ;;  %v9993_v55 = vsel %vm858_vm10, 1.0, %v13480_v3 }
 0x109   : > { %vm854_vm15 = vcmp.eq.s32.totalorder %v740_v21, %v13887_v32 }
 0x10a   : > { %12874 = vset.pattern.permute.xlu1 %v17803_v9  ;;  %v14099_v39 = vpop.permute.xlu0 %757  ;;  %v9989_v37 = vsel %vm854_vm15, 1.0, %v13480_v3 }
 0x10b   : > { %784 = vperm.xlu1 %12874, %v13794_v57   ;;  %v1286_v19 = vadd.f32 %v10037_v35, %v9989_v37  ;;  %v10088_v35 = vsel %vm1481_vm8, 1.0, %v13480_v3  ;;  %vm860_vm2 = vcmp.eq.s32.totalorder %v14099_v39, %v13887_v32 }
 0x10c   : > { %v743_v38 = vpop.permute.xlu1 %742 }
 0x10d   : > { %vm855_vm0 = vcmp.eq.s32.totalorder %v743_v38, %v13887_v32  ;;  %v1710_v38 = vpack.c.bf16 %v1685_v36, %v1684_v23 }
 0x10e   : > { %v14110_v43 = vpop.permute.xlu0 %772  ;;  %v9990_v6 = vsel %vm855_vm0, 1.0, %v13480_v3 }
 0x10f   : > { %12875 = vset.pattern.permute.xlu1 %v13477_v1  ;;  %12025 = vmatprep.mubr.msk.bf16.mxu1 %vm1994_vm1, %v1710_v38 }
 0x110   : > { %1069 = vperm.xlu1 %12875, %v13463_v40   ;;  %v1686_v40 = vld [vmem:[%s13825_s1 + $0xf0] sm:$0xff] }
 0x111   : > { %v1031_v51 = vpop.permute.xlu1 %1030 }
 0x112   : > { %vm1143_vm13 = vcmp.eq.s32.totalorder %v1031_v51, %v13887_v32  ;;  %v14130_v53 = vpop.permute.xlu0 %775  ;;  %v1687_v51 = vld [vmem:[%s13825_s1 + $0xf8] sm:$0xff] }
 0x113   : > { %v10038_v48 = vsel %vm1143_vm13, 1.0, %v13480_v3  ;;  %v1711_v60 = vpack.c.bf16 %v1687_v51, %v1686_v40  ;;  %v13466_v51 = vld [vmem:[%s13600_s23 + $0x110] sm:$0xff] }
 0x114   : > { %12876 = vset.pattern.permute.xlu1 %v17803_v9  ;;  %v1287_v5 = vadd.f32 %v10038_v48, %v9990_v6  ;;  %v13465_v48 = vld [vmem:[%s13600_s23 + $0x108] sm:$0xff] }
 0x115   : > { %787 = vperm.xlu1 %12876, %v13806_v61   ;;  %12026 = vmatmul.mubr.msk.bf16.gmra.mrb[12].mxu1 %vm1994_vm1, %v1711_v60 }
 0x116   : > { %v1361_v54 = vpop.permute.xlu1 %1360  ;;  %v1623_v42 = vadd.f32 %v10086_v15, %v1287_v5  ;;  %v14144_v44 = vpop.permute.xlu0 %781 }
 0x117   : > { %vm1477_vm3 = vcmp.eq.s32.totalorder %v1361_v54, %v13887_v32 }
 0x118   : > { %v10084_v4 = vsel %vm1477_vm3, 1.0, %v13480_v3 }
 0x119   : > { %v1621_v46 = vadd.f32 %v10084_v4, %v1285_v26  ;;  %790 = vperm.xlu1 %12876, %v13464_v13   ;;  %v681_v4 = vld [vmem:[%s13600_s23 + $0x118] sm:$0xff] }
 0x11a   : > { %v1364_v56 = vpop.permute.xlu1 %1363  ;;  %v14151_v21 = vpop.permute.xlu0 %796 }
 0x11b   : > { %vm1478_vm5 = vcmp.eq.s32.totalorder %v1364_v56, %v13887_v32  ;;  %v14139_v7 = vpack.c.bf16 %v1621_v46, %v1620_v10 }
 0x11c   : > { %v10085_v41 = vsel %vm1478_vm5, 1.0, %v13480_v3 }
 0x11d   : > { %v1622_v45 = vadd.f32 %v10085_v41, %v1286_v19  ;;  %12877 = vset.pattern.permute.xlu1 %v13477_v1  ;;  %11967 = vmatprep.mubr.bf16.mxu0 %v14139_v7 }
 0x11e   : > { %1078 = vperm.xlu1 %12877, %v13464_v13   ;;  %v14157_v58 = vpop.permute.xlu0 %799 }
 0x11f   : > { %v746_v62 = vpop.permute.xlu1 %745  ;;  %v14146_v16 = vpack.c.bf16 %v1623_v42, %v1622_v45 }
 0x120   : > { %vm856_vm9 = vcmp.eq.s32.totalorder %v746_v62, %v13887_v32 }
 0x121   : > { %11968 = vmatmul.mubr.bf16.gmra.mrb[12].mxu0 %v14146_v16  ;;  %v9991_v37 = vsel %vm856_vm9, 1.0, %v13480_v3 }
 0x122   : > { %12878 = vset.pattern.permute.xlu1 %v13479_v12  ;;  %v14171_v63 = vpop.permute.xlu0 %805 }
 0x123   : > { %1408 = vperm.xlu1 %12878, %v13794_v57  }
 0x124   : > { %v1034_v59 = vpop.permute.xlu1 %1033 }
 0x125   : > { %vm1144_vm7 = vcmp.eq.s32.totalorder %v1034_v59, %v13887_v32 }
 0x126   : > { %v10039_v2 = vsel %vm1144_vm7, 1.0, %v13480_v3 }
 0x127   : > { %1411 = vperm.xlu1 %12878, %v13806_v61   ;;  %v14168_v61 = vld [vmem:[%s13600_s23 + $0x148] sm:$0xff]  ;;  %v1040_v54 = vpop.permute.xlu0 %1039  ;;  %v1288_v17 = vadd.f32 %v10039_v2, %v9991_v37  ;;  %v1690_v2 = vld [vmem:[%s13825_s1 + $0x110] sm:$0xff]  ;;  %v9995_v37 = vsel %vm860_vm2, 1.0, %v13480_v3 }
 0x128   : > { %v1037_v24 = vpop.permute.xlu1 %1036  ;;  %820 = vperm.xlu0 %12893, %v14168_v61   ;;  %vm1146_vm12 = vcmp.eq.s32.totalorder %v1040_v54, %v13887_v32 }
 0x129   : > { %vm1145_vm4 = vcmp.eq.s32.totalorder %v1037_v24, %v13887_v32  ;;  %v10041_v13 = vsel %vm1146_vm12, 1.0, %v13480_v3  ;;  %vm1487_vm12 = vcmp.eq.s32.totalorder %v13864_v22, %v13887_v32 }
 0x12a   : > { %v10040_v49 = vsel %vm1145_vm4, 1.0, %v13480_v3  ;;  %v1290_v41 = vadd.f32 %v10041_v13, %v9993_v55  ;;  %vm1484_vm4 = vcmp.eq.s32.totalorder %v13857_v20, %v13887_v32 }
 0x12b   : > { %12879 = vset.pattern.permute.xlu1 %v17803_v9  ;;  %v1289_v26 = vadd.f32 %v10040_v49, %v9992_v50  ;;  %v1689_v50 = vld [vmem:[%s13825_s1 + $0x108] sm:$0xff] }
 0x12c   : > { %793 = vperm.xlu1 %12879, %v14155_v14   ;;  %823 = vperm.xlu0 %12893, %v14185_v34  }
 0x12d   : > { %v755_v57 = vpop.permute.xlu1 %754  ;;  %v1625_v5 = vadd.f32 %v10088_v35, %v1289_v26  ;;  %v1049_v26 = vpop.permute.xlu0 %1048  ;;  %v13467_v35 = vld [vmem:[%s13600_s23 + $0x120] sm:$0xff] }
 0x12e   : > { %vm859_vm14 = vcmp.eq.s32.totalorder %v755_v57, %v13887_v32  ;;  %vm1149_vm5 = vcmp.eq.s32.totalorder %v1049_v26, %v13887_v32 }
 0x12f   : > { %v9994_v42 = vsel %vm859_vm14, 1.0, %v13480_v3  ;;  %v10044_v39 = vsel %vm1149_vm5, 1.0, %v13480_v3  ;;  %vm865_vm14 = vcmp.eq.s32.totalorder %v14110_v43, %v13887_v32  ;;  %vm866_vm5 = vcmp.eq.s32.totalorder %v14130_v53, %v13887_v32 }
 0x130   : > { %12880 = vset.pattern.permute.xlu1 %v13477_v1  ;;  %12896 = vset.pattern.permute.xlu0 %v13477_v1 }
 0x131   : > { %1081 = vperm.xlu1 %12880, %v14155_v14   ;;  %1111 = vperm.xlu0 %12896, %v14185_v34  }
 0x132   : > { %v1043_v30 = vpop.permute.xlu1 %1042 }
 0x133   : > { %vm1147_vm13 = vcmp.eq.s32.totalorder %v1043_v30, %v13887_v32  ;;  %v1688_v30 = vld [vmem:[%s13825_s1 + $0x100] sm:$0xff] }
 0x134   : > { %v10042_v19 = vsel %vm1147_vm13, 1.0, %v13480_v3  ;;  %v1712_v49 = vpack.c.bf16 %v1689_v50, %v1688_v30  ;;  %v13468_v30 = vld [vmem:[%s13600_s23 + $0x128] sm:$0xff] }
 0x135   : > { %1084 = vperm.xlu1 %12880, %v13465_v48   ;;  %12899 = vset.pattern.permute.xlu0 %v13479_v12  ;;  %v1291_v59 = vadd.f32 %v10042_v19, %v9994_v42  ;;  %v1691_v48 = vld [vmem:[%s13825_s1 + $0x118] sm:$0xff] }
 0x136   : > { %1444 = vperm.xlu0 %12899, %v14168_v61   ;;  %12029 = vmatprep.mubr.msk.bf16.mxu1 %vm1994_vm1, %v1712_v49 }
 0x137   : > { %v1370_v6 = vpop.permute.xlu1 %1369 }
 0x138   : > { %vm1480_vm11 = vcmp.eq.s32.totalorder %v1370_v6, %v13887_v32 }
 0x139   : > { %v10087_v10 = vsel %vm1480_vm11, 1.0, %v13480_v3  ;;  %12881 = vset.pattern.permute.xlu1 %v17803_v9 }
 0x13a   : > { %v1624_v46 = vadd.f32 %v10087_v10, %v1288_v17  ;;  %802 = vperm.xlu1 %12881, %v681_v4   ;;  %12900 = vset.pattern.permute.xlu0 %v17803_v9 }
 0x13b   : > { %v1376_v15 = vpop.permute.xlu1 %1375 }
 0x13c   : > { %vm1482_vm15 = vcmp.eq.s32.totalorder %v1376_v15, %v13887_v32  ;;  %v14206_v56 = vpack.c.bf16 %v1625_v5, %v1624_v46  ;;  %v10091_v5 = vsel %vm1484_vm4, 1.0, %v13480_v3 }
 0x13d   : > { %v10089_v45 = vsel %vm1482_vm15, 1.0, %v13480_v3  ;;  %vm1489_vm15 = vcmp.eq.s32.totalorder %v13869_v25, %v13887_v32 }
 0x13e   : > { %12882 = vset.pattern.permute.xlu1 %v13477_v1  ;;  %11971 = vmatprep.mubr.bf16.mxu0 %v14206_v56  ;;  %v1626_v23 = vadd.f32 %v10089_v45, %v1290_v41  ;;  %v10096_v43 = vsel %vm1489_vm15, 1.0, %v13480_v3 }
 0x13f   : > { %1090 = vperm.xlu1 %12882, %v681_v4   ;;  %v1379_v62 = vpop.permute.xlu1 %1378 }
 0x140   : > { %vm1483_vm0 = vcmp.eq.s32.totalorder %v1379_v62, %v13887_v32 }
 0x141   : > { %v10090_v24 = vsel %vm1483_vm0, 1.0, %v13480_v3 }
 0x142   : > { %v1627_v36 = vadd.f32 %v10090_v24, %v1291_v59 }
 0x143   : > { %12883 = vset.pattern.permute.xlu1 %v13479_v12 }
 0x144   : > { %1417 = vperm.xlu1 %12883, %v14155_v14   ;;  %v761_v38 = vpop.permute.xlu1 %760  ;;  %v14219_v40 = vpack.c.bf16 %v1627_v36, %v1626_v23  ;;  %v1713_v14 = vpack.c.bf16 %v1691_v48, %v1690_v2  ;;  %v10094_v36 = vsel %vm1487_vm12, 1.0, %v13480_v3  ;;  %v686_v2 = vld [vmem:[%s13600_s23 + $0x140] sm:$0xff]  ;;  %vm1492_vm12 = vcmp.eq.s32.totalorder %v13874_v27, %v13887_v32 }
 0x145   : > { %vm861_vm6 = vcmp.eq.s32.totalorder %v761_v38, %v13887_v32  ;;  %v1692_v48 = vld [vmem:[%s13825_s1 + $0x120] sm:$0xff] }
 0x146   : > { %11972 = vmatmul.mubr.bf16.gmra.mrb[16].mxu0 %v14219_v40  ;;  %12030 = vmatmul.mubr.msk.bf16.gmra.mrb[16].mxu1 %vm1994_vm1, %v1713_v14  ;;  %v9996_v17 = vsel %vm861_vm6, 1.0, %v13480_v3  ;;  %v1693_v14 = vld [vmem:[%s13825_s1 + $0x128] sm:$0xff] }
 0x147   : > { %v1293_v55 = vadd.f32 %v10044_v39, %v9996_v17  ;;  %v1714_v26 = vpack.c.bf16 %v1693_v14, %v1692_v48  ;;  %v14296_v39 = vld [vmem:[%s17786_s4 + $0x40] sm:$0xff]  }
 0x148   : > { %1423 = vperm.xlu1 %12883, %v13466_v51   ;;  %12037 = vmatprep.subr.bf16.mxu0 %v14296_v39 }
 0x149   : > { %v1046_v60 = vpop.permute.xlu1 %1045  ;;  %12033 = vmatprep.mubr.msk.bf16.mxu1 %vm1994_vm1, %v1714_v26  ;;  %v691_v26 = vld [vmem:[%s13600_s23 + $0x168] sm:$0xff] }
 0x14a   : > { %vm1148_vm3 = vcmp.eq.s32.totalorder %v1046_v60, %v13887_v32 }
 0x14b   : > { %v10043_v6 = vsel %vm1148_vm3, 1.0, %v13480_v3 }
 0x14c   : > { %1426 = vperm.xlu1 %12883, %v681_v4   ;;  %v1052_v4 = vpop.permute.xlu0 %1051  ;;  %v1292_v10 = vadd.f32 %v10043_v6, %v9995_v37 }
 0x14d   : > { %vm1150_vm8 = vcmp.eq.s32.totalorder %v1052_v4, %v13887_v32 }
 0x14e   : > { %v764_v57 = vpop.permute.xlu1 %763  ;;  %v10045_v13 = vsel %vm1150_vm8, 1.0, %v13480_v3  ;;  %v1628_v42 = vadd.f32 %v10091_v5, %v1292_v10 }
 0x14f   : > { %vm862_vm9 = vcmp.eq.s32.totalorder %v764_v57, %v13887_v32 }
 0x150   : > { %12886 = vset.pattern.permute.xlu1 %v17803_v9  ;;  %v9997_v15 = vsel %vm862_vm9, 1.0, %v13480_v3  ;;  %v1064_v5 = vpop.permute.xlu0 %1063 }
 0x151   : > { %808 = vperm.xlu1 %12886, %v13814_v0   ;;  %v1294_v24 = vadd.f32 %v10045_v13, %v9997_v15  ;;  %vm1154_vm6 = vcmp.eq.s32.totalorder %v1064_v5, %v13887_v32  ;;  %v10001_v15 = vsel %vm866_vm5, 1.0, %v13480_v3 }
 0x152   : > { %v767_v54 = vpop.permute.xlu1 %766 }
 0x153   : > { %vm863_vm10 = vcmp.eq.s32.totalorder %v767_v54, %v13887_v32 }
 0x154   : > { %v9998_v19 = vsel %vm863_vm10, 1.0, %v13480_v3 }
 0x155   : > { %12887 = vset.pattern.permute.xlu1 %v13477_v1 }
 0x156   : > { %1093 = vperm.xlu1 %12887, %v13467_v35   ;;  %v1694_v35 = vld [vmem:[%s13825_s1 + $0x130] sm:$0xff] }
 0x157   : > { %v1055_v0 = vpop.permute.xlu1 %1054 }
 0x158   : > { %vm1151_vm7 = vcmp.eq.s32.totalorder %v1055_v0, %v13887_v32  ;;  %v1695_v0 = vld [vmem:[%s13825_s1 + $0x138] sm:$0xff] }
 0x159   : > { %v10046_v20 = vsel %vm1151_vm7, 1.0, %v13480_v3 }
 0x15a   : > { %12888 = vset.pattern.permute.xlu1 %v17803_v9  ;;  %v1295_v45 = vadd.f32 %v10046_v20, %v9998_v19  ;;  %v10049_v19 = vsel %vm1154_vm6, 1.0, %v13480_v3 }
 0x15b   : > { %811 = vperm.xlu1 %12888, %v13835_v8  }
 0x15c   : > { %v1385_v46 = vpop.permute.xlu1 %1384  ;;  %v1631_v51 = vadd.f32 %v10094_v36, %v1295_v45  ;;  %v1298_v45 = vadd.f32 %v10049_v19, %v10001_v15 }
 0x15d   : > { %vm1485_vm11 = vcmp.eq.s32.totalorder %v1385_v46, %v13887_v32  ;;  %v689_v46 = vld [vmem:[%s13600_s23 + $0x158] sm:$0xff] }
 0x15e   : > { %v10092_v41 = vsel %vm1485_vm11, 1.0, %v13480_v3  ;;  %vm868_vm11 = vcmp.eq.s32.totalorder %v14144_v44, %v13887_v32  ;;  %v690_v44 = vld [vmem:[%s13600_s23 + $0x160] sm:$0xff] }
 0x15f   : > { %v1629_v62 = vadd.f32 %v10092_v41, %v1293_v55  ;;  %814 = vperm.xlu1 %12888, %v13883_v31   ;;  %829 = vperm.xlu0 %12900, %v690_v44  }
 0x160   : > { %v1388_v59 = vpop.permute.xlu1 %1387 }
 0x161   : > { %vm1486_vm13 = vcmp.eq.s32.totalorder %v1388_v59, %v13887_v32  ;;  %v14262_v23 = vpack.c.bf16 %v1629_v62, %v1628_v42 }
 0x162   : > { %v10093_v38 = vsel %vm1486_vm13, 1.0, %v13480_v3 }
 0x163   : > { %v1630_v60 = vadd.f32 %v10093_v38, %v1294_v24  ;;  %12889 = vset.pattern.permute.xlu1 %v13477_v1  ;;  %11975 = vmatprep.mubr.bf16.mxu0 %v14262_v23 }
 0x164   : > { %1102 = vperm.xlu1 %12889, %v13883_v31   ;;  %v10000_v31 = vsel %vm865_vm14, 1.0, %v13480_v3  ;;  %12903 = vset.pattern.permute.xlu0 %v13477_v1 }
 0x165   : > { %v770_v22 = vpop.permute.xlu1 %769  ;;  %v14269_v57 = vpack.c.bf16 %v1631_v51, %v1630_v60  ;;  %1120 = vperm.xlu0 %12903, %v691_v26  }
 0x166   : > { %vm864_vm3 = vcmp.eq.s32.totalorder %v770_v22, %v13887_v32 }
 0x167   : > { %11976 = vmatmul.mubr.bf16.gmra.mrb[20].mxu0 %v14269_v57  ;;  %v9999_v10 = vsel %vm864_vm3, 1.0, %v13480_v3 }
 0x168   : > { %12891 = vset.pattern.permute.xlu1 %v13479_v12 }
 0x169   : > { %1432 = vperm.xlu1 %12891, %v13468_v30  }
 0x16a   : > { %v1058_v50 = vpop.permute.xlu1 %1057 }
 0x16b   : > { %vm1152_vm2 = vcmp.eq.s32.totalorder %v1058_v50, %v13887_v32 }
 0x16c   : > { %v10047_v17 = vsel %vm1152_vm2, 1.0, %v13480_v3 }
 0x16d   : > { %1435 = vperm.xlu1 %12891, %v13835_v8   ;;  %v1715_v8 = vpack.c.bf16 %v1695_v0, %v1694_v35  ;;  %v1296_v55 = vadd.f32 %v10047_v17, %v9999_v10  ;;  %v1073_v35 = vpop.permute.xlu0 %1072 }
 0x16e   : > { %v1061_v49 = vpop.permute.xlu1 %1060  ;;  %vm1157_vm14 = vcmp.eq.s32.totalorder %v1073_v35, %v13887_v32 }
 0x16f   : > { %vm1153_vm0 = vcmp.eq.s32.totalorder %v1061_v49, %v13887_v32  ;;  %12034 = vmatmul.mubr.msk.bf16.gmra.mrb[20].mxu1 %vm1994_vm1, %v1715_v8 }
 0x170   : > { %v10048_v54 = vsel %vm1153_vm0, 1.0, %v13480_v3 }
 0x171   : > { %v1297_v37 = vadd.f32 %v10048_v54, %v10000_v31  ;;  %12892 = vset.pattern.permute.xlu1 %v17803_v9  ;;  %v10003_v31 = vsel %vm868_vm11, 1.0, %v13480_v3 }
 0x172   : > { %817 = vperm.xlu1 %12892, %v686_v2  }
 0x173   : > { %v1633_v25 = vadd.f32 %v10096_v43, %v1297_v37  ;;  %v779_v6 = vpop.permute.xlu1 %778 }
 0x174   : > { %vm867_vm8 = vcmp.eq.s32.totalorder %v779_v6, %v13887_v32  ;;  %v10052_v6 = vsel %vm1157_vm14, 1.0, %v13480_v3  ;;  %vm874_vm14 = vcmp.eq.s32.totalorder %v14157_v58, %v13887_v32 }
 0x175   : > { %v10002_v62 = vsel %vm867_vm8, 1.0, %v13480_v3  ;;  %vm873_vm8 = vcmp.eq.s32.totalorder %v14151_v21, %v13887_v32 }
 0x176   : > { %12894 = vset.pattern.permute.xlu1 %v13477_v1 }
 0x177   : > { %1105 = vperm.xlu1 %12894, %v686_v2  }
 0x178   : > { %v1067_v4 = vpop.permute.xlu1 %1066 }
 0x179   : > { %vm1155_vm7 = vcmp.eq.s32.totalorder %v1067_v4, %v13887_v32  ;;  %v1076_v4 = vpop.permute.xlu0 %1075 }
 0x17a   : > { %v10050_v42 = vsel %vm1155_vm7, 1.0, %v13480_v3  ;;  %vm1158_vm2 = vcmp.eq.s32.totalorder %v1076_v4, %v13887_v32 }
 0x17b   : > { %1108 = vperm.xlu1 %12894, %v14168_v61   ;;  %v1299_v36 = vadd.f32 %v10050_v42, %v10002_v62 }
 0x17d   : > { %v1394_v20 = vpop.permute.xlu1 %1393 }
 0x17e   : > { %vm1488_vm4 = vcmp.eq.s32.totalorder %v1394_v20, %v13887_v32  ;;  %v693_v20 = vld [vmem:[%s13600_s23 + $0x178] sm:$0xff] }
 0x17f   : > { %v10095_v13 = vsel %vm1488_vm4, 1.0, %v13480_v3  ;;  %12895 = vset.pattern.permute.xlu1 %v17803_v9  ;;  %vm1495_vm4 = vcmp.eq.s32.totalorder %v13878_v29, %v13887_v32 }
 0x180   : > { %v1632_v61 = vadd.f32 %v10095_v13, %v1296_v55  ;;  %826 = vperm.xlu1 %12895, %v689_v46   ;;  %v10053_v55 = vsel %vm1158_vm2, 1.0, %v13480_v3 }
 0x181   : > { %v1400_v41 = vpop.permute.xlu1 %1399 }
 0x182   : > { %vm1490_vm9 = vcmp.eq.s32.totalorder %v1400_v41, %v13887_v32  ;;  %v14315_v53 = vpack.c.bf16 %v1633_v25, %v1632_v61  ;;  %v692_v25 = vld [vmem:[%s13600_s23 + $0x170] sm:$0xff] }
 0x183   : > { %v10097_v59 = vsel %vm1490_vm9, 1.0, %v13480_v3  ;;  %1123 = vperm.xlu0 %12903, %v692_v25   ;;  %vm1497_vm9 = vcmp.eq.s32.totalorder %v13890_v33, %v13887_v32 }
 0x184   : > { %11979 = vmatprep.mubr.bf16.mxu0 %v14315_v53  ;;  %12897 = vset.pattern.permute.xlu1 %v13477_v1  ;;  %v1634_v51 = vadd.f32 %v10097_v59, %v1298_v45  ;;  %v10102_v59 = vsel %vm1495_vm4, 1.0, %v13480_v3  ;;  %vm876_vm4 = vcmp.eq.s32.totalorder %v14171_v63, %v13887_v32 }
 0x185   : > { %v1403_v24 = vpop.permute.xlu1 %1402  ;;  %1114 = vperm.xlu1 %12897, %v689_v46  }
 0x186   : > { %vm1491_vm10 = vcmp.eq.s32.totalorder %v1403_v24, %v13887_v32 }
 0x187   : > { %v10098_v38 = vsel %vm1491_vm10, 1.0, %v13480_v3  ;;  %12906 = vset.pattern.permute.xlu0 %v13479_v12 }
 0x188   : > { %v1635_v60 = vadd.f32 %v10098_v38, %v1299_v36  ;;  %1453 = vperm.xlu0 %12906, %v690_v44  }
 0x189   : > { %12898 = vset.pattern.permute.xlu1 %v13479_v12 }
 0x18a   : > { %v785_v22 = vpop.permute.xlu1 %784  ;;  %v14325_v30 = vpack.c.bf16 %v1635_v60, %v1634_v51  ;;  %1441 = vperm.xlu1 %12898, %v686_v2   ;;  %v10099_v2 = vsel %vm1492_vm12, 1.0, %v13480_v3 }
 0x18b   : > { %vm869_vm15 = vcmp.eq.s32.totalorder %v785_v22, %v13887_v32 }
 0x18c   : > { %11980 = vmatmul.mubr.bf16.gmra.mrb[24].mxu0 %v14325_v30  ;;  %v10004_v17 = vsel %vm869_vm15, 1.0, %v13480_v3  ;;  %1462 = vperm.xlu0 %12906, %v693_v20  }
 0x18e   : > { %1447 = vperm.xlu1 %12898, %v14185_v34   ;;  %v14340_v34 = vpop.f32.mrb[0].mxu1 }
 0x18f   : > { %v1070_v50 = vpop.permute.xlu1 %1069  ;;  %v14343_v0 = vpop.f32.mrb[1].mxu1 }
 0x190   : > { %vm1156_vm13 = vcmp.eq.s32.totalorder %v1070_v50, %v13887_v32  ;;  %v14346_v37 = vpop.f32.mrb[2].mxu1 }
 0x191   : > { %v10051_v49 = vsel %vm1156_vm13, 1.0, %v13480_v3  ;;  %v14348_v8 = vpop.f32.mrb[3].mxu1 }
 0x192   : > { %v1300_v48 = vadd.f32 %v10051_v49, %v10003_v31  ;;  %1450 = vperm.xlu1 %12898, %v689_v46   ;;  %v1301_v46 = vadd.f32 %v10052_v6, %v10004_v17  ;;  %v10104_v49 = vsel %vm1497_vm9, 1.0, %v13480_v3 }
 0x194   : > { %v1636_v14 = vadd.f32 %v10099_v2, %v1300_v48  ;;  %v788_v54 = vpop.permute.xlu1 %787 }
 0x195   : > { %vm870_vm3 = vcmp.eq.s32.totalorder %v788_v54, %v13887_v32 }
 0x196   : > { %12901 = vset.pattern.permute.xlu1 %v17803_v9  ;;  %v10005_v13 = vsel %vm870_vm3, 1.0, %v13480_v3 }
 0x197   : > { %832 = vperm.xlu1 %12901, %v691_v26   ;;  %v1302_v45 = vadd.f32 %v10053_v55, %v10005_v13 }
 0x198   : > { %v791_v27 = vpop.permute.xlu1 %790 }
 0x199   : > { %vm871_vm5 = vcmp.eq.s32.totalorder %v791_v27, %v13887_v32 }
 0x19a   : > { %v10006_v61 = vsel %vm871_vm5, 1.0, %v13480_v3 }
 0x19b   : > { %12902 = vset.pattern.permute.xlu1 %v13477_v1 }
 0x19c   : > { %1117 = vperm.xlu1 %12902, %v690_v44   ;;  %v1088_v44 = vpop.permute.xlu0 %1087 }
 0x19d   : > { %v1079_v43 = vpop.permute.xlu1 %1078  ;;  %vm1162_vm15 = vcmp.eq.s32.totalorder %v1088_v44, %v13887_v32 }
 0x19e   : > { %vm1159_vm0 = vcmp.eq.s32.totalorder %v1079_v43, %v13887_v32 }
 0x19f   : > { %v10054_v10 = vsel %vm1159_vm0, 1.0, %v13480_v3 }
 0x1a0   : > { %12904 = vset.pattern.permute.xlu1 %v17803_v9  ;;  %v1303_v19 = vadd.f32 %v10054_v10, %v10006_v61  ;;  %v10009_v10 = vsel %vm874_vm14, 1.0, %v13480_v3 }
 0x1a1   : > { %835 = vperm.xlu1 %12904, %v692_v25  }
 0x1a2   : > { %v1409_v5 = vpop.permute.xlu1 %1408  ;;  %v1639_v36 = vadd.f32 %v10102_v59, %v1303_v19 }
 0x1a3   : > { %vm1493_vm6 = vcmp.eq.s32.totalorder %v1409_v5, %v13887_v32  ;;  %v10057_v5 = vsel %vm1162_vm15, 1.0, %v13480_v3 }
 0x1a4   : > { %v10100_v15 = vsel %vm1493_vm6, 1.0, %v13480_v3  ;;  %v1306_v13 = vadd.f32 %v10057_v5, %v10009_v10 }
 0x1a5   : > { %v1637_v41 = vadd.f32 %v10100_v15, %v1301_v46  ;;  %838 = vperm.xlu1 %12904, %v693_v20  }
 0x1a6   : > { %v1412_v42 = vpop.permute.xlu1 %1411 }
 0x1a7   : > { %vm1494_vm7 = vcmp.eq.s32.totalorder %v1412_v42, %v13887_v32  ;;  %v14371_v62 = vpack.c.bf16 %v1637_v41, %v1636_v14 }
 0x1a8   : > { %v10101_v24 = vsel %vm1494_vm7, 1.0, %v13480_v3 }
 0x1a9   : > { %v1638_v38 = vadd.f32 %v10101_v24, %v1302_v45  ;;  %11983 = vmatprep.mubr.bf16.mxu0 %v14371_v62  ;;  %12905 = vset.pattern.permute.xlu1 %v13477_v1  ;;  %v10008_v1 = vsel %vm873_vm8, 1.0, %v13480_v3  ;;  %v1097_v24 = vpop.permute.xlu0 %1096 }
 0x1aa   : > { %1126 = vperm.xlu1 %12905, %v693_v20   ;;  %vm1165_vm8 = vcmp.eq.s32.totalorder %v1097_v24, %v13887_v32 }
 0x1ab   : > { %v794_v29 = vpop.permute.xlu1 %793  ;;  %v14377_v51 = vpack.c.bf16 %v1639_v36, %v1638_v38  ;;  %v10060_v63 = vsel %vm1165_vm8, 1.0, %v13480_v3 }
 0x1ac   : > { %vm872_vm12 = vcmp.eq.s32.totalorder %v794_v29, %v13887_v32 }
 0x1ad   : > { %11984 = vmatmul.mubr.bf16.gmra.mrb[28].mxu0 %v14377_v51  ;;  %v10007_v27 = vsel %vm872_vm12, 1.0, %v13480_v3  ;;  %v1100_v38 = vpop.permute.xlu0 %1099 }
 0x1ae   : > { %12907 = vset.pattern.permute.xlu1 %v13479_v12 }
 0x1af   : > { %1456 = vperm.xlu1 %12907, %v691_v26  }
 0x1b0   : > { %v1082_v60 = vpop.permute.xlu1 %1081 }
 0x1b1   : > { %vm1160_vm11 = vcmp.eq.s32.totalorder %v1082_v60, %v13887_v32 }
 0x1b2   : > { %v10055_v26 = vsel %vm1160_vm11, 1.0, %v13480_v3 }
 0x1b3   : > { %1459 = vperm.xlu1 %12907, %v692_v25   ;;  %v1304_v43 = vadd.f32 %v10055_v26, %v10007_v27 }
 0x1b4   : > { %v1085_v22 = vpop.permute.xlu1 %1084 }
 0x1b5   : > { %vm1161_vm10 = vcmp.eq.s32.totalorder %v1085_v22, %v13887_v32 }
 0x1b6   : > { %v10056_v50 = vsel %vm1161_vm10, 1.0, %v13480_v3  ;;  %v14389_v2 = vpop.f32.mrb[4].mxu1 }
 0x1b7   : > { %v1305_v31 = vadd.f32 %v10056_v50, %v10008_v1  ;;  %v14391_v14 = vpop.f32.mrb[5].mxu1  ;;  %v1430_v50 = vpop.permute.xlu0 %1429 }
 0x1b8   : > { %v14393_v21 = vpop.f32.mrb[6].mxu1  ;;  %vm1500_vm9 = vcmp.eq.s32.totalorder %v1430_v50, %v13887_v32  ;;  %v1659_v50 = vld [vmem:[%s13825_s1 + $0x18] sm:$0xff] }
 0x1b9   : > { %v1641_v12 = vadd.f32 %v10104_v49, %v1305_v31  ;;  %v803_v48 = vpop.permute.xlu1 %802  ;;  %v14395_v54 = vpop.f32.mrb[7].mxu1  ;;  %v10107_v27 = vsel %vm1500_vm9, 1.0, %v13480_v3 }
 0x1ba   : > { %vm875_vm2 = vcmp.eq.s32.totalorder %v803_v48, %v13887_v32  ;;  %v10011_v48 = vsel %vm876_vm4, 1.0, %v13480_v3 }
 0x1bb   : > { %v10010_v58 = vsel %vm875_vm2, 1.0, %v13480_v3  ;;  %v1439_v26 = vpop.permute.xlu0 %1438 }
 0x1bc   : > { %vm1503_vm14 = vcmp.eq.s32.totalorder %v1439_v26, %v13887_v32  ;;  %v12917_v26 = vld [vmem:[%s17786_s4 + $0x48] sm:$0xff]  }
 0x1be   : > { %v1091_v33 = vpop.permute.xlu1 %1090 }
 0x1bf   : > { %vm1163_vm0 = vcmp.eq.s32.totalorder %v1091_v33, %v13887_v32 }
 0x1c0   : > { %v10058_v20 = vsel %vm1163_vm0, 1.0, %v13480_v3 }
 0x1c1   : > { %v1307_v61 = vadd.f32 %v10058_v20, %v10010_v58 }
 0x1c3   : > { %v1418_v35 = vpop.permute.xlu1 %1417 }
 0x1c4   : > { %vm1496_vm13 = vcmp.eq.s32.totalorder %v1418_v35, %v13887_v32 }
 0x1c5   : > { %v10103_v25 = vsel %vm1496_vm13, 1.0, %v13480_v3  ;;  %vm1166_vm13 = vcmp.eq.s32.totalorder %v1100_v38, %v13887_v32 }
 0x1c6   : > { %v1640_v6 = vadd.f32 %v10103_v25, %v1304_v43 }
 0x1c7   : > { %v1424_v4 = vpop.permute.xlu1 %1423 }
 0x1c8   : > { %vm1498_vm3 = vcmp.eq.s32.totalorder %v1424_v4, %v13887_v32  ;;  %v14409_v17 = vpack.c.bf16 %v1641_v12, %v1640_v6 }
 0x1c9   : > { %v10105_v46 = vsel %vm1498_vm3, 1.0, %v13480_v3 }
 0x1ca   : > { %11987 = vmatprep.mubr.bf16.mxu0 %v14409_v17  ;;  %v1642_v19 = vadd.f32 %v10105_v46, %v1306_v13  ;;  %v10061_v46 = vsel %vm1166_vm13, 1.0, %v13480_v3 }
 0x1cb   : > { %v1427_v55 = vpop.permute.xlu1 %1426 }
 0x1cc   : > { %vm1499_vm5 = vcmp.eq.s32.totalorder %v1427_v55, %v13887_v32  ;;  %v10110_v55 = vsel %vm1503_vm14, 1.0, %v13480_v3 }
 0x1cd   : > { %v10106_v15 = vsel %vm1499_vm5, 1.0, %v13480_v3 }
 0x1ce   : > { %v1643_v41 = vadd.f32 %v10106_v15, %v1307_v61 }
 0x1d0   : > { %v809_v42 = vpop.permute.xlu1 %808  ;;  %v14419_v45 = vpack.c.bf16 %v1643_v41, %v1642_v19  ;;  %v1656_v19 = vld [vmem:[%s13825_s1] sm:$0xff]  ;;  %v1657_v41 = vld [vmem:[%s13825_s1 + $0x8] sm:$0xff] }
 0x1d1   : > { %vm877_vm7 = vcmp.eq.s32.totalorder %v809_v42, %v13887_v32 }
 0x1d2   : > { %11988 = vmatmul.mubr.bf16.gmra.mrb[32].mxu0 %v14419_v45  ;;  %v10012_v33 = vsel %vm877_vm7, 1.0, %v13480_v3 }
 0x1d3   : > { %v1309_v25 = vadd.f32 %v10060_v63, %v10012_v33  ;;  %v1663_v63 = vld [vmem:[%s13825_s1 + $0x38] sm:$0xff] }
 0x1d5   : > { %v1094_v59 = vpop.permute.xlu1 %1093 }
 0x1d6   : > { %vm1164_vm6 = vcmp.eq.s32.totalorder %v1094_v59, %v13887_v32 }
 0x1d7   : > { %v14422_v60 = vpop.f32.mrb[8].mxu1  ;;  %v10059_v12 = vsel %vm1164_vm6, 1.0, %v13480_v3 }
 0x1d8   : > { %v14424_v22 = vpop.f32.mrb[9].mxu1  ;;  %v1308_v44 = vadd.f32 %v10059_v12, %v10011_v48  ;;  %v1661_v12 = vld [vmem:[%s13825_s1 + $0x28] sm:$0xff] }
 0x1d9   : > { %v14427_v1 = vpop.f32.mrb[10].mxu1 }
 0x1da   : > { %v812_v36 = vpop.permute.xlu1 %811  ;;  %v14429_v31 = vpop.f32.mrb[11].mxu1  ;;  %v1644_v5 = vadd.f32 %v10107_v27, %v1308_v44  ;;  %v1662_v44 = vld [vmem:[%s13825_s1 + $0x30] sm:$0xff] }
 0x1db   : > { %vm878_vm11 = vcmp.eq.s32.totalorder %v812_v36, %v13887_v32  ;;  %v1696_v36 = vpack.c.bf16 %v1657_v41, %v1656_v19  ;;  %v12918_v27 = vld [vmem:[%s17786_s4 + $0x50] sm:$0xff]  }
 0x1dc   : > { %v10013_v6 = vsel %vm878_vm11, 1.0, %v13480_v3 }
 0x1dd   : > { %v1310_v61 = vadd.f32 %v10061_v46, %v10013_v6  ;;  %v1667_v46 = vld [vmem:[%s13825_s1 + $0x58] sm:$0xff] }
 0x1de   : > { %v815_v29 = vpop.permute.xlu1 %814 }
 0x1df   : > { %vm879_vm12 = vcmp.eq.s32.totalorder %v815_v29, %v13887_v32  ;;  %v1658_v29 = vld [vmem:[%s13825_s1 + $0x10] sm:$0xff] }
 0x1e0   : > { %v10014_v4 = vsel %vm879_vm12, 1.0, %v13480_v3  ;;  %v1697_v48 = vpack.c.bf16 %v1659_v50, %v1658_v29  ;;  %v12923_v50 = vld [vmem:[%s17786_s4 + $0x78] sm:$0xff]  }
 0x1e3   : > { %v1103_v49 = vpop.permute.xlu1 %1102 }
 0x1e4   : > { %vm1167_vm10 = vcmp.eq.s32.totalorder %v1103_v49, %v13887_v32  ;;  %v1660_v49 = vld [vmem:[%s13825_s1 + $0x20] sm:$0xff] }
 0x1e5   : > { %v10062_v35 = vsel %vm1167_vm10, 1.0, %v13480_v3  ;;  %v1698_v33 = vpack.c.bf16 %v1661_v12, %v1660_v49  ;;  %v12924_v49 = vld [vmem:[%s17786_s4 + $0x80] sm:$0xff]  }
 0x1e6   : > { %v1311_v20 = vadd.f32 %v10062_v35, %v10014_v4  ;;  %v1664_v35 = vld [vmem:[%s13825_s1 + $0x40] sm:$0xff] }
 0x1e8   : > { %v1433_v43 = vpop.permute.xlu1 %1432  ;;  %v1647_v59 = vadd.f32 %v10110_v55, %v1311_v20  ;;  %v14481_v4 = vpop.f32.mrb[12].mxu1  ;;  %v12920_v55 = vld [vmem:[%s17786_s4 + $0x60] sm:$0xff]  }
 0x1e9   : > { %vm1501_vm15 = vcmp.eq.s32.totalorder %v1433_v43, %v13887_v32  ;;  %v1665_v43 = vld [vmem:[%s13825_s1 + $0x48] sm:$0xff] }
 0x1ea   : > { %v10108_v10 = vsel %vm1501_vm15, 1.0, %v13480_v3  ;;  %v1700_v6 = vpack.c.bf16 %v1665_v43, %v1664_v35 }
 0x1eb   : > { %v1645_v58 = vadd.f32 %v10108_v10, %v1309_v25  ;;  %v1699_v25 = vpack.c.bf16 %v1663_v63, %v1662_v44  ;;  %v14486_v10 = vpop.f32.mrb[13].mxu1 }
 0x1ec   : > { %v1436_v13 = vpop.permute.xlu1 %1435 }
 0x1ed   : > { %vm1502_vm0 = vcmp.eq.s32.totalorder %v1436_v13, %v13887_v32  ;;  %v14454_v15 = vpack.c.bf16 %v1645_v58, %v1644_v5  ;;  %v14488_v5 = vpop.f32.mrb[14].mxu1  ;;  %v1666_v58 = vld [vmem:[%s13825_s1 + $0x50] sm:$0xff]  ;;  %v1668_v13 = vld [vmem:[%s13825_s1 + $0x60] sm:$0xff] }
 0x1ee   : > { %v10109_v42 = vsel %vm1502_vm0, 1.0, %v13480_v3  ;;  %v14491_v20 = vpop.f32.mrb[15].mxu1  ;;  %v1701_v19 = vpack.c.bf16 %v1667_v46, %v1666_v58  ;;  %v12930_v58 = vld [vmem:[%s17786_s4 + $0xb0] sm:$0xff]   ;;  %v12931_v46 = vld [vmem:[%s17786_s4 + $0xb8] sm:$0xff]  }
 0x1ef   : > { %v1646_v24 = vadd.f32 %v10109_v42, %v1310_v61  ;;  %11991 = vmatprep.mubr.bf16.mxu0 %v14454_v15  ;;  %v1669_v61 = vld [vmem:[%s13825_s1 + $0x68] sm:$0xff] }
 0x1f0   : > { %v1702_v41 = vpack.c.bf16 %v1669_v61, %v1668_v13  ;;  %v12921_v42 = vld [vmem:[%s17786_s4 + $0x68] sm:$0xff]  }
 0x1f1   : > { %v14460_v38 = vpack.c.bf16 %v1647_v59, %v1646_v24  ;;  %v1670_v59 = vld [vmem:[%s13825_s1 + $0x70] sm:$0xff]  ;;  %v1671_v24 = vld [vmem:[%s13825_s1 + $0x78] sm:$0xff] }
 0x1f2   : > { %v1703_v29 = vpack.c.bf16 %v1671_v24, %v1670_v59 }
 0x1f3   : > { %11992 = vmatmul.mubr.bf16.gmra.mrb[36].mxu0 %v14460_v38 }
 0x1f4   : > { %11997 = vmatprep.mubr.msk.bf16.mxu0 %vm1994_vm1, %v1696_v36  ;;  %v12922_v36 = vld [vmem:[%s17786_s4 + $0x70] sm:$0xff]  }
 0x1fb   : > { %11998 = vmatmul.mubr.msk.bf16.vlgmr.msra.gmra.mrb[0].mxu0 %vm1994_vm1, %v1697_v48  ;;  %v12925_v48 = vld [vmem:[%s17786_s4 + $0x88] sm:$0xff]  }
 0x1fc   : > { %12038 = vmatpush3.bf16.msra.mxu0 %v14296_v39  ;;  %12001 = vmatprep.mubr.msk.bf16.mxu0 %vm1994_vm1, %v1698_v33  ;;  %v12919_v39 = vld [vmem:[%s17786_s4 + $0x58] sm:$0xff]  }
 0x1fd   : > { %12039 = vmatprep.subr.bf16.mxu0 %v12917_v26 }
 0x200   : > { %12040 = vmatpush3.bf16.msra.mxu0 %v12917_v26 }
 0x201   : > { %12041 = vmatprep.subr.bf16.mxu0 %v12918_v27 }
 0x203   : > { %12002 = vmatmul.mubr.msk.bf16.gmra.mrb[4].mxu0 %vm1994_vm1, %v1699_v25 }
 0x204   : > { %12042 = vmatpush3.bf16.msra.mxu0 %v12918_v27  ;;  %12005 = vmatprep.mubr.msk.bf16.mxu0 %vm1994_vm1, %v1700_v6  ;;  %v12929_v6 = vld [vmem:[%s17786_s4 + $0xa8] sm:$0xff]  }
 0x205   : > { %12043 = vmatprep.subr.bf16.mxu0 %v12919_v39 }
 0x208   : > { %12044 = vmatpush3.bf16.msra.mxu0 %v12919_v39  ;;  %v818_v39 = vpop.permute.xlu1 %817 }
 0x209   : > { %12045 = vmatprep.subr.bf16.mxu0 %v12920_v55 }
 0x20b   : > { %12006 = vmatmul.mubr.msk.bf16.gmra.mrb[8].mxu0 %vm1994_vm1, %v1701_v19  ;;  %v821_v19 = vpop.permute.xlu0 %820 }
 0x20c   : > { %12046 = vmatpush3.bf16.msra.mxu0 %v12920_v55  ;;  %12009 = vmatprep.mubr.msk.bf16.mxu0 %vm1994_vm1, %v1702_v41  ;;  %v1106_v55 = vpop.permute.xlu1 %1105  ;;  %vm881_vm3 = vcmp.eq.s32.totalorder %v821_v19, %v13887_v32 }
 0x20d   : > { %12047 = vmatprep.subr.bf16.mxu0 %v12921_v42  ;;  %vm1168_vm2 = vcmp.eq.s32.totalorder %v1106_v55, %v13887_v32 }
 0x210   : > { %12048 = vmatpush3.bf16.msra.mxu0 %v12921_v42  ;;  %v1109_v13 = vpop.permute.xlu1 %1108 }
 0x211   : > { %12049 = vmatprep.subr.bf16.mxu0 %v12922_v36  ;;  %vm1169_vm5 = vcmp.eq.s32.totalorder %v1109_v13, %v13887_v32 }
 0x213   : > { %12010 = vmatmul.mubr.msk.bf16.gmra.mrb[12].mxu0 %vm1994_vm1, %v1703_v29  ;;  %vm880_vm1 = vcmp.eq.s32.totalorder %v818_v39, %v13887_v32 }
 0x214   : > { %12050 = vmatpush3.bf16.msra.mxu0 %v12922_v36  ;;  %12053 = vmatprep.mubr.bf16.mxu0 %v14057_v52 }
 0x215   : > { %12051 = vmatprep.subr.bf16.mxu0 %v12923_v50 }
 0x218   : > { %12052 = vmatpush3.bf16.msra.mxu0 %v12923_v50  ;;  %v827_v50 = vpop.permute.xlu1 %826 }
 0x219   : > { %v11973_v12 = vpop.f32.mrb[16].mxu0  ;;  %12093 = vmatprep.subr.bf16.mxu0 %v12924_v49  ;;  %vm883_vm9 = vcmp.eq.s32.totalorder %v827_v50, %v13887_v32 }
 0x21a   : > { %v14523_v33 = vadd.f32 %v14340_v34, %v11973_v12  ;;  %v1899_v26 = vpop.f32.mrb[17].mxu0  ;;  %v12926_v34 = vld [vmem:[%s17786_s4 + $0x90] sm:$0xff]   ;;  %v824_v12 = vpop.permute.xlu0 %823 }
 0x21b   : > { %v14526_v44 = vadd.f32 %v14343_v0, %v1899_v26  ;;  %v11974_v52 = vpop.f32.mrb[18].mxu0  ;;  %12054 = vmatmul.mubr.bf16.vlgmr.msra.gmra.mrb[0].mxu0 %v14070_v11  ;;  %v12927_v11 = vld [vmem:[%s17786_s4 + $0x98] sm:$0xff]   ;;  %v12928_v0 = vld [vmem:[%s17786_s4 + $0xa0] sm:$0xff]   ;;  %vm882_vm7 = vcmp.eq.s32.totalorder %v824_v12, %v13887_v32 }
 0x21c   : > { %v14530_v63 = vadd.f32 %v14346_v37, %v11974_v52  ;;  %v1902_v27 = vpop.f32.mrb[19].mxu0  ;;  %12057 = vmatprep.mubr.bf16.mxu0 %v14075_v18  ;;  %12094 = vmatpush3.bf16.msra.mxu0 %v12924_v49  ;;  %v14547_v37 = vpop.f32.mrb[16].mxu1  ;;  %v10017_v19 = vsel %vm882_vm7, 1.0, %v13480_v3 }
 0x21d   : > { %v14534_v35 = vadd.f32 %v14348_v8, %v1902_v27  ;;  %12095 = vmatprep.subr.bf16.mxu0 %v12925_v48  ;;  %v14549_v8 = vpop.f32.mrb[17].mxu1 }
 0x21e   : > { %v14551_v43 = vpop.f32.mrb[18].mxu1 }
 0x21f   : > { %v14553_v25 = vpop.f32.mrb[19].mxu1 }
 0x220   : > { %12096 = vmatpush3.bf16.msra.mxu0 %v12925_v48 }
 0x221   : > { %12097 = vmatprep.subr.bf16.mxu0 %v12926_v34 }
 0x223   : > { %12058 = vmatmul.mubr.bf16.gmra.mrb[4].mxu0 %v14087_v47 }
 0x224   : > { %12061 = vmatprep.mubr.bf16.mxu0 %v14139_v7  ;;  %12098 = vmatpush3.bf16.msra.mxu0 %v12926_v34 }
 0x225   : > { %12099 = vmatprep.subr.bf16.mxu0 %v12927_v11 }
 0x228   : > { %12100 = vmatpush3.bf16.msra.mxu0 %v12927_v11  ;;  %v10015_v11 = vsel %vm880_vm1, 1.0, %v13480_v3 }
 0x229   : > { %12101 = vmatprep.subr.bf16.mxu0 %v12928_v0 }
 0x22b   : > { %12062 = vmatmul.mubr.bf16.gmra.mrb[8].mxu0 %v14146_v16 }
 0x22c   : > { %12065 = vmatprep.mubr.bf16.mxu0 %v14206_v56  ;;  %12102 = vmatpush3.bf16.msra.mxu0 %v12928_v0  ;;  %v10063_v0 = vsel %vm1168_vm2, 1.0, %v13480_v3 }
 0x22d   : > { %12103 = vmatprep.subr.bf16.mxu0 %v12929_v6  ;;  %v1312_v39 = vadd.f32 %v10063_v0, %v10015_v11 }
 0x230   : > { %12104 = vmatpush3.bf16.msra.mxu0 %v12929_v6  ;;  %v10016_v6 = vsel %vm881_vm3, 1.0, %v13480_v3 }
 0x231   : > { %12105 = vmatprep.subr.bf16.mxu0 %v12930_v58 }
 0x233   : > { %12066 = vmatmul.mubr.bf16.gmra.mrb[12].mxu0 %v14219_v40 }
 0x234   : > { %12069 = vmatprep.mubr.bf16.mxu0 %v14262_v23  ;;  %12106 = vmatpush3.bf16.msra.mxu0 %v12930_v58  ;;  %v10064_v58 = vsel %vm1169_vm5, 1.0, %v13480_v3 }
 0x235   : > { %12107 = vmatprep.subr.bf16.mxu0 %v12931_v46 }
 0x238   : > { %12108 = vmatpush3.bf16.msra.mxu0 %v12931_v46  ;;  %v1313_v46 = vadd.f32 %v10064_v58, %v10016_v6 }
 0x239   : > { %3400 = vmatprep.subr.bf16.mxu0 %v17803_v9 }
 0x23a   : > { %v11977_v61 = vpop.f32.mrb[20].mxu0 }
 0x23b   : > { %v14570_v41 = vadd.f32 %v14389_v2, %v11977_v61  ;;  %v1915_v42 = vpop.f32.mrb[21].mxu0  ;;  %12070 = vmatmul.mubr.bf16.gmra.mrb[40].mxu0 %v14269_v57  ;;  %v1115_v2 = vpop.permute.xlu1 %1114 }
 0x23c   : > { %v14574_v59 = vadd.f32 %v14391_v14, %v1915_v42  ;;  %v11978_v24 = vpop.f32.mrb[22].mxu0  ;;  %12073 = vmatprep.mubr.bf16.mxu0 %v14315_v53  ;;  %v1112_v14 = vpop.permute.xlu0 %1111  ;;  %vm1171_vm10 = vcmp.eq.s32.totalorder %v1115_v2, %v13887_v32 }
 0x23d   : > { %v14578_v36 = vadd.f32 %v14393_v21, %v11978_v24  ;;  %v1918_v29 = vpop.f32.mrb[23].mxu0  ;;  %vm1170_vm8 = vcmp.eq.s32.totalorder %v1112_v14, %v13887_v32  ;;  %v10018_v24 = vsel %vm883_vm9, 1.0, %v13480_v3  ;;  %vm3339_vm9 = vcmask 523264  }
 0x23e   : > { %v14581_v49 = vadd.f32 %v14395_v54, %v1918_v29  ;;  %v10065_v42 = vsel %vm1170_vm8, 1.0, %v13480_v3  ;;  %v10066_v29 = vsel %vm1171_vm10, 1.0, %v13480_v3  ;;  %vm9679_vm10 = vcmask 1041408  }
 0x23f   : > { %v1442_v27 = vpop.permute.xlu1 %1441  ;;  %v1314_v2 = vadd.f32 %v10065_v42, %v10017_v19  ;;  %v1315_v14 = vadd.f32 %v10066_v29, %v10018_v24 }
 0x240   : > { %v1445_v54 = vpop.permute.xlu0 %1444  ;;  %vm1504_vm4 = vcmp.eq.s32.totalorder %v1442_v27, %v13887_v32 }
 0x241   : > { %vm1505_vm6 = vcmp.eq.s32.totalorder %v1445_v54, %v13887_v32  ;;  %v10111_v13 = vsel %vm1504_vm4, 1.0, %v13480_v3 }
 0x242   : > { %v14585_v48 = vpop.f32.mrb[20].mxu1  ;;  %v10112_v55 = vsel %vm1505_vm6, 1.0, %v13480_v3  ;;  %v1648_v12 = vadd.f32 %v10111_v13, %v1312_v39 }
 0x243   : > { %12074 = vmatmul.mubr.bf16.gmra.mrb[44].mxu0 %v14325_v30  ;;  %v14587_v26 = vpop.f32.mrb[21].mxu1  ;;  %v1448_v34 = vpop.permute.xlu1 %1447  ;;  %v1649_v50 = vadd.f32 %v10112_v55, %v1313_v46 }
 0x244   : > { %12077 = vmatprep.mubr.bf16.mxu0 %v14371_v62  ;;  %v14589_v52 = vpop.f32.mrb[22].mxu1  ;;  %vm1506_vm11 = vcmp.eq.s32.totalorder %v1448_v34, %v13887_v32 }
 0x245   : > { %v14591_v21 = vpop.f32.mrb[23].mxu1  ;;  %v10113_v27 = vsel %vm1506_vm11, 1.0, %v13480_v3  ;;  %v14621_v11 = vpack.c.bf16 %v1649_v50, %v1648_v12  ;;  %vm9672_vm11 = vcmask 31744  }
 0x246   : > { %v1650_v0 = vadd.f32 %v10113_v27, %v1314_v2 }
 0x247   : > { %v1451_v61 = vpop.permute.xlu1 %1450 }
 0x248   : > { %vm1507_vm12 = vcmp.eq.s32.totalorder %v1451_v61, %v13887_v32 }
 0x249   : > { %v10114_v54 = vsel %vm1507_vm12, 1.0, %v13480_v3  ;;  %vm9852_vm12 = vcmask 130048  }
 0x24a   : > { %v1651_v6 = vadd.f32 %v10114_v54, %v1315_v14 }
 0x24b   : > { %12078 = vmatmul.mubr.bf16.gmra.mrb[48].mxu0 %v14377_v51 }
 0x24c   : > { %12081 = vmatprep.mubr.bf16.mxu0 %v14409_v17  ;;  %v14631_v13 = vpack.c.bf16 %v1651_v6, %v1650_v0 }
 0x253   : > { %12082 = vmatmul.mubr.bf16.gmra.mrb[52].mxu0 %v14419_v45 }
 0x254   : > { %12085 = vmatprep.mubr.bf16.mxu0 %v14454_v15 }
 0x25b   : > { %12086 = vmatmul.mubr.bf16.gmra.mrb[56].mxu0 %v14460_v38 }
 0x25c   : > { %12089 = vmatprep.mubr.bf16.mxu0 %v14621_v11 }
 0x25f   : > { %v11981_v58 = vpop.f32.mrb[24].mxu0 }
 0x260   : > { %v14626_v39 = vadd.f32 %v14422_v60, %v11981_v58  ;;  %v1931_v34 = vpop.f32.mrb[25].mxu0  ;;  %v833_v60 = vpop.permute.xlu1 %832 }
 0x261   : > { %v14629_v46 = vadd.f32 %v14424_v22, %v1931_v34  ;;  %v11982_v55 = vpop.f32.mrb[26].mxu0  ;;  %vm885_vm13 = vcmp.eq.s32.totalorder %v833_v60, %v13887_v32 }
 0x262   : > { %v14634_v61 = vadd.f32 %v14427_v1, %v11982_v55  ;;  %v1934_v19 = vpop.f32.mrb[27].mxu0 }
 0x263   : > { %v14637_v42 = vadd.f32 %v14429_v31, %v1934_v19  ;;  %12090 = vmatmul.mubr.bf16.gmra.mrb[60].mxu0 %v14631_v13 }
 0x264   : > { %12109 = vmatprep.mubr.bf16.mxu0 %v14075_v18 }
 0x26b   : > { %12110 = vmatmul.mubr.bf16.vlgmr.msra.gmra.mrb[0].mxu0 %v14087_v47 }
 0x26c   : > { %12113 = vmatprep.mubr.bf16.mxu0 %v14139_v7 }
 0x273   : > { %12114 = vmatmul.mubr.bf16.gmra.mrb[4].mxu0 %v14146_v16 }
 0x274   : > { %12117 = vmatprep.mubr.bf16.mxu0 %v14206_v56 }
 0x27b   : > { %12118 = vmatmul.mubr.bf16.gmra.mrb[8].mxu0 %v14219_v40  ;;  %v1118_v40 = vpop.permute.xlu1 %1117 }
 0x27c   : > { %12121 = vmatprep.mubr.bf16.mxu0 %v14262_v23  ;;  %v830_v23 = vpop.permute.xlu0 %829  ;;  %vm1172_vm14 = vcmp.eq.s32.totalorder %v1118_v40, %v13887_v32 }
 0x27d   : > { %vm884_vm15 = vcmp.eq.s32.totalorder %v830_v23, %v13887_v32 }
 0x280   : > { %v11985_v22 = vpop.f32.mrb[28].mxu0 }
 0x281   : > { %v14648_v1 = vadd.f32 %v14481_v4, %v11985_v22  ;;  %v1947_v31 = vpop.f32.mrb[29].mxu0  ;;  %v836_v4 = vpop.permute.xlu1 %835 }
 0x282   : > { %v14651_v18 = vadd.f32 %v14486_v10, %v1947_v31  ;;  %v11986_v47 = vpop.f32.mrb[30].mxu0  ;;  %v1121_v10 = vpop.permute.xlu0 %1120  ;;  %vm886_vm3 = vcmp.eq.s32.totalorder %v836_v4, %v13887_v32 }
 0x283   : > { %v14654_v7 = vadd.f32 %v14488_v5, %v11986_v47  ;;  %v1950_v16 = vpop.f32.mrb[31].mxu0  ;;  %12122 = vmatmul.mubr.bf16.gmra.mrb[12].mxu0 %v14269_v57  ;;  %vm1173_vm0 = vcmp.eq.s32.totalorder %v1121_v10, %v13887_v32  ;;  %v10021_v14 = vsel %vm886_vm3, 1.0, %v13480_v3 }
 0x284   : > { %v14658_v56 = vadd.f32 %v14491_v20, %v1950_v16  ;;  %12125 = vmatprep.mubr.bf16.mxu0 %v14315_v53  ;;  %v10068_v20 = vsel %vm1173_vm0, 1.0, %v13480_v3 }
 0x285   : > { %v839_v24 = vpop.permute.xlu1 %838 }
 0x286   : > { %v1124_v5 = vpop.permute.xlu0 %1123  ;;  %vm887_vm5 = vcmp.eq.s32.totalorder %v839_v24, %v13887_v32 }
 0x287   : > { %vm1174_vm6 = vcmp.eq.s32.totalorder %v1124_v5, %v13887_v32  ;;  %v10022_v27 = vsel %vm887_vm5, 1.0, %v13480_v3 }
 0x288   : > { %v10069_v54 = vsel %vm1174_vm6, 1.0, %v13480_v3 }
 0x289   : > { %v1127_v57 = vpop.permute.xlu1 %1126  ;;  %v1318_v60 = vadd.f32 %v10069_v54, %v10021_v14 }
 0x28a   : > { %v1454_v53 = vpop.permute.xlu0 %1453  ;;  %vm1175_vm4 = vcmp.eq.s32.totalorder %v1127_v57, %v13887_v32 }
 0x28b   : > { %12126 = vmatmul.mubr.bf16.gmra.mrb[40].mxu0 %v14325_v30  ;;  %vm1508_vm1 = vcmp.eq.s32.totalorder %v1454_v53, %v13887_v32  ;;  %v10070_v0 = vsel %vm1175_vm4, 1.0, %v13480_v3  ;;  %v12934_v53 = vld [vmem:[%s17788_s6 + $0x34] ss:$12 sps:$4 sm:$0xff]  }
 0x28c   : > { %12129 = vmatprep.mubr.bf16.mxu0 %v14371_v62  ;;  %v10020_v62 = vsel %vm885_vm13, 1.0, %v13480_v3  ;;  %v1319_v22 = vadd.f32 %v10070_v0, %v10022_v27  ;;  %3448 = vmatprep.mubr.bf16.mxu1 %v12934_v53  ;;  %vm9828_vm13 = vcmask 261120  }
 0x28d   : > { %v1457_v30 = vpop.permute.xlu1 %1456 }
 0x28e   : > { %vm1509_vm2 = vcmp.eq.s32.totalorder %v1457_v30, %v13887_v32  ;;  %v1463_v12 = vpop.permute.xlu0 %1462 }
 0x28f   : > { %v10116_v50 = vsel %vm1509_vm2, 1.0, %v13480_v3  ;;  %vm1511_vm7 = vcmp.eq.s32.totalorder %v1463_v12, %v13887_v32 }
 0x290   : > { %v10118_v16 = vsel %vm1511_vm7, 1.0, %v13480_v3 }
 0x291   : > { %v1460_v2 = vpop.permute.xlu1 %1459 }
 0x292   : > { %vm1510_vm8 = vcmp.eq.s32.totalorder %v1460_v2, %v13887_v32 }
 0x293   : > { %12130 = vmatmul.mubr.bf16.gmra.mrb[44].mxu0 %v14377_v51  ;;  %v10067_v51 = vsel %vm1172_vm14, 1.0, %v13480_v3  ;;  %v10117_v40 = vsel %vm1510_vm8, 1.0, %v13480_v3  ;;  %vm9880_vm14 = vcmask 7168  }
 0x294   : > { %12133 = vmatprep.mubr.bf16.mxu0 %v14409_v17  ;;  %v10019_v17 = vsel %vm884_vm15, 1.0, %v13480_v3  ;;  %v1654_v4 = vadd.f32 %v10117_v40, %v1318_v60 }
 0x295   : > { %v1316_v29 = vadd.f32 %v10067_v51, %v10019_v17 }
 0x29b   : > { %12134 = vmatmul.mubr.bf16.gmra.mrb[48].mxu0 %v14419_v45  ;;  %v1317_v45 = vadd.f32 %v10068_v20, %v10020_v62 }
 0x29c   : > { %12137 = vmatprep.mubr.bf16.mxu0 %v14454_v15  ;;  %v10115_v15 = vsel %vm1508_vm1, 1.0, %v13480_v3 }
 0x29d   : > { %v1652_v6 = vadd.f32 %v10115_v15, %v1316_v29  ;;  %v1653_v58 = vadd.f32 %v10116_v50, %v1317_v45 }
 0x29f   : > { %v2552_v23 = vpack.c.bf16 %v1653_v58, %v1652_v6 }
 0x2a3   : > { %12138 = vmatmul.mubr.bf16.gmra.mrb[52].mxu0 %v14460_v38 }
 0x2a4   : > { %12141 = vmatprep.mubr.bf16.mxu0 %v14621_v11 }
 0x2a5   : > { %v11989_v34 = vpop.f32.mrb[32].mxu0 }
 0x2a6   : > { %v14692_v55 = vadd.f32 %v14547_v37, %v11989_v34  ;;  %v1963_v19 = vpop.f32.mrb[33].mxu0  ;;  %v1655_v37 = vadd.f32 %v10118_v16, %v1319_v22 }
 0x2a7   : > { %v14695_v38 = vadd.f32 %v14549_v8, %v1963_v19  ;;  %v11990_v31 = vpop.f32.mrb[34].mxu0 }
 0x2a8   : > { %v14698_v47 = vadd.f32 %v14551_v43, %v11990_v31  ;;  %v1966_v11 = vpop.f32.mrb[35].mxu0  ;;  %v2553_v8 = vpack.c.bf16 %v1655_v37, %v1654_v4 }
 0x2a9   : > { %v14703_v32 = vadd.f32 %v14553_v25, %v1966_v11 }
 0x2ab   : > { %12142 = vmatmul.mubr.bf16.gmra.mrb[56].mxu0 %v14631_v13 }
 0x2ac   : > { %12145 = vmatprep.mubr.bf16.mxu0 %v2552_v23 }
 0x2b3   : > { %12146 = vmatmul.mubr.bf16.gmra.mrb[60].mxu0 %v2553_v8 }
 0x2c6   : > { %v11993_v10 = vpop.f32.mrb[36].mxu0 }
 0x2c7   : > { %v14707_v43 = vadd.f32 %v14585_v48, %v11993_v10  ;;  %v1979_v24 = vpop.f32.mrb[37].mxu0  ;;  %v12937_v48 = vld [vmem:[%s17788_s6 + $0x4] ss:$12 sps:$4 sm:$0xff]  }
 0x2c8   : > { %v14710_v5 = vadd.f32 %v14587_v26, %v1979_v24  ;;  %v11994_v3 = vpop.f32.mrb[38].mxu0  ;;  %3432 = vmatprep.mubr.bf16.mxu0 %v12937_v48  ;;  %v14727_v26 = vld [vmem:[%s17787_s5] ss:$0 sm:$0xff] }
 0x2c9   : > { %v14713_v57 = vadd.f32 %v14589_v52, %v11994_v3  ;;  %v1982_v25 = vpop.f32.mrb[39].mxu0 }
 0x2ca   : > { %v14716_v13 = vadd.f32 %v14591_v21, %v1982_v25 }
 0x33e   : > { %v12111_v52 = vpop.f32.mrb[0].mxu0 }
 0x33f   : > { %v2861_v30 = vadd.f32 %v12111_v52, %v14727_v26  ;;  %v2653_v21 = vpop.f32.mrb[1].mxu0 }
 0x340   : > { %v2859_v62 = vadd.f32 %v14727_v26, %v2653_v21  ;;  %v12112_v51 = vpop.f32.mrb[2].mxu0 }
 0x341   : > { %v2862_v17 = vadd.f32 %v12112_v51, %v14727_v26  ;;  %v2656_v20 = vpop.f32.mrb[3].mxu0  ;;  %v2901_v45 = vmax.f32 %v2861_v30, 0.0 }
 0x342   : > { %v2860_v29 = vadd.f32 %v14727_v26, %v2656_v20  ;;  %v2899_v50 = vmax.f32 %v2859_v62, 0.0 }
 0x343   : > { %v2902_v15 = vmax.f32 %v2862_v17, 0.0 }
 0x344   : > { %v2900_v12 = vmax.f32 %v2860_v29, 0.0 }
 0x345   : > { %v14733_v2 = vpack.c.bf16 %v2902_v15, %v2901_v45 }
 0x346   : > { %v14735_v14 = vpack.c.bf16 %v2900_v12, %v2899_v50  ;;  %v12115_v27 = vpop.f32.mrb[4].mxu0 }
 0x347   : > { %v2865_v54 = vadd.f32 %v12115_v27, %v14727_v26  ;;  %v2669_v0 = vpop.f32.mrb[5].mxu0 }
 0x348   : > { %v2863_v6 = vadd.f32 %v14727_v26, %v2669_v0  ;;  %v12116_v58 = vpop.f32.mrb[6].mxu0  ;;  %3401 = vmatpush1.bf16.msra.mxu0 %v14735_v14  ;;  %12461 = vmatpush1.bf16.msra.mxu1 %v14735_v14 }
 0x349   : > { %v2866_v34 = vadd.f32 %v12116_v58, %v14727_v26  ;;  %v2672_v19 = vpop.f32.mrb[7].mxu0  ;;  %3402 = vmatprep.subr.bf16.mxu0 %v17803_v9  ;;  %12446 = vmatprep.subr.bf16.mxu1 %v17803_v9  ;;  %v2905_v22 = vmax.f32 %v2865_v54, 0.0 }
 0x34a   : > { %v2864_v60 = vadd.f32 %v14727_v26, %v2672_v19  ;;  %v2903_v11 = vmax.f32 %v2863_v6, 0.0 }
 0x34b   : > { %v2906_v31 = vmax.f32 %v2866_v34, 0.0 }
 0x34c   : > { %v2904_v16 = vmax.f32 %v2864_v60, 0.0  ;;  %3403 = vmatpush1.bf16.msra.mxu0 %v14733_v2  ;;  %12462 = vmatpush1.bf16.msra.mxu1 %v14733_v2 }
 0x34d   : > { %v14747_v40 = vpack.c.bf16 %v2906_v31, %v2905_v22  ;;  %3404 = vmatprep.subr.bf16.mxu0 %v17803_v9  ;;  %12447 = vmatprep.subr.bf16.mxu1 %v17803_v9 }
 0x34e   : > { %v14751_v23 = vpack.c.bf16 %v2904_v16, %v2903_v11  ;;  %v12119_v37 = vpop.f32.mrb[8].mxu0 }
 0x34f   : > { %v2869_v4 = vadd.f32 %v12119_v37, %v14727_v26  ;;  %v2685_v8 = vpop.f32.mrb[9].mxu0 }
 0x350   : > { %v2867_v10 = vadd.f32 %v14727_v26, %v2685_v8  ;;  %v12120_v24 = vpop.f32.mrb[10].mxu0  ;;  %3405 = vmatpush1.bf16.msra.mxu0 %v14751_v23  ;;  %12463 = vmatpush1.bf16.msra.mxu1 %v14751_v23 }
 0x351   : > { %v2870_v3 = vadd.f32 %v12120_v24, %v14727_v26  ;;  %v2688_v25 = vpop.f32.mrb[11].mxu0  ;;  %3406 = vmatprep.subr.bf16.mxu0 %v17803_v9  ;;  %12448 = vmatprep.subr.bf16.mxu1 %v17803_v9  ;;  %v2909_v48 = vmax.f32 %v2869_v4, 0.0 }
 0x352   : > { %v2868_v53 = vadd.f32 %v14727_v26, %v2688_v25  ;;  %v2907_v30 = vmax.f32 %v2867_v10, 0.0 }
 0x353   : > { %v2910_v52 = vmax.f32 %v2870_v3, 0.0 }
 0x354   : > { %v2908_v21 = vmax.f32 %v2868_v53, 0.0  ;;  %3407 = vmatpush1.bf16.msra.mxu0 %v14747_v40  ;;  %12464 = vmatpush1.bf16.msra.mxu1 %v14747_v40 }
 0x355   : > { %v14763_v62 = vpack.c.bf16 %v2910_v52, %v2909_v48  ;;  %3408 = vmatprep.subr.bf16.mxu0 %v17803_v9  ;;  %12449 = vmatprep.subr.bf16.mxu1 %v17803_v9 }
 0x356   : > { %v14767_v51 = vpack.c.bf16 %v2908_v21, %v2907_v30  ;;  %v12123_v17 = vpop.f32.mrb[12].mxu0 }
 0x357   : > { %v2873_v20 = vadd.f32 %v12123_v17, %v14727_v26  ;;  %v2701_v29 = vpop.f32.mrb[13].mxu0 }
 0x358   : > { %v2871_v45 = vadd.f32 %v14727_v26, %v2701_v29  ;;  %v12124_v15 = vpop.f32.mrb[14].mxu0  ;;  %3409 = vmatpush1.bf16.msra.mxu0 %v14767_v51  ;;  %12465 = vmatpush1.bf16.msra.mxu1 %v14767_v51 }
 0x359   : > { %v2874_v50 = vadd.f32 %v12124_v15, %v14727_v26  ;;  %v2704_v12 = vpop.f32.mrb[15].mxu0  ;;  %3410 = vmatprep.subr.bf16.mxu0 %v17803_v9  ;;  %12450 = vmatprep.subr.bf16.mxu1 %v17803_v9  ;;  %v2913_v54 = vmax.f32 %v2873_v20, 0.0 }
 0x35a   : > { %v2872_v27 = vadd.f32 %v14727_v26, %v2704_v12  ;;  %v2911_v6 = vmax.f32 %v2871_v45, 0.0 }
 0x35b   : > { %v2914_v0 = vmax.f32 %v2874_v50, 0.0 }
 0x35c   : > { %v2912_v58 = vmax.f32 %v2872_v27, 0.0  ;;  %3411 = vmatpush1.bf16.msra.mxu0 %v14763_v62  ;;  %12466 = vmatpush1.bf16.msra.mxu1 %v14763_v62 }
 0x35d   : > { %v14779_v34 = vpack.c.bf16 %v2914_v0, %v2913_v54  ;;  %3412 = vmatprep.subr.bf16.mxu0 %v17803_v9  ;;  %12451 = vmatprep.subr.bf16.mxu1 %v17803_v9 }
 0x35e   : > { %v14783_v19 = vpack.c.bf16 %v2912_v58, %v2911_v6  ;;  %v12127_v60 = vpop.f32.mrb[40].mxu0 }
 0x35f   : > { %v12478_v22 = vadd.f32 %v12127_v60, %v14523_v33  ;;  %v2717_v31 = vpop.f32.mrb[41].mxu0 }
 0x360   : > { %v12480_v11 = vadd.f32 %v2717_v31, %v14526_v44  ;;  %v12128_v16 = vpop.f32.mrb[42].mxu0  ;;  %3413 = vmatpush1.bf16.msra.mxu0 %v14783_v19  ;;  %12467 = vmatpush1.bf16.msra.mxu1 %v14783_v19 }
 0x361   : > { %v2877_v37 = vadd.f32 %v12478_v22, %v14727_v26  ;;  %v12482_v4 = vadd.f32 %v12128_v16, %v14530_v63  ;;  %v2720_v8 = vpop.f32.mrb[43].mxu0  ;;  %3414 = vmatprep.subr.bf16.mxu0 %v17803_v9  ;;  %12452 = vmatprep.subr.bf16.mxu1 %v17803_v9 }
 0x362   : > { %v2875_v10 = vadd.f32 %v12480_v11, %v14727_v26  ;;  %v12484_v33 = vadd.f32 %v2720_v8, %v14534_v35 }
 0x363   : > { %v2878_v44 = vadd.f32 %v12482_v4, %v14727_v26  ;;  %v2917_v3 = vmax.f32 %v2877_v37, 0.0 }
 0x364   : > { %v2876_v24 = vadd.f32 %v12484_v33, %v14727_v26  ;;  %3415 = vmatpush1.bf16.msra.mxu0 %v14779_v34  ;;  %12468 = vmatpush1.bf16.msra.mxu1 %v14779_v34  ;;  %v2915_v63 = vmax.f32 %v2875_v10, 0.0 }
 0x365   : > { %v2918_v25 = vmax.f32 %v2878_v44, 0.0  ;;  %3416 = vmatprep.subr.bf16.mxu0 %v17803_v9  ;;  %12453 = vmatprep.subr.bf16.mxu1 %v17803_v9 }
 0x366   : > { %v2916_v53 = vmax.f32 %v2876_v24, 0.0  ;;  %v12131_v48 = vpop.f32.mrb[44].mxu0 }
 0x367   : > { %v12486_v52 = vadd.f32 %v12131_v48, %v14570_v41  ;;  %v2733_v35 = vpop.f32.mrb[45].mxu0  ;;  %v14802_v30 = vpack.c.bf16 %v2918_v25, %v2917_v3 }
 0x368   : > { %v12488_v21 = vadd.f32 %v2733_v35, %v14574_v59  ;;  %v12132_v17 = vpop.f32.mrb[46].mxu0  ;;  %v14805_v20 = vpack.c.bf16 %v2916_v53, %v2915_v63 }
 0x369   : > { %v2881_v29 = vadd.f32 %v12486_v52, %v14727_v26  ;;  %v12490_v45 = vadd.f32 %v12132_v17, %v14578_v36  ;;  %v2736_v15 = vpop.f32.mrb[47].mxu0 }
 0x36a   : > { %v2879_v50 = vadd.f32 %v12488_v21, %v14727_v26  ;;  %v12492_v12 = vadd.f32 %v2736_v15, %v14581_v49  ;;  %3417 = vmatpush1.bf16.msra.mxu0 %v14805_v20  ;;  %12469 = vmatpush1.bf16.msra.mxu1 %v14805_v20 }
 0x36b   : > { %v2882_v41 = vadd.f32 %v12490_v45, %v14727_v26  ;;  %3418 = vmatprep.subr.bf16.mxu0 %v17803_v9  ;;  %12454 = vmatprep.subr.bf16.mxu1 %v17803_v9  ;;  %v2921_v27 = vmax.f32 %v2881_v29, 0.0 }
 0x36c   : > { %v2880_v59 = vadd.f32 %v12492_v12, %v14727_v26  ;;  %v2919_v36 = vmax.f32 %v2879_v50, 0.0 }
 0x36d   : > { %v2922_v54 = vmax.f32 %v2882_v41, 0.0 }
 0x36e   : > { %v2920_v0 = vmax.f32 %v2880_v59, 0.0  ;;  %v12135_v6 = vpop.f32.mrb[48].mxu0  ;;  %3419 = vmatpush1.bf16.msra.mxu0 %v14802_v30  ;;  %12470 = vmatpush1.bf16.msra.mxu1 %v14802_v30 }
 0x36f   : > { %v12494_v49 = vadd.f32 %v12135_v6, %v14626_v39  ;;  %v2749_v58 = vpop.f32.mrb[49].mxu0  ;;  %3420 = vmatprep.subr.bf16.mxu0 %v17803_v9  ;;  %12455 = vmatprep.subr.bf16.mxu1 %v17803_v9  ;;  %v14822_v60 = vpack.c.bf16 %v2922_v54, %v2921_v27 }
 0x370   : > { %v12496_v22 = vadd.f32 %v2749_v58, %v14629_v46  ;;  %v12136_v31 = vpop.f32.mrb[50].mxu0  ;;  %v14825_v11 = vpack.c.bf16 %v2920_v0, %v2919_v36 }
 0x371   : > { %v2885_v16 = vadd.f32 %v12494_v49, %v14727_v26  ;;  %v12498_v37 = vadd.f32 %v12136_v31, %v14634_v61  ;;  %v2752_v4 = vpop.f32.mrb[51].mxu0 }
 0x372   : > { %v2883_v8 = vadd.f32 %v12496_v22, %v14727_v26  ;;  %v12500_v39 = vadd.f32 %v2752_v4, %v14637_v42  ;;  %3421 = vmatpush1.bf16.msra.mxu0 %v14825_v11  ;;  %12471 = vmatpush1.bf16.msra.mxu1 %v14825_v11 }
 0x373   : > { %v2886_v10 = vadd.f32 %v12498_v37, %v14727_v26  ;;  %3422 = vmatprep.subr.bf16.mxu0 %v17803_v9  ;;  %12456 = vmatprep.subr.bf16.mxu1 %v17803_v9  ;;  %v2925_v33 = vmax.f32 %v2885_v16, 0.0 }
 0x374   : > { %v2884_v46 = vadd.f32 %v12500_v39, %v14727_v26  ;;  %v2923_v61 = vmax.f32 %v2883_v8, 0.0 }
 0x375   : > { %v2926_v44 = vmax.f32 %v2886_v10, 0.0 }
 0x376   : > { %v2924_v24 = vmax.f32 %v2884_v46, 0.0  ;;  %v12139_v3 = vpop.f32.mrb[52].mxu0  ;;  %3423 = vmatpush1.bf16.msra.mxu0 %v14822_v60  ;;  %12472 = vmatpush1.bf16.msra.mxu1 %v14822_v60 }
 0x377   : > { %v12502_v42 = vadd.f32 %v12139_v3, %v14648_v1  ;;  %v2765_v25 = vpop.f32.mrb[53].mxu0  ;;  %3424 = vmatprep.subr.bf16.mxu0 %v17803_v9  ;;  %12457 = vmatprep.subr.bf16.mxu1 %v17803_v9  ;;  %v14842_v63 = vpack.c.bf16 %v2926_v44, %v2925_v33 }
 0x378   : > { %v12504_v53 = vadd.f32 %v2765_v25, %v14651_v18  ;;  %v12140_v48 = vpop.f32.mrb[54].mxu0  ;;  %v14845_v52 = vpack.c.bf16 %v2924_v24, %v2923_v61 }
 0x379   : > { %v2889_v35 = vadd.f32 %v12502_v42, %v14727_v26  ;;  %v12506_v21 = vadd.f32 %v12140_v48, %v14654_v7  ;;  %v2768_v17 = vpop.f32.mrb[55].mxu0 }
 0x37a   : > { %v2887_v29 = vadd.f32 %v12504_v53, %v14727_v26  ;;  %v12508_v1 = vadd.f32 %v2768_v17, %v14658_v56  ;;  %3425 = vmatpush1.bf16.msra.mxu0 %v14845_v52  ;;  %12473 = vmatpush1.bf16.msra.mxu1 %v14845_v52  ;;  %v12938_v53 = vld [vmem:[%s17788_s6 + $0x4c] ss:$12 sps:$4 sm:$0xff]  }
 0x37b   : > { %v2890_v45 = vadd.f32 %v12506_v21, %v14727_v26  ;;  %3426 = vmatprep.subr.bf16.mxu0 %v17803_v9  ;;  %12458 = vmatprep.subr.bf16.mxu1 %v17803_v9  ;;  %v2929_v15 = vmax.f32 %v2889_v35, 0.0 }
 0x37c   : > { %v2888_v18 = vadd.f32 %v12508_v1, %v14727_v26  ;;  %v2927_v7 = vmax.f32 %v2887_v29, 0.0 }
 0x37d   : > { %v2930_v50 = vmax.f32 %v2890_v45, 0.0  ;;  %v12941_v45 = vld [vmem:[%s17788_s6 + $0x64] ss:$12 sps:$4 sm:$0xff]  }
 0x37e   : > { %v2928_v12 = vmax.f32 %v2888_v18, 0.0  ;;  %v12143_v41 = vpop.f32.mrb[56].mxu0  ;;  %3427 = vmatpush1.bf16.msra.mxu0 %v14842_v63  ;;  %12474 = vmatpush1.bf16.msra.mxu1 %v14842_v63  ;;  %v12989_v18 = vld [vmem:[%s17788_s6 + $0x1c] ss:$12 sps:$4 sm:$0xff]  }
 0x37f   : > { %v12510_v56 = vadd.f32 %v12143_v41, %v14692_v55  ;;  %v2781_v59 = vpop.f32.mrb[57].mxu0  ;;  %3428 = vmatprep.subr.bf16.mxu0 %v17803_v9  ;;  %12459 = vmatprep.subr.bf16.mxu1 %v17803_v9  ;;  %v14862_v27 = vpack.c.bf16 %v2930_v50, %v2929_v15  ;;  %v12992_v15 = vld [vmem:[%s17788_s6 + $0x18] ss:$12 sps:$4 sm:$0xff]   ;;  %v12943_v50 = vld [vmem:[%s17788_s6 + $0x60] ss:$12 sps:$4 sm:$0xff]  }
 0x380   : > { %v12512_v54 = vadd.f32 %v2781_v59, %v14695_v38  ;;  %v12144_v36 = vpop.f32.mrb[58].mxu0  ;;  %v14865_v0 = vpack.c.bf16 %v2928_v12, %v2927_v7  ;;  %v12944_v7 = vld [vmem:[%s17788_s6 + $0x7c] ss:$12 sps:$4 sm:$0xff]   ;;  %v12946_v12 = vld [vmem:[%s17788_s6 + $0x78] ss:$12 sps:$4 sm:$0xff]  }
 0x381   : > { %v2893_v6 = vadd.f32 %v12510_v56, %v14727_v26  ;;  %v12514_v49 = vadd.f32 %v12144_v36, %v14698_v47  ;;  %v2784_v58 = vpop.f32.mrb[59].mxu0  ;;  %v12932_v47 = vld [vmem:[%s17788_s6 + $0x30] ss:$12 sps:$4 sm:$0xff]   ;;  %v12947_v41 = vld [vmem:[%s17788_s6 + $0x94] ss:$12 sps:$4 sm:$0xff]  }
 0x382   : > { %v2891_v22 = vadd.f32 %v12512_v54, %v14727_v26  ;;  %v12516_v55 = vadd.f32 %v2784_v58, %v14703_v32  ;;  %3429 = vmatpush1.bf16.msra.mxu0 %v14865_v0  ;;  %12475 = vmatpush1.bf16.msra.mxu1 %v14865_v0  ;;  %v12935_v32 = vld [vmem:[%s17788_s6] ss:$12 sps:$4 sm:$0xff]   ;;  %v12949_v56 = vld [vmem:[%s17788_s6 + $0x90] ss:$12 sps:$4 sm:$0xff]   ;;  %v12952_v54 = vld [vmem:[%s17788_s6 + $0xa8] ss:$12 sps:$4 sm:$0xff]  }
 0x383   : > { %v2894_v31 = vadd.f32 %v12514_v49, %v14727_v26  ;;  %3430 = vmatprep.subr.bf16.mxu0 %v17803_v9  ;;  %12460 = vmatprep.subr.bf16.mxu1 %v17803_v9  ;;  %v2933_v16 = vmax.f32 %v2893_v6, 0.0  ;;  %v12950_v59 = vld [vmem:[%s17788_s6 + $0xac] ss:$12 sps:$4 sm:$0xff]   ;;  %v12953_v36 = vld [vmem:[%s17788_s6 + $0xc4] ss:$12 sps:$4 sm:$0xff]  }
 0x384   : > { %v2892_v38 = vadd.f32 %v12516_v55, %v14727_v26  ;;  %v2931_v4 = vmax.f32 %v2891_v22, 0.0  ;;  %v12955_v6 = vld [vmem:[%s17788_s6 + $0xc0] ss:$12 sps:$4 sm:$0xff]   ;;  %v12956_v49 = vld [vmem:[%s17788_s6 + $0xdc] ss:$12 sps:$4 sm:$0xff]  }
 0x385   : > { %v2934_v37 = vmax.f32 %v2894_v31, 0.0  ;;  %v12958_v58 = vld [vmem:[%s17788_s6 + $0xd8] ss:$12 sps:$4 sm:$0xff]   ;;  %v12959_v22 = vld [vmem:[%s17788_s6 + $0xf4] ss:$12 sps:$4 sm:$0xff]  }
 0x386   : > { %v2932_v8 = vmax.f32 %v2892_v38, 0.0  ;;  %v12147_v39 = vpop.f32.mrb[60].mxu0  ;;  %3431 = vmatpush1.bf16.msra.mxu0 %v14862_v27  ;;  %12476 = vmatpush1.bf16.msra.mxu1 %v14862_v27  ;;  %v12961_v55 = vld [vmem:[%s17788_s6 + $0xf0] ss:$12 sps:$4 sm:$0xff]   ;;  %v12962_v31 = vld [vmem:[%s17788_s6 + $0x10c] ss:$12 sps:$4 sm:$0xff]  }
 0x387   : > { %v14885_v10 = vpack.c.bf16 %v2934_v37, %v2933_v16  ;;  %v12518_v46 = vadd.f32 %v12147_v39, %v14707_v43  ;;  %v2797_v33 = vpop.f32.mrb[61].mxu0  ;;  %v12964_v38 = vld [vmem:[%s17788_s6 + $0x108] ss:$12 sps:$4 sm:$0xff]   ;;  %v12965_v16 = vld [vmem:[%s17788_s6 + $0x124] ss:$12 sps:$4 sm:$0xff]  }
 0x388   : > { %v14888_v44 = vpack.c.bf16 %v2932_v8, %v2931_v4  ;;  %v12520_v61 = vadd.f32 %v2797_v33, %v14710_v5  ;;  %v12148_v24 = vpop.f32.mrb[62].mxu0  ;;  %v12967_v37 = vld [vmem:[%s17788_s6 + $0x120] ss:$12 sps:$4 sm:$0xff]   ;;  %v13012_v8 = vld [vmem:[%s17788_s6 + $0x1e8] ss:$12 sps:$4 sm:$0xff]  }
 0x389   : > { %v2897_v3 = vadd.f32 %v12518_v46, %v14727_v26  ;;  %v12522_v42 = vadd.f32 %v12148_v24, %v14713_v57  ;;  %v2800_v25 = vpop.f32.mrb[63].mxu0  ;;  %3449 = vmatmul.mubr.bf16.vlgmr.msra.gmra.mrb[24].mxu1 %v12932_v47  ;;  %3433 = vmatmul.mubr.bf16.vlgmr.msra.gmra.mrb[64].mxu0 %v12935_v32  ;;  %v12968_v47 = vld [vmem:[%s17788_s6 + $0x13c] ss:$12 sps:$4 sm:$0xff]   ;;  %v12970_v32 = vld [vmem:[%s17788_s6 + $0x138] ss:$12 sps:$4 sm:$0xff]  }
 0x38a   : > { %v2895_v48 = vadd.f32 %v12520_v61, %v14727_v26  ;;  %v12524_v43 = vadd.f32 %v2800_v25, %v14716_v13  ;;  %12149 = vmatprep.subr.bf16.mxu1 %v14888_v44  ;;  %12197 = vmatprep.subr.bf16.mxu0 %v14888_v44  ;;  %v12940_v13 = vld [vmem:[%s17788_s6 + $0x48] ss:$12 sps:$4 sm:$0xff]   ;;  %v12973_v39 = vld [vmem:[%s17788_s6 + $0x150] ss:$12 sps:$4 sm:$0xff]   ;;  %v13013_v46 = vld [vmem:[%s17788_s6 + $0x200] ss:$12 sps:$4 sm:$0xff]  }
 0x38b   : > { %v2898_v5 = vadd.f32 %v12522_v42, %v14727_v26  ;;  %12150 = vmatpush3.bf16.msra.mxu1 %v14888_v44  ;;  %12198 = vmatpush3.bf16.msra.mxu0 %v14888_v44  ;;  %v2937_v35 = vmax.f32 %v2897_v3, 0.0  ;;  %v12971_v4 = vld [vmem:[%s17788_s6 + $0x154] ss:$12 sps:$4 sm:$0xff]   ;;  %v12974_v33 = vld [vmem:[%s17788_s6 + $0x16c] ss:$12 sps:$4 sm:$0xff]  }
 0x38c   : > { %v2896_v57 = vadd.f32 %v12524_v43, %v14727_v26  ;;  %12151 = vmatprep.subr.bf16.mxu1 %v14885_v10  ;;  %12199 = vmatprep.subr.bf16.mxu0 %v14885_v10  ;;  %v2935_v17 = vmax.f32 %v2895_v48, 0.0  ;;  %v12976_v61 = vld [vmem:[%s17788_s6 + $0x168] ss:$12 sps:$4 sm:$0xff]   ;;  %v12977_v24 = vld [vmem:[%s17788_s6 + $0x184] ss:$12 sps:$4 sm:$0xff]  }
 0x38d   : > { %v2938_v21 = vmax.f32 %v2898_v5, 0.0  ;;  %3456 = vmatprep.mubr.bf16.mxu1 %v12938_v53  ;;  %3440 = vmatprep.mubr.bf16.mxu0 %v12989_v18  ;;  %v13020_v3 = vld [vmem:[%s17788_s6 + $0x218] ss:$12 sps:$4 sm:$0xff]   ;;  %v12979_v42 = vld [vmem:[%s17788_s6 + $0x180] ss:$12 sps:$4 sm:$0xff]  }
 0x38e   : > { %v2936_v29 = vmax.f32 %v2896_v57, 0.0  ;;  %v13021_v25 = vld [vmem:[%s17788_s6 + $0x230] ss:$12 sps:$4 sm:$0xff]   ;;  %v12982_v48 = vld [vmem:[%s17788_s6 + $0x198] ss:$12 sps:$4 sm:$0xff]  }
 0x38f   : > { %v14909_v1 = vpack.c.bf16 %v2938_v21, %v2937_v35  ;;  %12152 = vmatpush3.bf16.msra.mxu1 %v14885_v10  ;;  %12200 = vmatpush3.bf16.msra.mxu0 %v14885_v10  ;;  %v12980_v53 = vld [vmem:[%s17788_s6 + $0x19c] ss:$12 sps:$4 sm:$0xff]   ;;  %v12983_v43 = vld [vmem:[%s17788_s6 + $0x1b4] ss:$12 sps:$4 sm:$0xff]   ;;  %v12986_v21 = vld [vmem:[%s17788_s6 + $0x1cc] ss:$12 sps:$4 sm:$0xff]  }
 0x390   : > { %v14913_v26 = vpack.c.bf16 %v2936_v29, %v2935_v17  ;;  %v13028_v5 = vld [vmem:[%s17788_s6 + $0x248] ss:$12 sps:$4 sm:$0xff]   ;;  %v12985_v57 = vld [vmem:[%s17788_s6 + $0x1b0] ss:$12 sps:$4 sm:$0xff]   ;;  %v13029_v35 = vld [vmem:[%s17788_s6 + $0x260] ss:$12 sps:$4 sm:$0xff]  }
 0x391   : > { %3457 = vmatmul.mubr.bf16.gmra.mrb[28].mxu1 %v12940_v13  ;;  %3441 = vmatmul.mubr.bf16.gmra.mrb[68].mxu0 %v12992_v15  ;;  %v12988_v13 = vld [vmem:[%s17788_s6 + $0x1c8] ss:$12 sps:$4 sm:$0xff]   ;;  %v13036_v29 = vld [vmem:[%s17788_s6 + $0x278] ss:$12 sps:$4 sm:$0xff]   ;;  %v13037_v18 = vld [vmem:[%s17788_s6 + $0x290] ss:$12 sps:$4 sm:$0xff]  }
 0x392   : > { %12153 = vmatprep.subr.bf16.mxu1 %v14913_v26  ;;  %12201 = vmatprep.subr.bf16.mxu0 %v14913_v26  ;;  %v12991_v17 = vld [vmem:[%s17788_s6 + $0x8] ss:$12 sps:$4 sm:$0xff]   ;;  %v12994_v15 = vld [vmem:[%s17788_s6 + $0x38] ss:$12 sps:$4 sm:$0xff]  }
 0x393   : > { %12154 = vmatpush3.bf16.msra.mxu1 %v14913_v26  ;;  %12202 = vmatpush3.bf16.msra.mxu0 %v14913_v26 }
 0x394   : > { %12155 = vmatprep.subr.bf16.mxu1 %v14909_v1  ;;  %12203 = vmatprep.subr.bf16.mxu0 %v14909_v1 }
 0x395   : > { %3464 = vmatprep.mubr.bf16.mxu1 %v12941_v45  ;;  %12205 = vmatprep.mubr.msk.bf16.mxu0 %vm3339_vm9, %v13012_v8  ;;  %v12993_v45 = vld [vmem:[%s17788_s6 + $0x20] ss:$12 sps:$4 sm:$0xff]   ;;  %v13068_v8 = vld [vmem:[%s17788_s6 + $0x338] ss:$12 sps:$4 sm:$0xff]  }
 0x397   : > { %12156 = vmatpush3.bf16.msra.mxu1 %v14909_v1  ;;  %12204 = vmatpush3.bf16.msra.mxu0 %v14909_v1 }
 0x398   : > { %4263 = vmatprep.subr.bf16.mxu1 %v17803_v9 }
 0x399   : > { %3465 = vmatmul.mubr.bf16.gmra.mrb[32].mxu1 %v12943_v50  ;;  %v12995_v50 = vld [vmem:[%s17788_s6 + $0x50] ss:$12 sps:$4 sm:$0xff]  }
 0x39a   : > { %3472 = vmatprep.mubr.bf16.mxu1 %v12944_v7  ;;  %12206 = vmatmul.mubr.msk.bf16.vlgmr.msra.gmra.mrb[72].mxu0 %vm3339_vm9, %v13013_v46  ;;  %v12996_v7 = vld [vmem:[%s17788_s6 + $0x68] ss:$12 sps:$4 sm:$0xff]   ;;  %v13069_v46 = vld [vmem:[%s17788_s6 + $0x350] ss:$12 sps:$4 sm:$0xff]  }
 0x39b   : > { %12209 = vmatprep.mubr.msk.bf16.mxu0 %vm3339_vm9, %v13020_v3  ;;  %v13011_v3 = vld [vmem:[%s17788_s6 + $0x1d0] ss:$12 sps:$4 sm:$0xff]  }
 0x3a1   : > { %3473 = vmatmul.mubr.bf16.gmra.mrb[36].mxu1 %v12946_v12  ;;  %v13044_v12 = vld [vmem:[%s17788_s6 + $0x2a8] ss:$12 sps:$4 sm:$0xff]  }
 0x3a2   : > { %3480 = vmatprep.mubr.bf16.mxu1 %v12947_v41  ;;  %12210 = vmatmul.mubr.msk.bf16.gmra.mrb[76].mxu0 %vm3339_vm9, %v13021_v25  ;;  %v12997_v41 = vld [vmem:[%s17788_s6 + $0x80] ss:$12 sps:$4 sm:$0xff]   ;;  %v13016_v25 = vld [vmem:[%s17788_s6 + $0x1e4] ss:$12 sps:$4 sm:$0xff]  }
 0x3a3   : > { %12213 = vmatprep.mubr.msk.bf16.mxu0 %vm3339_vm9, %v13028_v5 }
 0x3a9   : > { %3481 = vmatmul.mubr.bf16.gmra.mrb[40].mxu1 %v12949_v56  ;;  %v13045_v56 = vld [vmem:[%s17788_s6 + $0x2c0] ss:$12 sps:$4 sm:$0xff]  }
 0x3aa   : > { %3488 = vmatprep.mubr.bf16.mxu1 %v12950_v59  ;;  %12214 = vmatmul.mubr.msk.bf16.gmra.mrb[80].mxu0 %vm3339_vm9, %v13029_v35  ;;  %v12998_v59 = vld [vmem:[%s17788_s6 + $0x98] ss:$12 sps:$4 sm:$0xff]   ;;  %v13077_v35 = vld [vmem:[%s17788_s6 + $0x380] ss:$12 sps:$4 sm:$0xff]  }
 0x3ab   : > { %12217 = vmatprep.mubr.msk.bf16.mxu0 %vm3339_vm9, %v13036_v29 }
 0x3b1   : > { %3489 = vmatmul.mubr.bf16.gmra.mrb[44].mxu1 %v12952_v54  ;;  %v12999_v54 = vld [vmem:[%s17788_s6 + $0xb0] ss:$12 sps:$4 sm:$0xff]  }
 0x3b2   : > { %3496 = vmatprep.mubr.bf16.mxu1 %v12953_v36  ;;  %12218 = vmatmul.mubr.msk.bf16.gmra.mrb[84].mxu0 %vm3339_vm9, %v13037_v18  ;;  %v13000_v36 = vld [vmem:[%s17788_s6 + $0xc8] ss:$12 sps:$4 sm:$0xff]  }
 0x3b3   : > { %12221 = vmatprep.mubr.msk.bf16.mxu0 %vm3339_vm9, %v13044_v12 }
 0x3b9   : > { %3497 = vmatmul.mubr.bf16.gmra.mrb[48].mxu1 %v12955_v6  ;;  %v13052_v6 = vld [vmem:[%s17788_s6 + $0x2d8] ss:$12 sps:$4 sm:$0xff]  }
 0x3ba   : > { %3504 = vmatprep.mubr.bf16.mxu1 %v12956_v49  ;;  %12222 = vmatmul.mubr.msk.bf16.gmra.mrb[88].mxu0 %vm3339_vm9, %v13045_v56  ;;  %v13001_v49 = vld [vmem:[%s17788_s6 + $0xe0] ss:$12 sps:$4 sm:$0xff]   ;;  %v13019_v56 = vld [vmem:[%s17788_s6 + $0x1f8] ss:$12 sps:$4 sm:$0xff]  }
 0x3bb   : > { %12225 = vmatprep.mubr.msk.bf16.mxu0 %vm3339_vm9, %v13052_v6 }
 0x3c1   : > { %3505 = vmatmul.mubr.bf16.gmra.mrb[52].mxu1 %v12958_v58  ;;  %v13053_v58 = vld [vmem:[%s17788_s6 + $0x2f0] ss:$12 sps:$4 sm:$0xff]  }
 0x3c2   : > { %3512 = vmatprep.mubr.bf16.mxu1 %v12959_v22  ;;  %v13002_v22 = vld [vmem:[%s17788_s6 + $0xf8] ss:$12 sps:$4 sm:$0xff]   ;;  %12226 = vmatmul.mubr.msk.bf16.gmra.mrb[92].mxu0 %vm3339_vm9, %v13053_v58 }
 0x3c9   : > { %3513 = vmatmul.mubr.bf16.gmra.mrb[56].mxu1 %v12961_v55  ;;  %v13003_v55 = vld [vmem:[%s17788_s6 + $0x110] ss:$12 sps:$4 sm:$0xff]  }
 0x3ca   : > { %3520 = vmatprep.mubr.bf16.mxu1 %v12962_v31  ;;  %v13004_v31 = vld [vmem:[%s17788_s6 + $0x128] ss:$12 sps:$4 sm:$0xff]  }
 0x3d1   : > { %3521 = vmatmul.mubr.bf16.gmra.mrb[60].mxu1 %v12964_v38  ;;  %v13060_v38 = vld [vmem:[%s17788_s6 + $0x308] ss:$12 sps:$4 sm:$0xff]  }
 0x3d2   : > { %3528 = vmatprep.mubr.bf16.mxu1 %v12965_v16  ;;  %v13005_v16 = vld [vmem:[%s17788_s6 + $0x140] ss:$12 sps:$4 sm:$0xff]   ;;  %12229 = vmatprep.mubr.msk.bf16.mxu0 %vm3339_vm9, %v13060_v38 }
 0x3d9   : > { %3529 = vmatmul.mubr.bf16.gmra.mrb[64].mxu1 %v12967_v37  ;;  %v13061_v37 = vld [vmem:[%s17788_s6 + $0x320] ss:$12 sps:$4 sm:$0xff]  }
 0x3da   : > { %3536 = vmatprep.mubr.bf16.mxu1 %v12968_v47  ;;  %v13006_v47 = vld [vmem:[%s17788_s6 + $0x158] ss:$12 sps:$4 sm:$0xff]   ;;  %12230 = vmatmul.mubr.msk.bf16.gmra.mrb[96].mxu0 %vm3339_vm9, %v13061_v37  ;;  %v13027_v37 = vld [vmem:[%s17788_s6 + $0x228] ss:$12 sps:$4 sm:$0xff]  }
 0x3db   : > { %12233 = vmatprep.mubr.msk.bf16.mxu0 %vm3339_vm9, %v13068_v8 }
 0x3e1   : > { %3537 = vmatmul.mubr.bf16.gmra.mrb[68].mxu1 %v12970_v32  ;;  %v13007_v32 = vld [vmem:[%s17788_s6 + $0x170] ss:$12 sps:$4 sm:$0xff]  }
 0x3e2   : > { %3544 = vmatprep.mubr.bf16.mxu1 %v12971_v4  ;;  %v13008_v4 = vld [vmem:[%s17788_s6 + $0x188] ss:$12 sps:$4 sm:$0xff]   ;;  %12234 = vmatmul.mubr.msk.bf16.gmra.mrb[100].mxu0 %vm3339_vm9, %v13069_v46 }
 0x3e3   : > { %v13033_v46 = vld [vmem:[%s17788_s6 + $0x25c] ss:$12 sps:$4 sm:$0xff]  }
 0x3e9   : > { %3545 = vmatmul.mubr.bf16.gmra.mrb[72].mxu1 %v12973_v39  ;;  %v13009_v39 = vld [vmem:[%s17788_s6 + $0x1a0] ss:$12 sps:$4 sm:$0xff]  }
 0x3ea   : > { %3552 = vmatprep.mubr.bf16.mxu1 %v12974_v33  ;;  %v13010_v33 = vld [vmem:[%s17788_s6 + $0x1b8] ss:$12 sps:$4 sm:$0xff]  }
 0x3f1   : > { %3553 = vmatmul.mubr.bf16.gmra.mrb[76].mxu1 %v12976_v61 }
 0x3f2   : > { %3560 = vmatprep.mubr.bf16.mxu1 %v12977_v24 }
 0x3f9   : > { %3561 = vmatmul.mubr.bf16.gmra.mrb[80].mxu1 %v12979_v42 }
 0x3fa   : > { %3568 = vmatprep.mubr.bf16.mxu1 %v12980_v53 }
 0x401   : > { %3569 = vmatmul.mubr.bf16.gmra.mrb[84].mxu1 %v12982_v48 }
 0x402   : > { %3576 = vmatprep.mubr.bf16.mxu1 %v12983_v43  ;;  %v13076_v43 = vld [vmem:[%s17788_s6 + $0x368] ss:$12 sps:$4 sm:$0xff]  }
 0x403   : > { %12237 = vmatprep.mubr.msk.bf16.mxu0 %vm3339_vm9, %v13076_v43 }
 0x404   : > { %12238 = vmatmul.mubr.msk.bf16.gmra.mrb[104].mxu0 %vm3339_vm9, %v13077_v35 }
 0x409   : > { %3577 = vmatmul.mubr.bf16.gmra.mrb[88].mxu1 %v12985_v57  ;;  %v13014_v57 = vld [vmem:[%s17788_s6 + $0x1e0] ss:$12 sps:$4 sm:$0xff]  }
 0x40a   : > { %3584 = vmatprep.mubr.bf16.mxu1 %v12986_v21 }
 0x411   : > { %3585 = vmatmul.mubr.bf16.gmra.mrb[92].mxu1 %v12988_v13  ;;  %v13017_v13 = vld [vmem:[%s17788_s6 + $0x1fc] ss:$12 sps:$4 sm:$0xff]  }
 0x412   : > { %12157 = vmatprep.mubr.msk.bf16.mxu1 %vm3339_vm9, %v12991_v17 }
 0x419   : > { %12158 = vmatmul.mubr.msk.bf16.vlgmr.msra.gmra.mrb[96].mxu1 %vm3339_vm9, %v12993_v45 }
 0x41a   : > { %4264 = vmatpush1.bf16.msra.mxu1 %v14735_v14  ;;  %12161 = vmatprep.mubr.msk.bf16.mxu1 %vm3339_vm9, %v12994_v15 }
 0x41b   : > { %4265 = vmatprep.subr.bf16.mxu1 %v17803_v9 }
 0x41e   : > { %4266 = vmatpush1.bf16.msra.mxu1 %v14733_v2 }
 0x41f   : > { %4267 = vmatprep.subr.bf16.mxu1 %v17803_v9 }
 0x421   : > { %12162 = vmatmul.mubr.msk.bf16.gmra.mrb[100].mxu1 %vm3339_vm9, %v12995_v50 }
 0x422   : > { %4268 = vmatpush1.bf16.msra.mxu1 %v14751_v23  ;;  %12165 = vmatprep.mubr.msk.bf16.mxu1 %vm3339_vm9, %v12996_v7 }
 0x423   : > { %4269 = vmatprep.subr.bf16.mxu1 %v17803_v9 }
 0x426   : > { %4270 = vmatpush1.bf16.msra.mxu1 %v14747_v40 }
 0x427   : > { %4271 = vmatprep.subr.bf16.mxu1 %v17803_v9 }
 0x429   : > { %12166 = vmatmul.mubr.msk.bf16.gmra.mrb[104].mxu1 %vm3339_vm9, %v12997_v41 }
 0x42a   : > { %4272 = vmatpush1.bf16.msra.mxu1 %v14767_v51  ;;  %12169 = vmatprep.mubr.msk.bf16.mxu1 %vm3339_vm9, %v12998_v59 }
 0x42b   : > { %4273 = vmatprep.subr.bf16.mxu1 %v17803_v9 }
 0x42e   : > { %4274 = vmatpush1.bf16.msra.mxu1 %v14763_v62 }
 0x42f   : > { %4275 = vmatprep.subr.bf16.mxu1 %v17803_v9 }
 0x431   : > { %12170 = vmatmul.mubr.msk.bf16.gmra.mrb[108].mxu1 %vm3339_vm9, %v12999_v54 }
 0x432   : > { %4276 = vmatpush1.bf16.msra.mxu1 %v14783_v19  ;;  %12173 = vmatprep.mubr.msk.bf16.mxu1 %vm3339_vm9, %v13000_v36 }
 0x433   : > { %4277 = vmatprep.subr.bf16.mxu1 %v17803_v9 }
 0x436   : > { %4278 = vmatpush1.bf16.msra.mxu1 %v14779_v34 }
 0x437   : > { %4279 = vmatprep.subr.bf16.mxu1 %v17803_v9 }
 0x439   : > { %12174 = vmatmul.mubr.msk.bf16.gmra.mrb[112].mxu1 %vm3339_vm9, %v13001_v49 }
 0x43a   : > { %4280 = vmatpush1.bf16.msra.mxu1 %v14805_v20  ;;  %12177 = vmatprep.mubr.msk.bf16.mxu1 %vm3339_vm9, %v13002_v22  ;;  %v13024_v22 = vld [vmem:[%s17788_s6 + $0x210] ss:$12 sps:$4 sm:$0xff]  }
 0x43b   : > { %4281 = vmatprep.subr.bf16.mxu1 %v17803_v9 }
 0x43e   : > { %4282 = vmatpush1.bf16.msra.mxu1 %v14802_v30 }
 0x43f   : > { %4283 = vmatprep.subr.bf16.mxu1 %v17803_v9 }
 0x441   : > { %12178 = vmatmul.mubr.msk.bf16.gmra.mrb[116].mxu1 %vm3339_vm9, %v13003_v55  ;;  %v13085_v55 = vld [vmem:[%s17788_s6 + $0x3b0] ss:$12 sps:$4 sm:$0xff]  }
 0x442   : > { %4284 = vmatpush1.bf16.msra.mxu1 %v14825_v11  ;;  %12181 = vmatprep.mubr.msk.bf16.mxu1 %vm3339_vm9, %v13004_v31  ;;  %v13025_v31 = vld [vmem:[%s17788_s6 + $0x22c] ss:$12 sps:$4 sm:$0xff]  }
 0x443   : > { %4285 = vmatprep.subr.bf16.mxu1 %v17803_v9 }
 0x446   : > { %4286 = vmatpush1.bf16.msra.mxu1 %v14822_v60 }
 0x447   : > { %4287 = vmatprep.subr.bf16.mxu1 %v17803_v9 }
 0x449   : > { %12182 = vmatmul.mubr.msk.bf16.gmra.mrb[120].mxu1 %vm3339_vm9, %v13005_v16 }
 0x44a   : > { %4288 = vmatpush1.bf16.msra.mxu1 %v14845_v52  ;;  %12185 = vmatprep.mubr.msk.bf16.mxu1 %vm3339_vm9, %v13006_v47 }
 0x44b   : > { %4289 = vmatprep.subr.bf16.mxu1 %v17803_v9 }
 0x44e   : > { %4290 = vmatpush1.bf16.msra.mxu1 %v14842_v63 }
 0x44f   : > { %4291 = vmatprep.subr.bf16.mxu1 %v17803_v9 }
 0x451   : > { %12186 = vmatmul.mubr.msk.bf16.gmra.mrb[124].mxu1 %vm3339_vm9, %v13007_v32  ;;  %v13030_v32 = vld [vmem:[%s17788_s6 + $0x244] ss:$12 sps:$4 sm:$0xff]  }
 0x452   : > { %4292 = vmatpush1.bf16.msra.mxu1 %v14865_v0  ;;  %12189 = vmatprep.mubr.msk.bf16.mxu1 %vm3339_vm9, %v13008_v4 }
 0x453   : > { %4293 = vmatprep.subr.bf16.mxu1 %v17803_v9 }
 0x456   : > { %4294 = vmatpush1.bf16.msra.mxu1 %v14862_v27 }
 0x457   : > { %5753 = vmatprep.subr.bf16.mxu1 %v17803_v9 }
 0x459   : > { %12190 = vmatmul.mubr.msk.bf16.gmra.mrb[128].mxu1 %vm3339_vm9, %v13009_v39 }
 0x45a   : > { %12193 = vmatprep.mubr.msk.bf16.mxu1 %vm3339_vm9, %v13010_v33 }
 0x45c   : > { %v15198_v61 = vpop.f32.mrb[24].mxu1  ;;  %v15227_v29 = vpop.f32.mrb[64].mxu0 }
 0x45d   : > { %v3452_v24 = vpop.f32.mrb[25].mxu1  ;;  %v3436_v45 = vpop.f32.mrb[65].mxu0 }
 0x45e   : > { %v15203_v42 = vpop.f32.mrb[26].mxu1  ;;  %v15229_v18 = vpop.f32.mrb[66].mxu0  ;;  %v13046_v45 = vld [vmem:[%s17788_s6 + $0x2a4] ss:$12 sps:$4 sm:$0xff]  }
 0x45f   : > { %v3455_v53 = vpop.f32.mrb[27].mxu1  ;;  %v3439_v15 = vpop.f32.mrb[67].mxu0 }
 0x461   : > { %12194 = vmatmul.mubr.msk.bf16.gmra.mrb[132].mxu1 %vm3339_vm9, %v13011_v3 }
 0x462   : > { %4295 = vmatprep.mubr.bf16.mxu1 %v13016_v25  ;;  %v13038_v25 = vld [vmem:[%s17788_s6 + $0x274] ss:$12 sps:$4 sm:$0xff]  }
 0x464   : > { %v15209_v48 = vpop.f32.mrb[28].mxu1  ;;  %v15233_v50 = vpop.f32.mrb[68].mxu0 }
 0x465   : > { %v3460_v5 = vpop.f32.mrb[29].mxu1  ;;  %v3444_v12 = vpop.f32.mrb[69].mxu0 }
 0x466   : > { %v15220_v21 = vpop.f32.mrb[30].mxu1  ;;  %v15246_v54 = vpop.f32.mrb[70].mxu0  ;;  %v13106_v12 = vld [vmem:[%s17789_s7 + $0x84] ss:$8 sps:$4 sm:$0xff]  }
 0x467   : > { %v3463_v17 = vpop.f32.mrb[31].mxu1  ;;  %v3447_v6 = vpop.f32.mrb[71].mxu0  ;;  %4766 = vmatprep.subr.bf16.mxu0 %v13106_v12  ;;  %v13059_v12 = vld [vmem:[%s17788_s6 + $0x2e8] ss:$12 sps:$4 sm:$0xff]  }
 0x469   : > { %4296 = vmatmul.mubr.bf16.vlgmr.msra.gmra.mrb[136].mxu1 %v13014_v57  ;;  %v13041_v57 = vld [vmem:[%s17788_s6 + $0x28c] ss:$12 sps:$4 sm:$0xff]  }
 0x46a   : > { %5754 = vmatpush1.bf16.msra.mxu1 %v14735_v14  ;;  %4303 = vmatprep.mubr.bf16.mxu1 %v13017_v13  ;;  %v13022_v14 = vld [vmem:[%s17788_s6 + $0x214] ss:$12 sps:$4 sm:$0xff]  }
 0x46b   : > { %5755 = vmatprep.subr.bf16.mxu1 %v17803_v9 }
 0x46c   : > { %v15235_v7 = vpop.f32.mrb[32].mxu1 }
 0x46d   : > { %v3468_v41 = vpop.f32.mrb[33].mxu1 }
 0x46e   : > { %5756 = vmatpush1.bf16.msra.mxu1 %v14733_v2  ;;  %v15241_v59 = vpop.f32.mrb[34].mxu1  ;;  %v13084_v2 = vld [vmem:[%s17788_s6 + $0x398] ss:$12 sps:$4 sm:$0xff]  }
 0x46f   : > { %v3471_v36 = vpop.f32.mrb[35].mxu1  ;;  %5757 = vmatprep.subr.bf16.mxu1 %v17803_v9  ;;  %12241 = vmatprep.mubr.msk.bf16.mxu0 %vm3339_vm9, %v13084_v2  ;;  %v13107_v2 = vld [vmem:[%s17789_s7 + $0x90] ss:$8 sps:$4 sm:$0xff]  }
 0x470   : > { %12242 = vmatmul.mubr.msk.bf16.gmra.mrb[108].mxu0 %vm3339_vm9, %v13085_v55  ;;  %v13109_v36 = vld [vmem:[%s17789_s7 + $0x94] ss:$8 sps:$4 sm:$0xff]  }
 0x471   : > { %4304 = vmatmul.mubr.bf16.gmra.mrb[140].mxu1 %v13019_v56  ;;  %4798 = vmatprep.mubr.bf16.mxu0 %v17803_v9  ;;  %v13048_v56 = vld [vmem:[%s17788_s6 + $0x2a0] ss:$12 sps:$4 sm:$0xff]  }
 0x472   : > { %5758 = vmatpush1.bf16.msra.mxu1 %v14751_v23  ;;  %4311 = vmatprep.mubr.bf16.mxu1 %v13022_v14 }
 0x473   : > { %5759 = vmatprep.subr.bf16.mxu1 %v17803_v9 }
 0x474   : > { %v15251_v49 = vpop.f32.mrb[36].mxu1 }
 0x475   : > { %v3476_v58 = vpop.f32.mrb[37].mxu1 }
 0x476   : > { %5760 = vmatpush1.bf16.msra.mxu1 %v14747_v40  ;;  %v15263_v23 = vpop.f32.mrb[38].mxu1  ;;  %v13115_v58 = vld [vmem:[%s17789_s7 + $0xa4] ss:$8 sps:$4 sm:$0xff]  }
 0x477   : > { %v3479_v38 = vpop.f32.mrb[39].mxu1  ;;  %5761 = vmatprep.subr.bf16.mxu1 %v17803_v9 }
 0x479   : > { %4312 = vmatmul.mubr.bf16.gmra.mrb[144].mxu1 %v13024_v22 }
 0x47a   : > { %5762 = vmatpush1.bf16.msra.mxu1 %v14767_v51  ;;  %4319 = vmatprep.mubr.bf16.mxu1 %v13025_v31  ;;  %v13051_v31 = vld [vmem:[%s17788_s6 + $0x2b8] ss:$12 sps:$4 sm:$0xff]  }
 0x47b   : > { %5763 = vmatprep.subr.bf16.mxu1 %v17803_v9 }
 0x47c   : > { %v15274_v40 = vpop.f32.mrb[40].mxu1 }
 0x47d   : > { %v3484_v16 = vpop.f32.mrb[41].mxu1 }
 0x47e   : > { %5764 = vmatpush1.bf16.msra.mxu1 %v14763_v62  ;;  %v15280_v47 = vpop.f32.mrb[42].mxu1  ;;  %v13032_v62 = vld [vmem:[%s17788_s6 + $0x240] ss:$12 sps:$4 sm:$0xff]  }
 0x47f   : > { %v3487_v4 = vpop.f32.mrb[43].mxu1  ;;  %5765 = vmatprep.subr.bf16.mxu1 %v17803_v9  ;;  %v13054_v16 = vld [vmem:[%s17788_s6 + $0x2d4] ss:$12 sps:$4 sm:$0xff]  }
 0x480   : > { %v13116_v4 = vld [vmem:[%s17789_s7 + $0xb0] ss:$8 sps:$4 sm:$0xff]  }
 0x481   : > { %4320 = vmatmul.mubr.bf16.gmra.mrb[148].mxu1 %v13027_v37  ;;  %v13118_v37 = vld [vmem:[%s17789_s7 + $0xb4] ss:$8 sps:$4 sm:$0xff]  }
 0x482   : > { %5766 = vmatpush1.bf16.msra.mxu1 %v14783_v19  ;;  %4327 = vmatprep.mubr.bf16.mxu1 %v13030_v32 }
 0x483   : > { %5767 = vmatprep.subr.bf16.mxu1 %v17803_v9 }
 0x484   : > { %v15288_v51 = vpop.f32.mrb[44].mxu1 }
 0x485   : > { %v3492_v8 = vpop.f32.mrb[45].mxu1 }
 0x486   : > { %5768 = vmatpush1.bf16.msra.mxu1 %v14779_v34  ;;  %v15294_v39 = vpop.f32.mrb[46].mxu1  ;;  %v13035_v34 = vld [vmem:[%s17788_s6 + $0x258] ss:$12 sps:$4 sm:$0xff]   ;;  %v13122_v8 = vld [vmem:[%s17789_s7 + $0xc0] ss:$8 sps:$4 sm:$0xff]  }
 0x487   : > { %v3495_v33 = vpop.f32.mrb[47].mxu1  ;;  %5769 = vmatprep.subr.bf16.mxu1 %v17803_v9 }
 0x489   : > { %4328 = vmatmul.mubr.bf16.gmra.mrb[152].mxu1 %v13032_v62  ;;  %v13124_v62 = vld [vmem:[%s17789_s7 + $0xc4] ss:$8 sps:$4 sm:$0xff]  }
 0x48a   : > { %5770 = vmatpush1.bf16.msra.mxu1 %v14805_v20  ;;  %4335 = vmatprep.mubr.bf16.mxu1 %v13033_v46 }
 0x48b   : > { %5771 = vmatprep.subr.bf16.mxu1 %v17803_v9 }
 0x48c   : > { %v15302_v19 = vpop.f32.mrb[48].mxu1 }
 0x48d   : > { %v3500_v24 = vpop.f32.mrb[49].mxu1 }
 0x48e   : > { %5772 = vmatpush1.bf16.msra.mxu1 %v14802_v30  ;;  %v15308_v3 = vpop.f32.mrb[50].mxu1  ;;  %v13040_v30 = vld [vmem:[%s17788_s6 + $0x270] ss:$12 sps:$4 sm:$0xff]  }
 0x48f   : > { %v3503_v53 = vpop.f32.mrb[51].mxu1  ;;  %5773 = vmatprep.subr.bf16.mxu1 %v17803_v9  ;;  %v13056_v24 = vld [vmem:[%s17788_s6 + $0x2d0] ss:$12 sps:$4 sm:$0xff]  }
 0x490   : > { %v13127_v53 = vld [vmem:[%s17789_s7 + $0xd4] ss:$8 sps:$4 sm:$0xff]  }
 0x491   : > { %4336 = vmatmul.mubr.bf16.gmra.mrb[156].mxu1 %v13035_v34 }
 0x492   : > { %5774 = vmatpush1.bf16.msra.mxu1 %v14825_v11  ;;  %4343 = vmatprep.mubr.bf16.mxu1 %v13038_v25  ;;  %v13057_v25 = vld [vmem:[%s17788_s6 + $0x2ec] ss:$12 sps:$4 sm:$0xff]  }
 0x493   : > { %5775 = vmatprep.subr.bf16.mxu1 %v17803_v9 }
 0x494   : > { %v15316_v20 = vpop.f32.mrb[52].mxu1 }
 0x495   : > { %v3508_v43 = vpop.f32.mrb[53].mxu1 }
 0x496   : > { %5776 = vmatpush1.bf16.msra.mxu1 %v14822_v60  ;;  %v15322_v5 = vpop.f32.mrb[54].mxu1  ;;  %v13043_v60 = vld [vmem:[%s17788_s6 + $0x288] ss:$12 sps:$4 sm:$0xff]  }
 0x497   : > { %v3511_v35 = vpop.f32.mrb[55].mxu1  ;;  %5777 = vmatprep.subr.bf16.mxu1 %v17803_v9 }
 0x498   : > { %v13133_v35 = vld [vmem:[%s17789_s7 + $0xe4] ss:$8 sps:$4 sm:$0xff]  }
 0x499   : > { %4344 = vmatmul.mubr.bf16.gmra.mrb[160].mxu1 %v13040_v30  ;;  %v13125_v30 = vld [vmem:[%s17789_s7 + $0xd0] ss:$8 sps:$4 sm:$0xff]  }
 0x49a   : > { %5778 = vmatpush1.bf16.msra.mxu1 %v14845_v52  ;;  %4351 = vmatprep.mubr.bf16.mxu1 %v13041_v57  ;;  %v13104_v52 = vld [vmem:[%s17789_s7 + $0x80] ss:$8 sps:$4 sm:$0xff]  }
 0x49b   : > { %5779 = vmatprep.subr.bf16.mxu1 %v17803_v9  ;;  %4767 = vmatpush1.bf16.msra.mxu0 %v13104_v52  ;;  %v13131_v57 = vld [vmem:[%s17789_s7 + $0xe0] ss:$8 sps:$4 sm:$0xff]  }
 0x49c   : > { %v15330_v11 = vpop.f32.mrb[56].mxu1  ;;  %4768 = vmatprep.subr.bf16.mxu0 %v13109_v36  ;;  %v13136_v36 = vld [vmem:[%s17789_s7 + $0xf4] ss:$8 sps:$4 sm:$0xff]  }
 0x49d   : > { %v3516_v13 = vpop.f32.mrb[57].mxu1 }
 0x49e   : > { %5780 = vmatpush1.bf16.msra.mxu1 %v14842_v63  ;;  %v15336_v17 = vpop.f32.mrb[58].mxu1  ;;  %v15418_v13 = vpop.f32.mrb[72].mxu0 }
 0x49f   : > { %v3519_v15 = vpop.f32.mrb[59].mxu1  ;;  %5781 = vmatprep.subr.bf16.mxu1 %v17803_v9  ;;  %4769 = vmatpush1.bf16.msra.mxu0 %v13107_v2  ;;  %v13134_v2 = vld [vmem:[%s17789_s7 + $0xf0] ss:$8 sps:$4 sm:$0xff]  }
 0x4a0   : > { %4770 = vmatprep.subr.bf16.mxu0 %v13115_v58 }
 0x4a1   : > { %4352 = vmatmul.mubr.bf16.gmra.mrb[164].mxu1 %v13043_v60  ;;  %v15420_v60 = vpop.f32.mrb[73].mxu0 }
 0x4a2   : > { %5782 = vmatpush1.bf16.msra.mxu1 %v14865_v0  ;;  %4359 = vmatprep.mubr.bf16.mxu1 %v13046_v45  ;;  %v13049_v0 = vld [vmem:[%s17788_s6 + $0x2bc] ss:$12 sps:$4 sm:$0xff]   ;;  %v15424_v15 = vpop.f32.mrb[74].mxu0 }
 0x4a3   : > { %5783 = vmatprep.subr.bf16.mxu1 %v17803_v9 }
 0x4a4   : > { %v15350_v63 = vpop.f32.mrb[60].mxu1 }
 0x4a5   : > { %v3524_v41 = vpop.f32.mrb[61].mxu1 }
 0x4a6   : > { %5784 = vmatpush1.bf16.msra.mxu1 %v14862_v27  ;;  %v15356_v14 = vpop.f32.mrb[62].mxu1  ;;  %v13113_v27 = vld [vmem:[%s17789_s7 + $0xa0] ss:$8 sps:$4 sm:$0xff]   ;;  %v15429_v41 = vpop.f32.mrb[75].mxu0 }
 0x4a7   : > { %12245 = vmatprep.subr.bf16.mxu1 %v14888_v44  ;;  %v3527_v6 = vpop.f32.mrb[63].mxu1  ;;  %4771 = vmatpush1.bf16.msra.mxu0 %v13113_v27 }
 0x4a8   : > { %4772 = vmatprep.subr.bf16.mxu0 %v13118_v37 }
 0x4a9   : > { %4360 = vmatmul.mubr.bf16.gmra.mrb[168].mxu1 %v13048_v56 }
 0x4aa   : > { %4367 = vmatprep.mubr.bf16.mxu1 %v13049_v0  ;;  %v13062_v0 = vld [vmem:[%s17788_s6 + $0x304] ss:$12 sps:$4 sm:$0xff]  }
 0x4ab   : > { %4773 = vmatpush1.bf16.msra.mxu0 %v13116_v4 }
 0x4ac   : > { %v15374_v22 = vpop.f32.mrb[64].mxu1  ;;  %4774 = vmatprep.subr.bf16.mxu0 %v13124_v62 }
 0x4ad   : > { %v3532_v55 = vpop.f32.mrb[65].mxu1 }
 0x4ae   : > { %v15379_v38 = vpop.f32.mrb[66].mxu1  ;;  %v13064_v55 = vld [vmem:[%s17788_s6 + $0x300] ss:$12 sps:$4 sm:$0xff]  }
 0x4af   : > { %v3535_v32 = vpop.f32.mrb[67].mxu1  ;;  %4775 = vmatpush1.bf16.msra.mxu0 %v13122_v8 }
 0x4b0   : > { %4776 = vmatprep.subr.bf16.mxu0 %v13127_v53  ;;  %v15452_v32 = vpop.f32.mrb[76].mxu0 }
 0x4b1   : > { %4368 = vmatmul.mubr.bf16.gmra.mrb[172].mxu1 %v13051_v31  ;;  %v15454_v4 = vpop.f32.mrb[77].mxu0 }
 0x4b2   : > { %4375 = vmatprep.mubr.bf16.mxu1 %v13054_v16  ;;  %v13065_v16 = vld [vmem:[%s17788_s6 + $0x31c] ss:$12 sps:$4 sm:$0xff]   ;;  %v15458_v62 = vpop.f32.mrb[78].mxu0 }
 0x4b3   : > { %4777 = vmatpush1.bf16.msra.mxu0 %v13125_v30 }
 0x4b4   : > { %v15396_v46 = vpop.f32.mrb[68].mxu1  ;;  %4778 = vmatprep.subr.bf16.mxu0 %v13133_v35 }
 0x4b5   : > { %v3540_v33 = vpop.f32.mrb[69].mxu1 }
 0x4b6   : > { %v15401_v34 = vpop.f32.mrb[70].mxu1 }
 0x4b7   : > { %v3543_v43 = vpop.f32.mrb[71].mxu1  ;;  %4779 = vmatpush1.bf16.msra.mxu0 %v13131_v57 }
 0x4b8   : > { %4780 = vmatprep.subr.bf16.mxu0 %v13136_v36  ;;  %v13070_v43 = vld [vmem:[%s17788_s6 + $0x334] ss:$12 sps:$4 sm:$0xff]  }
 0x4b9   : > { %4376 = vmatmul.mubr.bf16.gmra.mrb[176].mxu1 %v13056_v24  ;;  %v13067_v24 = vld [vmem:[%s17788_s6 + $0x318] ss:$12 sps:$4 sm:$0xff]  }
 0x4ba   : > { %4383 = vmatprep.mubr.bf16.mxu1 %v13057_v25  ;;  %v15463_v25 = vpop.f32.mrb[79].mxu0 }
 0x4bb   : > { %4781 = vmatpush1.bf16.msra.mxu0 %v13134_v2 }
 0x4bc   : > { %v15422_v45 = vpop.f32.mrb[72].mxu1 }
 0x4bd   : > { %v3548_v52 = vpop.f32.mrb[73].mxu1 }
 0x4be   : > { %v15431_v56 = vpop.f32.mrb[74].mxu1  ;;  %v13072_v52 = vld [vmem:[%s17788_s6 + $0x330] ss:$12 sps:$4 sm:$0xff]  }
 0x4bf   : > { %v3551_v6 = vpop.f32.mrb[75].mxu1 }
 0x4c0   : > { %v15480_v6 = vpop.f32.mrb[80].mxu0 }
 0x4c1   : > { %4384 = vmatmul.mubr.bf16.gmra.mrb[180].mxu1 %v13059_v12  ;;  %17829 = vst [vmem:[#allocation3_spill] sm:$0xff] %v15480_v6  ;;  %v15482_v2 = vpop.f32.mrb[81].mxu0  ;;  %v13083_v6 = vld [vmem:[%s17788_s6 + $0x378] ss:$12 sps:$4 sm:$0xff]  }
 0x4c2   : > { %4391 = vmatprep.mubr.bf16.mxu1 %v13062_v0  ;;  %v13073_v0 = vld [vmem:[%s17788_s6 + $0x34c] ss:$12 sps:$4 sm:$0xff]  }
 0x4c4   : > { %v15442_v27 = vpop.f32.mrb[76].mxu1 }
 0x4c5   : > { %v3556_v58 = vpop.f32.mrb[77].mxu1 }
 0x4c6   : > { %v15447_v31 = vpop.f32.mrb[78].mxu1 }
 0x4c7   : > { %v3559_v37 = vpop.f32.mrb[79].mxu1 }
 0x4c8   : > { %v13075_v37 = vld [vmem:[%s17788_s6 + $0x348] ss:$12 sps:$4 sm:$0xff]  }
 0x4c9   : > { %4392 = vmatmul.mubr.bf16.gmra.mrb[184].mxu1 %v13064_v55  ;;  %v15486_v55 = vpop.f32.mrb[82].mxu0 }
 0x4ca   : > { %4399 = vmatprep.mubr.bf16.mxu1 %v13065_v16  ;;  %17830 = vst [vmem:[#allocation4_spill] sm:$0xff] %v15486_v55 }
 0x4cc   : > { %v15456_v8 = vpop.f32.mrb[80].mxu1 }
 0x4cd   : > { %v3564_v33 = vpop.f32.mrb[81].mxu1 }
 0x4ce   : > { %v15465_v53 = vpop.f32.mrb[82].mxu1  ;;  %v15491_v33 = vpop.f32.mrb[83].mxu0 }
 0x4cf   : > { %v3567_v30 = vpop.f32.mrb[83].mxu1  ;;  %17831 = vst [vmem:[#allocation5_spill] sm:$0xff] %v15491_v33  ;;  %v15508_v9 = vpop.f32.mrb[84].mxu0 }
 0x4d0   : > { %17832 = vst [vmem:[#allocation6_spill] sm:$0xff] %v15508_v9 }
 0x4d1   : > { %4400 = vmatmul.mubr.bf16.gmra.mrb[188].mxu1 %v13067_v24 }
 0x4d2   : > { %4407 = vmatprep.mubr.bf16.mxu1 %v13070_v43  ;;  %v13078_v43 = vld [vmem:[%s17788_s6 + $0x364] ss:$12 sps:$4 sm:$0xff]  }
 0x4d4   : > { %v15470_v57 = vpop.f32.mrb[84].mxu1 }
 0x4d5   : > { %v3572_v35 = vpop.f32.mrb[85].mxu1 }
 0x4d6   : > { %v15475_v12 = vpop.f32.mrb[86].mxu1 }
 0x4d7   : > { %v3575_v36 = vpop.f32.mrb[87].mxu1 }
 0x4d9   : > { %4408 = vmatmul.mubr.bf16.gmra.mrb[192].mxu1 %v13072_v52 }
 0x4da   : > { %4415 = vmatprep.mubr.bf16.mxu1 %v13073_v0  ;;  %v13080_v0 = vld [vmem:[%s17788_s6 + $0x360] ss:$12 sps:$4 sm:$0xff]  }
 0x4dc   : > { %v15484_v58 = vpop.f32.mrb[88].mxu1 }
 0x4dd   : > { %v3580_v16 = vpop.f32.mrb[89].mxu1 }
 0x4de   : > { %v15493_v24 = vpop.f32.mrb[90].mxu1  ;;  %v13081_v16 = vld [vmem:[%s17788_s6 + $0x37c] ss:$12 sps:$4 sm:$0xff]  }
 0x4df   : > { %v3583_v30 = vpop.f32.mrb[91].mxu1 }
 0x4e1   : > { %4416 = vmatmul.mubr.bf16.gmra.mrb[196].mxu1 %v13075_v37  ;;  %v15510_v37 = vpop.f32.mrb[85].mxu0 }
 0x4e2   : > { %4423 = vmatprep.mubr.bf16.mxu1 %v13078_v43  ;;  %17833 = vst [vmem:[#allocation7_spill] sm:$0xff] %v15510_v37  ;;  %v15512_v30 = vpop.f32.mrb[86].mxu0 }
 0x4e3   : > { %17834 = vst [vmem:[#allocation8_spill] sm:$0xff] %v15512_v30  ;;  %v15520_v33 = vpop.f32.mrb[87].mxu0 }
 0x4e4   : > { %v15498_v35 = vpop.f32.mrb[92].mxu1  ;;  %17836 = vst [vmem:[#allocation10_spill] sm:$0xff] %v15520_v33  ;;  %v15558_v9 = vpop.f32.mrb[88].mxu0 }
 0x4e5   : > { %v3588_v52 = vpop.f32.mrb[93].mxu1 }
 0x4e6   : > { %v15503_v36 = vpop.f32.mrb[94].mxu1 }
 0x4e7   : > { %v3591_v28 = vpop.f32.mrb[95].mxu1 }
 0x4e9   : > { %4424 = vmatmul.mubr.bf16.gmra.mrb[200].mxu1 %v13080_v0 }
 0x4ea   : > { %4431 = vmatprep.mubr.bf16.mxu1 %v13081_v16  ;;  %v13086_v16 = vld [vmem:[%s17788_s6 + $0x394] ss:$12 sps:$4 sm:$0xff]  }
 0x4ec   : > { %v12159_v43 = vpop.f32.mrb[96].mxu1 }
 0x4ed   : > { %v15515_v52 = vadd.f32 %v12159_v43, %v15233_v50  ;;  %v3627_v55 = vpop.f32.mrb[97].mxu1 }
 0x4ee   : > { %v15523_v28 = vadd.f32 %v3627_v55, %v15227_v29  ;;  %v12160_v0 = vpop.f32.mrb[98].mxu1 }
 0x4ef   : > { %17835 = vst [vmem:[#allocation9_spill] sm:$0xff] %v15515_v52  ;;  %v15529_v30 = vadd.f32 %v12160_v0, %v15246_v54  ;;  %v3630_v50 = vpop.f32.mrb[99].mxu1  ;;  %v13088_v54 = vld [vmem:[%s17788_s6 + $0x390] ss:$12 sps:$4 sm:$0xff]   ;;  %v13089_v0 = vld [vmem:[%s17788_s6 + $0x3ac] ss:$12 sps:$4 sm:$0xff]  }
 0x4f0   : > { %v15532_v43 = vadd.f32 %v3630_v50, %v15229_v18 }
 0x4f1   : > { %4432 = vmatmul.mubr.bf16.gmra.mrb[204].mxu1 %v13083_v6 }
 0x4f2   : > { %4439 = vmatprep.mubr.bf16.mxu1 %v13086_v16 }
 0x4f4   : > { %v12163_v55 = vpop.f32.mrb[100].mxu1 }
 0x4f5   : > { %v15539_v33 = vadd.f32 %v12163_v55, %v15209_v48  ;;  %v3643_v37 = vpop.f32.mrb[101].mxu1  ;;  %v13094_v55 = vld [vmem:[%s17788_s6 + $0x3c4] ss:$12 sps:$4 sm:$0xff]  }
 0x4f6   : > { %v15545_v18 = vadd.f32 %v3643_v37, %v15198_v61  ;;  %v12164_v6 = vpop.f32.mrb[102].mxu1  ;;  %v15562_v37 = vpop.f32.mrb[89].mxu0 }
 0x4f7   : > { %17837 = vst [vmem:[#allocation11_spill] sm:$0xff] %v15539_v33  ;;  %v15551_v50 = vadd.f32 %v12164_v6, %v15220_v21  ;;  %v3646_v16 = vpop.f32.mrb[103].mxu1  ;;  %v15564_v52 = vpop.f32.mrb[90].mxu0 }
 0x4f8   : > { %17838 = vst [vmem:[#allocation12_spill] sm:$0xff] %v15545_v18  ;;  %v15554_v48 = vadd.f32 %v3646_v16, %v15203_v42  ;;  %v15572_v6 = vpop.f32.mrb[91].mxu0 }
 0x4f9   : > { %17839 = vst [vmem:[#allocation13_spill] sm:$0xff] %v15551_v50  ;;  %4440 = vmatmul.mubr.bf16.gmra.mrb[208].mxu1 %v13088_v54  ;;  %v13091_v54 = vld [vmem:[%s17788_s6 + $0x3a8] ss:$12 sps:$4 sm:$0xff]  }
 0x4fa   : > { %4447 = vmatprep.mubr.bf16.mxu1 %v13089_v0 }
 0x4fc   : > { %v12167_v29 = vpop.f32.mrb[104].mxu1 }
 0x4fd   : > { %v15567_v21 = vadd.f32 %v12167_v29, %v15251_v49  ;;  %v3659_v42 = vpop.f32.mrb[105].mxu1 }
 0x4fe   : > { %v15575_v0 = vadd.f32 %v3659_v42, %v15235_v7  ;;  %v12168_v16 = vpop.f32.mrb[106].mxu1 }
 0x4ff   : > { %v15581_v61 = vadd.f32 %v12168_v16, %v15263_v23  ;;  %v3662_v49 = vpop.f32.mrb[107].mxu1  ;;  %v13092_v23 = vld [vmem:[%s17788_s6 + $0x3c0] ss:$12 sps:$4 sm:$0xff]  }
 0x500   : > { %v15584_v29 = vadd.f32 %v3662_v49, %v15241_v59 }
 0x501   : > { %4448 = vmatmul.mubr.bf16.gmra.mrb[212].mxu1 %v13091_v54 }
 0x502   : > { %5785 = vmatprep.mubr.bf16.mxu1 %v13094_v55  ;;  %v13095_v55 = vld [vmem:[%s17788_s6 + $0x3dc] ss:$12 sps:$4 sm:$0xff]  }
 0x504   : > { %v12171_v42 = vpop.f32.mrb[108].mxu1 }
 0x505   : > { %v15591_v50 = vadd.f32 %v12171_v42, %v15288_v51  ;;  %v3675_v18 = vpop.f32.mrb[109].mxu1  ;;  %v13166_v51 = vld [vmem:[%s17789_s7 + $0x4] ss:$8 sps:$4 sm:$0xff]  }
 0x506   : > { %v15597_v59 = vadd.f32 %v3675_v18, %v15274_v40  ;;  %v12172_v54 = vpop.f32.mrb[110].mxu1  ;;  %5079 = vmatprep.subr.bf16.mxu0 %v13166_v51  ;;  %v15614_v18 = vpop.f32.mrb[92].mxu0 }
 0x507   : > { %v15603_v16 = vadd.f32 %v12172_v54, %v15294_v39  ;;  %v3678_v49 = vpop.f32.mrb[111].mxu1  ;;  %v15619_v54 = vpop.f32.mrb[93].mxu0  ;;  %v13098_v39 = vld [vmem:[%s17788_s6 + $0x3f4] ss:$12 sps:$4 sm:$0xff]  }
 0x508   : > { %v15609_v42 = vadd.f32 %v3678_v49, %v15280_v47  ;;  %v15621_v47 = vpop.f32.mrb[94].mxu0 }
 0x509   : > { %5786 = vmatmul.mubr.bf16.vlgmr.msra.gmra.mrb[216].mxu1 %v13092_v23 }
 0x50a   : > { %12246 = vmatpush3.bf16.msra.mxu1 %v14888_v44  ;;  %5793 = vmatprep.mubr.bf16.mxu1 %v13095_v55  ;;  %v13097_v44 = vld [vmem:[%s17788_s6 + $0x3d8] ss:$12 sps:$4 sm:$0xff]   ;;  %v15629_v55 = vpop.f32.mrb[95].mxu0 }
 0x50b   : > { %12247 = vmatprep.subr.bf16.mxu1 %v14885_v10 }
 0x50c   : > { %v12175_v33 = vpop.f32.mrb[112].mxu1 }
 0x50d   : > { %v15624_v23 = vadd.f32 %v12175_v33, %v15316_v20  ;;  %v3691_v49 = vpop.f32.mrb[113].mxu1 }
 0x50e   : > { %v15632_v51 = vadd.f32 %v3691_v49, %v15302_v19  ;;  %12248 = vmatpush3.bf16.msra.mxu1 %v14885_v10  ;;  %v12176_v40 = vpop.f32.mrb[114].mxu1  ;;  %v13110_v19 = vld [vmem:[%s17788_s6 + $0x424] ss:$12 sps:$4 sm:$0xff]  }
 0x50f   : > { %17840 = vst [vmem:[#allocation14_spill] sm:$0xff] %v15624_v23  ;;  %v15639_v20 = vadd.f32 %v12176_v40, %v15322_v5  ;;  %12249 = vmatprep.subr.bf16.mxu1 %v14913_v26  ;;  %v3694_v33 = vpop.f32.mrb[115].mxu1 }
 0x510   : > { %v15643_v7 = vadd.f32 %v3694_v33, %v15308_v3  ;;  %v13100_v3 = vld [vmem:[%s17788_s6 + $0x3f0] ss:$12 sps:$4 sm:$0xff]  }
 0x511   : > { %5794 = vmatmul.mubr.bf16.gmra.mrb[220].mxu1 %v13097_v44 }
 0x512   : > { %12250 = vmatpush3.bf16.msra.mxu1 %v14913_v26  ;;  %5801 = vmatprep.mubr.bf16.mxu1 %v13098_v39  ;;  %v13101_v39 = vld [vmem:[%s17788_s6 + $0x40c] ss:$12 sps:$4 sm:$0xff]  }
 0x513   : > { %12251 = vmatprep.subr.bf16.mxu1 %v14909_v1 }
 0x514   : > { %v12179_v5 = vpop.f32.mrb[116].mxu1 }
 0x515   : > { %v15652_v40 = vadd.f32 %v12179_v5, %v15350_v63  ;;  %v3707_v49 = vpop.f32.mrb[117].mxu1 }
 0x516   : > { %v15658_v44 = vadd.f32 %v3707_v49, %v15330_v11  ;;  %12252 = vmatpush3.bf16.msra.mxu1 %v14909_v1  ;;  %v12180_v26 = vpop.f32.mrb[118].mxu1  ;;  %v15672_v11 = vpop.f32.mrb[96].mxu0 }
 0x517   : > { %17841 = vst [vmem:[#allocation15_spill] sm:$0xff] %v15652_v40  ;;  %v15665_v33 = vadd.f32 %v12180_v26, %v15356_v14  ;;  %v3710_v63 = vpop.f32.mrb[119].mxu1  ;;  %v15676_v49 = vpop.f32.mrb[97].mxu0 }
 0x518   : > { %17842 = vst [vmem:[#allocation16_spill] sm:$0xff] %v15658_v44  ;;  %v15668_v5 = vadd.f32 %v3710_v63, %v15336_v17  ;;  %v15678_v23 = vpop.f32.mrb[98].mxu0 }
 0x519   : > { %17843 = vst [vmem:[#allocation17_spill] sm:$0xff] %v15665_v33  ;;  %5802 = vmatmul.mubr.bf16.gmra.mrb[224].mxu1 %v13100_v3  ;;  %v13103_v3 = vld [vmem:[%s17788_s6 + $0x408] ss:$12 sps:$4 sm:$0xff]   ;;  %v15686_v26 = vpop.f32.mrb[99].mxu0 }
 0x51a   : > { %5809 = vmatprep.mubr.bf16.mxu1 %v13101_v39  ;;  %v15724_v40 = vpop.f32.mrb[100].mxu0 }
 0x51c   : > { %v12183_v10 = vpop.f32.mrb[120].mxu1 }
 0x51d   : > { %v15681_v14 = vadd.f32 %v12183_v10, %v15396_v46  ;;  %v3723_v17 = vpop.f32.mrb[121].mxu1 }
 0x51e   : > { %v15689_v39 = vadd.f32 %v3723_v17, %v15374_v22  ;;  %v12184_v63 = vpop.f32.mrb[122].mxu1 }
 0x51f   : > { %17844 = vst [vmem:[#allocation18_spill] sm:$0xff] %v15681_v14  ;;  %v15695_v1 = vadd.f32 %v12184_v63, %v15401_v34  ;;  %v3726_v46 = vpop.f32.mrb[123].mxu1  ;;  %v13112_v34 = vld [vmem:[%s17788_s6 + $0x420] ss:$12 sps:$4 sm:$0xff]  }
 0x520   : > { %v15698_v10 = vadd.f32 %v3726_v46, %v15379_v38 }
 0x521   : > { %5810 = vmatmul.mubr.bf16.gmra.mrb[228].mxu1 %v13103_v3 }
 0x522   : > { %5817 = vmatprep.mubr.bf16.mxu1 %v13110_v19  ;;  %v13119_v19 = vld [vmem:[%s17788_s6 + $0x43c] ss:$12 sps:$4 sm:$0xff]  }
 0x524   : > { %v12187_v17 = vpop.f32.mrb[124].mxu1 }
 0x525   : > { %v15705_v33 = vadd.f32 %v12187_v17, %v15442_v27  ;;  %v3739_v44 = vpop.f32.mrb[125].mxu1  ;;  %v13128_v17 = vld [vmem:[%s17788_s6 + $0x454] ss:$12 sps:$4 sm:$0xff]  }
 0x526   : > { %v15711_v38 = vadd.f32 %v3739_v44, %v15422_v45  ;;  %v12188_v3 = vpop.f32.mrb[126].mxu1  ;;  %v15728_v44 = vpop.f32.mrb[101].mxu0 }
 0x527   : > { %17845 = vst [vmem:[#allocation19_spill] sm:$0xff] %v15705_v33  ;;  %v15717_v63 = vadd.f32 %v12188_v3, %v15447_v31  ;;  %v3742_v46 = vpop.f32.mrb[127].mxu1  ;;  %v15730_v14 = vpop.f32.mrb[102].mxu0 }
 0x528   : > { %17846 = vst [vmem:[#allocation20_spill] sm:$0xff] %v15711_v38  ;;  %v15720_v27 = vadd.f32 %v3742_v46, %v15431_v56  ;;  %v15738_v3 = vpop.f32.mrb[103].mxu0 }
 0x529   : > { %17847 = vst [vmem:[#allocation21_spill] sm:$0xff] %v15717_v63  ;;  %5818 = vmatmul.mubr.bf16.gmra.mrb[232].mxu1 %v13112_v34  ;;  %v13121_v34 = vld [vmem:[%s17788_s6 + $0x438] ss:$12 sps:$4 sm:$0xff]   ;;  %v15776_v33 = vpop.f32.mrb[104].mxu0 }
 0x52a   : > { %5825 = vmatprep.mubr.bf16.mxu1 %v13119_v19 }
 0x52c   : > { %v12191_v22 = vpop.f32.mrb[128].mxu1 }
 0x52d   : > { %v15733_v31 = vadd.f32 %v12191_v22, %v15470_v57  ;;  %v3755_v56 = vpop.f32.mrb[129].mxu1 }
 0x52e   : > { %v15741_v19 = vadd.f32 %v3755_v56, %v15456_v8  ;;  %v12192_v46 = vpop.f32.mrb[130].mxu1 }
 0x52f   : > { %17848 = vst [vmem:[#allocation22_spill] sm:$0xff] %v15733_v31  ;;  %v15747_v45 = vadd.f32 %v12192_v46, %v15475_v12  ;;  %v3758_v57 = vpop.f32.mrb[131].mxu1  ;;  %v13130_v12 = vld [vmem:[%s17788_s6 + $0x450] ss:$12 sps:$4 sm:$0xff]  }
 0x530   : > { %v15750_v22 = vadd.f32 %v3758_v57, %v15465_v53 }
 0x531   : > { %5826 = vmatmul.mubr.bf16.gmra.mrb[236].mxu1 %v13121_v34 }
 0x532   : > { %5833 = vmatprep.mubr.bf16.mxu1 %v13128_v17  ;;  %v13137_v17 = vld [vmem:[%s17788_s6 + $0x46c] ss:$12 sps:$4 sm:$0xff]  }
 0x534   : > { %v12195_v56 = vpop.f32.mrb[132].mxu1 }
 0x535   : > { %v15757_v63 = vadd.f32 %v12195_v56, %v15498_v35  ;;  %v3771_v38 = vpop.f32.mrb[133].mxu1 }
 0x536   : > { %v15763_v53 = vadd.f32 %v3771_v38, %v15484_v58  ;;  %v12196_v34 = vpop.f32.mrb[134].mxu1  ;;  %v15780_v38 = vpop.f32.mrb[105].mxu0 }
 0x537   : > { %17849 = vst [vmem:[#allocation23_spill] sm:$0xff] %v15757_v63  ;;  %v15769_v46 = vadd.f32 %v12196_v34, %v15503_v36  ;;  %v3774_v57 = vpop.f32.mrb[135].mxu1  ;;  %v15782_v31 = vpop.f32.mrb[106].mxu0  ;;  %v13164_v63 = vld [vmem:[%s17789_s7] ss:$8 sps:$4 sm:$0xff]  }
 0x538   : > { %17850 = vst [vmem:[#allocation24_spill] sm:$0xff] %v15763_v53  ;;  %v15772_v35 = vadd.f32 %v3774_v57, %v15493_v24  ;;  %v13139_v24 = vld [vmem:[%s17788_s6 + $0x468] ss:$12 sps:$4 sm:$0xff]   ;;  %v13140_v57 = vld [vmem:[%s17788_s6 + $0x484] ss:$12 sps:$4 sm:$0xff]  }
 0x539   : > { %17851 = vst [vmem:[#allocation25_spill] sm:$0xff] %v15769_v46  ;;  %5834 = vmatmul.mubr.bf16.gmra.mrb[240].mxu1 %v13130_v12  ;;  %v15788_v12 = vpop.f32.mrb[107].mxu0  ;;  %v17853_v46 = vmov 0  }
 0x53a   : > { %17852 = vst [vmem:[#allocation26_spill] sm:$0xff] %v15772_v35  ;;  %5841 = vmatprep.mubr.bf16.mxu1 %v13137_v17 }
 0x53c   : > { %v4297_v8 = vpop.f32.mrb[136].mxu1 }
 0x53d   : > { %v4491_v36 = vadd.f32 %v15420_v60, %v4297_v8  ;;  %v4299_v34 = vpop.f32.mrb[137].mxu1  ;;  %v13178_v8 = vld [vmem:[%s17789_s7 + $0x14] ss:$8 sps:$4 sm:$0xff]  }
 0x53e   : > { %v4300_v17 = vpop.f32.mrb[138].mxu1 }
 0x53f   : > { %v4494_v56 = vadd.f32 %v15429_v41, %v4300_v17  ;;  %v4302_v58 = vpop.f32.mrb[139].mxu1  ;;  %v13176_v41 = vld [vmem:[%s17789_s7 + $0x10] ss:$8 sps:$4 sm:$0xff]  }
 0x541   : > { %v4649_v60 = vpack.c.bf16 %v4494_v56, %v4491_v36  ;;  %5842 = vmatmul.mubr.bf16.gmra.mrb[244].mxu1 %v13139_v24  ;;  %v13142_v56 = vld [vmem:[%s17788_s6 + $0x480] ss:$12 sps:$4 sm:$0xff]  }
 0x542   : > { %5849 = vmatprep.mubr.bf16.mxu1 %v13140_v57  ;;  %v13186_v36 = vld [vmem:[%s17789_s7 + $0x24] ss:$8 sps:$4 sm:$0xff]  }
 0x543   : > { %4799 = vmatmul.mubr.bf16.vlgmr.msra.gmra.mrb[112].mxu0 %v4649_v60 }
 0x544   : > { %v4305_v34 = vpop.f32.mrb[140].mxu1  ;;  %4808 = vmatprep.mubr.bf16.mxu0 %v17853_v46  ;;  %5080 = vmatpush1.bf16.msra.mxu0 %v13164_v63  ;;  %v13143_v63 = vld [vmem:[%s17788_s6 + $0x49c] ss:$12 sps:$4 sm:$0xff]  }
 0x545   : > { %v4499_v58 = vadd.f32 %v15418_v13, %v4305_v34  ;;  %v4307_v17 = vpop.f32.mrb[141].mxu1  ;;  %5081 = vmatprep.subr.bf16.mxu0 %v13178_v8  ;;  %v13184_v13 = vld [vmem:[%s17789_s7 + $0x20] ss:$8 sps:$4 sm:$0xff]   ;;  %v13195_v8 = vld [vmem:[%s17789_s7 + $0x34] ss:$8 sps:$4 sm:$0xff]  }
 0x546   : > { %v4308_v24 = vpop.f32.mrb[142].mxu1  ;;  %v15821_v17 = vpop.f32.mrb[108].mxu0 }
 0x547   : > { %v4502_v57 = vadd.f32 %v15424_v15, %v4308_v24  ;;  %v4310_v60 = vpop.f32.mrb[143].mxu1  ;;  %v15823_v53 = vpop.f32.mrb[109].mxu0  ;;  %v13145_v24 = vld [vmem:[%s17788_s6 + $0x498] ss:$12 sps:$4 sm:$0xff]  }
 0x548   : > { %5082 = vmatpush1.bf16.msra.mxu0 %v13176_v41  ;;  %v13193_v41 = vld [vmem:[%s17789_s7 + $0x30] ss:$8 sps:$4 sm:$0xff]   ;;  %v13148_v60 = vld [vmem:[%s17788_s6 + $0x4b4] ss:$12 sps:$4 sm:$0xff]  }
 0x549   : > { %5850 = vmatmul.mubr.bf16.gmra.mrb[248].mxu1 %v13142_v56  ;;  %v4650_v34 = vpack.c.bf16 %v4502_v57, %v4499_v58  ;;  %5083 = vmatprep.subr.bf16.mxu0 %v13186_v36  ;;  %v15829_v58 = vpop.f32.mrb[110].mxu0 }
 0x54a   : > { %5857 = vmatprep.mubr.bf16.mxu1 %v13143_v63  ;;  %v15835_v63 = vpop.f32.mrb[111].mxu0 }
 0x54b   : > { %4809 = vmatmul.mubr.bf16.gmra.mrb[116].mxu0 %v4650_v34 }
 0x54c   : > { %v4313_v15 = vpop.f32.mrb[144].mxu1  ;;  %4818 = vmatprep.mubr.bf16.mxu0 %v17853_v46  ;;  %5084 = vmatpush1.bf16.msra.mxu0 %v13184_v13 }
 0x54d   : > { %v4507_v56 = vadd.f32 %v15454_v4, %v4313_v15  ;;  %v4315_v36 = vpop.f32.mrb[145].mxu1  ;;  %5085 = vmatprep.subr.bf16.mxu0 %v13195_v8  ;;  %v13202_v4 = vld [vmem:[%s17789_s7 + $0x44] ss:$8 sps:$4 sm:$0xff]   ;;  %v13200_v8 = vld [vmem:[%s17789_s7 + $0x40] ss:$8 sps:$4 sm:$0xff]  }
 0x54e   : > { %v4316_v57 = vpop.f32.mrb[146].mxu1 }
 0x54f   : > { %v4510_v13 = vadd.f32 %v15463_v25, %v4316_v57  ;;  %v4318_v34 = vpop.f32.mrb[147].mxu1 }
 0x550   : > { %5086 = vmatpush1.bf16.msra.mxu0 %v13193_v41  ;;  %v13146_v41 = vld [vmem:[%s17788_s6 + $0x4b0] ss:$12 sps:$4 sm:$0xff]   ;;  %v13210_v34 = vld [vmem:[%s17789_s7 + $0x64] ss:$8 sps:$4 sm:$0xff]  }
 0x551   : > { %5858 = vmatmul.mubr.bf16.gmra.mrb[252].mxu1 %v13145_v24  ;;  %v4651_v35 = vpack.c.bf16 %v4510_v13, %v4507_v56  ;;  %5087 = vmatprep.subr.bf16.mxu0 %v13202_v4  ;;  %v13205_v24 = vld [vmem:[%s17789_s7 + $0x54] ss:$8 sps:$4 sm:$0xff]   ;;  %v13208_v4 = vld [vmem:[%s17789_s7 + $0x60] ss:$8 sps:$4 sm:$0xff]  }
 0x552   : > { %5865 = vmatprep.mubr.bf16.mxu1 %v13148_v60 }
 0x553   : > { %4819 = vmatmul.mubr.bf16.gmra.mrb[120].mxu0 %v4651_v35  ;;  %v13151_v35 = vld [vmem:[%s17788_s6 + $0x4cc] ss:$12 sps:$4 sm:$0xff]  }
 0x554   : > { %v4321_v15 = vpop.f32.mrb[148].mxu1  ;;  %4828 = vmatprep.mubr.bf16.mxu0 %v17853_v46  ;;  %5088 = vmatpush1.bf16.msra.mxu0 %v13200_v8 }
 0x555   : > { %v4515_v25 = vadd.f32 %v15452_v32, %v4321_v15  ;;  %v4323_v36 = vpop.f32.mrb[149].mxu1  ;;  %v13203_v32 = vld [vmem:[%s17789_s7 + $0x50] ss:$8 sps:$4 sm:$0xff]   ;;  %5089 = vmatprep.subr.bf16.mxu0 %v13205_v24 }
 0x556   : > { %v4324_v56 = vpop.f32.mrb[150].mxu1  ;;  %v13154_v36 = vld [vmem:[%s17788_s6 + $0x4e4] ss:$12 sps:$4 sm:$0xff]  }
 0x557   : > { %v4518_v57 = vadd.f32 %v15458_v62, %v4324_v56  ;;  %v4326_v60 = vpop.f32.mrb[151].mxu1  ;;  %v13211_v56 = vld [vmem:[%s17789_s7 + $0x70] ss:$8 sps:$4 sm:$0xff]  }
 0x558   : > { %5090 = vmatpush1.bf16.msra.mxu0 %v13203_v32 }
 0x559   : > { %5866 = vmatmul.mubr.bf16.gmra.mrb[0].mxu1 %v13146_v41  ;;  %v4652_v13 = vpack.c.bf16 %v4518_v57, %v4515_v25  ;;  %5091 = vmatprep.subr.bf16.mxu0 %v13210_v34  ;;  %v13149_v25 = vld [vmem:[%s17788_s6 + $0x4c8] ss:$12 sps:$4 sm:$0xff]  }
 0x55a   : > { %5873 = vmatprep.mubr.bf16.mxu1 %v13151_v35  ;;  %v13213_v35 = vld [vmem:[%s17789_s7 + $0x74] ss:$8 sps:$4 sm:$0xff]  }
 0x55b   : > { %4829 = vmatmul.mubr.bf16.gmra.mrb[124].mxu0 %v4652_v13  ;;  %v17855_v13 = vld [vmem:[#allocation3_spill] sm:$0xff] }
 0x55c   : > { %v4329_v62 = vpop.f32.mrb[152].mxu1  ;;  %4838 = vmatprep.mubr.bf16.mxu0 %v17853_v46  ;;  %5092 = vmatpush1.bf16.msra.mxu0 %v13208_v4 }
 0x55d   : > { %v4523_v8 = vadd.f32 %v15482_v2, %v4329_v62  ;;  %v4331_v15 = vpop.f32.mrb[153].mxu1  ;;  %v17854_v2 = vld [vmem:[#allocation5_spill] sm:$0xff]  ;;  %5093 = vmatprep.subr.bf16.mxu0 %v13213_v35  ;;  %v13152_v62 = vld [vmem:[%s17788_s6 + $0x4e0] ss:$12 sps:$4 sm:$0xff]  }
 0x55e   : > { %v4332_v41 = vpop.f32.mrb[154].mxu1 }
 0x55f   : > { %v4526_v24 = vadd.f32 %v17854_v2, %v4332_v41  ;;  %v4334_v57 = vpop.f32.mrb[155].mxu1  ;;  %v13157_v41 = vld [vmem:[%s17788_s6 + $0x4fc] ss:$12 sps:$4 sm:$0xff]  }
 0x560   : > { %5094 = vmatpush1.bf16.msra.mxu0 %v13211_v56  ;;  %v17857_v2 = vld [vmem:[#allocation7_spill] sm:$0xff] }
 0x561   : > { %5874 = vmatmul.mubr.bf16.gmra.mrb[4].mxu1 %v13149_v25  ;;  %v4653_v60 = vpack.c.bf16 %v4526_v24, %v4523_v8  ;;  %v17856_v25 = vld [vmem:[#allocation4_spill] sm:$0xff] }
 0x562   : > { %5881 = vmatprep.mubr.bf16.mxu1 %v13154_v36 }
 0x563   : > { %4839 = vmatmul.mubr.bf16.gmra.mrb[128].mxu0 %v4653_v60  ;;  %v13155_v60 = vld [vmem:[%s17788_s6 + $0x4f8] ss:$12 sps:$4 sm:$0xff]  }
 0x564   : > { %v4337_v32 = vpop.f32.mrb[156].mxu1  ;;  %4848 = vmatprep.mubr.bf16.mxu0 %v17853_v46 }
 0x565   : > { %v4531_v34 = vadd.f32 %v17855_v13, %v4337_v32  ;;  %v4339_v4 = vpop.f32.mrb[157].mxu1  ;;  %v13160_v13 = vld [vmem:[%s17788_s6 + $0x514] ss:$12 sps:$4 sm:$0xff]  }
 0x566   : > { %v4340_v15 = vpop.f32.mrb[158].mxu1  ;;  %v17858_v4 = vld [vmem:[#allocation10_spill] sm:$0xff] }
 0x567   : > { %v4534_v8 = vadd.f32 %v17856_v25, %v4340_v15  ;;  %v4342_v56 = vpop.f32.mrb[159].mxu1  ;;  %v17859_v25 = vld [vmem:[#allocation6_spill] sm:$0xff] }
 0x569   : > { %5882 = vmatmul.mubr.bf16.gmra.mrb[8].mxu1 %v13152_v62  ;;  %v4654_v36 = vpack.c.bf16 %v4534_v8, %v4531_v34 }
 0x56a   : > { %5889 = vmatprep.mubr.bf16.mxu1 %v13157_v41 }
 0x56b   : > { %4849 = vmatmul.mubr.bf16.gmra.mrb[132].mxu0 %v4654_v36  ;;  %v13158_v36 = vld [vmem:[%s17788_s6 + $0x510] ss:$12 sps:$4 sm:$0xff]  }
 0x56c   : > { %v4345_v35 = vpop.f32.mrb[160].mxu1  ;;  %4858 = vmatprep.mubr.bf16.mxu0 %v17853_v46 }
 0x56d   : > { %v4539_v24 = vadd.f32 %v17857_v2, %v4345_v35  ;;  %v4347_v57 = vpop.f32.mrb[161].mxu1  ;;  %v13163_v2 = vld [vmem:[%s17788_s6 + $0x52c] ss:$12 sps:$4 sm:$0xff]  }
 0x56e   : > { %v4348_v32 = vpop.f32.mrb[162].mxu1  ;;  %v17860_v57 = vld [vmem:[#allocation8_spill] sm:$0xff] }
 0x56f   : > { %v4542_v62 = vadd.f32 %v17858_v4, %v4348_v32  ;;  %v4350_v34 = vpop.f32.mrb[163].mxu1 }
 0x570   : > { %v13161_v34 = vld [vmem:[%s17788_s6 + $0x528] ss:$12 sps:$4 sm:$0xff]  }
 0x571   : > { %5890 = vmatmul.mubr.bf16.gmra.mrb[12].mxu1 %v13155_v60  ;;  %v4655_v15 = vpack.c.bf16 %v4542_v62, %v4539_v24 }
 0x572   : > { %5897 = vmatprep.mubr.bf16.mxu1 %v13160_v13 }
 0x573   : > { %4859 = vmatmul.mubr.bf16.gmra.mrb[136].mxu0 %v4655_v15 }
 0x574   : > { %v4353_v41 = vpop.f32.mrb[164].mxu1  ;;  %4868 = vmatprep.mubr.bf16.mxu0 %v17853_v46 }
 0x575   : > { %v4547_v8 = vadd.f32 %v17859_v25, %v4353_v41  ;;  %v4355_v56 = vpop.f32.mrb[165].mxu1  ;;  %v13169_v41 = vld [vmem:[%s17788_s6 + $0x544] ss:$12 sps:$4 sm:$0xff]  }
 0x576   : > { %v4356_v35 = vpop.f32.mrb[166].mxu1 }
 0x577   : > { %v4550_v60 = vadd.f32 %v17860_v57, %v4356_v35  ;;  %v4358_v24 = vpop.f32.mrb[167].mxu1 }
 0x579   : > { %5898 = vmatmul.mubr.bf16.gmra.mrb[16].mxu1 %v13158_v36  ;;  %v4656_v32 = vpack.c.bf16 %v4550_v60, %v4547_v8 }
 0x57a   : > { %5905 = vmatprep.mubr.bf16.mxu1 %v13163_v2  ;;  %v13167_v2 = vld [vmem:[%s17788_s6 + $0x540] ss:$12 sps:$4 sm:$0xff]  }
 0x57b   : > { %4869 = vmatmul.mubr.bf16.gmra.mrb[140].mxu0 %v4656_v32 }
 0x57c   : > { %v4361_v13 = vpop.f32.mrb[168].mxu1  ;;  %4878 = vmatprep.mubr.bf16.mxu0 %v17853_v46 }
 0x57d   : > { %v4555_v4 = vadd.f32 %v15562_v37, %v4361_v13  ;;  %v4363_v62 = vpop.f32.mrb[169].mxu1 }
 0x57e   : > { %v4364_v15 = vpop.f32.mrb[170].mxu1  ;;  %v13170_v62 = vld [vmem:[%s17788_s6 + $0x558] ss:$12 sps:$4 sm:$0xff]  }
 0x57f   : > { %v4558_v25 = vadd.f32 %v15572_v6, %v4364_v15  ;;  %v4366_v8 = vpop.f32.mrb[171].mxu1  ;;  %v13172_v6 = vld [vmem:[%s17788_s6 + $0x55c] ss:$12 sps:$4 sm:$0xff]  }
 0x581   : > { %5906 = vmatmul.mubr.bf16.gmra.mrb[20].mxu1 %v13161_v34  ;;  %v4657_v56 = vpack.c.bf16 %v4558_v25, %v4555_v4 }
 0x582   : > { %5913 = vmatprep.mubr.bf16.mxu1 %v13169_v41 }
 0x583   : > { %4879 = vmatmul.mubr.bf16.gmra.mrb[144].mxu0 %v4657_v56 }
 0x584   : > { %v4369_v36 = vpop.f32.mrb[172].mxu1  ;;  %4888 = vmatprep.mubr.bf16.mxu0 %v17853_v46 }
 0x585   : > { %v4563_v37 = vadd.f32 %v15558_v9, %v4369_v36  ;;  %v4371_v35 = vpop.f32.mrb[173].mxu1  ;;  %v13173_v36 = vld [vmem:[%s17788_s6 + $0x570] ss:$12 sps:$4 sm:$0xff]  }
 0x586   : > { %v4372_v57 = vpop.f32.mrb[174].mxu1 }
 0x587   : > { %v4566_v60 = vadd.f32 %v15564_v52, %v4372_v57  ;;  %v4374_v24 = vpop.f32.mrb[175].mxu1  ;;  %v13175_v52 = vld [vmem:[%s17788_s6 + $0x574] ss:$12 sps:$4 sm:$0xff]  }
 0x588   : > { %v13179_v24 = vld [vmem:[%s17788_s6 + $0x588] ss:$12 sps:$4 sm:$0xff]  }
 0x589   : > { %5914 = vmatmul.mubr.bf16.gmra.mrb[24].mxu1 %v13167_v2  ;;  %v4658_v32 = vpack.c.bf16 %v4566_v60, %v4563_v37 }
 0x58a   : > { %5921 = vmatprep.mubr.bf16.mxu1 %v13172_v6 }
 0x58b   : > { %4889 = vmatmul.mubr.bf16.gmra.mrb[148].mxu0 %v4658_v32 }
 0x58c   : > { %v4377_v13 = vpop.f32.mrb[176].mxu1  ;;  %4898 = vmatprep.mubr.bf16.mxu0 %v17853_v46 }
 0x58d   : > { %v4571_v9 = vadd.f32 %v15619_v54, %v4377_v13  ;;  %v4379_v4 = vpop.f32.mrb[177].mxu1 }
 0x58e   : > { %v4380_v34 = vpop.f32.mrb[178].mxu1 }
 0x58f   : > { %v4574_v15 = vadd.f32 %v15629_v55, %v4380_v34  ;;  %v4382_v41 = vpop.f32.mrb[179].mxu1  ;;  %v13181_v55 = vld [vmem:[%s17788_s6 + $0x58c] ss:$12 sps:$4 sm:$0xff]  }
 0x591   : > { %5922 = vmatmul.mubr.bf16.gmra.mrb[28].mxu1 %v13170_v62  ;;  %v4659_v25 = vpack.c.bf16 %v4574_v15, %v4571_v9 }
 0x592   : > { %5929 = vmatprep.mubr.bf16.mxu1 %v13175_v52  ;;  %v13183_v52 = vld [vmem:[%s17788_s6 + $0x3e0] ss:$12 sps:$4 sm:$0xff]  }
 0x593   : > { %4899 = vmatmul.mubr.bf16.gmra.mrb[152].mxu0 %v4659_v25 }
 0x594   : > { %v4385_v8 = vpop.f32.mrb[180].mxu1  ;;  %4908 = vmatprep.mubr.bf16.mxu0 %v17853_v46 }
 0x595   : > { %v4579_v54 = vadd.f32 %v15614_v18, %v4385_v8  ;;  %v4387_v56 = vpop.f32.mrb[181].mxu1  ;;  %v13222_v8 = vld [vmem:[%s17789_s7 + $0x104] ss:$8 sps:$4 sm:$0xff]  }
 0x596   : > { %v4388_v37 = vpop.f32.mrb[182].mxu1  ;;  %6256 = vmatprep.subr.bf16.mxu0 %v13222_v8 }
 0x597   : > { %v4582_v35 = vadd.f32 %v15621_v47, %v4388_v37  ;;  %v4390_v2 = vpop.f32.mrb[183].mxu1  ;;  %v13182_v47 = vld [vmem:[%s17788_s6 + $0x3c8] ss:$12 sps:$4 sm:$0xff]  }
 0x599   : > { %5930 = vmatmul.mubr.bf16.gmra.mrb[32].mxu1 %v13173_v36  ;;  %v4660_v57 = vpack.c.bf16 %v4582_v35, %v4579_v54 }
 0x59a   : > { %5937 = vmatprep.mubr.bf16.mxu1 %v13181_v55  ;;  %v13189_v55 = vld [vmem:[%s17788_s6 + $0x428] ss:$12 sps:$4 sm:$0xff]  }
 0x59b   : > { %4909 = vmatmul.mubr.bf16.gmra.mrb[156].mxu0 %v4660_v57 }
 0x59c   : > { %v4393_v6 = vpop.f32.mrb[184].mxu1  ;;  %4918 = vmatprep.mubr.bf16.mxu0 %v17853_v46 }
 0x59d   : > { %v4587_v18 = vadd.f32 %v15676_v49, %v4393_v6  ;;  %v4395_v60 = vpop.f32.mrb[185].mxu1 }
 0x59e   : > { %v4396_v32 = vpop.f32.mrb[186].mxu1  ;;  %v13190_v60 = vld [vmem:[%s17788_s6 + $0x440] ss:$12 sps:$4 sm:$0xff]  }
 0x59f   : > { %v4590_v13 = vadd.f32 %v15686_v26, %v4396_v32  ;;  %v4398_v9 = vpop.f32.mrb[187].mxu1  ;;  %v13187_v26 = vld [vmem:[%s17788_s6 + $0x3f8] ss:$12 sps:$4 sm:$0xff]  }
 0x5a1   : > { %5938 = vmatmul.mubr.bf16.gmra.mrb[36].mxu1 %v13179_v24  ;;  %v4661_v4 = vpack.c.bf16 %v4590_v13, %v4587_v18 }
 0x5a2   : > { %12253 = vmatprep.mubr.msk.bf16.mxu1 %vm3339_vm9, %v13182_v47 }
 0x5a3   : > { %4919 = vmatmul.mubr.bf16.gmra.mrb[160].mxu0 %v4661_v4 }
 0x5a4   : > { %v4401_v62 = vpop.f32.mrb[188].mxu1  ;;  %4928 = vmatprep.mubr.bf16.mxu0 %v17853_v46 }
 0x5a5   : > { %v4595_v49 = vadd.f32 %v15672_v11, %v4401_v62  ;;  %v4403_v34 = vpop.f32.mrb[189].mxu1  ;;  %v13192_v62 = vld [vmem:[%s17788_s6 + $0x470] ss:$12 sps:$4 sm:$0xff]  }
 0x5a6   : > { %v4404_v15 = vpop.f32.mrb[190].mxu1 }
 0x5a7   : > { %v4598_v41 = vadd.f32 %v15678_v23, %v4404_v15  ;;  %v4406_v25 = vpop.f32.mrb[191].mxu1  ;;  %v13188_v23 = vld [vmem:[%s17788_s6 + $0x410] ss:$12 sps:$4 sm:$0xff]  }
 0x5a8   : > { %v13197_v25 = vld [vmem:[%s17788_s6 + $0x4a0] ss:$12 sps:$4 sm:$0xff]  }
 0x5a9   : > { %12254 = vmatmul.mubr.msk.bf16.vlgmr.msra.gmra.mrb[40].mxu1 %vm3339_vm9, %v13183_v52  ;;  %v4662_v11 = vpack.c.bf16 %v4598_v41, %v4595_v49 }
 0x5aa   : > { %12257 = vmatprep.mubr.msk.bf16.mxu1 %vm3339_vm9, %v13187_v26 }
 0x5ab   : > { %4929 = vmatmul.mubr.bf16.gmra.mrb[164].mxu0 %v4662_v11 }
 0x5ac   : > { %v4409_v54 = vpop.f32.mrb[192].mxu1  ;;  %4938 = vmatprep.mubr.bf16.mxu0 %v17853_v46 }
 0x5ad   : > { %v4603_v56 = vadd.f32 %v15728_v44, %v4409_v54  ;;  %v4411_v36 = vpop.f32.mrb[193].mxu1 }
 0x5ae   : > { %v4412_v37 = vpop.f32.mrb[194].mxu1 }
 0x5af   : > { %v4606_v35 = vadd.f32 %v15738_v3, %v4412_v37  ;;  %v4414_v2 = vpop.f32.mrb[195].mxu1  ;;  %v13191_v3 = vld [vmem:[%s17788_s6 + $0x458] ss:$12 sps:$4 sm:$0xff]   ;;  %v13199_v37 = vld [vmem:[%s17788_s6 + $0x4d0] ss:$12 sps:$4 sm:$0xff]  }
 0x5b1   : > { %12258 = vmatmul.mubr.msk.bf16.gmra.mrb[44].mxu1 %vm3339_vm9, %v13188_v23  ;;  %v4663_v57 = vpack.c.bf16 %v4606_v35, %v4603_v56 }
 0x5b2   : > { %12261 = vmatprep.mubr.msk.bf16.mxu1 %vm3339_vm9, %v13189_v55 }
 0x5b3   : > { %4939 = vmatmul.mubr.bf16.gmra.mrb[168].mxu0 %v4663_v57 }
 0x5b4   : > { %v4417_v44 = vpop.f32.mrb[196].mxu1  ;;  %4948 = vmatprep.mubr.bf16.mxu0 %v17853_v46 }
 0x5b5   : > { %v4611_v6 = vadd.f32 %v15724_v40, %v4417_v44  ;;  %v4419_v18 = vpop.f32.mrb[197].mxu1 }
 0x5b6   : > { %v4420_v24 = vpop.f32.mrb[198].mxu1  ;;  %v13207_v18 = vld [vmem:[%s17788_s6 + $0x500] ss:$12 sps:$4 sm:$0xff]  }
 0x5b7   : > { %v4614_v32 = vadd.f32 %v15730_v14, %v4420_v24  ;;  %v4422_v47 = vpop.f32.mrb[199].mxu1  ;;  %v13196_v14 = vld [vmem:[%s17788_s6 + $0x488] ss:$12 sps:$4 sm:$0xff]  }
 0x5b9   : > { %12262 = vmatmul.mubr.msk.bf16.gmra.mrb[48].mxu1 %vm3339_vm9, %v13190_v60  ;;  %v4664_v13 = vpack.c.bf16 %v4614_v32, %v4611_v6 }
 0x5ba   : > { %12265 = vmatprep.mubr.msk.bf16.mxu1 %vm3339_vm9, %v13191_v3 }
 0x5bb   : > { %4949 = vmatmul.mubr.bf16.gmra.mrb[172].mxu0 %v4664_v13  ;;  %v13215_v13 = vld [vmem:[%s17788_s6 + $0x530] ss:$12 sps:$4 sm:$0xff]  }
 0x5bc   : > { %v4425_v40 = vpop.f32.mrb[200].mxu1  ;;  %4958 = vmatprep.mubr.bf16.mxu0 %v17853_v46 }
 0x5bd   : > { %v4619_v9 = vadd.f32 %v15780_v38, %v4425_v40  ;;  %v4427_v4 = vpop.f32.mrb[201].mxu1 }
 0x5be   : > { %v4428_v49 = vpop.f32.mrb[202].mxu1  ;;  %v13220_v4 = vld [vmem:[%s17789_s7 + $0x100] ss:$8 sps:$4 sm:$0xff]  }
 0x5bf   : > { %v4622_v34 = vadd.f32 %v15788_v12, %v4428_v49  ;;  %v4430_v52 = vpop.f32.mrb[203].mxu1  ;;  %v13198_v12 = vld [vmem:[%s17788_s6 + $0x4b8] ss:$12 sps:$4 sm:$0xff]   ;;  %v17861_v49 = vpack.c.bf16 %v15532_v43, %v15523_v28 }
 0x5c0   : > { %v13228_v28 = vld [vmem:[%s17789_s7 + $0x124] ss:$8 sps:$4 sm:$0xff]  }
 0x5c1   : > { %12266 = vmatmul.mubr.msk.bf16.gmra.mrb[52].mxu1 %vm3339_vm9, %v13192_v62  ;;  %v4665_v15 = vpack.c.bf16 %v4622_v34, %v4619_v9  ;;  %v13225_v62 = vld [vmem:[%s17789_s7 + $0x114] ss:$8 sps:$4 sm:$0xff]   ;;  %v13223_v34 = vld [vmem:[%s17789_s7 + $0x110] ss:$8 sps:$4 sm:$0xff]  }
 0x5c2   : > { %12269 = vmatprep.mubr.msk.bf16.mxu1 %vm3339_vm9, %v13196_v14 }
 0x5c3   : > { %4959 = vmatmul.mubr.bf16.gmra.mrb[176].mxu0 %v4665_v15  ;;  %v13217_v15 = vld [vmem:[%s17788_s6 + $0x560] ss:$12 sps:$4 sm:$0xff]  }
 0x5c4   : > { %v4433_v38 = vpop.f32.mrb[204].mxu1  ;;  %4968 = vmatprep.mubr.bf16.mxu0 %v17853_v46 }
 0x5c5   : > { %v4627_v26 = vadd.f32 %v15776_v33, %v4433_v38  ;;  %v4435_v41 = vpop.f32.mrb[205].mxu1  ;;  %v13218_v38 = vld [vmem:[%s17788_s6 + $0x578] ss:$12 sps:$4 sm:$0xff]  }
 0x5c6   : > { %v4436_v8 = vpop.f32.mrb[206].mxu1  ;;  %v13226_v41 = vld [vmem:[%s17789_s7 + $0x120] ss:$8 sps:$4 sm:$0xff]  }
 0x5c7   : > { %v4630_v11 = vadd.f32 %v15782_v31, %v4436_v8  ;;  %v4438_v54 = vpop.f32.mrb[207].mxu1  ;;  %v13206_v31 = vld [vmem:[%s17788_s6 + $0x4e8] ss:$12 sps:$4 sm:$0xff]  }
 0x5c8   : > { %v17862_v8 = vld [vmem:[#allocation9_spill] sm:$0xff] }
 0x5c9   : > { %12270 = vmatmul.mubr.msk.bf16.gmra.mrb[56].mxu1 %vm3339_vm9, %v13197_v25  ;;  %v4666_v56 = vpack.c.bf16 %v4630_v11, %v4627_v26  ;;  %v13231_v25 = vld [vmem:[%s17789_s7 + $0x134] ss:$8 sps:$4 sm:$0xff]   ;;  %v13229_v54 = vld [vmem:[%s17789_s7 + $0x130] ss:$8 sps:$4 sm:$0xff]  }
 0x5ca   : > { %12273 = vmatprep.mubr.msk.bf16.mxu1 %vm3339_vm9, %v13198_v12  ;;  %v17863_v12 = vpack.c.bf16 %v15529_v30, %v17862_v8  ;;  %v17864_v30 = vld [vmem:[#allocation12_spill] sm:$0xff] }
 0x5cb   : > { %4969 = vmatmul.mubr.bf16.gmra.mrb[180].mxu0 %v4666_v56 }
 0x5cc   : > { %v4441_v33 = vpop.f32.mrb[208].mxu1  ;;  %4978 = vmatprep.mubr.bf16.mxu0 %v17853_v46 }
 0x5cd   : > { %v4635_v36 = vadd.f32 %v15823_v53, %v4441_v33  ;;  %v4443_v23 = vpop.f32.mrb[209].mxu1  ;;  %v13219_v33 = vld [vmem:[%s17788_s6 + $0x590] ss:$12 sps:$4 sm:$0xff]  }
 0x5ce   : > { %v4444_v55 = vpop.f32.mrb[210].mxu1 }
 0x5cf   : > { %v4638_v35 = vadd.f32 %v15835_v63, %v4444_v55  ;;  %v4446_v2 = vpop.f32.mrb[211].mxu1  ;;  %v13214_v63 = vld [vmem:[%s17788_s6 + $0x518] ss:$12 sps:$4 sm:$0xff]  }
 0x5d0   : > { %v13234_v55 = vld [vmem:[%s17789_s7 + $0x144] ss:$8 sps:$4 sm:$0xff]  }
 0x5d1   : > { %12274 = vmatmul.mubr.msk.bf16.gmra.mrb[60].mxu1 %vm3339_vm9, %v13199_v37  ;;  %v4667_v57 = vpack.c.bf16 %v4638_v35, %v4635_v36  ;;  %v17865_v37 = vpack.c.bf16 %v15554_v48, %v17864_v30  ;;  %v13232_v35 = vld [vmem:[%s17789_s7 + $0x140] ss:$8 sps:$4 sm:$0xff]   ;;  %v13235_v48 = vld [vmem:[%s17789_s7 + $0x150] ss:$8 sps:$4 sm:$0xff]  }
 0x5d2   : > { %12277 = vmatprep.mubr.msk.bf16.mxu1 %vm3339_vm9, %v13206_v31 }
 0x5d3   : > { %4979 = vmatmul.mubr.bf16.gmra.mrb[184].mxu0 %v4667_v57 }
 0x5d4   : > { %v4449_v53 = vpop.f32.mrb[212].mxu1  ;;  %4988 = vmatprep.mubr.bf16.mxu0 %v17853_v46 }
 0x5d5   : > { %v4643_v44 = vadd.f32 %v15821_v17, %v4449_v53  ;;  %v4451_v6 = vpop.f32.mrb[213].mxu1 }
 0x5d6   : > { %v4452_v60 = vpop.f32.mrb[214].mxu1  ;;  %v17866_v6 = vld [vmem:[#allocation13_spill] sm:$0xff] }
 0x5d7   : > { %v4646_v24 = vadd.f32 %v15829_v58, %v4452_v60  ;;  %v4454_v3 = vpop.f32.mrb[215].mxu1  ;;  %v13216_v58 = vld [vmem:[%s17788_s6 + $0x548] ss:$12 sps:$4 sm:$0xff]  }
 0x5d8   : > { %v13238_v3 = vld [vmem:[%s17789_s7 + $0x160] ss:$8 sps:$4 sm:$0xff]  }
 0x5d9   : > { %12278 = vmatmul.mubr.msk.bf16.gmra.mrb[64].mxu1 %vm3339_vm9, %v13207_v18  ;;  %v4668_v32 = vpack.c.bf16 %v4646_v24, %v4643_v44  ;;  %v13237_v44 = vld [vmem:[%s17789_s7 + $0x154] ss:$8 sps:$4 sm:$0xff]   ;;  %v17867_v18 = vld [vmem:[#allocation11_spill] sm:$0xff] }
 0x5da   : > { %12281 = vmatprep.mubr.msk.bf16.mxu1 %vm3339_vm9, %v13214_v63  ;;  %v17868_v60 = vpack.c.bf16 %v17866_v6, %v17867_v18  ;;  %v13240_v63 = vld [vmem:[%s17789_s7 + $0x164] ss:$8 sps:$4 sm:$0xff]   ;;  %v17878_v18 = vld [vmem:[#allocation17_spill] sm:$0xff] }
 0x5db   : > { %4989 = vmatmul.mubr.bf16.gmra.mrb[188].mxu0 %v4668_v32 }
 0x5dc   : > { %v16036_v17 = vpop.f32.mrb[216].mxu1  ;;  %5111 = vmatprep.mubr.bf16.mxu0 %v17853_v46 }
 0x5dd   : > { %v5789_v47 = vpop.f32.mrb[217].mxu1 }
 0x5de   : > { %v16042_v40 = vpop.f32.mrb[218].mxu1 }
 0x5df   : > { %v5792_v9 = vpop.f32.mrb[219].mxu1 }
 0x5e0   : > { %v13241_v9 = vld [vmem:[%s17789_s7 + $0x170] ss:$8 sps:$4 sm:$0xff]  }
 0x5e1   : > { %12282 = vmatmul.mubr.msk.bf16.gmra.mrb[68].mxu1 %vm3339_vm9, %v13215_v13 }
 0x5e2   : > { %12285 = vmatprep.mubr.msk.bf16.mxu1 %vm3339_vm9, %v13216_v58  ;;  %v13243_v58 = vld [vmem:[%s17789_s7 + $0x174] ss:$8 sps:$4 sm:$0xff]  }
 0x5e3   : > { %5112 = vmatmul.mubr.bf16.vlgmr.msra.gmra.mrb[112].mxu0 %v17861_v49 }
 0x5e4   : > { %v16058_v14 = vpop.f32.mrb[220].mxu1  ;;  %5121 = vmatprep.mubr.bf16.mxu0 %v17853_v46  ;;  %6257 = vmatpush1.bf16.msra.mxu0 %v13220_v4  ;;  %v17869_v4 = vpack.c.bf16 %v15584_v29, %v15575_v0  ;;  %v17871_v29 = vpack.c.bf16 %v15609_v42, %v15597_v59  ;;  %v17873_v42 = vpack.c.bf16 %v15643_v7, %v15632_v51  ;;  %v17876_v51 = vld [vmem:[#allocation16_spill] sm:$0xff] }
 0x5e5   : > { %v5797_v52 = vpop.f32.mrb[221].mxu1  ;;  %6258 = vmatprep.subr.bf16.mxu0 %v13225_v62 }
 0x5e6   : > { %v16070_v43 = vpop.f32.mrb[222].mxu1 }
 0x5e7   : > { %v5800_v26 = vpop.f32.mrb[223].mxu1 }
 0x5e8   : > { %6259 = vmatpush1.bf16.msra.mxu0 %v13223_v34 }
 0x5e9   : > { %12286 = vmatmul.mubr.msk.bf16.gmra.mrb[72].mxu1 %vm3339_vm9, %v13217_v15  ;;  %6260 = vmatprep.subr.bf16.mxu0 %v13228_v28  ;;  %v17870_v15 = vpack.c.bf16 %v15581_v61, %v15567_v21  ;;  %v17872_v21 = vpack.c.bf16 %v15603_v16, %v15591_v50  ;;  %v17874_v16 = vld [vmem:[#allocation14_spill] sm:$0xff] }
 0x5ea   : > { %12289 = vmatprep.mubr.msk.bf16.mxu1 %vm3339_vm9, %v13218_v38 }
 0x5eb   : > { %5122 = vmatmul.mubr.bf16.gmra.mrb[116].mxu0 %v17863_v12 }
 0x5ec   : > { %v16086_v11 = vpop.f32.mrb[224].mxu1  ;;  %5131 = vmatprep.mubr.bf16.mxu0 %v17853_v46  ;;  %6261 = vmatpush1.bf16.msra.mxu0 %v13226_v41 }
 0x5ed   : > { %v5805_v56 = vpop.f32.mrb[225].mxu1  ;;  %6262 = vmatprep.subr.bf16.mxu0 %v13231_v25 }
 0x5ee   : > { %v16095_v36 = vpop.f32.mrb[226].mxu1 }
 0x5ef   : > { %v5808_v23 = vpop.f32.mrb[227].mxu1 }
 0x5f0   : > { %6263 = vmatpush1.bf16.msra.mxu0 %v13229_v54 }
 0x5f1   : > { %12290 = vmatmul.mubr.msk.bf16.gmra.mrb[76].mxu1 %vm3339_vm9, %v13219_v33  ;;  %6264 = vmatprep.subr.bf16.mxu0 %v13234_v55 }
 0x5f3   : > { %5132 = vmatmul.mubr.bf16.gmra.mrb[120].mxu0 %v17865_v37  ;;  %v17875_v37 = vpack.c.bf16 %v15639_v20, %v17874_v16 }
 0x5f4   : > { %v16104_v31 = vpop.f32.mrb[228].mxu1  ;;  %5141 = vmatprep.mubr.bf16.mxu0 %v17853_v46  ;;  %6265 = vmatpush1.bf16.msra.mxu0 %v13232_v35 }
 0x5f5   : > { %v5813_v2 = vpop.f32.mrb[229].mxu1  ;;  %6266 = vmatprep.subr.bf16.mxu0 %v13237_v44 }
 0x5f6   : > { %v16110_v57 = vpop.f32.mrb[230].mxu1 }
 0x5f7   : > { %v5816_v53 = vpop.f32.mrb[231].mxu1 }
 0x5f8   : > { %6267 = vmatpush1.bf16.msra.mxu0 %v13235_v48  ;;  %v17877_v53 = vpack.c.bf16 %v15668_v5, %v17876_v51 }
 0x5f9   : > { %6268 = vmatprep.subr.bf16.mxu0 %v13240_v63 }
 0x5fb   : > { %5142 = vmatmul.mubr.bf16.gmra.mrb[124].mxu0 %v17868_v60  ;;  %v17879_v60 = vld [vmem:[#allocation15_spill] sm:$0xff] }
 0x5fc   : > { %v16124_v24 = vpop.f32.mrb[232].mxu1  ;;  %5151 = vmatprep.mubr.bf16.mxu0 %v17853_v46  ;;  %6269 = vmatpush1.bf16.msra.mxu0 %v13238_v3  ;;  %v17880_v63 = vpack.c.bf16 %v17878_v18, %v17879_v60  ;;  %v17890_v18 = vld [vmem:[#allocation22_spill] sm:$0xff] }
 0x5fd   : > { %v5821_v32 = vpop.f32.mrb[233].mxu1  ;;  %6270 = vmatprep.subr.bf16.mxu0 %v13243_v58  ;;  %v17881_v58 = vpack.c.bf16 %v15698_v10, %v15689_v39  ;;  %v17884_v10 = vld [vmem:[#allocation20_spill] sm:$0xff]  ;;  %v17891_v60 = vpack.c.bf16 %v15747_v45, %v17890_v18 }
 0x5fe   : > { %v16130_v47 = vpop.f32.mrb[234].mxu1 }
 0x5ff   : > { %v5824_v13 = vpop.f32.mrb[235].mxu1 }
 0x600   : > { %6271 = vmatpush1.bf16.msra.mxu0 %v13241_v9 }
 0x603   : > { %5152 = vmatmul.mubr.bf16.gmra.mrb[128].mxu0 %v17869_v4 }
 0x604   : > { %v16141_v62 = vpop.f32.mrb[236].mxu1  ;;  %5161 = vmatprep.mubr.bf16.mxu0 %v17853_v46 }
 0x605   : > { %v5829_v49 = vpop.f32.mrb[237].mxu1 }
 0x606   : > { %v16144_v34 = vpop.f32.mrb[238].mxu1 }
 0x607   : > { %v5832_v52 = vpop.f32.mrb[239].mxu1 }
 0x60b   : > { %5162 = vmatmul.mubr.bf16.gmra.mrb[132].mxu0 %v17870_v15  ;;  %v17882_v15 = vld [vmem:[#allocation18_spill] sm:$0xff] }
 0x60c   : > { %v16149_v28 = vpop.f32.mrb[240].mxu1  ;;  %5171 = vmatprep.mubr.bf16.mxu0 %v17853_v46 }
 0x60d   : > { %v5837_v38 = vpop.f32.mrb[241].mxu1 }
 0x60e   : > { %v16152_v26 = vpop.f32.mrb[242].mxu1  ;;  %v17883_v38 = vpack.c.bf16 %v15695_v1, %v17882_v15 }
 0x60f   : > { %v5840_v0 = vpop.f32.mrb[243].mxu1 }
 0x613   : > { %5172 = vmatmul.mubr.bf16.gmra.mrb[136].mxu0 %v17871_v29 }
 0x614   : > { %v16157_v41 = vpop.f32.mrb[244].mxu1  ;;  %5181 = vmatprep.mubr.bf16.mxu0 %v17853_v46 }
 0x615   : > { %v5845_v25 = vpop.f32.mrb[245].mxu1 }
 0x616   : > { %v16160_v8 = vpop.f32.mrb[246].mxu1 }
 0x617   : > { %v5848_v61 = vpop.f32.mrb[247].mxu1 }
 0x618   : > { %v17885_v61 = vpack.c.bf16 %v15720_v27, %v17884_v10 }
 0x61b   : > { %5182 = vmatmul.mubr.bf16.gmra.mrb[140].mxu0 %v17872_v21 }
 0x61c   : > { %v16165_v12 = vpop.f32.mrb[248].mxu1  ;;  %5191 = vmatprep.mubr.bf16.mxu0 %v17853_v46 }
 0x61d   : > { %v5853_v54 = vpop.f32.mrb[249].mxu1 }
 0x61e   : > { %v16168_v56 = vpop.f32.mrb[250].mxu1 }
 0x61f   : > { %v5856_v59 = vpop.f32.mrb[251].mxu1 }
 0x623   : > { %5192 = vmatmul.mubr.bf16.gmra.mrb[144].mxu0 %v17873_v42  ;;  %v17886_v42 = vld [vmem:[#allocation21_spill] sm:$0xff] }
 0x624   : > { %v16173_v33 = vpop.f32.mrb[252].mxu1  ;;  %5201 = vmatprep.mubr.bf16.mxu0 %v17853_v46 }
 0x625   : > { %v5861_v23 = vpop.f32.mrb[253].mxu1 }
 0x626   : > { %v16176_v30 = vpop.f32.mrb[254].mxu1  ;;  %v17887_v23 = vld [vmem:[#allocation19_spill] sm:$0xff] }
 0x627   : > { %v5864_v50 = vpop.f32.mrb[255].mxu1 }
 0x628   : > { %v17888_v50 = vpack.c.bf16 %v17886_v42, %v17887_v23 }
 0x62b   : > { %5202 = vmatmul.mubr.bf16.gmra.mrb[148].mxu0 %v17875_v37 }
 0x62c   : > { %v16181_v55 = vpop.f32.mrb[0].mxu1  ;;  %5211 = vmatprep.mubr.bf16.mxu0 %v17853_v46 }
 0x62d   : > { %v5869_v35 = vpop.f32.mrb[1].mxu1 }
 0x62e   : > { %v16184_v2 = vpop.f32.mrb[2].mxu1 }
 0x62f   : > { %v5872_v7 = vpop.f32.mrb[3].mxu1 }
 0x630   : > { %v17889_v7 = vpack.c.bf16 %v15750_v22, %v15741_v19  ;;  %v17892_v22 = vld [vmem:[#allocation26_spill] sm:$0xff] }
 0x633   : > { %5212 = vmatmul.mubr.bf16.gmra.mrb[152].mxu0 %v17877_v53 }
 0x634   : > { %v16189_v48 = vpop.f32.mrb[4].mxu1  ;;  %5221 = vmatprep.mubr.bf16.mxu0 %v17853_v46 }
 0x635   : > { %v5877_v44 = vpop.f32.mrb[5].mxu1 }
 0x636   : > { %v16192_v6 = vpop.f32.mrb[6].mxu1 }
 0x637   : > { %v5880_v20 = vpop.f32.mrb[7].mxu1 }
 0x63b   : > { %5222 = vmatmul.mubr.bf16.gmra.mrb[156].mxu0 %v17880_v63 }
 0x63c   : > { %v16197_v3 = vpop.f32.mrb[8].mxu1  ;;  %5231 = vmatprep.mubr.bf16.mxu0 %v17853_v46 }
 0x63d   : > { %v5885_v32 = vpop.f32.mrb[9].mxu1 }
 0x63e   : > { %v16200_v13 = vpop.f32.mrb[10].mxu1 }
 0x63f   : > { %v5888_v5 = vpop.f32.mrb[11].mxu1 }
 0x643   : > { %5232 = vmatmul.mubr.bf16.gmra.mrb[160].mxu0 %v17881_v58  ;;  %v17893_v58 = vld [vmem:[#allocation24_spill] sm:$0xff] }
 0x644   : > { %v16205_v9 = vpop.f32.mrb[12].mxu1  ;;  %5241 = vmatprep.mubr.bf16.mxu0 %v17853_v46 }
 0x645   : > { %v5893_v4 = vpop.f32.mrb[13].mxu1 }
 0x646   : > { %v16208_v49 = vpop.f32.mrb[14].mxu1  ;;  %v17894_v4 = vpack.c.bf16 %v17892_v22, %v17893_v58 }
 0x647   : > { %v5896_v52 = vpop.f32.mrb[15].mxu1 }
 0x64b   : > { %5242 = vmatmul.mubr.bf16.gmra.mrb[164].mxu0 %v17883_v38 }
 0x64c   : > { %v16213_v0 = vpop.f32.mrb[16].mxu1  ;;  %5251 = vmatprep.mubr.bf16.mxu0 %v17853_v46 }
 0x64d   : > { %v5901_v29 = vpop.f32.mrb[17].mxu1 }
 0x64e   : > { %v16216_v25 = vpop.f32.mrb[18].mxu1  ;;  %v17895_v29 = vld [vmem:[#allocation25_spill] sm:$0xff] }
 0x64f   : > { %v5904_v39 = vpop.f32.mrb[19].mxu1 }
 0x650   : > { %v17896_v39 = vld [vmem:[#allocation23_spill] sm:$0xff] }
 0x651   : > { %v17897_v10 = vpack.c.bf16 %v17895_v29, %v17896_v39 }
 0x653   : > { %5252 = vmatmul.mubr.bf16.gmra.mrb[168].mxu0 %v17885_v61 }
 0x654   : > { %v16221_v21 = vpop.f32.mrb[20].mxu1  ;;  %5261 = vmatprep.mubr.bf16.mxu0 %v17853_v46 }
 0x655   : > { %v5909_v54 = vpop.f32.mrb[21].mxu1 }
 0x656   : > { %v16224_v59 = vpop.f32.mrb[22].mxu1 }
 0x657   : > { %v5912_v1 = vpop.f32.mrb[23].mxu1 }
 0x65b   : > { %5262 = vmatmul.mubr.bf16.gmra.mrb[172].mxu0 %v17888_v50 }
 0x65c   : > { %v16229_v16 = vpop.f32.mrb[24].mxu1  ;;  %5271 = vmatprep.mubr.bf16.mxu0 %v17853_v46 }
 0x65d   : > { %v5917_v37 = vpop.f32.mrb[25].mxu1 }
 0x65e   : > { %v16232_v35 = vpop.f32.mrb[26].mxu1 }
 0x65f   : > { %v5920_v27 = vpop.f32.mrb[27].mxu1 }
 0x663   : > { %5272 = vmatmul.mubr.bf16.gmra.mrb[176].mxu0 %v17889_v7 }
 0x664   : > { %v16237_v51 = vpop.f32.mrb[28].mxu1  ;;  %5281 = vmatprep.mubr.bf16.mxu0 %v17853_v46 }
 0x665   : > { %v5925_v53 = vpop.f32.mrb[29].mxu1 }
 0x666   : > { %v16240_v44 = vpop.f32.mrb[30].mxu1 }
 0x667   : > { %v5928_v20 = vpop.f32.mrb[31].mxu1 }
 0x66b   : > { %5282 = vmatmul.mubr.bf16.gmra.mrb[180].mxu0 %v17891_v60 }
 0x66c   : > { %v16245_v63 = vpop.f32.mrb[32].mxu1  ;;  %5291 = vmatprep.mubr.bf16.mxu0 %v17853_v46 }
 0x66d   : > { %v5933_v32 = vpop.f32.mrb[33].mxu1 }
 0x66e   : > { %v16248_v5 = vpop.f32.mrb[34].mxu1 }
 0x66f   : > { %v5936_v19 = vpop.f32.mrb[35].mxu1 }
 0x673   : > { %5292 = vmatmul.mubr.bf16.gmra.mrb[184].mxu0 %v17894_v4 }
 0x674   : > { %v16253_v52 = vpop.f32.mrb[36].mxu1  ;;  %5301 = vmatprep.mubr.bf16.mxu0 %v17853_v46 }
 0x675   : > { %v5941_v15 = vpop.f32.mrb[37].mxu1 }
 0x676   : > { %v16256_v38 = vpop.f32.mrb[38].mxu1 }
 0x677   : > { %v5944_v45 = vpop.f32.mrb[39].mxu1 }
 0x67b   : > { %5302 = vmatmul.mubr.bf16.gmra.mrb[188].mxu0 %v17897_v10 }
 0x67c   : > { %v12255_v61 = vpop.f32.mrb[40].mxu1  ;;  %6288 = vmatprep.mubr.bf16.mxu0 %v17853_v46 }
 0x67d   : > { %v5980_v54 = vpop.f32.mrb[41].mxu1  ;;  %v5989_v1 = vadd.f32 %v12255_v61, %v16058_v14 }
 0x67e   : > { %v5981_v42 = vadd.f32 %v5980_v54, %v16036_v17  ;;  %v12256_v23 = vpop.f32.mrb[42].mxu1 }
 0x67f   : > { %v5983_v50 = vpop.f32.mrb[43].mxu1  ;;  %v5992_v37 = vadd.f32 %v12256_v23, %v16070_v43 }
 0x680   : > { %v5984_v27 = vadd.f32 %v5983_v50, %v16042_v40 }
 0x681   : > { %v6140_v7 = vpack.c.bf16 %v5992_v37, %v5989_v1  ;;  %v13245_v37 = vld [vmem:[%s17791_s9 + $0x80] sm:$0xff]  }
 0x682   : > { %v6139_v53 = vpack.c.bf16 %v5984_v27, %v5981_v42 }
 0x684   : > { %v12259_v20 = vpop.f32.mrb[44].mxu1  ;;  %6289 = vmatmul.mubr.bf16.vlgmr.msra.gmra.mrb[112].mxu0 %v6139_v53 }
 0x685   : > { %v5996_v18 = vpop.f32.mrb[45].mxu1  ;;  %6298 = vmatprep.mubr.bf16.mxu0 %v17853_v46  ;;  %v6005_v60 = vadd.f32 %v12259_v20, %v16104_v31 }
 0x686   : > { %v12260_v32 = vpop.f32.mrb[46].mxu1  ;;  %v5997_v14 = vadd.f32 %v5996_v18, %v16086_v11 }
 0x687   : > { %v5999_v19 = vpop.f32.mrb[47].mxu1  ;;  %v6008_v17 = vadd.f32 %v12260_v32, %v16110_v57 }
 0x688   : > { %v6000_v22 = vadd.f32 %v5999_v19, %v16095_v36 }
 0x689   : > { %v6142_v43 = vpack.c.bf16 %v6008_v17, %v6005_v60 }
 0x68a   : > { %v6141_v58 = vpack.c.bf16 %v6000_v22, %v5997_v14 }
 0x68c   : > { %v12263_v40 = vpop.f32.mrb[48].mxu1  ;;  %6299 = vmatmul.mubr.bf16.gmra.mrb[116].mxu0 %v6140_v7 }
 0x68d   : > { %v6021_v4 = vadd.f32 %v12263_v40, %v16141_v62  ;;  %v6012_v15 = vpop.f32.mrb[49].mxu1  ;;  %6308 = vmatprep.mubr.bf16.mxu0 %v17853_v46 }
 0x68e   : > { %v6013_v45 = vadd.f32 %v6012_v15, %v16124_v24  ;;  %v12264_v31 = vpop.f32.mrb[50].mxu1 }
 0x68f   : > { %v6024_v29 = vadd.f32 %v12264_v31, %v16144_v34  ;;  %v6015_v11 = vpop.f32.mrb[51].mxu1 }
 0x690   : > { %v6016_v39 = vadd.f32 %v6015_v11, %v16130_v47 }
 0x691   : > { %v6144_v57 = vpack.c.bf16 %v6024_v29, %v6021_v4 }
 0x692   : > { %v6143_v10 = vpack.c.bf16 %v6016_v39, %v6013_v45 }
 0x694   : > { %v12267_v36 = vpop.f32.mrb[52].mxu1  ;;  %6309 = vmatmul.mubr.bf16.gmra.mrb[120].mxu0 %v6141_v58 }
 0x695   : > { %v16277_v61 = vadd.f32 %v12267_v36, %v16157_v41  ;;  %v6028_v54 = vpop.f32.mrb[53].mxu1  ;;  %6318 = vmatprep.mubr.bf16.mxu0 %v17853_v46  ;;  %v13244_v41 = vld [vmem:[%s17791_s9 + $0xc0] sm:$0xff]  }
 0x696   : > { %v6029_v62 = vadd.f32 %v6028_v54, %v16149_v28  ;;  %v12268_v1 = vpop.f32.mrb[54].mxu1  ;;  %v13246_v28 = vld [vmem:[%s17791_s9 + $0xc8] sm:$0xff]   ;;  %11192 = vmatprep.subr.bf16.mxu1 %v13244_v41 }
 0x697   : > { %v6040_v24 = vadd.f32 %v12268_v1, %v16160_v8  ;;  %v6031_v42 = vpop.f32.mrb[55].mxu1  ;;  %11193 = vmatpush3.bf16.msra.mxu1 %v13245_v37 }
 0x698   : > { %v6032_v34 = vadd.f32 %v6031_v42, %v16152_v26  ;;  %11194 = vmatprep.subr.bf16.mxu1 %v13246_v28  ;;  %v13250_v28 = vld [vmem:[%s17791_s9 + $0xd8] sm:$0xff]  }
 0x699   : > { %v6146_v47 = vpack.c.bf16 %v6040_v24, %v16277_v61 }
 0x69a   : > { %v6145_v23 = vpack.c.bf16 %v6032_v34, %v6029_v62 }
 0x69c   : > { %v12271_v50 = vpop.f32.mrb[56].mxu1  ;;  %6319 = vmatmul.mubr.bf16.gmra.mrb[124].mxu0 %v6142_v43 }
 0x69d   : > { %v16294_v8 = vadd.f32 %v12271_v50, %v16173_v33  ;;  %v6044_v26 = vpop.f32.mrb[57].mxu1  ;;  %6328 = vmatprep.mubr.bf16.mxu0 %v17853_v46 }
 0x69e   : > { %v6045_v27 = vadd.f32 %v6044_v26, %v16165_v12  ;;  %v12272_v7 = vpop.f32.mrb[58].mxu1  ;;  %v13252_v26 = vld [vmem:[%s17791_s9 + $0xe0] sm:$0xff]  }
 0x69f   : > { %v16299_v53 = vadd.f32 %v12272_v7, %v16176_v30  ;;  %v6047_v20 = vpop.f32.mrb[59].mxu1  ;;  %v13254_v7 = vld [vmem:[%s17791_s9 + $0xa0] sm:$0xff]  }
 0x6a0   : > { %v6048_v18 = vadd.f32 %v6047_v20, %v16168_v56  ;;  %v13256_v20 = vld [vmem:[%s17791_s9 + $0xe8] sm:$0xff]  }
 0x6a1   : > { %v6148_v60 = vpack.c.bf16 %v16299_v53, %v16294_v8  ;;  %v13251_v8 = vld [vmem:[%s17791_s9 + $0x98] sm:$0xff]   ;;  %v13255_v53 = vld [vmem:[%s17791_s9 + $0x100] sm:$0xff]  }
 0x6a2   : > { %v6147_v33 = vpack.c.bf16 %v6048_v18, %v6045_v27  ;;  %v13253_v27 = vld [vmem:[%s17791_s9 + $0x140] sm:$0xff]   ;;  %v13257_v18 = vld [vmem:[%s17791_s9 + $0x148] sm:$0xff]  }
 0x6a3   : > { %11416 = vmatprep.subr.bf16.mxu0 %v13253_v27 }
 0x6a4   : > { %v12275_v32 = vpop.f32.mrb[60].mxu1  ;;  %6329 = vmatmul.mubr.bf16.gmra.mrb[128].mxu0 %v6143_v10 }
 0x6a5   : > { %v16305_v14 = vadd.f32 %v12275_v32, %v16189_v48  ;;  %v6060_v12 = vpop.f32.mrb[61].mxu1  ;;  %6338 = vmatprep.mubr.bf16.mxu0 %v17853_v46  ;;  %11417 = vmatpush3.bf16.msra.mxu0 %v13255_v53  ;;  %v13260_v32 = vld [vmem:[%s17791_s9 + $0xf0] sm:$0xff]  }
 0x6a6   : > { %v6061_v30 = vadd.f32 %v6060_v12, %v16181_v55  ;;  %v12276_v19 = vpop.f32.mrb[62].mxu1  ;;  %11418 = vmatprep.subr.bf16.mxu0 %v13257_v18  ;;  %v13262_v12 = vld [vmem:[%s17791_s9 + $0xb0] sm:$0xff]  }
 0x6a7   : > { %v6072_v17 = vadd.f32 %v12276_v19, %v16192_v6  ;;  %v6063_v22 = vpop.f32.mrb[63].mxu1  ;;  %v13264_v19 = vld [vmem:[%s17791_s9 + $0xf8] sm:$0xff]  }
 0x6a8   : > { %v6064_v56 = vadd.f32 %v6063_v22, %v16184_v2  ;;  %v13266_v22 = vld [vmem:[%s17791_s9 + $0xb8] sm:$0xff]  }
 0x6a9   : > { %v6150_v43 = vpack.c.bf16 %v6072_v17, %v16305_v14  ;;  %v13261_v14 = vld [vmem:[%s17791_s9 + $0x150] sm:$0xff]   ;;  %v13265_v17 = vld [vmem:[%s17791_s9 + $0x158] sm:$0xff]  }
 0x6aa   : > { %v6149_v58 = vpack.c.bf16 %v6064_v56, %v6061_v30  ;;  %v13263_v30 = vld [vmem:[%s17791_s9 + $0x110] sm:$0xff]   ;;  %v13267_v56 = vld [vmem:[%s17791_s9 + $0x118] sm:$0xff]  }
 0x6ac   : > { %v12279_v40 = vpop.f32.mrb[64].mxu1  ;;  %6339 = vmatmul.mubr.bf16.gmra.mrb[132].mxu0 %v6144_v57 }
 0x6ad   : > { %v16313_v4 = vadd.f32 %v12279_v40, %v16205_v9  ;;  %v6076_v48 = vpop.f32.mrb[65].mxu1  ;;  %6348 = vmatprep.mubr.bf16.mxu0 %v17853_v46  ;;  %v13270_v40 = vld [vmem:[%s17791_s9 + $0x168] sm:$0xff]  }
 0x6ae   : > { %v16317_v15 = vadd.f32 %v6076_v48, %v16197_v3  ;;  %v12280_v55 = vpop.f32.mrb[66].mxu1  ;;  %v13272_v48 = vld [vmem:[%s17791_s9 + $0x170] sm:$0xff]  }
 0x6af   : > { %v16320_v6 = vadd.f32 %v12280_v55, %v16208_v49  ;;  %v6079_v45 = vpop.f32.mrb[67].mxu1  ;;  %v13274_v55 = vld [vmem:[%s17791_s9 + $0x178] sm:$0xff]  }
 0x6b0   : > { %v6080_v2 = vadd.f32 %v6079_v45, %v16200_v13  ;;  %v13276_v45 = vld [vmem:[%s17791_s9 + $0x40] sm:$0xff]  }
 0x6b1   : > { %v6152_v31 = vpack.c.bf16 %v16320_v6, %v16313_v4  ;;  %v13271_v4 = vld [vmem:[%s17791_s9 + $0x128] sm:$0xff]   ;;  %v13275_v6 = vld [vmem:[%s17791_s9 + $0x138] sm:$0xff]  }
 0x6b2   : > { %v6151_v29 = vpack.c.bf16 %v6080_v2, %v16317_v15  ;;  %v13273_v15 = vld [vmem:[%s17791_s9 + $0x130] sm:$0xff]   ;;  %v17898_v2 = vlaneseq }
 0x6b4   : > { %v12283_v9 = vpop.f32.mrb[68].mxu1  ;;  %6349 = vmatmul.mubr.bf16.gmra.mrb[136].mxu0 %v6145_v23 }
 0x6b5   : > { %v16327_v11 = vadd.f32 %v12283_v9, %v16221_v21  ;;  %v6092_v39 = vpop.f32.mrb[69].mxu1  ;;  %6358 = vmatprep.mubr.bf16.mxu0 %v17853_v46  ;;  %v6569_v9 = vld [vmem:[%s17790_s8] sm:$0x3] }
 0x6b6   : > { %v16331_v3 = vadd.f32 %v6092_v39, %v16213_v0  ;;  %v12284_v49 = vpop.f32.mrb[70].mxu1 }
 0x6b7   : > { %v16334_v57 = vadd.f32 %v12284_v49, %v16224_v59  ;;  %v6095_v13 = vpop.f32.mrb[71].mxu1 }
 0x6b8   : > { %v16337_v10 = vadd.f32 %v6095_v13, %v16216_v25 }
 0x6b9   : > { %v6154_v36 = vpack.c.bf16 %v16334_v57, %v16327_v11 }
 0x6ba   : > { %v6153_v21 = vpack.c.bf16 %v16337_v10, %v16331_v3 }
 0x6bc   : > { %v12287_v61 = vpop.f32.mrb[72].mxu1  ;;  %6359 = vmatmul.mubr.bf16.gmra.mrb[140].mxu0 %v6146_v47 }
 0x6bd   : > { %v16344_v54 = vadd.f32 %v12287_v61, %v16237_v51  ;;  %v6108_v0 = vpop.f32.mrb[73].mxu1  ;;  %6368 = vmatprep.mubr.bf16.mxu0 %v17853_v46 }
 0x6be   : > { %v16348_v59 = vadd.f32 %v6108_v0, %v16229_v16  ;;  %v12288_v62 = vpop.f32.mrb[74].mxu1 }
 0x6bf   : > { %v16351_v25 = vadd.f32 %v12288_v62, %v16240_v44  ;;  %v6111_v1 = vpop.f32.mrb[75].mxu1 }
 0x6c0   : > { %v16354_v24 = vadd.f32 %v6111_v1, %v16232_v35 }
 0x6c1   : > { %v6156_v42 = vpack.c.bf16 %v16351_v25, %v16344_v54 }
 0x6c2   : > { %v6155_v51 = vpack.c.bf16 %v16354_v24, %v16348_v59 }
 0x6c4   : > { %v12291_v34 = vpop.f32.mrb[76].mxu1  ;;  %6369 = vmatmul.mubr.bf16.gmra.mrb[144].mxu0 %v6147_v33  ;;  %v13259_v33 = vld [vmem:[%s17791_s9 + $0x108] sm:$0xff]  }
 0x6c5   : > { %v16361_v47 = vadd.f32 %v12291_v34, %v16253_v52  ;;  %v6124_v16 = vpop.f32.mrb[77].mxu1  ;;  %6378 = vmatprep.mubr.bf16.mxu0 %v17853_v46  ;;  %11419 = vmatpush3.bf16.msra.mxu0 %v13259_v33 }
 0x6c6   : > { %v16365_v44 = vadd.f32 %v6124_v16, %v16245_v63  ;;  %v12292_v23 = vpop.f32.mrb[78].mxu1  ;;  %v13247_v63 = vld [vmem:[%s17791_s9 + $0x88] sm:$0xff]   ;;  %11420 = vmatprep.subr.bf16.mxu0 %v13261_v14 }
 0x6c7   : > { %v16368_v35 = vadd.f32 %v12292_v23, %v16256_v38  ;;  %v6127_v50 = vpop.f32.mrb[79].mxu1  ;;  %11195 = vmatpush3.bf16.msra.mxu1 %v13247_v63  ;;  %v13249_v38 = vld [vmem:[%s17791_s9 + $0x90] sm:$0xff]  }
 0x6c8   : > { %v16371_v41 = vadd.f32 %v6127_v50, %v16248_v5  ;;  %v13248_v5 = vld [vmem:[%s17791_s9 + $0xd0] sm:$0xff]  }
 0x6c9   : > { %v6158_v37 = vpack.c.bf16 %v16368_v35, %v16361_v47  ;;  %11196 = vmatprep.subr.bf16.mxu1 %v13248_v5  ;;  %11421 = vmatpush3.bf16.msra.mxu0 %v13263_v30  ;;  %v13277_v30 = vld [vmem:[%s17791_s9] sm:$0xff]  }
 0x6ca   : > { %v6157_v52 = vpack.c.bf16 %v16371_v41, %v16365_v44  ;;  %11422 = vmatprep.subr.bf16.mxu0 %v13265_v17 }
 0x6cb   : > { %11197 = vmatpush3.bf16.msra.mxu1 %v13249_v38 }
 0x6cc   : > { %6379 = vmatmul.mubr.bf16.gmra.mrb[148].mxu0 %v6148_v60  ;;  %11198 = vmatprep.subr.bf16.mxu1 %v13250_v28  ;;  %v13258_v60 = vld [vmem:[%s17791_s9 + $0xa8] sm:$0xff]  }
 0x6cd   : > { %6388 = vmatprep.mubr.bf16.mxu0 %v17853_v46  ;;  %11423 = vmatpush3.bf16.msra.mxu0 %v13267_v56 }
 0x6cf   : > { %11199 = vmatpush3.bf16.msra.mxu1 %v13251_v8 }
 0x6d0   : > { %11200 = vmatprep.subr.bf16.mxu1 %v13252_v26 }
 0x6d3   : > { %11201 = vmatpush3.bf16.msra.mxu1 %v13254_v7 }
 0x6d4   : > { %6389 = vmatmul.mubr.bf16.gmra.mrb[152].mxu0 %v6149_v58  ;;  %11202 = vmatprep.subr.bf16.mxu1 %v13256_v20  ;;  %v13269_v58 = vld [vmem:[%s17791_s9 + $0x120] sm:$0xff]  }
 0x6d5   : > { %6398 = vmatprep.mubr.bf16.mxu0 %v17853_v46 }
 0x6d7   : > { %11203 = vmatpush3.bf16.msra.mxu1 %v13258_v60 }
 0x6d8   : > { %11204 = vmatprep.subr.bf16.mxu1 %v13260_v32 }
 0x6db   : > { %11205 = vmatpush3.bf16.msra.mxu1 %v13262_v12 }
 0x6dc   : > { %6399 = vmatmul.mubr.bf16.gmra.mrb[156].mxu0 %v6150_v43  ;;  %11206 = vmatprep.subr.bf16.mxu1 %v13264_v19  ;;  %v13268_v43 = vld [vmem:[%s17791_s9 + $0x160] sm:$0xff]  }
 0x6dd   : > { %6408 = vmatprep.mubr.bf16.mxu0 %v17853_v46  ;;  %11424 = vmatprep.subr.bf16.mxu0 %v13268_v43 }
 0x6de   : > { %11425 = vmatpush3.bf16.msra.mxu0 %v13269_v58 }
 0x6df   : > { %11207 = vmatpush3.bf16.msra.mxu1 %v13266_v22  ;;  %11426 = vmatprep.subr.bf16.mxu0 %v13270_v40  ;;  %v13278_v22 = vld [vmem:[%s17791_s9 + $0x48] sm:$0xff]  }
 0x6e0   : > { %11304 = vmatprep.subr.bf16.mxu1 %v13276_v45 }
 0x6e2   : > { %11427 = vmatpush3.bf16.msra.mxu0 %v13271_v4 }
 0x6e3   : > { %11428 = vmatprep.subr.bf16.mxu0 %v13272_v48  ;;  %v13279_v48 = vld [vmem:[%s17791_s9 + $0x8] sm:$0xff]  }
 0x6e4   : > { %6409 = vmatmul.mubr.bf16.gmra.mrb[160].mxu0 %v6151_v29 }
 0x6e5   : > { %6418 = vmatprep.mubr.bf16.mxu0 %v17853_v46 }
 0x6e6   : > { %11429 = vmatpush3.bf16.msra.mxu0 %v13273_v15 }
 0x6e7   : > { %11430 = vmatprep.subr.bf16.mxu0 %v13274_v55 }
 0x6ea   : > { %11431 = vmatpush3.bf16.msra.mxu0 %v13275_v6  ;;  %v13280_v6 = vld [vmem:[%s17791_s9 + $0x50] sm:$0xff]  }
 0x6ec   : > { %6419 = vmatmul.mubr.bf16.gmra.mrb[164].mxu0 %v6152_v31  ;;  %v6572_v31 = vshrl.u32 %v17898_v2, 7 }
 0x6ed   : > { %6428 = vmatprep.mubr.bf16.mxu0 %v17853_v46 }
 0x6ee   : > { %v6573_v29 = vsub.s32 0, %v6572_v31  ;;  %v6577_v11 = vsub.s32 1, %v6572_v31 }
 0x6f0   : > { %v16502_v39 = vrot.slane %v6569_v9, %v6573_v29 }
 0x6f4   : > { %6429 = vmatmul.mubr.bf16.gmra.mrb[168].mxu0 %v6153_v21 }
 0x6f5   : > { %6438 = vmatprep.mubr.bf16.mxu0 %v17853_v46 }
 0x6fc   : > { %6439 = vmatmul.mubr.bf16.gmra.mrb[172].mxu0 %v6154_v36 }
 0x6fd   : > { %6448 = vmatprep.mubr.bf16.mxu0 %v17853_v46 }
 0x704   : > { %6449 = vmatmul.mubr.bf16.gmra.mrb[176].mxu0 %v6155_v51 }
 0x705   : > { %6458 = vmatprep.mubr.bf16.mxu0 %v17853_v46 }
 0x70c   : > { %6459 = vmatmul.mubr.bf16.gmra.mrb[180].mxu0 %v6156_v42 }
 0x70d   : > { %6468 = vmatprep.mubr.bf16.mxu0 %v17853_v46 }
 0x714   : > { %6469 = vmatmul.mubr.bf16.gmra.mrb[184].mxu0 %v6157_v52 }
 0x715   : > { %6478 = vmatprep.mubr.bf16.mxu0 %v17853_v46  ;;  %v16504_v46 = vrot.slane %v6569_v9, %v6577_v11  ;;  %v13281_v11 = vld [vmem:[%s17791_s9 + $0x10] sm:$0xff]  }
 0x71c   : > { %6479 = vmatmul.mubr.bf16.gmra.mrb[188].mxu0 %v6158_v37 }
 0x757   : > { %v6290_v3 = vpop.f32.mrb[112].mxu0 }
 0x758   : > { %v6581_v49 = vadd.f32 %v16502_v39, %v6290_v3  ;;  %v6292_v57 = vpop.f32.mrb[113].mxu0 }
 0x759   : > { %v6582_v13 = vadd.f32 %v16504_v46, %v6292_v57  ;;  %v6294_v10 = vpop.f32.mrb[114].mxu0  ;;  %v13282_v57 = vld [vmem:[%s17791_s9 + $0x58] sm:$0xff]  }
 0x75a   : > { %v6583_v36 = vadd.f32 %v16502_v39, %v6294_v10  ;;  %v6296_v21 = vpop.f32.mrb[115].mxu0  ;;  %v6661_v54 = vmax.f32 %v6581_v49, 0.0 }
 0x75b   : > { %v6584_v61 = vadd.f32 %v16504_v46, %v6296_v21  ;;  %v6662_v59 = vmax.f32 %v6582_v13, 0.0 }
 0x75c   : > { %v6663_v0 = vmax.f32 %v6583_v36, 0.0 }
 0x75d   : > { %v6664_v62 = vmax.f32 %v6584_v61, 0.0 }
 0x75e   : > { %v16510_v25 = vpack.c.bf16 %v6663_v0, %v6661_v54  ;;  %v13283_v54 = vld [vmem:[%s17791_s9 + $0x18] sm:$0xff]  }
 0x75f   : > { %v6300_v1 = vpop.f32.mrb[116].mxu0  ;;  %v16512_v24 = vpack.c.bf16 %v6664_v62, %v6662_v59  ;;  %v13284_v62 = vld [vmem:[%s17791_s9 + $0x60] sm:$0xff]  }
 0x760   : > { %v6585_v42 = vadd.f32 %v16502_v39, %v6300_v1  ;;  %v6302_v51 = vpop.f32.mrb[117].mxu0 }
 0x761   : > { %v6586_v34 = vadd.f32 %v16504_v46, %v6302_v51  ;;  %v6304_v47 = vpop.f32.mrb[118].mxu0 }
 0x762   : > { %v6587_v16 = vadd.f32 %v16502_v39, %v6304_v47  ;;  %v6306_v44 = vpop.f32.mrb[119].mxu0  ;;  %v6665_v35 = vmax.f32 %v6585_v42, 0.0 }
 0x763   : > { %v6588_v23 = vadd.f32 %v16504_v46, %v6306_v44  ;;  %v6666_v41 = vmax.f32 %v6586_v34, 0.0 }
 0x764   : > { %v6667_v50 = vmax.f32 %v6587_v16, 0.0  ;;  %v13285_v16 = vld [vmem:[%s17791_s9 + $0x20] sm:$0xff]  }
 0x765   : > { %v6668_v37 = vmax.f32 %v6588_v23, 0.0 }
 0x766   : > { %v16518_v52 = vpack.c.bf16 %v6667_v50, %v6665_v35  ;;  %v13286_v35 = vld [vmem:[%s17791_s9 + $0x68] sm:$0xff]  }
 0x767   : > { %v6310_v63 = vpop.f32.mrb[120].mxu0  ;;  %v16520_v5 = vpack.c.bf16 %v6668_v37, %v6666_v41 }
 0x768   : > { %v6589_v38 = vadd.f32 %v16502_v39, %v6310_v63  ;;  %v6312_v28 = vpop.f32.mrb[121].mxu0 }
 0x769   : > { %v6590_v8 = vadd.f32 %v16504_v46, %v6312_v28  ;;  %v6314_v26 = vpop.f32.mrb[122].mxu0  ;;  %v13287_v28 = vld [vmem:[%s17791_s9 + $0x28] sm:$0xff]  }
 0x76a   : > { %v6591_v27 = vadd.f32 %v16502_v39, %v6314_v26  ;;  %v6316_v7 = vpop.f32.mrb[123].mxu0  ;;  %v6669_v20 = vmax.f32 %v6589_v38, 0.0 }
 0x76b   : > { %v6592_v53 = vadd.f32 %v16504_v46, %v6316_v7  ;;  %v6670_v60 = vmax.f32 %v6590_v8, 0.0 }
 0x76c   : > { %v6671_v18 = vmax.f32 %v6591_v27, 0.0  ;;  %v13288_v27 = vld [vmem:[%s17791_s9 + $0x70] sm:$0xff]  }
 0x76d   : > { %v6672_v33 = vmax.f32 %v6592_v53, 0.0 }
 0x76e   : > { %v16526_v32 = vpack.c.bf16 %v6671_v18, %v6669_v20 }
 0x76f   : > { %v6320_v14 = vpop.f32.mrb[124].mxu0  ;;  %v16528_v12 = vpack.c.bf16 %v6672_v33, %v6670_v60  ;;  %v13289_v33 = vld [vmem:[%s17791_s9 + $0x30] sm:$0xff]  }
 0x770   : > { %v6593_v19 = vadd.f32 %v16502_v39, %v6320_v14  ;;  %v6322_v17 = vpop.f32.mrb[125].mxu0 }
 0x771   : > { %v6594_v56 = vadd.f32 %v16504_v46, %v6322_v17  ;;  %v6324_v43 = vpop.f32.mrb[126].mxu0  ;;  %6970 = vmatprep.mubr.bf16.mxu1 %v16528_v12 }
 0x772   : > { %v6595_v58 = vadd.f32 %v16502_v39, %v6324_v43  ;;  %v6326_v40 = vpop.f32.mrb[127].mxu0  ;;  %6971 = vmatmul.mubr.bf16.vlgmr.msra.gmra.mrb[80].mxu1 %v16526_v32  ;;  %v6673_v15 = vmax.f32 %v6593_v19, 0.0  ;;  %v13290_v19 = vld [vmem:[%s17791_s9 + $0x78] sm:$0xff]  }
 0x773   : > { %v6596_v4 = vadd.f32 %v16504_v46, %v6326_v40  ;;  %11305 = vmatpush3.bf16.msra.mxu1 %v13277_v30  ;;  %v6674_v45 = vmax.f32 %v6594_v56, 0.0  ;;  %v13291_v40 = vld [vmem:[%s17791_s9 + $0x38] sm:$0xff]  }
 0x774   : > { %v6675_v55 = vmax.f32 %v6595_v58, 0.0  ;;  %11306 = vmatprep.subr.bf16.mxu1 %v13278_v22 }
 0x775   : > { %v6676_v2 = vmax.f32 %v6596_v4, 0.0 }
 0x776   : > { %v16548_v31 = vpack.c.bf16 %v6675_v55, %v6673_v15 }
 0x777   : > { %v6330_v29 = vpop.f32.mrb[128].mxu0  ;;  %v16550_v9 = vpack.c.bf16 %v6676_v2, %v6674_v45  ;;  %11307 = vmatpush3.bf16.msra.mxu1 %v13279_v48 }
 0x778   : > { %v6597_v3 = vadd.f32 %v16502_v39, %v6330_v29  ;;  %v6332_v49 = vpop.f32.mrb[129].mxu0  ;;  %11308 = vmatprep.subr.bf16.mxu1 %v13280_v6 }
 0x779   : > { %v6598_v13 = vadd.f32 %v16504_v46, %v6332_v49  ;;  %v6334_v10 = vpop.f32.mrb[130].mxu0  ;;  %6978 = vmatprep.mubr.bf16.mxu1 %v16550_v9 }
 0x77a   : > { %v6599_v36 = vadd.f32 %v16502_v39, %v6334_v10  ;;  %v6336_v21 = vpop.f32.mrb[131].mxu0  ;;  %6979 = vmatmul.mubr.bf16.gmra.mrb[84].mxu1 %v16548_v31  ;;  %v6677_v0 = vmax.f32 %v6597_v3, 0.0 }
 0x77b   : > { %v6600_v61 = vadd.f32 %v16504_v46, %v6336_v21  ;;  %11309 = vmatpush3.bf16.msra.mxu1 %v13281_v11  ;;  %v6678_v1 = vmax.f32 %v6598_v13, 0.0 }
 0x77c   : > { %v6679_v59 = vmax.f32 %v6599_v36, 0.0  ;;  %11310 = vmatprep.subr.bf16.mxu1 %v13282_v57 }
 0x77d   : > { %v6680_v42 = vmax.f32 %v6600_v61, 0.0 }
 0x77e   : > { %v16570_v51 = vpack.c.bf16 %v6679_v59, %v6677_v0 }
 0x77f   : > { %v6340_v34 = vpop.f32.mrb[132].mxu0  ;;  %v16572_v47 = vpack.c.bf16 %v6680_v42, %v6678_v1  ;;  %11311 = vmatpush3.bf16.msra.mxu1 %v13283_v54 }
 0x780   : > { %v6601_v44 = vadd.f32 %v16502_v39, %v6340_v34  ;;  %v6342_v23 = vpop.f32.mrb[133].mxu0  ;;  %11312 = vmatprep.subr.bf16.mxu1 %v13284_v62 }
 0x781   : > { %v6602_v50 = vadd.f32 %v16504_v46, %v6342_v23  ;;  %v6344_v41 = vpop.f32.mrb[134].mxu0  ;;  %6986 = vmatprep.mubr.bf16.mxu1 %v16572_v47  ;;  %7521 = vmatprep.mubr.bf16.mxu0 %v16572_v47 }
 0x782   : > { %v6603_v37 = vadd.f32 %v16502_v39, %v6344_v41  ;;  %v6346_v63 = vpop.f32.mrb[135].mxu0  ;;  %6987 = vmatmul.mubr.bf16.gmra.mrb[88].mxu1 %v16570_v51  ;;  %7522 = vmatmul.mubr.bf16.vlgmr.msra.gmra.mrb[192].mxu0 %v16570_v51  ;;  %v6681_v8 = vmax.f32 %v6601_v44, 0.0 }
 0x783   : > { %v6604_v38 = vadd.f32 %v16504_v46, %v6346_v63  ;;  %11313 = vmatpush3.bf16.msra.mxu1 %v13285_v16  ;;  %v6682_v7 = vmax.f32 %v6602_v50, 0.0 }
 0x784   : > { %v6683_v26 = vmax.f32 %v6603_v37, 0.0  ;;  %11314 = vmatprep.subr.bf16.mxu1 %v13286_v35 }
 0x785   : > { %v6684_v53 = vmax.f32 %v6604_v38, 0.0 }
 0x786   : > { %v16594_v20 = vpack.c.bf16 %v6683_v26, %v6681_v8 }
 0x787   : > { %v16596_v18 = vpack.c.bf16 %v6684_v53, %v6682_v7  ;;  %v6350_v60 = vpop.f32.mrb[136].mxu0  ;;  %11315 = vmatpush3.bf16.msra.mxu1 %v13287_v28 }
 0x788   : > { %v6605_v14 = vadd.f32 %v16502_v39, %v6350_v60  ;;  %v6352_v30 = vpop.f32.mrb[137].mxu0  ;;  %11316 = vmatprep.subr.bf16.mxu1 %v13288_v27 }
 0x789   : > { %v6606_v17 = vadd.f32 %v16504_v46, %v6352_v30  ;;  %v6354_v22 = vpop.f32.mrb[138].mxu0  ;;  %6994 = vmatprep.mubr.bf16.mxu1 %v16596_v18  ;;  %7529 = vmatprep.mubr.bf16.mxu0 %v16596_v18 }
 0x78a   : > { %v6607_v56 = vadd.f32 %v16502_v39, %v6354_v22  ;;  %v6356_v43 = vpop.f32.mrb[139].mxu0  ;;  %6995 = vmatmul.mubr.bf16.gmra.mrb[92].mxu1 %v16594_v20  ;;  %7530 = vmatmul.mubr.bf16.gmra.mrb[196].mxu0 %v16594_v20  ;;  %v6685_v4 = vmax.f32 %v6605_v14, 0.0 }
 0x78b   : > { %v6608_v58 = vadd.f32 %v16504_v46, %v6356_v43  ;;  %11317 = vmatpush3.bf16.msra.mxu1 %v13289_v33  ;;  %v6686_v15 = vmax.f32 %v6606_v17, 0.0 }
 0x78c   : > { %v6687_v48 = vmax.f32 %v6607_v56, 0.0  ;;  %11318 = vmatprep.subr.bf16.mxu1 %v13290_v19 }
 0x78d   : > { %v6688_v55 = vmax.f32 %v6608_v58, 0.0 }
 0x78e   : > { %v16615_v6 = vpack.c.bf16 %v6687_v48, %v6685_v4 }
 0x78f   : > { %v16617_v45 = vpack.c.bf16 %v6688_v55, %v6686_v15  ;;  %v6360_v2 = vpop.f32.mrb[140].mxu0  ;;  %11319 = vmatpush3.bf16.msra.mxu1 %v13291_v40 }
 0x790   : > { %v6609_v29 = vadd.f32 %v16502_v39, %v6360_v2  ;;  %v6362_v11 = vpop.f32.mrb[141].mxu0 }
 0x791   : > { %v6610_v3 = vadd.f32 %v16504_v46, %v6362_v11  ;;  %v6364_v49 = vpop.f32.mrb[142].mxu0  ;;  %7002 = vmatprep.mubr.bf16.mxu1 %v16617_v45  ;;  %7537 = vmatprep.mubr.bf16.mxu0 %v16617_v45 }
 0x792   : > { %v6611_v57 = vadd.f32 %v16502_v39, %v6364_v49  ;;  %v6366_v13 = vpop.f32.mrb[143].mxu0  ;;  %7003 = vmatmul.mubr.bf16.gmra.mrb[96].mxu1 %v16615_v6  ;;  %7538 = vmatmul.mubr.bf16.gmra.mrb[200].mxu0 %v16615_v6  ;;  %v6689_v36 = vmax.f32 %v6609_v29, 0.0 }
 0x793   : > { %v6612_v10 = vadd.f32 %v16504_v46, %v6366_v13  ;;  %v6690_v61 = vmax.f32 %v6610_v3, 0.0 }
 0x794   : > { %v6691_v21 = vmax.f32 %v6611_v57, 0.0 }
 0x795   : > { %v6692_v54 = vmax.f32 %v6612_v10, 0.0 }
 0x796   : > { %v16627_v0 = vpack.c.bf16 %v6691_v21, %v6689_v36 }
 0x797   : > { %v16629_v59 = vpack.c.bf16 %v6692_v54, %v6690_v61  ;;  %v6370_v62 = vpop.f32.mrb[144].mxu0 }
 0x798   : > { %v6613_v1 = vadd.f32 %v16502_v39, %v6370_v62  ;;  %v6372_v42 = vpop.f32.mrb[145].mxu0 }
 0x799   : > { %v6614_v34 = vadd.f32 %v16504_v46, %v6372_v42  ;;  %v6374_v16 = vpop.f32.mrb[146].mxu0  ;;  %7010 = vmatprep.mubr.bf16.mxu1 %v16629_v59  ;;  %7545 = vmatprep.mubr.bf16.mxu0 %v16629_v59 }
 0x79a   : > { %v6615_v44 = vadd.f32 %v16502_v39, %v6374_v16  ;;  %v6376_v23 = vpop.f32.mrb[147].mxu0  ;;  %7011 = vmatmul.mubr.bf16.gmra.mrb[100].mxu1 %v16627_v0  ;;  %7546 = vmatmul.mubr.bf16.gmra.mrb[204].mxu0 %v16627_v0  ;;  %v6693_v50 = vmax.f32 %v6613_v1, 0.0 }
 0x79b   : > { %v6616_v35 = vadd.f32 %v16504_v46, %v6376_v23  ;;  %v6694_v37 = vmax.f32 %v6614_v34, 0.0 }
 0x79c   : > { %v6695_v41 = vmax.f32 %v6615_v44, 0.0 }
 0x79d   : > { %v6696_v63 = vmax.f32 %v6616_v35, 0.0 }
 0x79e   : > { %v16639_v38 = vpack.c.bf16 %v6695_v41, %v6693_v50 }
 0x79f   : > { %v16641_v28 = vpack.c.bf16 %v6696_v63, %v6694_v37  ;;  %v6380_v8 = vpop.f32.mrb[148].mxu0 }
 0x7a0   : > { %v6617_v26 = vadd.f32 %v16502_v39, %v6380_v8  ;;  %v6382_v27 = vpop.f32.mrb[149].mxu0 }
 0x7a1   : > { %v6618_v7 = vadd.f32 %v16504_v46, %v6382_v27  ;;  %v6384_v53 = vpop.f32.mrb[150].mxu0  ;;  %7018 = vmatprep.mubr.bf16.mxu1 %v16641_v28  ;;  %7553 = vmatprep.mubr.bf16.mxu0 %v16641_v28 }
 0x7a2   : > { %v6619_v60 = vadd.f32 %v16502_v39, %v6384_v53  ;;  %v6386_v33 = vpop.f32.mrb[151].mxu0  ;;  %7019 = vmatmul.mubr.bf16.gmra.mrb[104].mxu1 %v16639_v38  ;;  %7554 = vmatmul.mubr.bf16.gmra.mrb[208].mxu0 %v16639_v38  ;;  %v6697_v30 = vmax.f32 %v6617_v26, 0.0 }
 0x7a3   : > { %v6620_v14 = vadd.f32 %v16504_v46, %v6386_v33  ;;  %v6698_v17 = vmax.f32 %v6618_v7, 0.0 }
 0x7a4   : > { %v6699_v19 = vmax.f32 %v6619_v60, 0.0 }
 0x7a5   : > { %v6700_v22 = vmax.f32 %v6620_v14, 0.0 }
 0x7a6   : > { %v16651_v56 = vpack.c.bf16 %v6699_v19, %v6697_v30 }
 0x7a7   : > { %v16653_v43 = vpack.c.bf16 %v6700_v22, %v6698_v17  ;;  %v6390_v58 = vpop.f32.mrb[152].mxu0 }
 0x7a8   : > { %v6621_v40 = vadd.f32 %v16502_v39, %v6390_v58  ;;  %v6392_v4 = vpop.f32.mrb[153].mxu0 }
 0x7a9   : > { %v6622_v48 = vadd.f32 %v16504_v46, %v6392_v4  ;;  %v6394_v15 = vpop.f32.mrb[154].mxu0  ;;  %7026 = vmatprep.mubr.bf16.mxu1 %v16653_v43  ;;  %7561 = vmatprep.mubr.bf16.mxu0 %v16653_v43 }
 0x7aa   : > { %v6623_v55 = vadd.f32 %v16502_v39, %v6394_v15  ;;  %v6396_v2 = vpop.f32.mrb[155].mxu0  ;;  %7027 = vmatmul.mubr.bf16.gmra.mrb[108].mxu1 %v16651_v56  ;;  %7562 = vmatmul.mubr.bf16.gmra.mrb[212].mxu0 %v16651_v56  ;;  %v6701_v11 = vmax.f32 %v6621_v40, 0.0 }
 0x7ab   : > { %v6624_v29 = vadd.f32 %v16504_v46, %v6396_v2  ;;  %v6702_v49 = vmax.f32 %v6622_v48, 0.0 }
 0x7ac   : > { %v6703_v3 = vmax.f32 %v6623_v55, 0.0 }
 0x7ad   : > { %v6704_v57 = vmax.f32 %v6624_v29, 0.0 }
 0x7ae   : > { %v16663_v13 = vpack.c.bf16 %v6703_v3, %v6701_v11 }
 0x7af   : > { %v16665_v10 = vpack.c.bf16 %v6704_v57, %v6702_v49  ;;  %v6400_v36 = vpop.f32.mrb[156].mxu0 }
 0x7b0   : > { %v6625_v21 = vadd.f32 %v16502_v39, %v6400_v36  ;;  %v6402_v61 = vpop.f32.mrb[157].mxu0 }
 0x7b1   : > { %v6626_v54 = vadd.f32 %v16504_v46, %v6402_v61  ;;  %v6404_v62 = vpop.f32.mrb[158].mxu0  ;;  %7034 = vmatprep.mubr.bf16.mxu1 %v16665_v10  ;;  %7569 = vmatprep.mubr.bf16.mxu0 %v16665_v10 }
 0x7b2   : > { %v6627_v1 = vadd.f32 %v16502_v39, %v6404_v62  ;;  %v6406_v42 = vpop.f32.mrb[159].mxu0  ;;  %7035 = vmatmul.mubr.bf16.gmra.mrb[112].mxu1 %v16663_v13  ;;  %7570 = vmatmul.mubr.bf16.gmra.mrb[216].mxu0 %v16663_v13  ;;  %v6705_v16 = vmax.f32 %v6625_v21, 0.0 }
 0x7b3   : > { %v6628_v34 = vadd.f32 %v16504_v46, %v6406_v42  ;;  %v6706_v23 = vmax.f32 %v6626_v54, 0.0 }
 0x7b4   : > { %v6707_v44 = vmax.f32 %v6627_v1, 0.0 }
 0x7b5   : > { %v6708_v35 = vmax.f32 %v6628_v34, 0.0 }
 0x7b6   : > { %v16675_v50 = vpack.c.bf16 %v6707_v44, %v6705_v16 }
 0x7b7   : > { %v16677_v41 = vpack.c.bf16 %v6708_v35, %v6706_v23  ;;  %v6410_v37 = vpop.f32.mrb[160].mxu0 }
 0x7b8   : > { %v6629_v63 = vadd.f32 %v16502_v39, %v6410_v37  ;;  %v6412_v8 = vpop.f32.mrb[161].mxu0 }
 0x7b9   : > { %v6630_v26 = vadd.f32 %v16504_v46, %v6412_v8  ;;  %v6414_v27 = vpop.f32.mrb[162].mxu0  ;;  %7042 = vmatprep.mubr.bf16.mxu1 %v16677_v41  ;;  %7577 = vmatprep.mubr.bf16.mxu0 %v16677_v41 }
 0x7ba   : > { %v6631_v7 = vadd.f32 %v16502_v39, %v6414_v27  ;;  %v6416_v53 = vpop.f32.mrb[163].mxu0  ;;  %7043 = vmatmul.mubr.bf16.gmra.mrb[116].mxu1 %v16675_v50  ;;  %7578 = vmatmul.mubr.bf16.gmra.mrb[220].mxu0 %v16675_v50  ;;  %v6709_v33 = vmax.f32 %v6629_v63, 0.0 }
 0x7bb   : > { %v6632_v60 = vadd.f32 %v16504_v46, %v6416_v53  ;;  %v6710_v30 = vmax.f32 %v6630_v26, 0.0 }
 0x7bc   : > { %v6711_v14 = vmax.f32 %v6631_v7, 0.0 }
 0x7bd   : > { %v6712_v19 = vmax.f32 %v6632_v60, 0.0 }
 0x7be   : > { %v16687_v17 = vpack.c.bf16 %v6711_v14, %v6709_v33 }
 0x7bf   : > { %v16689_v22 = vpack.c.bf16 %v6712_v19, %v6710_v30  ;;  %v6420_v58 = vpop.f32.mrb[164].mxu0 }
 0x7c0   : > { %v6633_v40 = vadd.f32 %v16502_v39, %v6420_v58  ;;  %v6422_v4 = vpop.f32.mrb[165].mxu0 }
 0x7c1   : > { %v6634_v48 = vadd.f32 %v16504_v46, %v6422_v4  ;;  %v6424_v15 = vpop.f32.mrb[166].mxu0  ;;  %7050 = vmatprep.mubr.bf16.mxu1 %v16689_v22  ;;  %7585 = vmatprep.mubr.bf16.mxu0 %v16689_v22 }
 0x7c2   : > { %v6635_v55 = vadd.f32 %v16502_v39, %v6424_v15  ;;  %v6426_v2 = vpop.f32.mrb[167].mxu0  ;;  %7051 = vmatmul.mubr.bf16.gmra.mrb[120].mxu1 %v16687_v17  ;;  %7586 = vmatmul.mubr.bf16.gmra.mrb[224].mxu0 %v16687_v17  ;;  %v6713_v11 = vmax.f32 %v6633_v40, 0.0 }
 0x7c3   : > { %v6636_v29 = vadd.f32 %v16504_v46, %v6426_v2  ;;  %v6714_v49 = vmax.f32 %v6634_v48, 0.0 }
 0x7c4   : > { %v6715_v3 = vmax.f32 %v6635_v55, 0.0 }
 0x7c5   : > { %v6716_v57 = vmax.f32 %v6636_v29, 0.0 }
 0x7c6   : > { %v16699_v36 = vpack.c.bf16 %v6715_v3, %v6713_v11 }
 0x7c7   : > { %v16701_v21 = vpack.c.bf16 %v6716_v57, %v6714_v49  ;;  %v6430_v61 = vpop.f32.mrb[168].mxu0 }
 0x7c8   : > { %v6637_v54 = vadd.f32 %v16502_v39, %v6430_v61  ;;  %v6432_v62 = vpop.f32.mrb[169].mxu0 }
 0x7c9   : > { %v6638_v1 = vadd.f32 %v16504_v46, %v6432_v62  ;;  %v6434_v42 = vpop.f32.mrb[170].mxu0  ;;  %7058 = vmatprep.mubr.bf16.mxu1 %v16701_v21  ;;  %7593 = vmatprep.mubr.bf16.mxu0 %v16701_v21 }
 0x7ca   : > { %v6639_v34 = vadd.f32 %v16502_v39, %v6434_v42  ;;  %v6436_v16 = vpop.f32.mrb[171].mxu0  ;;  %7059 = vmatmul.mubr.bf16.gmra.mrb[124].mxu1 %v16699_v36  ;;  %7594 = vmatmul.mubr.bf16.gmra.mrb[228].mxu0 %v16699_v36  ;;  %v6717_v23 = vmax.f32 %v6637_v54, 0.0 }
 0x7cb   : > { %v6640_v44 = vadd.f32 %v16504_v46, %v6436_v16  ;;  %v6718_v37 = vmax.f32 %v6638_v1, 0.0 }
 0x7cc   : > { %v6719_v35 = vmax.f32 %v6639_v34, 0.0 }
 0x7cd   : > { %v6720_v63 = vmax.f32 %v6640_v44, 0.0 }
 0x7ce   : > { %v16711_v8 = vpack.c.bf16 %v6719_v35, %v6717_v23 }
 0x7cf   : > { %v16713_v26 = vpack.c.bf16 %v6720_v63, %v6718_v37  ;;  %v6440_v27 = vpop.f32.mrb[172].mxu0 }
 0x7d0   : > { %v6641_v7 = vadd.f32 %v16502_v39, %v6440_v27  ;;  %v6442_v53 = vpop.f32.mrb[173].mxu0 }
 0x7d1   : > { %v6642_v60 = vadd.f32 %v16504_v46, %v6442_v53  ;;  %v6444_v33 = vpop.f32.mrb[174].mxu0  ;;  %7066 = vmatprep.mubr.bf16.mxu1 %v16713_v26  ;;  %7601 = vmatprep.mubr.bf16.mxu0 %v16713_v26 }
 0x7d2   : > { %v6643_v14 = vadd.f32 %v16502_v39, %v6444_v33  ;;  %v6446_v30 = vpop.f32.mrb[175].mxu0  ;;  %7067 = vmatmul.mubr.bf16.gmra.mrb[128].mxu1 %v16711_v8  ;;  %7602 = vmatmul.mubr.bf16.gmra.mrb[232].mxu0 %v16711_v8  ;;  %v6721_v58 = vmax.f32 %v6641_v7, 0.0 }
 0x7d3   : > { %v6644_v19 = vadd.f32 %v16504_v46, %v6446_v30  ;;  %v6722_v4 = vmax.f32 %v6642_v60, 0.0 }
 0x7d4   : > { %v6723_v40 = vmax.f32 %v6643_v14, 0.0 }
 0x7d5   : > { %v6724_v48 = vmax.f32 %v6644_v19, 0.0 }
 0x7d6   : > { %v16723_v15 = vpack.c.bf16 %v6723_v40, %v6721_v58 }
 0x7d7   : > { %v16725_v55 = vpack.c.bf16 %v6724_v48, %v6722_v4  ;;  %v6450_v2 = vpop.f32.mrb[176].mxu0 }
 0x7d8   : > { %v6645_v29 = vadd.f32 %v16502_v39, %v6450_v2  ;;  %v6452_v11 = vpop.f32.mrb[177].mxu0 }
 0x7d9   : > { %v6646_v3 = vadd.f32 %v16504_v46, %v6452_v11  ;;  %v6454_v49 = vpop.f32.mrb[178].mxu0  ;;  %7074 = vmatprep.mubr.bf16.mxu1 %v16725_v55  ;;  %7609 = vmatprep.mubr.bf16.mxu0 %v16725_v55 }
 0x7da   : > { %v6647_v57 = vadd.f32 %v16502_v39, %v6454_v49  ;;  %v6456_v61 = vpop.f32.mrb[179].mxu0  ;;  %7075 = vmatmul.mubr.bf16.gmra.mrb[132].mxu1 %v16723_v15  ;;  %7610 = vmatmul.mubr.bf16.gmra.mrb[236].mxu0 %v16723_v15  ;;  %v6725_v62 = vmax.f32 %v6645_v29, 0.0 }
 0x7db   : > { %v6648_v54 = vadd.f32 %v16504_v46, %v6456_v61  ;;  %v6726_v42 = vmax.f32 %v6646_v3, 0.0 }
 0x7dc   : > { %v6727_v1 = vmax.f32 %v6647_v57, 0.0 }
 0x7dd   : > { %v6728_v34 = vmax.f32 %v6648_v54, 0.0 }
 0x7de   : > { %v6805_v16 = vpack.c.bf16 %v6727_v1, %v6725_v62 }
 0x7df   : > { %v6806_v44 = vpack.c.bf16 %v6728_v34, %v6726_v42  ;;  %v6460_v23 = vpop.f32.mrb[180].mxu0 }
 0x7e0   : > { %v6649_v35 = vadd.f32 %v16502_v39, %v6460_v23  ;;  %v6462_v37 = vpop.f32.mrb[181].mxu0 }
 0x7e1   : > { %v6650_v63 = vadd.f32 %v16504_v46, %v6462_v37  ;;  %v6464_v27 = vpop.f32.mrb[182].mxu0  ;;  %7082 = vmatprep.mubr.bf16.mxu1 %v6806_v44  ;;  %7617 = vmatprep.mubr.bf16.mxu0 %v6806_v44 }
 0x7e2   : > { %v6651_v7 = vadd.f32 %v16502_v39, %v6464_v27  ;;  %v6466_v53 = vpop.f32.mrb[183].mxu0  ;;  %7083 = vmatmul.mubr.bf16.gmra.mrb[136].mxu1 %v6805_v16  ;;  %7618 = vmatmul.mubr.bf16.gmra.mrb[240].mxu0 %v6805_v16  ;;  %v6729_v33 = vmax.f32 %v6649_v35, 0.0 }
 0x7e3   : > { %v6652_v60 = vadd.f32 %v16504_v46, %v6466_v53  ;;  %v6730_v30 = vmax.f32 %v6650_v63, 0.0 }
 0x7e4   : > { %v6731_v14 = vmax.f32 %v6651_v7, 0.0 }
 0x7e5   : > { %v6732_v19 = vmax.f32 %v6652_v60, 0.0 }
 0x7e6   : > { %v6807_v58 = vpack.c.bf16 %v6731_v14, %v6729_v33 }
 0x7e7   : > { %v6808_v40 = vpack.c.bf16 %v6732_v19, %v6730_v30  ;;  %v6470_v4 = vpop.f32.mrb[184].mxu0 }
 0x7e8   : > { %v6653_v48 = vadd.f32 %v16502_v39, %v6470_v4  ;;  %v6472_v2 = vpop.f32.mrb[185].mxu0 }
 0x7e9   : > { %v6654_v29 = vadd.f32 %v16504_v46, %v6472_v2  ;;  %v6474_v11 = vpop.f32.mrb[186].mxu0  ;;  %7090 = vmatprep.mubr.bf16.mxu1 %v6808_v40  ;;  %7625 = vmatprep.mubr.bf16.mxu0 %v6808_v40 }
 0x7ea   : > { %v6655_v3 = vadd.f32 %v16502_v39, %v6474_v11  ;;  %v6476_v49 = vpop.f32.mrb[187].mxu0  ;;  %7091 = vmatmul.mubr.bf16.gmra.mrb[140].mxu1 %v6807_v58  ;;  %7626 = vmatmul.mubr.bf16.gmra.mrb[244].mxu0 %v6807_v58  ;;  %v6733_v61 = vmax.f32 %v6653_v48, 0.0 }
 0x7eb   : > { %v6656_v57 = vadd.f32 %v16504_v46, %v6476_v49  ;;  %7227 = vmatprep.mubr.bf16.mxu1 %v16512_v24  ;;  %v6734_v62 = vmax.f32 %v6654_v29, 0.0 }
 0x7ec   : > { %v6735_v54 = vmax.f32 %v6655_v3, 0.0 }
 0x7ed   : > { %v6736_v1 = vmax.f32 %v6656_v57, 0.0 }
 0x7ee   : > { %v7356_v42 = vpack.c.bf16 %v6735_v54, %v6733_v61 }
 0x7ef   : > { %v7357_v34 = vpack.c.bf16 %v6736_v1, %v6734_v62  ;;  %v6480_v16 = vpop.f32.mrb[188].mxu0 }
 0x7f0   : > { %v6657_v44 = vadd.f32 %v16502_v39, %v6480_v16  ;;  %v6482_v23 = vpop.f32.mrb[189].mxu0 }
 0x7f1   : > { %v6658_v35 = vadd.f32 %v16504_v46, %v6482_v23  ;;  %v6484_v37 = vpop.f32.mrb[190].mxu0  ;;  %7633 = vmatprep.mubr.bf16.mxu0 %v7357_v34 }
 0x7f2   : > { %v6659_v63 = vadd.f32 %v16502_v39, %v6484_v37  ;;  %v6486_v27 = vpop.f32.mrb[191].mxu0  ;;  %7228 = vmatmul.mubr.bf16.vlgmr.msra.gmra.mrb[144].mxu1 %v16510_v25  ;;  %7634 = vmatmul.mubr.bf16.gmra.mrb[248].mxu0 %v7356_v42  ;;  %v6737_v7 = vmax.f32 %v6657_v44, 0.0 }
 0x7f3   : > { %v6660_v24 = vadd.f32 %v16504_v46, %v6486_v27  ;;  %7235 = vmatprep.mubr.bf16.mxu1 %v16520_v5  ;;  %v6738_v60 = vmax.f32 %v6658_v35, 0.0 }
 0x7f4   : > { %v6739_v53 = vmax.f32 %v6659_v63, 0.0 }
 0x7f5   : > { %v6740_v33 = vmax.f32 %v6660_v24, 0.0 }
 0x7f6   : > { %v7358_v14 = vpack.c.bf16 %v6739_v53, %v6737_v7 }
 0x7f7   : > { %v7359_v30 = vpack.c.bf16 %v6740_v33, %v6738_v60 }
 0x7f9   : > { %7641 = vmatprep.mubr.bf16.mxu0 %v7359_v30 }
 0x7fa   : > { %7236 = vmatmul.mubr.bf16.gmra.mrb[148].mxu1 %v16518_v52  ;;  %7642 = vmatmul.mubr.bf16.gmra.mrb[252].mxu0 %v7358_v14 }
 0x7fb   : > { %7243 = vmatprep.mubr.bf16.mxu1 %v16528_v12 }
 0x802   : > { %7244 = vmatmul.mubr.bf16.gmra.mrb[152].mxu1 %v16526_v32 }
 0x803   : > { %7251 = vmatprep.mubr.bf16.mxu1 %v16550_v9 }
 0x80a   : > { %7252 = vmatmul.mubr.bf16.gmra.mrb[156].mxu1 %v16548_v31 }
 0x80b   : > { %7259 = vmatprep.mubr.bf16.mxu1 %v16572_v47 }
 0x812   : > { %7260 = vmatmul.mubr.bf16.gmra.mrb[160].mxu1 %v16570_v51 }
 0x813   : > { %7267 = vmatprep.mubr.bf16.mxu1 %v16596_v18 }
 0x81a   : > { %7268 = vmatmul.mubr.bf16.gmra.mrb[164].mxu1 %v16594_v20 }
 0x81b   : > { %7275 = vmatprep.mubr.bf16.mxu1 %v16617_v45 }
 0x822   : > { %7276 = vmatmul.mubr.bf16.gmra.mrb[168].mxu1 %v16615_v6 }
 0x823   : > { %7283 = vmatprep.mubr.bf16.mxu1 %v16629_v59 }
 0x82a   : > { %7284 = vmatmul.mubr.bf16.gmra.mrb[172].mxu1 %v16627_v0 }
 0x82b   : > { %7291 = vmatprep.mubr.bf16.mxu1 %v16641_v28 }
 0x832   : > { %7292 = vmatmul.mubr.bf16.gmra.mrb[176].mxu1 %v16639_v38 }
 0x833   : > { %7299 = vmatprep.mubr.bf16.mxu1 %v16653_v43 }
 0x83a   : > { %7300 = vmatmul.mubr.bf16.gmra.mrb[180].mxu1 %v16651_v56 }
 0x83b   : > { %7307 = vmatprep.mubr.bf16.mxu1 %v16665_v10 }
 0x842   : > { %7308 = vmatmul.mubr.bf16.gmra.mrb[184].mxu1 %v16663_v13 }
 0x843   : > { %7315 = vmatprep.mubr.bf16.mxu1 %v16677_v41 }
 0x845   : > { %v11208_v39 = vpop.f32.mrb[80].mxu1 }
 0x846   : > { %v11209_v46 = vpop.f32.mrb[81].mxu1 }
 0x847   : > { %v16770_v25 = vadd.f32 %v11209_v46, %v11208_v39  ;;  %v11211_v52 = vpop.f32.mrb[82].mxu1 }
 0x848   : > { %v11212_v5 = vpop.f32.mrb[83].mxu1 }
 0x849   : > { %v16772_v32 = vadd.f32 %v11212_v5, %v11211_v52 }
 0x84a   : > { %7316 = vmatmul.mubr.bf16.gmra.mrb[188].mxu1 %v16675_v50 }
 0x84b   : > { %7323 = vmatprep.mubr.bf16.mxu1 %v16689_v22 }
 0x84d   : > { %v11214_v12 = vpop.f32.mrb[84].mxu1 }
 0x84e   : > { %v11215_v31 = vpop.f32.mrb[85].mxu1 }
 0x84f   : > { %v16776_v9 = vadd.f32 %v11215_v31, %v11214_v12  ;;  %v11217_v51 = vpop.f32.mrb[86].mxu1 }
 0x850   : > { %v11218_v47 = vpop.f32.mrb[87].mxu1 }
 0x851   : > { %v16778_v20 = vadd.f32 %v11218_v47, %v11217_v51 }
 0x852   : > { %7324 = vmatmul.mubr.bf16.gmra.mrb[192].mxu1 %v16687_v17 }
 0x853   : > { %7331 = vmatprep.mubr.bf16.mxu1 %v16701_v21 }
 0x855   : > { %v11220_v18 = vpop.f32.mrb[88].mxu1  ;;  %v11432_v6 = vpop.f32.mrb[192].mxu0 }
 0x856   : > { %v11221_v45 = vpop.f32.mrb[89].mxu1  ;;  %v11433_v0 = vpop.f32.mrb[193].mxu0 }
 0x857   : > { %v16782_v59 = vadd.f32 %v11221_v45, %v11220_v18  ;;  %v16784_v38 = vadd.f32 %v11433_v0, %v11432_v6  ;;  %v11223_v28 = vpop.f32.mrb[90].mxu1  ;;  %v11435_v56 = vpop.f32.mrb[194].mxu0 }
 0x858   : > { %v11224_v43 = vpop.f32.mrb[91].mxu1  ;;  %v11436_v13 = vpop.f32.mrb[195].mxu0 }
 0x859   : > { %v16786_v10 = vadd.f32 %v11224_v43, %v11223_v28  ;;  %v16788_v50 = vadd.f32 %v11436_v13, %v11435_v56 }
 0x85a   : > { %7332 = vmatmul.mubr.bf16.gmra.mrb[196].mxu1 %v16699_v36 }
 0x85b   : > { %7339 = vmatprep.mubr.bf16.mxu1 %v16713_v26 }
 0x85d   : > { %v11226_v41 = vpop.f32.mrb[92].mxu1  ;;  %v11438_v17 = vpop.f32.mrb[196].mxu0 }
 0x85e   : > { %v11227_v22 = vpop.f32.mrb[93].mxu1  ;;  %v11439_v21 = vpop.f32.mrb[197].mxu0 }
 0x85f   : > { %v16792_v19 = vadd.f32 %v11227_v22, %v11226_v41  ;;  %v16794_v58 = vadd.f32 %v11439_v21, %v11438_v17  ;;  %v11229_v40 = vpop.f32.mrb[94].mxu1  ;;  %v11441_v4 = vpop.f32.mrb[198].mxu0 }
 0x860   : > { %v11230_v48 = vpop.f32.mrb[95].mxu1  ;;  %v11442_v2 = vpop.f32.mrb[199].mxu0 }
 0x861   : > { %v16796_v29 = vadd.f32 %v11230_v48, %v11229_v40  ;;  %v16798_v11 = vadd.f32 %v11442_v2, %v11441_v4 }
 0x862   : > { %7340 = vmatmul.mubr.bf16.gmra.mrb[200].mxu1 %v16711_v8 }
 0x863   : > { %7347 = vmatprep.mubr.bf16.mxu1 %v16725_v55 }
 0x865   : > { %v11232_v36 = vpop.f32.mrb[96].mxu1  ;;  %v11444_v26 = vpop.f32.mrb[200].mxu0 }
 0x866   : > { %v11233_v3 = vpop.f32.mrb[97].mxu1  ;;  %v11445_v49 = vpop.f32.mrb[201].mxu0 }
 0x867   : > { %v16802_v57 = vadd.f32 %v11233_v3, %v11232_v36  ;;  %v16804_v61 = vadd.f32 %v11445_v49, %v11444_v26  ;;  %v11235_v54 = vpop.f32.mrb[98].mxu1  ;;  %v11447_v62 = vpop.f32.mrb[202].mxu0 }
 0x868   : > { %v11236_v1 = vpop.f32.mrb[99].mxu1  ;;  %v11448_v42 = vpop.f32.mrb[203].mxu0 }
 0x869   : > { %v16806_v34 = vadd.f32 %v11236_v1, %v11235_v54  ;;  %v16808_v16 = vadd.f32 %v11448_v42, %v11447_v62 }
 0x86a   : > { %7348 = vmatmul.mubr.bf16.gmra.mrb[204].mxu1 %v16723_v15 }
 0x86d   : > { %v11238_v8 = vpop.f32.mrb[100].mxu1  ;;  %v11450_v55 = vpop.f32.mrb[204].mxu0 }
 0x86e   : > { %v11239_v44 = vpop.f32.mrb[101].mxu1  ;;  %v11451_v23 = vpop.f32.mrb[205].mxu0 }
 0x86f   : > { %v16811_v35 = vadd.f32 %v11239_v44, %v11238_v8  ;;  %v16813_v37 = vadd.f32 %v11451_v23, %v11450_v55  ;;  %v11241_v63 = vpop.f32.mrb[102].mxu1  ;;  %v11453_v27 = vpop.f32.mrb[206].mxu0 }
 0x870   : > { %v11242_v24 = vpop.f32.mrb[103].mxu1  ;;  %v11454_v7 = vpop.f32.mrb[207].mxu0 }
 0x871   : > { %v16815_v53 = vadd.f32 %v11242_v24, %v11241_v63  ;;  %v16817_v60 = vadd.f32 %v11454_v7, %v11453_v27 }
 0x875   : > { %v11244_v33 = vpop.f32.mrb[104].mxu1  ;;  %v11456_v14 = vpop.f32.mrb[208].mxu0 }
 0x876   : > { %v11245_v30 = vpop.f32.mrb[105].mxu1  ;;  %v11457_v15 = vpop.f32.mrb[209].mxu0 }
 0x877   : > { %v16819_v39 = vadd.f32 %v11245_v30, %v11244_v33  ;;  %v16821_v46 = vadd.f32 %v11457_v15, %v11456_v14  ;;  %v11247_v52 = vpop.f32.mrb[106].mxu1  ;;  %v11459_v5 = vpop.f32.mrb[210].mxu0 }
 0x878   : > { %v11248_v12 = vpop.f32.mrb[107].mxu1  ;;  %v11460_v31 = vpop.f32.mrb[211].mxu0 }
 0x879   : > { %v16823_v51 = vadd.f32 %v11248_v12, %v11247_v52  ;;  %v16825_v47 = vadd.f32 %v11460_v31, %v11459_v5 }
 0x87d   : > { %v11250_v18 = vpop.f32.mrb[108].mxu1  ;;  %v11462_v6 = vpop.f32.mrb[212].mxu0 }
 0x87e   : > { %v11251_v45 = vpop.f32.mrb[109].mxu1  ;;  %v11463_v0 = vpop.f32.mrb[213].mxu0 }
 0x87f   : > { %v16827_v28 = vadd.f32 %v11251_v45, %v11250_v18  ;;  %v16829_v56 = vadd.f32 %v11463_v0, %v11462_v6  ;;  %v11253_v43 = vpop.f32.mrb[110].mxu1  ;;  %v11465_v13 = vpop.f32.mrb[214].mxu0 }
 0x880   : > { %v11254_v41 = vpop.f32.mrb[111].mxu1  ;;  %v11466_v17 = vpop.f32.mrb[215].mxu0 }
 0x881   : > { %v16831_v22 = vadd.f32 %v11254_v41, %v11253_v43  ;;  %v16833_v21 = vadd.f32 %v11466_v17, %v11465_v13 }
 0x885   : > { %v11256_v40 = vpop.f32.mrb[112].mxu1  ;;  %v11468_v4 = vpop.f32.mrb[216].mxu0 }
 0x886   : > { %v11257_v48 = vpop.f32.mrb[113].mxu1  ;;  %v11469_v2 = vpop.f32.mrb[217].mxu0 }
 0x887   : > { %v16835_v36 = vadd.f32 %v11257_v48, %v11256_v40  ;;  %v16837_v26 = vadd.f32 %v11469_v2, %v11468_v4  ;;  %v11259_v3 = vpop.f32.mrb[114].mxu1  ;;  %v11471_v49 = vpop.f32.mrb[218].mxu0 }
 0x888   : > { %v11260_v54 = vpop.f32.mrb[115].mxu1  ;;  %v11472_v62 = vpop.f32.mrb[219].mxu0 }
 0x889   : > { %v16839_v1 = vadd.f32 %v11260_v54, %v11259_v3  ;;  %v16841_v42 = vadd.f32 %v11472_v62, %v11471_v49 }
 0x88d   : > { %v11262_v8 = vpop.f32.mrb[116].mxu1  ;;  %v11474_v55 = vpop.f32.mrb[220].mxu0 }
 0x88e   : > { %v11263_v44 = vpop.f32.mrb[117].mxu1  ;;  %v11475_v23 = vpop.f32.mrb[221].mxu0 }
 0x88f   : > { %v16843_v63 = vadd.f32 %v11263_v44, %v11262_v8  ;;  %v16845_v27 = vadd.f32 %v11475_v23, %v11474_v55  ;;  %v11265_v24 = vpop.f32.mrb[118].mxu1  ;;  %v11477_v7 = vpop.f32.mrb[222].mxu0 }
 0x890   : > { %v11266_v33 = vpop.f32.mrb[119].mxu1  ;;  %v11478_v14 = vpop.f32.mrb[223].mxu0 }
 0x891   : > { %v16847_v30 = vadd.f32 %v11266_v33, %v11265_v24  ;;  %v16849_v15 = vadd.f32 %v11478_v14, %v11477_v7 }
 0x895   : > { %v11268_v52 = vpop.f32.mrb[120].mxu1  ;;  %v11480_v5 = vpop.f32.mrb[224].mxu0 }
 0x896   : > { %v11269_v12 = vpop.f32.mrb[121].mxu1  ;;  %v11481_v31 = vpop.f32.mrb[225].mxu0 }
 0x897   : > { %v16851_v18 = vadd.f32 %v11269_v12, %v11268_v52  ;;  %v16853_v6 = vadd.f32 %v11481_v31, %v11480_v5  ;;  %v11271_v45 = vpop.f32.mrb[122].mxu1  ;;  %v11483_v0 = vpop.f32.mrb[226].mxu0 }
 0x898   : > { %v11272_v43 = vpop.f32.mrb[123].mxu1  ;;  %v11484_v13 = vpop.f32.mrb[227].mxu0 }
 0x899   : > { %v16855_v41 = vadd.f32 %v11272_v43, %v11271_v45  ;;  %v16857_v17 = vadd.f32 %v11484_v13, %v11483_v0 }
 0x89d   : > { %v11274_v40 = vpop.f32.mrb[124].mxu1  ;;  %v11486_v4 = vpop.f32.mrb[228].mxu0 }
 0x89e   : > { %v11275_v48 = vpop.f32.mrb[125].mxu1  ;;  %v11487_v2 = vpop.f32.mrb[229].mxu0 }
 0x89f   : > { %v16859_v3 = vadd.f32 %v11275_v48, %v11274_v40  ;;  %v16861_v49 = vadd.f32 %v11487_v2, %v11486_v4  ;;  %v11277_v54 = vpop.f32.mrb[126].mxu1  ;;  %v11489_v62 = vpop.f32.mrb[230].mxu0 }
 0x8a0   : > { %v11278_v8 = vpop.f32.mrb[127].mxu1  ;;  %v11490_v55 = vpop.f32.mrb[231].mxu0 }
 0x8a1   : > { %v16863_v44 = vadd.f32 %v11278_v8, %v11277_v54  ;;  %v16865_v23 = vadd.f32 %v11490_v55, %v11489_v62 }
 0x8a3   : > { %17899 = vst [vmem:[#allocation5_spill] sm:$0xff] %v16863_v44 }
 0x8a5   : > { %v11280_v24 = vpop.f32.mrb[128].mxu1  ;;  %v11492_v7 = vpop.f32.mrb[232].mxu0 }
 0x8a6   : > { %v11281_v33 = vpop.f32.mrb[129].mxu1  ;;  %v11493_v14 = vpop.f32.mrb[233].mxu0 }
 0x8a7   : > { %v16867_v52 = vadd.f32 %v11281_v33, %v11280_v24  ;;  %v16869_v5 = vadd.f32 %v11493_v14, %v11492_v7  ;;  %v11283_v12 = vpop.f32.mrb[130].mxu1  ;;  %v11495_v31 = vpop.f32.mrb[234].mxu0 }
 0x8a8   : > { %v11284_v45 = vpop.f32.mrb[131].mxu1  ;;  %v11496_v0 = vpop.f32.mrb[235].mxu0 }
 0x8a9   : > { %17900 = vst [vmem:[#allocation3_spill] sm:$0xff] %v16867_v52  ;;  %v16871_v43 = vadd.f32 %v11284_v45, %v11283_v12  ;;  %v16873_v13 = vadd.f32 %v11496_v0, %v11495_v31 }
 0x8ab   : > { %17901 = vst [vmem:[#allocation4_spill] sm:$0xff] %v16871_v43 }
 0x8ad   : > { %v11286_v40 = vpop.f32.mrb[132].mxu1  ;;  %v11498_v4 = vpop.f32.mrb[236].mxu0 }
 0x8ae   : > { %v11287_v48 = vpop.f32.mrb[133].mxu1  ;;  %v11499_v2 = vpop.f32.mrb[237].mxu0 }
 0x8af   : > { %v16875_v54 = vadd.f32 %v11287_v48, %v11286_v40  ;;  %v16877_v62 = vadd.f32 %v11499_v2, %v11498_v4  ;;  %v11289_v8 = vpop.f32.mrb[134].mxu1  ;;  %v11501_v55 = vpop.f32.mrb[238].mxu0 }
 0x8b0   : > { %v11290_v24 = vpop.f32.mrb[135].mxu1  ;;  %v11502_v7 = vpop.f32.mrb[239].mxu0 }
 0x8b1   : > { %17902 = vst [vmem:[#allocation7_spill] sm:$0xff] %v16875_v54  ;;  %17903 = vst [vmem:[#allocation10_spill] sm:$0xff] %v16877_v62  ;;  %v16879_v33 = vadd.f32 %v11290_v24, %v11289_v8  ;;  %v16881_v14 = vadd.f32 %v11502_v7, %v11501_v55 }
 0x8b3   : > { %17904 = vst [vmem:[#allocation6_spill] sm:$0xff] %v16879_v33  ;;  %17905 = vst [vmem:[#allocation8_spill] sm:$0xff] %v16881_v14 }
 0x8b5   : > { %v11292_v12 = vpop.f32.mrb[136].mxu1  ;;  %v11504_v45 = vpop.f32.mrb[240].mxu0 }
 0x8b6   : > { %v11293_v31 = vpop.f32.mrb[137].mxu1  ;;  %v11505_v0 = vpop.f32.mrb[241].mxu0 }
 0x8b7   : > { %v16883_v43 = vadd.f32 %v11293_v31, %v11292_v12  ;;  %v16885_v52 = vadd.f32 %v11505_v0, %v11504_v45  ;;  %v11295_v40 = vpop.f32.mrb[138].mxu1  ;;  %v11507_v48 = vpop.f32.mrb[242].mxu0 }
 0x8b8   : > { %v11296_v4 = vpop.f32.mrb[139].mxu1  ;;  %v11508_v2 = vpop.f32.mrb[243].mxu0 }
 0x8b9   : > { %17906 = vst [vmem:[#allocation9_spill] sm:$0xff] %v16883_v43  ;;  %17907 = vst [vmem:[#allocation12_spill] sm:$0xff] %v16885_v52  ;;  %v16887_v54 = vadd.f32 %v11296_v4, %v11295_v40  ;;  %v16889_v44 = vadd.f32 %v11508_v2, %v11507_v48 }
 0x8bb   : > { %17908 = vst [vmem:[#allocation13_spill] sm:$0xff] %v16887_v54  ;;  %17909 = vst [vmem:[#allocation11_spill] sm:$0xff] %v16889_v44 }
 0x8bd   : > { %v11298_v8 = vpop.f32.mrb[140].mxu1  ;;  %v11510_v24 = vpop.f32.mrb[244].mxu0 }
 0x8be   : > { %v11299_v55 = vpop.f32.mrb[141].mxu1  ;;  %v11511_v7 = vpop.f32.mrb[245].mxu0 }
 0x8bf   : > { %v16891_v33 = vadd.f32 %v11299_v55, %v11298_v8  ;;  %v16893_v14 = vadd.f32 %v11511_v7, %v11510_v24  ;;  %v11301_v12 = vpop.f32.mrb[142].mxu1  ;;  %v11513_v31 = vpop.f32.mrb[246].mxu0 }
 0x8c0   : > { %v11302_v45 = vpop.f32.mrb[143].mxu1  ;;  %v11514_v0 = vpop.f32.mrb[247].mxu0 }
 0x8c1   : > { %17910 = vst [vmem:[#allocation14_spill] sm:$0xff] %v16891_v33  ;;  %17911 = vst [vmem:[#allocation16_spill] sm:$0xff] %v16893_v14  ;;  %v16895_v43 = vadd.f32 %v11302_v45, %v11301_v12  ;;  %v16897_v52 = vadd.f32 %v11514_v0, %v11513_v31  ;;  %v16907_v12 = vld [vmem:[%s17792_s10] ss:$0 sm:$0xff] }
 0x8c3   : > { %17912 = vst [vmem:[#allocation17_spill] sm:$0xff] %v16895_v43 }
 0x8c5   : > { %v11320_v40 = vpop.f32.mrb[144].mxu1  ;;  %v11516_v4 = vpop.f32.mrb[248].mxu0 }
 0x8c6   : > { %v11321_v48 = vpop.f32.mrb[145].mxu1  ;;  %v11517_v2 = vpop.f32.mrb[249].mxu0 }
 0x8c7   : > { %v11322_v54 = vadd.f32 %v11321_v48, %v11320_v40  ;;  %v16899_v44 = vadd.f32 %v11517_v2, %v11516_v4  ;;  %v11323_v62 = vpop.f32.mrb[146].mxu1  ;;  %v11519_v8 = vpop.f32.mrb[250].mxu0 }
 0x8c8   : > { %v11324_v55 = vpop.f32.mrb[147].mxu1  ;;  %v11520_v24 = vpop.f32.mrb[251].mxu0 }
 0x8c9   : > { %v7230_v7 = vadd.f32 %v11322_v54, %v16770_v25  ;;  %v11325_v33 = vadd.f32 %v11324_v55, %v11323_v62  ;;  %v16902_v14 = vadd.f32 %v11520_v24, %v11519_v8 }
 0x8cb   : > { %17913 = vst [vmem:[#allocation15_spill] sm:$0xff] %v16902_v14  ;;  %v7650_v31 = vadd.f32 %v16784_v38, %v7230_v7  ;;  %v7233_v45 = vadd.f32 %v11325_v33, %v16772_v32  ;;  %v13294_v32 = vld [vmem:[%s17793_s11 + $0x104] ss:$8 sps:$4 sm:$0xff]  }
 0x8cc   : > { %8379 = vmatprep.mubr.bf16.mxu0 %v13294_v32 }
 0x8cd   : > { %v7689_v0 = vadd.f32 %v16907_v12, %v7650_v31  ;;  %v7651_v40 = vadd.f32 %v16788_v50, %v7233_v45  ;;  %v11326_v4 = vpop.f32.mrb[148].mxu1  ;;  %v11522_v48 = vpop.f32.mrb[252].mxu0 }
 0x8ce   : > { %v11327_v2 = vpop.f32.mrb[149].mxu1  ;;  %v11523_v25 = vpop.f32.mrb[253].mxu0 }
 0x8cf   : > { %v7690_v54 = vadd.f32 %v16907_v12, %v7651_v40  ;;  %v11328_v62 = vadd.f32 %v11327_v2, %v11326_v4  ;;  %v16914_v8 = vadd.f32 %v11523_v25, %v11522_v48  ;;  %v11329_v55 = vpop.f32.mrb[150].mxu1  ;;  %v11525_v24 = vpop.f32.mrb[254].mxu0  ;;  %v7721_v43 = vmax.f32 %v7689_v0, 0.0 }
 0x8d0   : > { %v11330_v14 = vpop.f32.mrb[151].mxu1  ;;  %v11526_v38 = vpop.f32.mrb[255].mxu0 }
 0x8d1   : > { %17914 = vst [vmem:[#allocation18_spill] sm:$0xff] %v16914_v8  ;;  %v7722_v33 = vmax.f32 %v7690_v54, 0.0  ;;  %v7238_v50 = vadd.f32 %v11328_v62, %v16776_v9  ;;  %v11331_v7 = vadd.f32 %v11330_v14, %v11329_v55  ;;  %v16920_v31 = vadd.f32 %v11526_v38, %v11525_v24 }
 0x8d3   : > { %v7652_v45 = vadd.f32 %v16794_v58, %v7238_v50  ;;  %v7241_v40 = vadd.f32 %v11331_v7, %v16778_v20  ;;  %v16924_v4 = vpack.c.bf16 %v7722_v33, %v7721_v43 }
 0x8d5   : > { %v7691_v0 = vadd.f32 %v16907_v12, %v7652_v45  ;;  %v7653_v48 = vadd.f32 %v16798_v11, %v7241_v40  ;;  %v11332_v2 = vpop.f32.mrb[152].mxu1 }
 0x8d6   : > { %v11333_v25 = vpop.f32.mrb[153].mxu1 }
 0x8d7   : > { %v7692_v54 = vadd.f32 %v16907_v12, %v7653_v48  ;;  %v11334_v8 = vadd.f32 %v11333_v25, %v11332_v2  ;;  %v11335_v9 = vpop.f32.mrb[154].mxu1  ;;  %v7723_v62 = vmax.f32 %v7691_v0, 0.0 }
 0x8d8   : > { %v11336_v14 = vpop.f32.mrb[155].mxu1 }
 0x8d9   : > { %v7724_v55 = vmax.f32 %v7692_v54, 0.0  ;;  %v7246_v24 = vadd.f32 %v11334_v8, %v16782_v59  ;;  %v11337_v58 = vadd.f32 %v11336_v14, %v11335_v9 }
 0x8db   : > { %v7654_v20 = vadd.f32 %v16804_v61, %v7246_v24  ;;  %v7249_v43 = vadd.f32 %v11337_v58, %v16786_v10  ;;  %v16932_v38 = vpack.c.bf16 %v7724_v55, %v7723_v62 }
 0x8dd   : > { %v7693_v11 = vadd.f32 %v16907_v12, %v7654_v20  ;;  %v7655_v32 = vadd.f32 %v16808_v16, %v7249_v43  ;;  %v11338_v33 = vpop.f32.mrb[156].mxu1 }
 0x8de   : > { %v11339_v50 = vpop.f32.mrb[157].mxu1 }
 0x8df   : > { %v7694_v7 = vadd.f32 %v16907_v12, %v7655_v32  ;;  %v11340_v45 = vadd.f32 %v11339_v50, %v11338_v33  ;;  %v11341_v40 = vpop.f32.mrb[158].mxu1  ;;  %v7725_v48 = vmax.f32 %v7693_v11, 0.0 }
 0x8e0   : > { %v11342_v0 = vpop.f32.mrb[159].mxu1 }
 0x8e1   : > { %v7726_v59 = vmax.f32 %v7694_v7, 0.0  ;;  %v7254_v8 = vadd.f32 %v11340_v45, %v16792_v19  ;;  %v11343_v61 = vadd.f32 %v11342_v0, %v11341_v40 }
 0x8e3   : > { %v7656_v10 = vadd.f32 %v16813_v37, %v7254_v8  ;;  %v7257_v2 = vadd.f32 %v11343_v61, %v16796_v29  ;;  %v16940_v25 = vpack.c.bf16 %v7726_v59, %v7725_v48 }
 0x8e5   : > { %v7695_v16 = vadd.f32 %v16907_v12, %v7656_v10  ;;  %v7657_v54 = vadd.f32 %v16817_v60, %v7257_v2  ;;  %v11344_v9 = vpop.f32.mrb[160].mxu1 }
 0x8e6   : > { %v11345_v14 = vpop.f32.mrb[161].mxu1 }
 0x8e7   : > { %v7696_v62 = vadd.f32 %v16907_v12, %v7657_v54  ;;  %v11346_v55 = vadd.f32 %v11345_v14, %v11344_v9  ;;  %v11347_v24 = vpop.f32.mrb[162].mxu1  ;;  %v7727_v20 = vmax.f32 %v7695_v16, 0.0 }
 0x8e8   : > { %v11348_v58 = vpop.f32.mrb[163].mxu1 }
 0x8e9   : > { %v7728_v19 = vmax.f32 %v7696_v62, 0.0  ;;  %v7262_v43 = vadd.f32 %v11346_v55, %v16802_v57  ;;  %v11349_v37 = vadd.f32 %v11348_v58, %v11347_v24 }
 0x8eb   : > { %v7658_v29 = vadd.f32 %v16821_v46, %v7262_v43  ;;  %v7265_v11 = vadd.f32 %v11349_v37, %v16806_v34  ;;  %v16948_v32 = vpack.c.bf16 %v7728_v19, %v7727_v20 }
 0x8ed   : > { %v7697_v60 = vadd.f32 %v16907_v12, %v7658_v29  ;;  %v7659_v33 = vadd.f32 %v16825_v47, %v7265_v11  ;;  %v11350_v50 = vpop.f32.mrb[164].mxu1 }
 0x8ee   : > { %v11351_v7 = vpop.f32.mrb[165].mxu1 }
 0x8ef   : > { %v7698_v45 = vadd.f32 %v16907_v12, %v7659_v33  ;;  %v11352_v40 = vadd.f32 %v11351_v7, %v11350_v50  ;;  %v11353_v0 = vpop.f32.mrb[166].mxu1  ;;  %v7729_v59 = vmax.f32 %v7697_v60, 0.0 }
 0x8f0   : > { %v11354_v48 = vpop.f32.mrb[167].mxu1 }
 0x8f1   : > { %v7730_v57 = vmax.f32 %v7698_v45, 0.0  ;;  %v7270_v8 = vadd.f32 %v11352_v40, %v16811_v35  ;;  %v11355_v46 = vadd.f32 %v11354_v48, %v11353_v0 }
 0x8f3   : > { %v7660_v34 = vadd.f32 %v16829_v56, %v7270_v8  ;;  %v7273_v61 = vadd.f32 %v11355_v46, %v16815_v53  ;;  %v16956_v10 = vpack.c.bf16 %v7730_v57, %v7729_v59 }
 0x8f5   : > { %v7699_v47 = vadd.f32 %v16907_v12, %v7660_v34  ;;  %v7661_v2 = vadd.f32 %v16833_v21, %v7273_v61  ;;  %v11356_v16 = vpop.f32.mrb[168].mxu1 }
 0x8f6   : > { %v11357_v54 = vpop.f32.mrb[169].mxu1 }
 0x8f7   : > { %v7700_v9 = vadd.f32 %v16907_v12, %v7661_v2  ;;  %v11358_v14 = vadd.f32 %v11357_v54, %v11356_v16  ;;  %v11359_v62 = vpop.f32.mrb[170].mxu1  ;;  %v7731_v24 = vmax.f32 %v7699_v47, 0.0 }
 0x8f8   : > { %v11360_v55 = vpop.f32.mrb[171].mxu1 }
 0x8f9   : > { %v7732_v35 = vmax.f32 %v7700_v9, 0.0  ;;  %v7278_v58 = vadd.f32 %v11358_v14, %v16819_v39  ;;  %v11361_v56 = vadd.f32 %v11360_v55, %v11359_v62 }
 0x8fb   : > { %v7662_v53 = vadd.f32 %v16837_v26, %v7278_v58  ;;  %v7281_v20 = vadd.f32 %v11361_v56, %v16823_v51  ;;  %v16964_v19 = vpack.c.bf16 %v7732_v35, %v7731_v24 }
 0x8fd   : > { %v7701_v21 = vadd.f32 %v16907_v12, %v7662_v53  ;;  %v7663_v43 = vadd.f32 %v16841_v42, %v7281_v20  ;;  %v11362_v37 = vpop.f32.mrb[172].mxu1 }
 0x8fe   : > { %v11363_v29 = vpop.f32.mrb[173].mxu1 }
 0x8ff   : > { %v7702_v11 = vadd.f32 %v16907_v12, %v7663_v43  ;;  %v11364_v60 = vadd.f32 %v11363_v29, %v11362_v37  ;;  %v11365_v33 = vpop.f32.mrb[174].mxu1  ;;  %v7733_v7 = vmax.f32 %v7701_v21, 0.0 }
 0x900   : > { %v11366_v50 = vpop.f32.mrb[175].mxu1 }
 0x901   : > { %v7734_v39 = vmax.f32 %v7702_v11, 0.0  ;;  %v7286_v45 = vadd.f32 %v11364_v60, %v16827_v28  ;;  %v11367_v26 = vadd.f32 %v11366_v50, %v11365_v33 }
 0x903   : > { %v7664_v51 = vadd.f32 %v16845_v27, %v7286_v45  ;;  %v7289_v40 = vadd.f32 %v11367_v26, %v16831_v22  ;;  %v16972_v0 = vpack.c.bf16 %v7734_v39, %v7733_v7  ;;  %v13318_v22 = vld [vmem:[%s17793_s11 + $0x4] ss:$8 sps:$4 sm:$0xff]  }
 0x904   : > { %7993 = vmatprep.mubr.bf16.mxu1 %v13318_v22 }
 0x905   : > { %v7703_v42 = vadd.f32 %v16907_v12, %v7664_v51  ;;  %v7665_v48 = vadd.f32 %v16849_v15, %v7289_v40  ;;  %v11368_v59 = vpop.f32.mrb[176].mxu1 }
 0x906   : > { %v11369_v57 = vpop.f32.mrb[177].mxu1 }
 0x907   : > { %v7704_v8 = vadd.f32 %v16907_v12, %v7665_v48  ;;  %v11370_v46 = vadd.f32 %v11369_v57, %v11368_v59  ;;  %v11371_v34 = vpop.f32.mrb[178].mxu1  ;;  %v7735_v47 = vmax.f32 %v7703_v42, 0.0 }
 0x908   : > { %v11372_v61 = vpop.f32.mrb[179].mxu1 }
 0x909   : > { %v7736_v28 = vmax.f32 %v7704_v8, 0.0  ;;  %v7294_v2 = vadd.f32 %v11370_v46, %v16835_v36  ;;  %v11373_v27 = vadd.f32 %v11372_v61, %v11371_v34  ;;  %v17915_v34 = vld [vmem:[#allocation10_spill] sm:$0xff] }
 0x90b   : > { %v7666_v16 = vadd.f32 %v16853_v6, %v7294_v2  ;;  %v7297_v15 = vadd.f32 %v11373_v27, %v16839_v1  ;;  %v16983_v54 = vpack.c.bf16 %v7736_v28, %v7735_v47  ;;  %v17916_v47 = vld [vmem:[#allocation5_spill] sm:$0xff]  ;;  %v17917_v27 = vld [vmem:[#allocation8_spill] sm:$0xff] }
 0x90d   : > { %v7667_v9 = vadd.f32 %v16857_v17, %v7297_v15  ;;  %v11374_v14 = vpop.f32.mrb[180].mxu1  ;;  %v7705_v62 = vadd.f32 %v16907_v12, %v7666_v16 }
 0x90e   : > { %v11375_v55 = vpop.f32.mrb[181].mxu1 }
 0x90f   : > { %v11376_v24 = vadd.f32 %v11375_v55, %v11374_v14  ;;  %v11377_v36 = vpop.f32.mrb[182].mxu1  ;;  %v7706_v35 = vadd.f32 %v16907_v12, %v7667_v9  ;;  %v7737_v6 = vmax.f32 %v7705_v62, 0.0 }
 0x910   : > { %v11378_v58 = vpop.f32.mrb[183].mxu1 }
 0x911   : > { %v7302_v56 = vadd.f32 %v11376_v24, %v16843_v63  ;;  %v11379_v53 = vadd.f32 %v11378_v58, %v11377_v36  ;;  %v7738_v20 = vmax.f32 %v7706_v35, 0.0  ;;  %v17918_v24 = vld [vmem:[#allocation3_spill] sm:$0xff] }
 0x913   : > { %v7668_v1 = vadd.f32 %v16861_v49, %v7302_v56  ;;  %v7305_v21 = vadd.f32 %v11379_v53, %v16847_v30  ;;  %v16991_v43 = vpack.c.bf16 %v7738_v20, %v7737_v6  ;;  %v17919_v53 = vld [vmem:[#allocation12_spill] sm:$0xff] }
 0x914   : > { %v17920_v20 = vld [vmem:[#allocation4_spill] sm:$0xff] }
 0x915   : > { %v7669_v17 = vadd.f32 %v16865_v23, %v7305_v21  ;;  %v11380_v37 = vpop.f32.mrb[184].mxu1  ;;  %11528 = vmatprep.subr.bf16.mxu1 %v16991_v43  ;;  %11640 = vmatprep.subr.bf16.mxu0 %v16991_v43  ;;  %v7707_v29 = vadd.f32 %v16907_v12, %v7668_v1 }
 0x916   : > { %v11381_v11 = vpop.f32.mrb[185].mxu1  ;;  %11529 = vmatpush3.bf16.msra.mxu1 %v16924_v4  ;;  %11641 = vmatpush3.bf16.msra.mxu0 %v16924_v4 }
 0x917   : > { %v11382_v63 = vadd.f32 %v11381_v11, %v11380_v37  ;;  %v11383_v49 = vpop.f32.mrb[186].mxu1  ;;  %v7708_v30 = vadd.f32 %v16907_v12, %v7669_v17  ;;  %v7739_v50 = vmax.f32 %v7707_v29, 0.0  ;;  %v17921_v17 = vld [vmem:[#allocation11_spill] sm:$0xff] }
 0x918   : > { %v11384_v60 = vpop.f32.mrb[187].mxu1 }
 0x919   : > { %v7310_v33 = vadd.f32 %v11382_v63, %v16851_v18  ;;  %v11385_v23 = vadd.f32 %v11384_v60, %v11383_v49  ;;  %v7740_v7 = vmax.f32 %v7708_v30, 0.0 }
 0x91b   : > { %v7670_v39 = vadd.f32 %v16869_v5, %v7310_v33  ;;  %v7313_v45 = vadd.f32 %v11385_v23, %v16855_v41  ;;  %v17003_v26 = vpack.c.bf16 %v7740_v7, %v7739_v50  ;;  %v17922_v23 = vld [vmem:[#allocation7_spill] sm:$0xff] }
 0x91d   : > { %v7671_v51 = vadd.f32 %v16873_v13, %v7313_v45  ;;  %v11386_v40 = vpop.f32.mrb[188].mxu1  ;;  %11530 = vmatprep.subr.bf16.mxu1 %v17003_v26  ;;  %11642 = vmatprep.subr.bf16.mxu0 %v17003_v26  ;;  %v7709_v42 = vadd.f32 %v16907_v12, %v7670_v39 }
 0x91e   : > { %v11387_v48 = vpop.f32.mrb[189].mxu1  ;;  %11531 = vmatpush3.bf16.msra.mxu1 %v16932_v38  ;;  %11643 = vmatpush3.bf16.msra.mxu0 %v16932_v38 }
 0x91f   : > { %v11388_v18 = vadd.f32 %v11387_v48, %v11386_v40  ;;  %v11389_v5 = vpop.f32.mrb[190].mxu1  ;;  %v7710_v41 = vadd.f32 %v16907_v12, %v7671_v51  ;;  %v7741_v8 = vmax.f32 %v7709_v42, 0.0  ;;  %v17923_v51 = vld [vmem:[#allocation16_spill] sm:$0xff]  ;;  %v17924_v42 = vld [vmem:[#allocation6_spill] sm:$0xff] }
 0x920   : > { %v11390_v59 = vpop.f32.mrb[191].mxu1 }
 0x921   : > { %v7318_v57 = vadd.f32 %v11388_v18, %v16859_v3  ;;  %v11391_v13 = vadd.f32 %v11390_v59, %v11389_v5  ;;  %v7742_v46 = vmax.f32 %v7710_v41, 0.0 }
 0x923   : > { %v7672_v61 = vadd.f32 %v17915_v34, %v7318_v57  ;;  %v7321_v28 = vadd.f32 %v11391_v13, %v17916_v47  ;;  %v17015_v2 = vpack.c.bf16 %v7742_v46, %v7741_v8 }
 0x925   : > { %v7673_v22 = vadd.f32 %v17917_v27, %v7321_v28  ;;  %v11392_v16 = vpop.f32.mrb[192].mxu1  ;;  %11532 = vmatprep.subr.bf16.mxu1 %v17015_v2  ;;  %11644 = vmatprep.subr.bf16.mxu0 %v17015_v2  ;;  %v7711_v15 = vadd.f32 %v16907_v12, %v7672_v61  ;;  %v17925_v61 = vld [vmem:[#allocation9_spill] sm:$0xff] }
 0x926   : > { %v11393_v9 = vpop.f32.mrb[193].mxu1  ;;  %11533 = vmatpush3.bf16.msra.mxu1 %v16940_v25  ;;  %11645 = vmatpush3.bf16.msra.mxu0 %v16940_v25 }
 0x927   : > { %v11394_v3 = vadd.f32 %v11393_v9, %v11392_v16  ;;  %v11395_v14 = vpop.f32.mrb[194].mxu1  ;;  %v7712_v62 = vadd.f32 %v16907_v12, %v7673_v22  ;;  %v7743_v58 = vmax.f32 %v7711_v15, 0.0  ;;  %v17926_v16 = vld [vmem:[#allocation13_spill] sm:$0xff] }
 0x928   : > { %v11396_v55 = vpop.f32.mrb[195].mxu1 }
 0x929   : > { %v7326_v36 = vadd.f32 %v11394_v3, %v17918_v24  ;;  %v11397_v35 = vadd.f32 %v11396_v55, %v11395_v14  ;;  %v7744_v56 = vmax.f32 %v7712_v62, 0.0  ;;  %v17927_v3 = vld [vmem:[#allocation15_spill] sm:$0xff] }
 0x92b   : > { %v7674_v6 = vadd.f32 %v17919_v53, %v7326_v36  ;;  %v7329_v1 = vadd.f32 %v11397_v35, %v17920_v20  ;;  %v17027_v21 = vpack.c.bf16 %v7744_v56, %v7743_v58  ;;  %v17928_v56 = vld [vmem:[#allocation14_spill] sm:$0xff] }
 0x92d   : > { %v7675_v37 = vadd.f32 %v17921_v17, %v7329_v1  ;;  %v11398_v29 = vpop.f32.mrb[196].mxu1  ;;  %11534 = vmatprep.subr.bf16.mxu1 %v17027_v21  ;;  %11646 = vmatprep.subr.bf16.mxu0 %v17027_v21  ;;  %v7713_v11 = vadd.f32 %v16907_v12, %v7674_v6  ;;  %v17929_v17 = vld [vmem:[#allocation18_spill] sm:$0xff] }
 0x92e   : > { %v11399_v63 = vpop.f32.mrb[197].mxu1  ;;  %11535 = vmatpush3.bf16.msra.mxu1 %v16948_v32  ;;  %11647 = vmatpush3.bf16.msra.mxu0 %v16948_v32 }
 0x92f   : > { %v11400_v49 = vadd.f32 %v11399_v63, %v11398_v29  ;;  %v11401_v30 = vpop.f32.mrb[198].mxu1  ;;  %v7714_v60 = vadd.f32 %v16907_v12, %v7675_v37  ;;  %v7745_v39 = vmax.f32 %v7713_v11, 0.0  ;;  %v17930_v29 = vld [vmem:[#allocation17_spill] sm:$0xff] }
 0x930   : > { %v11402_v33 = vpop.f32.mrb[199].mxu1 }
 0x931   : > { %v7334_v50 = vadd.f32 %v11400_v49, %v17922_v23  ;;  %v11403_v7 = vadd.f32 %v11402_v33, %v11401_v30  ;;  %v7746_v45 = vmax.f32 %v7714_v60, 0.0 }
 0x933   : > { %v7676_v40 = vadd.f32 %v17923_v51, %v7334_v50  ;;  %v7337_v48 = vadd.f32 %v11403_v7, %v17924_v42  ;;  %v17039_v18 = vpack.c.bf16 %v7746_v45, %v7745_v39  ;;  %v13292_v7 = vld [vmem:[%s17793_s11 + $0x100] ss:$8 sps:$4 sm:$0xff]   ;;  %v13324_v39 = vld [vmem:[%s17793_s11 + $0x14] ss:$8 sps:$4 sm:$0xff]   ;;  %v13295_v45 = vld [vmem:[%s17793_s11 + $0x110] ss:$8 sps:$4 sm:$0xff]  }
 0x934   : > { %v13300_v51 = vld [vmem:[%s17793_s11 + $0x124] ss:$8 sps:$4 sm:$0xff]   ;;  %v13340_v42 = vld [vmem:[%s17793_s11 + $0x40] ss:$8 sps:$4 sm:$0xff]  }
 0x935   : > { %v7677_v5 = vadd.f32 %v16897_v52, %v7337_v48  ;;  %v11404_v41 = vpop.f32.mrb[200].mxu1  ;;  %11536 = vmatprep.subr.bf16.mxu1 %v17039_v18  ;;  %11648 = vmatprep.subr.bf16.mxu0 %v17039_v18  ;;  %v7715_v59 = vadd.f32 %v16907_v12, %v7676_v40  ;;  %v13306_v40 = vld [vmem:[%s17793_s11 + $0x144] ss:$8 sps:$4 sm:$0xff]   ;;  %v13309_v48 = vld [vmem:[%s17793_s11 + $0x154] ss:$8 sps:$4 sm:$0xff]  }
 0x936   : > { %v11405_v57 = vpop.f32.mrb[201].mxu1  ;;  %11537 = vmatpush3.bf16.msra.mxu1 %v16956_v10  ;;  %11649 = vmatpush3.bf16.msra.mxu0 %v16956_v10 }
 0x937   : > { %v11406_v13 = vadd.f32 %v11405_v57, %v11404_v41  ;;  %v11407_v8 = vpop.f32.mrb[202].mxu1  ;;  %v7716_v46 = vadd.f32 %v16907_v12, %v7677_v5  ;;  %v7747_v28 = vmax.f32 %v7715_v59, 0.0  ;;  %v13312_v5 = vld [vmem:[%s17793_s11 + $0x164] ss:$8 sps:$4 sm:$0xff]   ;;  %v13310_v59 = vld [vmem:[%s17793_s11 + $0x160] ss:$8 sps:$4 sm:$0xff]  }
 0x938   : > { %v11408_v34 = vpop.f32.mrb[203].mxu1  ;;  %v13354_v41 = vld [vmem:[%s17793_s11 + $0x64] ss:$8 sps:$4 sm:$0xff]   ;;  %v13352_v57 = vld [vmem:[%s17793_s11 + $0x60] ss:$8 sps:$4 sm:$0xff]  }
 0x939   : > { %v7342_v47 = vadd.f32 %v11406_v13, %v17925_v61  ;;  %v11409_v52 = vadd.f32 %v11408_v34, %v11407_v8  ;;  %v7748_v27 = vmax.f32 %v7716_v46, 0.0  ;;  %v13315_v13 = vld [vmem:[%s17793_s11 + $0x174] ss:$8 sps:$4 sm:$0xff]   ;;  %v13313_v46 = vld [vmem:[%s17793_s11 + $0x170] ss:$8 sps:$4 sm:$0xff]  }
 0x93a   : > { %v13360_v8 = vld [vmem:[%s17793_s11 + $0x74] ss:$8 sps:$4 sm:$0xff]   ;;  %v13358_v34 = vld [vmem:[%s17793_s11 + $0x70] ss:$8 sps:$4 sm:$0xff]   ;;  %v13321_v61 = vld [vmem:[%s17793_s11 + $0x184] ss:$8 sps:$4 sm:$0xff]  }
 0x93b   : > { %v7678_v22 = vadd.f32 %v16899_v44, %v7342_v47  ;;  %v7345_v15 = vadd.f32 %v11409_v52, %v17926_v16  ;;  %v17051_v9 = vpack.c.bf16 %v7748_v27, %v7747_v28  ;;  %v13366_v47 = vld [vmem:[%s17793_s11 + $0x84] ss:$8 sps:$4 sm:$0xff]   ;;  %v13319_v52 = vld [vmem:[%s17793_s11 + $0x180] ss:$8 sps:$4 sm:$0xff]   ;;  %v13327_v27 = vld [vmem:[%s17793_s11 + $0x194] ss:$8 sps:$4 sm:$0xff]  }
 0x93c   : > { %v13364_v28 = vld [vmem:[%s17793_s11 + $0x80] ss:$8 sps:$4 sm:$0xff]  }
 0x93d   : > { %v7679_v14 = vadd.f32 %v17927_v3, %v7345_v15  ;;  %v11410_v62 = vpop.f32.mrb[204].mxu1  ;;  %11538 = vmatprep.subr.bf16.mxu1 %v17051_v9  ;;  %11650 = vmatprep.subr.bf16.mxu0 %v17051_v9  ;;  %v7717_v55 = vadd.f32 %v16907_v12, %v7678_v22  ;;  %v13372_v22 = vld [vmem:[%s17793_s11 + $0x94] ss:$8 sps:$4 sm:$0xff]   ;;  %v13424_v16 = vld [vmem:[%s17794_s12 + $0x40] sm:$0xff]   ;;  %v13325_v15 = vld [vmem:[%s17793_s11 + $0x190] ss:$8 sps:$4 sm:$0xff]  }
 0x93e   : > { %v11411_v24 = vpop.f32.mrb[205].mxu1  ;;  %11539 = vmatpush3.bf16.msra.mxu1 %v16964_v19  ;;  %11651 = vmatpush3.bf16.msra.mxu0 %v16964_v19  ;;  %v13333_v3 = vld [vmem:[%s17793_s11 + $0x1a4] ss:$8 sps:$4 sm:$0xff]  }
 0x93f   : > { %v11412_v36 = vadd.f32 %v11411_v24, %v11410_v62  ;;  %v11413_v44 = vpop.f32.mrb[206].mxu1  ;;  %v7718_v35 = vadd.f32 %v16907_v12, %v7679_v14  ;;  %v7749_v20 = vmax.f32 %v7717_v55, 0.0  ;;  %v13378_v14 = vld [vmem:[%s17793_s11 + $0xa4] ss:$8 sps:$4 sm:$0xff]   ;;  %v13438_v55 = vld [vmem:[%s17794_s12 + $0x50] sm:$0xff]  }
 0x940   : > { %v11414_v58 = vpop.f32.mrb[207].mxu1  ;;  %v13431_v62 = vld [vmem:[%s17794_s12 + $0x48] sm:$0xff]  }
 0x941   : > { %v7350_v53 = vadd.f32 %v11412_v36, %v17928_v56  ;;  %v11415_v6 = vadd.f32 %v11414_v58, %v11413_v44  ;;  %v7750_v1 = vmax.f32 %v7718_v35, 0.0  ;;  %v13331_v24 = vld [vmem:[%s17793_s11 + $0x1a0] ss:$8 sps:$4 sm:$0xff]   ;;  %v13339_v44 = vld [vmem:[%s17793_s11 + $0x1b4] ss:$8 sps:$4 sm:$0xff]  }
 0x942   : > { %v13376_v36 = vld [vmem:[%s17793_s11 + $0xa0] ss:$8 sps:$4 sm:$0xff]   ;;  %v13384_v35 = vld [vmem:[%s17793_s11 + $0xb4] ss:$8 sps:$4 sm:$0xff]  }
 0x943   : > { %v7680_v37 = vadd.f32 %v17929_v17, %v7350_v53  ;;  %v7353_v11 = vadd.f32 %v11415_v6, %v17930_v29  ;;  %v7767_v63 = vpack.c.bf16 %v7750_v1, %v7749_v20  ;;  %v13439_v58 = vld [vmem:[%s17794_s12 + $0x58] sm:$0xff]   ;;  %v13440_v56 = vld [vmem:[%s17794_s12 + $0x60] sm:$0xff]   ;;  %v13441_v17 = vld [vmem:[%s17794_s12 + $0x68] sm:$0xff]  }
 0x944   : > { %v13337_v53 = vld [vmem:[%s17793_s11 + $0x1b0] ss:$8 sps:$4 sm:$0xff]   ;;  %v13345_v20 = vld [vmem:[%s17793_s11 + $0x1c4] ss:$8 sps:$4 sm:$0xff]   ;;  %v13343_v29 = vld [vmem:[%s17793_s11 + $0x1c0] ss:$8 sps:$4 sm:$0xff]  }
 0x945   : > { %v7681_v49 = vadd.f32 %v16920_v31, %v7353_v11  ;;  %11540 = vmatprep.subr.bf16.mxu1 %v7767_v63  ;;  %11652 = vmatprep.subr.bf16.mxu0 %v7767_v63  ;;  %v7719_v30 = vadd.f32 %v16907_v12, %v7680_v37  ;;  %v13316_v31 = vld [vmem:[%s17793_s11] ss:$8 sps:$4 sm:$0xff]   ;;  %v13382_v6 = vld [vmem:[%s17793_s11 + $0xb0] ss:$8 sps:$4 sm:$0xff]   ;;  %v13390_v1 = vld [vmem:[%s17793_s11 + $0xc4] ss:$8 sps:$4 sm:$0xff]  }
 0x946   : > { %11541 = vmatpush3.bf16.msra.mxu1 %v16972_v0  ;;  %11653 = vmatpush3.bf16.msra.mxu0 %v16972_v0  ;;  %v13442_v37 = vld [vmem:[%s17794_s12 + $0x70] sm:$0xff]   ;;  %v13388_v11 = vld [vmem:[%s17793_s11 + $0xc0] ss:$8 sps:$4 sm:$0xff]  }
 0x947   : > { %v7720_v60 = vadd.f32 %v16907_v12, %v7681_v49  ;;  %v7751_v33 = vmax.f32 %v7719_v30, 0.0  ;;  %v13297_v12 = vld [vmem:[%s17793_s11 + $0x114] ss:$8 sps:$4 sm:$0xff]  }
 0x948   : > { %v13396_v49 = vld [vmem:[%s17793_s11 + $0xd4] ss:$8 sps:$4 sm:$0xff]  }
 0x949   : > { %v7752_v23 = vmax.f32 %v7720_v60, 0.0  ;;  %v13443_v30 = vld [vmem:[%s17794_s12 + $0x78] sm:$0xff]  }
 0x94a   : > { %v13349_v60 = vld [vmem:[%s17793_s11 + $0x1d0] ss:$8 sps:$4 sm:$0xff]  }
 0x94b   : > { %v7768_v50 = vpack.c.bf16 %v7752_v23, %v7751_v33  ;;  %v13394_v33 = vld [vmem:[%s17793_s11 + $0xd0] ss:$8 sps:$4 sm:$0xff]   ;;  %v13357_v23 = vld [vmem:[%s17793_s11 + $0x1e4] ss:$8 sps:$4 sm:$0xff]  }
 0x94d   : > { %11542 = vmatprep.subr.bf16.mxu1 %v7768_v50  ;;  %11654 = vmatprep.subr.bf16.mxu0 %v7768_v50 }
 0x94e   : > { %11543 = vmatpush3.bf16.msra.mxu1 %v16983_v54  ;;  %11655 = vmatpush3.bf16.msra.mxu0 %v16983_v54 }
 0x94f   : > { %11800 = vmatprep.subr.bf16.mxu0 %v16991_v43  ;;  %v13322_v43 = vld [vmem:[%s17793_s11 + $0x10] ss:$8 sps:$4 sm:$0xff]   ;;  %12293 = vmatprep.subr.bf16.mxu1 %v13424_v16 }
 0x951   : > { %8380 = vmatmul.mubr.bf16.vlgmr.msra.gmra.mrb[16].mxu0 %v13292_v7  ;;  %7994 = vmatmul.mubr.bf16.vlgmr.msra.gmra.mrb[208].mxu1 %v13316_v31  ;;  %v13355_v7 = vld [vmem:[%s17793_s11 + $0x1e0] ss:$8 sps:$4 sm:$0xff]  }
 0x952   : > { %11801 = vmatpush3.bf16.msra.mxu0 %v16924_v4  ;;  %8387 = vmatprep.mubr.bf16.mxu0 %v13297_v12  ;;  %v13330_v4 = vld [vmem:[%s17793_s11 + $0x24] ss:$8 sps:$4 sm:$0xff]   ;;  %v13400_v31 = vld [vmem:[%s17793_s11 + $0xe0] ss:$8 sps:$4 sm:$0xff]   ;;  %v13363_v12 = vld [vmem:[%s17793_s11 + $0x1f4] ss:$8 sps:$4 sm:$0xff]  }
 0x953   : > { %11802 = vmatprep.subr.bf16.mxu0 %v17003_v26  ;;  %8001 = vmatprep.mubr.bf16.mxu1 %v13324_v39  ;;  %v13328_v26 = vld [vmem:[%s17793_s11 + $0x20] ss:$8 sps:$4 sm:$0xff]   ;;  %v13408_v39 = vld [vmem:[%s17793_s11 + $0xf4] ss:$8 sps:$4 sm:$0xff]  }
 0x954   : > { %12294 = vmatpush3.bf16.msra.mxu1 %v13424_v16 }
 0x955   : > { %12295 = vmatprep.subr.bf16.mxu1 %v13431_v62 }
 0x956   : > { %11803 = vmatpush3.bf16.msra.mxu0 %v16932_v38  ;;  %v13298_v38 = vld [vmem:[%s17793_s11 + $0x120] ss:$8 sps:$4 sm:$0xff]  }
 0x957   : > { %11804 = vmatprep.subr.bf16.mxu0 %v17015_v2  ;;  %v13303_v2 = vld [vmem:[%s17793_s11 + $0x134] ss:$8 sps:$4 sm:$0xff]  }
 0x958   : > { %12296 = vmatpush3.bf16.msra.mxu1 %v13431_v62 }
 0x959   : > { %8388 = vmatmul.mubr.bf16.gmra.mrb[20].mxu0 %v13295_v45  ;;  %8002 = vmatmul.mubr.bf16.gmra.mrb[212].mxu1 %v13322_v43  ;;  %v13361_v45 = vld [vmem:[%s17793_s11 + $0x1f0] ss:$8 sps:$4 sm:$0xff]  }
 0x95a   : > { %11805 = vmatpush3.bf16.msra.mxu0 %v16940_v25  ;;  %8395 = vmatprep.mubr.bf16.mxu0 %v13300_v51  ;;  %v13336_v25 = vld [vmem:[%s17793_s11 + $0x34] ss:$8 sps:$4 sm:$0xff]   ;;  %v13406_v43 = vld [vmem:[%s17793_s11 + $0xf0] ss:$8 sps:$4 sm:$0xff]   ;;  %v13369_v51 = vld [vmem:[%s17793_s11 + $0x204] ss:$8 sps:$4 sm:$0xff]  }
 0x95b   : > { %11806 = vmatprep.subr.bf16.mxu0 %v17027_v21  ;;  %8009 = vmatprep.mubr.bf16.mxu1 %v13330_v4  ;;  %v13334_v21 = vld [vmem:[%s17793_s11 + $0x30] ss:$8 sps:$4 sm:$0xff]   ;;  %v13367_v4 = vld [vmem:[%s17793_s11 + $0x200] ss:$8 sps:$4 sm:$0xff]  }
 0x95c   : > { %12297 = vmatprep.subr.bf16.mxu1 %v13438_v55 }
 0x95d   : > { %12298 = vmatpush3.bf16.msra.mxu1 %v13438_v55 }
 0x95e   : > { %11807 = vmatpush3.bf16.msra.mxu0 %v16948_v32  ;;  %v13301_v32 = vld [vmem:[%s17793_s11 + $0x130] ss:$8 sps:$4 sm:$0xff]   ;;  %12299 = vmatprep.subr.bf16.mxu1 %v13439_v58 }
 0x95f   : > { %11808 = vmatprep.subr.bf16.mxu0 %v17039_v18  ;;  %v13307_v18 = vld [vmem:[%s17793_s11 + $0x150] ss:$8 sps:$4 sm:$0xff]  }
 0x961   : > { %8396 = vmatmul.mubr.bf16.gmra.mrb[24].mxu0 %v13298_v38  ;;  %8010 = vmatmul.mubr.bf16.gmra.mrb[216].mxu1 %v13328_v26  ;;  %v13375_v38 = vld [vmem:[%s17793_s11 + $0x214] ss:$8 sps:$4 sm:$0xff]   ;;  %v13373_v26 = vld [vmem:[%s17793_s11 + $0x210] ss:$8 sps:$4 sm:$0xff]  }
 0x962   : > { %11809 = vmatpush3.bf16.msra.mxu0 %v16956_v10  ;;  %8403 = vmatprep.mubr.bf16.mxu0 %v13303_v2  ;;  %v13342_v10 = vld [vmem:[%s17793_s11 + $0x44] ss:$8 sps:$4 sm:$0xff]  }
 0x963   : > { %11810 = vmatprep.subr.bf16.mxu0 %v17051_v9  ;;  %8017 = vmatprep.mubr.bf16.mxu1 %v13336_v25  ;;  %v13370_v9 = vld [vmem:[%s17793_s11 + $0x90] ss:$8 sps:$4 sm:$0xff]   ;;  %v13381_v2 = vld [vmem:[%s17793_s11 + $0x224] ss:$8 sps:$4 sm:$0xff]   ;;  %v13379_v25 = vld [vmem:[%s17793_s11 + $0x220] ss:$8 sps:$4 sm:$0xff]  }
 0x964   : > { %12300 = vmatpush3.bf16.msra.mxu1 %v13439_v58 }
 0x965   : > { %12301 = vmatprep.subr.bf16.mxu1 %v13440_v56 }
 0x966   : > { %11811 = vmatpush3.bf16.msra.mxu0 %v16964_v19  ;;  %v13304_v19 = vld [vmem:[%s17793_s11 + $0x140] ss:$8 sps:$4 sm:$0xff]  }
 0x967   : > { %11812 = vmatprep.subr.bf16.mxu0 %v7767_v63  ;;  %v13351_v63 = vld [vmem:[%s17793_s11 + $0x1d4] ss:$8 sps:$4 sm:$0xff]  }
 0x968   : > { %12302 = vmatpush3.bf16.msra.mxu1 %v13440_v56  ;;  %v13425_v56 = vld [vmem:[%s17793_s11 + $0x2c0] ss:$8 sps:$4 sm:$0xff]  }
 0x969   : > { %8404 = vmatmul.mubr.bf16.gmra.mrb[28].mxu0 %v13301_v32  ;;  %8018 = vmatmul.mubr.bf16.gmra.mrb[220].mxu1 %v13334_v21  ;;  %v13387_v32 = vld [vmem:[%s17793_s11 + $0x234] ss:$8 sps:$4 sm:$0xff]   ;;  %v13385_v21 = vld [vmem:[%s17793_s11 + $0x230] ss:$8 sps:$4 sm:$0xff]  }
 0x96a   : > { %11813 = vmatpush3.bf16.msra.mxu0 %v16972_v0  ;;  %8411 = vmatprep.mubr.bf16.mxu0 %v13306_v40  ;;  %v13348_v0 = vld [vmem:[%s17793_s11 + $0x54] ss:$8 sps:$4 sm:$0xff]   ;;  %v13393_v40 = vld [vmem:[%s17793_s11 + $0x244] ss:$8 sps:$4 sm:$0xff]  }
 0x96b   : > { %11814 = vmatprep.subr.bf16.mxu0 %v7768_v50  ;;  %8025 = vmatprep.mubr.bf16.mxu1 %v13342_v10  ;;  %v13402_v50 = vld [vmem:[%s17793_s11 + $0xe4] ss:$8 sps:$4 sm:$0xff]   ;;  %v13391_v10 = vld [vmem:[%s17793_s11 + $0x240] ss:$8 sps:$4 sm:$0xff]  }
 0x96c   : > { %12303 = vmatprep.subr.bf16.mxu1 %v13441_v17 }
 0x96d   : > { %12304 = vmatpush3.bf16.msra.mxu1 %v13441_v17 }
 0x96e   : > { %11815 = vmatpush3.bf16.msra.mxu0 %v16983_v54  ;;  %v13346_v54 = vld [vmem:[%s17793_s11 + $0x50] ss:$8 sps:$4 sm:$0xff]   ;;  %12305 = vmatprep.subr.bf16.mxu1 %v13442_v37 }
 0x971   : > { %8412 = vmatmul.mubr.bf16.gmra.mrb[32].mxu0 %v13304_v19  ;;  %8026 = vmatmul.mubr.bf16.gmra.mrb[224].mxu1 %v13340_v42  ;;  %v13399_v19 = vld [vmem:[%s17793_s11 + $0x254] ss:$8 sps:$4 sm:$0xff]   ;;  %v13397_v42 = vld [vmem:[%s17793_s11 + $0x250] ss:$8 sps:$4 sm:$0xff]  }
 0x972   : > { %8419 = vmatprep.mubr.bf16.mxu0 %v13309_v48  ;;  %8033 = vmatprep.mubr.bf16.mxu1 %v13348_v0  ;;  %v13405_v48 = vld [vmem:[%s17793_s11 + $0x264] ss:$8 sps:$4 sm:$0xff]  }
 0x973   : > { %12306 = vmatpush3.bf16.msra.mxu1 %v13442_v37  ;;  %v17336_v0 = vld [vmem:[%s17794_s12] sm:$0xff]  }
 0x974   : > { %12307 = vmatprep.subr.bf16.mxu1 %v13443_v30 }
 0x977   : > { %12308 = vmatpush3.bf16.msra.mxu1 %v13443_v30 }
 0x978   : > { %12341 = vmatprep.subr.bf16.mxu1 %v17336_v0 }
 0x979   : > { %8420 = vmatmul.mubr.bf16.gmra.mrb[36].mxu0 %v13307_v18  ;;  %8034 = vmatmul.mubr.bf16.gmra.mrb[228].mxu1 %v13346_v54  ;;  %v13403_v18 = vld [vmem:[%s17793_s11 + $0x260] ss:$8 sps:$4 sm:$0xff]   ;;  %v13411_v54 = vld [vmem:[%s17793_s11 + $0x274] ss:$8 sps:$4 sm:$0xff]  }
 0x97a   : > { %8427 = vmatprep.mubr.bf16.mxu0 %v13312_v5  ;;  %8041 = vmatprep.mubr.bf16.mxu1 %v13354_v41  ;;  %v13409_v5 = vld [vmem:[%s17793_s11 + $0x270] ss:$8 sps:$4 sm:$0xff]   ;;  %v13414_v41 = vld [vmem:[%s17793_s11 + $0x284] ss:$8 sps:$4 sm:$0xff]  }
 0x981   : > { %8428 = vmatmul.mubr.bf16.gmra.mrb[0].mxu0 %v13310_v59  ;;  %8042 = vmatmul.mubr.bf16.gmra.mrb[232].mxu1 %v13352_v57  ;;  %v13412_v59 = vld [vmem:[%s17793_s11 + $0x280] ss:$8 sps:$4 sm:$0xff]   ;;  %v13417_v57 = vld [vmem:[%s17793_s11 + $0x294] ss:$8 sps:$4 sm:$0xff]  }
 0x982   : > { %8435 = vmatprep.mubr.bf16.mxu0 %v13315_v13  ;;  %8049 = vmatprep.mubr.bf16.mxu1 %v13360_v8  ;;  %v13415_v13 = vld [vmem:[%s17793_s11 + $0x290] ss:$8 sps:$4 sm:$0xff]   ;;  %v13420_v8 = vld [vmem:[%s17793_s11 + $0x2a4] ss:$8 sps:$4 sm:$0xff]  }
 0x989   : > { %8436 = vmatmul.mubr.bf16.gmra.mrb[4].mxu0 %v13313_v46  ;;  %8050 = vmatmul.mubr.bf16.gmra.mrb[236].mxu1 %v13358_v34  ;;  %v13418_v46 = vld [vmem:[%s17793_s11 + $0x2a0] ss:$8 sps:$4 sm:$0xff]   ;;  %v13423_v34 = vld [vmem:[%s17793_s11 + $0x2b4] ss:$8 sps:$4 sm:$0xff]  }
 0x98a   : > { %8443 = vmatprep.mubr.bf16.mxu0 %v13321_v61  ;;  %8057 = vmatprep.mubr.bf16.mxu1 %v13366_v47 }
 0x991   : > { %8444 = vmatmul.mubr.bf16.gmra.mrb[8].mxu0 %v13319_v52  ;;  %8058 = vmatmul.mubr.bf16.gmra.mrb[240].mxu1 %v13364_v28  ;;  %v13421_v52 = vld [vmem:[%s17793_s11 + $0x2b0] ss:$8 sps:$4 sm:$0xff]  }
 0x992   : > { %8451 = vmatprep.mubr.bf16.mxu0 %v13327_v27  ;;  %8065 = vmatprep.mubr.bf16.mxu1 %v13372_v22  ;;  %v13427_v22 = vld [vmem:[%s17793_s11 + $0x2c4] ss:$8 sps:$4 sm:$0xff]  }
 0x999   : > { %8452 = vmatmul.mubr.bf16.gmra.mrb[12].mxu0 %v13325_v15  ;;  %8066 = vmatmul.mubr.bf16.gmra.mrb[244].mxu1 %v13370_v9 }
 0x99a   : > { %8459 = vmatprep.mubr.bf16.mxu0 %v13333_v3  ;;  %8073 = vmatprep.mubr.bf16.mxu1 %v13378_v14 }
 0x9a1   : > { %8460 = vmatmul.mubr.bf16.gmra.mrb[40].mxu0 %v13331_v24  ;;  %8074 = vmatmul.mubr.bf16.gmra.mrb[248].mxu1 %v13376_v36 }
 0x9a2   : > { %8467 = vmatprep.mubr.bf16.mxu0 %v13339_v44  ;;  %8081 = vmatprep.mubr.bf16.mxu1 %v13384_v35 }
 0x9a9   : > { %8468 = vmatmul.mubr.bf16.gmra.mrb[44].mxu0 %v13337_v53  ;;  %8082 = vmatmul.mubr.bf16.gmra.mrb[252].mxu1 %v13382_v6 }
 0x9aa   : > { %8475 = vmatprep.mubr.bf16.mxu0 %v13345_v20  ;;  %8089 = vmatprep.mubr.bf16.mxu1 %v13390_v1  ;;  %v13430_v20 = vld [vmem:[%s17793_s11 + $0x2d4] ss:$8 sps:$4 sm:$0xff]  }
 0x9b1   : > { %8476 = vmatmul.mubr.bf16.gmra.mrb[48].mxu0 %v13343_v29  ;;  %8090 = vmatmul.mubr.bf16.gmra.mrb[0].mxu1 %v13388_v11 }
 0x9b2   : > { %8483 = vmatprep.mubr.bf16.mxu0 %v13351_v63  ;;  %8097 = vmatprep.mubr.bf16.mxu1 %v13396_v49 }
 0x9b9   : > { %8484 = vmatmul.mubr.bf16.gmra.mrb[52].mxu0 %v13349_v60  ;;  %8098 = vmatmul.mubr.bf16.gmra.mrb[4].mxu1 %v13394_v33  ;;  %v13445_v33 = vld [vmem:[%s17794_s12 + $0x8] sm:$0xff]  }
 0x9ba   : > { %8491 = vmatprep.mubr.bf16.mxu0 %v13357_v23  ;;  %8105 = vmatprep.mubr.bf16.mxu1 %v13402_v50 }
 0x9c1   : > { %8492 = vmatmul.mubr.bf16.gmra.mrb[56].mxu0 %v13355_v7  ;;  %8106 = vmatmul.mubr.bf16.gmra.mrb[8].mxu1 %v13400_v31  ;;  %v13428_v31 = vld [vmem:[%s17793_s11 + $0x2d0] ss:$8 sps:$4 sm:$0xff]  }
 0x9c2   : > { %8499 = vmatprep.mubr.bf16.mxu0 %v13363_v12  ;;  %8113 = vmatprep.mubr.bf16.mxu1 %v13408_v39 }
 0x9c9   : > { %8500 = vmatmul.mubr.bf16.gmra.mrb[60].mxu0 %v13361_v45  ;;  %8114 = vmatmul.mubr.bf16.gmra.mrb[12].mxu1 %v13406_v43  ;;  %v13434_v45 = vld [vmem:[%s17793_s11 + $0x2e4] ss:$8 sps:$4 sm:$0xff]  }
 0x9ca   : > { %9184 = vmatprep.mubr.bf16.mxu0 %v13369_v51 }
 0x9d1   : > { %9185 = vmatmul.mubr.bf16.vlgmr.msra.gmra.mrb[64].mxu0 %v13367_v4  ;;  %v13446_v4 = vld [vmem:[%s17794_s12 + $0x10] sm:$0xff]  }
 0x9d2   : > { %9192 = vmatprep.mubr.bf16.mxu0 %v13375_v38 }
 0x9d9   : > { %9193 = vmatmul.mubr.bf16.gmra.mrb[68].mxu0 %v13373_v26 }
 0x9da   : > { %9200 = vmatprep.mubr.bf16.mxu0 %v13381_v2 }
 0x9e1   : > { %9201 = vmatmul.mubr.bf16.gmra.mrb[72].mxu0 %v13379_v25 }
 0x9e2   : > { %9208 = vmatprep.mubr.bf16.mxu0 %v13387_v32 }
 0x9e9   : > { %9209 = vmatmul.mubr.bf16.gmra.mrb[76].mxu0 %v13385_v21 }
 0x9ea   : > { %9216 = vmatprep.mubr.bf16.mxu0 %v13393_v40 }
 0x9f1   : > { %9217 = vmatmul.mubr.bf16.gmra.mrb[80].mxu0 %v13391_v10  ;;  %v13447_v10 = vld [vmem:[%s17794_s12 + $0x18] sm:$0xff]  }
 0x9f2   : > { %9224 = vmatprep.mubr.bf16.mxu0 %v13399_v19 }
 0x9f9   : > { %9225 = vmatmul.mubr.bf16.gmra.mrb[84].mxu0 %v13397_v42 }
 0x9fa   : > { %9232 = vmatprep.mubr.bf16.mxu0 %v13405_v48 }
 0xa01   : > { %9233 = vmatmul.mubr.bf16.gmra.mrb[88].mxu0 %v13403_v18 }
 0xa02   : > { %9240 = vmatprep.mubr.bf16.mxu0 %v13411_v54 }
 0xa09   : > { %9241 = vmatmul.mubr.bf16.gmra.mrb[92].mxu0 %v13409_v5  ;;  %v13437_v5 = vld [vmem:[%s17793_s11 + $0x2f4] ss:$8 sps:$4 sm:$0xff]  }
 0xa0a   : > { %9248 = vmatprep.mubr.bf16.mxu0 %v13414_v41 }
 0xa11   : > { %9249 = vmatmul.mubr.bf16.gmra.mrb[96].mxu0 %v13412_v59 }
 0xa12   : > { %9256 = vmatprep.mubr.bf16.mxu0 %v13417_v57  ;;  %v13448_v57 = vld [vmem:[%s17794_s12 + $0x20] sm:$0xff]  }
 0xa19   : > { %9257 = vmatmul.mubr.bf16.gmra.mrb[100].mxu0 %v13415_v13 }
 0xa1a   : > { %9264 = vmatprep.mubr.bf16.mxu0 %v13420_v8 }
 0xa21   : > { %9265 = vmatmul.mubr.bf16.gmra.mrb[104].mxu0 %v13418_v46 }
 0xa22   : > { %9272 = vmatprep.mubr.bf16.mxu0 %v13423_v34 }
 0xa24   : > { %v11656_v61 = vpop.f32.mrb[16].mxu0  ;;  %v11544_v47 = vpop.f32.mrb[208].mxu1 }
 0xa25   : > { %v11657_v28 = vpop.f32.mrb[17].mxu0  ;;  %v11545_v27 = vpop.f32.mrb[209].mxu1 }
 0xa26   : > { %v11658_v16 = vadd.f32 %v11657_v28, %v11656_v61  ;;  %v11659_v15 = vpop.f32.mrb[18].mxu0  ;;  %v17375_v9 = vadd.f32 %v11545_v27, %v11544_v47  ;;  %v11547_v3 = vpop.f32.mrb[210].mxu1  ;;  %v13449_v28 = vld [vmem:[%s17794_s12 + $0x28] sm:$0xff]  }
 0xa27   : > { %v11660_v14 = vpop.f32.mrb[19].mxu0  ;;  %v11548_v62 = vpop.f32.mrb[211].mxu1 }
 0xa28   : > { %v11661_v55 = vadd.f32 %v11660_v14, %v11659_v15  ;;  %v17377_v24 = vadd.f32 %v11548_v62, %v11547_v3  ;;  %v13435_v15 = vld [vmem:[%s17793_s11 + $0x2f0] ss:$8 sps:$4 sm:$0xff]  }
 0xa29   : > { %9273 = vmatmul.mubr.bf16.gmra.mrb[108].mxu0 %v13421_v52 }
 0xa2a   : > { %9280 = vmatprep.mubr.bf16.mxu0 %v13427_v22  ;;  %v8508_v36 = vpack.c.bf16 %v11661_v55, %v11658_v16  ;;  %v8122_v44 = vpack.c.bf16 %v17377_v24, %v17375_v9 }
 0xa2c   : > { %v11662_v35 = vpop.f32.mrb[20].mxu0  ;;  %12309 = vmatprep.mubr.bf16.mxu1 %v8508_v36  ;;  %v11550_v58 = vpop.f32.mrb[212].mxu1  ;;  %v13450_v36 = vld [vmem:[%s17794_s12 + $0x30] sm:$0xff]  }
 0xa2d   : > { %v11663_v53 = vpop.f32.mrb[21].mxu0  ;;  %v11551_v6 = vpop.f32.mrb[213].mxu1 }
 0xa2e   : > { %v11664_v1 = vadd.f32 %v11663_v53, %v11662_v35  ;;  %v11665_v17 = vpop.f32.mrb[22].mxu0  ;;  %v17387_v37 = vadd.f32 %v11551_v6, %v11550_v58  ;;  %v11553_v29 = vpop.f32.mrb[214].mxu1 }
 0xa2f   : > { %v11666_v11 = vpop.f32.mrb[23].mxu0  ;;  %v11554_v63 = vpop.f32.mrb[215].mxu1 }
 0xa30   : > { %v11667_v49 = vadd.f32 %v11666_v11, %v11665_v17  ;;  %v17389_v30 = vadd.f32 %v11554_v63, %v11553_v29  ;;  %v13451_v17 = vld [vmem:[%s17794_s12 + $0x38] sm:$0xff]  }
 0xa31   : > { %9281 = vmatmul.mubr.bf16.gmra.mrb[112].mxu0 %v13425_v56 }
 0xa32   : > { %9288 = vmatprep.mubr.bf16.mxu0 %v13430_v20  ;;  %v8509_v60 = vpack.c.bf16 %v11667_v49, %v11664_v1  ;;  %v8123_v23 = vpack.c.bf16 %v17389_v30, %v17387_v37  ;;  %v13455_v37 = vld [vmem:[%s17794_s12 + $0x98] sm:$0xff]  }
 0xa34   : > { %v11668_v50 = vpop.f32.mrb[24].mxu0  ;;  %12310 = vmatmul.mubr.bf16.vlgmr.msra.gmra.mrb[16].mxu1 %v8509_v60  ;;  %v11556_v7 = vpop.f32.mrb[216].mxu1 }
 0xa35   : > { %v11669_v12 = vpop.f32.mrb[25].mxu0  ;;  %12342 = vmatpush3.bf16.msra.mxu1 %v17336_v0  ;;  %v11557_v39 = vpop.f32.mrb[217].mxu1  ;;  %v13432_v0 = vld [vmem:[%s17793_s11 + $0x2e0] ss:$8 sps:$4 sm:$0xff]  }
 0xa36   : > { %v11670_v43 = vadd.f32 %v11669_v12, %v11668_v50  ;;  %v11671_v51 = vpop.f32.mrb[26].mxu0  ;;  %12343 = vmatprep.subr.bf16.mxu1 %v13445_v33  ;;  %v17406_v38 = vadd.f32 %v11557_v39, %v11556_v7  ;;  %v11559_v26 = vpop.f32.mrb[218].mxu1  ;;  %v17453_v12 = vld [vmem:[%s17794_s12 + $0x80] sm:$0xff]  }
 0xa37   : > { %v11672_v2 = vpop.f32.mrb[27].mxu0  ;;  %v11560_v25 = vpop.f32.mrb[219].mxu1 }
 0xa38   : > { %v11673_v32 = vadd.f32 %v11672_v2, %v11671_v51  ;;  %v17408_v21 = vadd.f32 %v11560_v25, %v11559_v26 }
 0xa39   : > { %9289 = vmatmul.mubr.bf16.gmra.mrb[116].mxu0 %v13428_v31  ;;  %12344 = vmatpush3.bf16.msra.mxu1 %v13445_v33 }
 0xa3a   : > { %9296 = vmatprep.mubr.bf16.mxu0 %v13434_v45  ;;  %v8510_v40 = vpack.c.bf16 %v11673_v32, %v11670_v43  ;;  %12345 = vmatprep.subr.bf16.mxu1 %v13446_v4  ;;  %v8124_v19 = vpack.c.bf16 %v17408_v21, %v17406_v38  ;;  %v13456_v21 = vld [vmem:[%s17794_s12 + $0xa0] sm:$0xff]  }
 0xa3c   : > { %v11674_v42 = vpop.f32.mrb[28].mxu0  ;;  %12313 = vmatprep.mubr.bf16.mxu1 %v8510_v40  ;;  %v11562_v48 = vpop.f32.mrb[220].mxu1 }
 0xa3d   : > { %v11675_v18 = vpop.f32.mrb[29].mxu0  ;;  %12346 = vmatpush3.bf16.msra.mxu1 %v13446_v4  ;;  %v11563_v54 = vpop.f32.mrb[221].mxu1 }
 0xa3e   : > { %v11676_v41 = vadd.f32 %v11675_v18, %v11674_v42  ;;  %v11677_v59 = vpop.f32.mrb[30].mxu0  ;;  %12347 = vmatprep.subr.bf16.mxu1 %v13447_v10  ;;  %v17424_v13 = vadd.f32 %v11563_v54, %v11562_v48  ;;  %v11565_v8 = vpop.f32.mrb[222].mxu1 }
 0xa3f   : > { %v11678_v46 = vpop.f32.mrb[31].mxu0  ;;  %v11566_v34 = vpop.f32.mrb[223].mxu1 }
 0xa40   : > { %v11679_v61 = vadd.f32 %v11678_v46, %v11677_v59  ;;  %v17426_v47 = vadd.f32 %v11566_v34, %v11565_v8 }
 0xa41   : > { %9297 = vmatmul.mubr.bf16.gmra.mrb[120].mxu0 %v13432_v0  ;;  %12348 = vmatpush3.bf16.msra.mxu1 %v13447_v10 }
 0xa42   : > { %9304 = vmatprep.mubr.bf16.mxu0 %v13437_v5  ;;  %v8511_v52 = vpack.c.bf16 %v11679_v61, %v11676_v41  ;;  %12349 = vmatprep.subr.bf16.mxu1 %v13448_v57  ;;  %v8125_v27 = vpack.c.bf16 %v17426_v47, %v17424_v13  ;;  %v13457_v13 = vld [vmem:[%s17794_s12 + $0xa8] sm:$0xff]  }
 0xa44   : > { %v11680_v22 = vpop.f32.mrb[32].mxu0  ;;  %12314 = vmatmul.mubr.bf16.gmra.mrb[20].mxu1 %v8511_v52  ;;  %v11568_v16 = vpop.f32.mrb[224].mxu1 }
 0xa45   : > { %v11681_v3 = vpop.f32.mrb[33].mxu0  ;;  %12350 = vmatpush3.bf16.msra.mxu1 %v13448_v57  ;;  %v11569_v14 = vpop.f32.mrb[225].mxu1 }
 0xa46   : > { %v11682_v62 = vadd.f32 %v11681_v3, %v11680_v22  ;;  %v11683_v55 = vpop.f32.mrb[34].mxu0  ;;  %12351 = vmatprep.subr.bf16.mxu1 %v13449_v28  ;;  %v17439_v35 = vadd.f32 %v11569_v14, %v11568_v16  ;;  %v11571_v58 = vpop.f32.mrb[226].mxu1 }
 0xa47   : > { %v11684_v56 = vpop.f32.mrb[35].mxu0  ;;  %v11572_v53 = vpop.f32.mrb[227].mxu1 }
 0xa48   : > { %v11685_v6 = vadd.f32 %v11684_v56, %v11683_v55  ;;  %v17441_v20 = vadd.f32 %v11572_v53, %v11571_v58  ;;  %v9664_v53 = vld [vmem:[%s17796_s14] sm:$0x3] }
 0xa49   : > { %9305 = vmatmul.mubr.bf16.gmra.mrb[124].mxu0 %v13435_v15  ;;  %12352 = vmatpush3.bf16.msra.mxu1 %v13449_v28 }
 0xa4a   : > { %v8512_v1 = vpack.c.bf16 %v11685_v6, %v11682_v62  ;;  %12353 = vmatprep.subr.bf16.mxu1 %v13450_v36  ;;  %v8126_v29 = vpack.c.bf16 %v17441_v20, %v17439_v35  ;;  %12823 = vmatprep.subr.msk.bf16.mxu0 %vm9679_vm10, %v9664_v53  ;;  %v13458_v20 = vld [vmem:[%s17794_s12 + $0xb0] sm:$0xff]  }
 0xa4c   : > { %v11686_v11 = vpop.f32.mrb[36].mxu0  ;;  %12317 = vmatprep.mubr.bf16.mxu1 %v8512_v1  ;;  %v11574_v63 = vpop.f32.mrb[228].mxu1 }
 0xa4d   : > { %v11687_v49 = vpop.f32.mrb[37].mxu0  ;;  %12354 = vmatpush3.bf16.msra.mxu1 %v13450_v36  ;;  %v11575_v60 = vpop.f32.mrb[229].mxu1 }
 0xa4e   : > { %v11688_v33 = vadd.f32 %v11687_v49, %v11686_v11  ;;  %v11689_v50 = vpop.f32.mrb[38].mxu0  ;;  %12355 = vmatprep.subr.bf16.mxu1 %v13451_v17  ;;  %v17448_v7 = vadd.f32 %v11575_v60, %v11574_v63  ;;  %v11577_v31 = vpop.f32.mrb[230].mxu1 }
 0xa4f   : > { %v11690_v39 = vpop.f32.mrb[39].mxu0  ;;  %v11578_v45 = vpop.f32.mrb[231].mxu1 }
 0xa50   : > { %v11691_v43 = vadd.f32 %v11690_v39, %v11689_v50  ;;  %v17455_v51 = vadd.f32 %v11578_v45, %v11577_v31 }
 0xa51   : > { %12356 = vmatpush3.bf16.msra.mxu1 %v13451_v17  ;;  %v9681_v17 = vsel %vm9679_vm10, %v9664_v53, 0 }
 0xa52   : > { %v8513_v4 = vpack.c.bf16 %v11691_v43, %v11688_v33  ;;  %v8127_v26 = vpack.c.bf16 %v17455_v51, %v17448_v7  ;;  %12389 = vmatprep.subr.bf16.mxu1 %v17453_v12  ;;  %12438 = vmatpush3.bf16.msra.mxu0 %v9681_v17  ;;  %v13459_v7 = vld [vmem:[%s17794_s12 + $0xb8] sm:$0xff]  }
 0xa54   : > { %v11692_v2 = vpop.f32.mrb[0].mxu0  ;;  %12318 = vmatmul.mubr.bf16.gmra.mrb[24].mxu1 %v8513_v4  ;;  %v11580_v25 = vpop.f32.mrb[232].mxu1 }
 0xa55   : > { %v11693_v32 = vpop.f32.mrb[1].mxu0  ;;  %v11581_v40 = vpop.f32.mrb[233].mxu1 }
 0xa56   : > { %v11694_v10 = vadd.f32 %v11693_v32, %v11692_v2  ;;  %v11695_v42 = vpop.f32.mrb[2].mxu0  ;;  %v17460_v48 = vadd.f32 %v11581_v40, %v11580_v25  ;;  %v11583_v0 = vpop.f32.mrb[234].mxu1 }
 0xa57   : > { %v11696_v18 = vpop.f32.mrb[3].mxu0  ;;  %v11584_v54 = vpop.f32.mrb[235].mxu1 }
 0xa58   : > { %v11697_v5 = vadd.f32 %v11696_v18, %v11695_v42  ;;  %v17462_v41 = vadd.f32 %v11584_v54, %v11583_v0 }
 0xa5a   : > { %v8514_v59 = vpack.c.bf16 %v11697_v5, %v11694_v10  ;;  %v8128_v57 = vpack.c.bf16 %v17462_v41, %v17460_v48 }
 0xa5c   : > { %v11698_v8 = vpop.f32.mrb[4].mxu0  ;;  %12321 = vmatprep.mubr.bf16.mxu1 %v8514_v59  ;;  %v11586_v46 = vpop.f32.mrb[236].mxu1 }
 0xa5d   : > { %v11699_v34 = vpop.f32.mrb[5].mxu0  ;;  %v11587_v61 = vpop.f32.mrb[237].mxu1 }
 0xa5e   : > { %v11700_v52 = vadd.f32 %v11699_v34, %v11698_v8  ;;  %v11701_v28 = vpop.f32.mrb[6].mxu0  ;;  %v17466_v22 = vadd.f32 %v11587_v61, %v11586_v46  ;;  %v11589_v16 = vpop.f32.mrb[238].mxu1 }
 0xa5f   : > { %v11702_v15 = vpop.f32.mrb[7].mxu0  ;;  %v11590_v3 = vpop.f32.mrb[239].mxu1 }
 0xa60   : > { %v11703_v14 = vadd.f32 %v11702_v15, %v11701_v28  ;;  %v17468_v62 = vadd.f32 %v11590_v3, %v11589_v16 }
 0xa62   : > { %v8515_v55 = vpack.c.bf16 %v11703_v14, %v11700_v52  ;;  %v8129_v36 = vpack.c.bf16 %v17468_v62, %v17466_v22 }
 0xa64   : > { %v11704_v58 = vpop.f32.mrb[8].mxu0  ;;  %12322 = vmatmul.mubr.bf16.gmra.mrb[28].mxu1 %v8515_v55  ;;  %v11592_v56 = vpop.f32.mrb[240].mxu1 }
 0xa65   : > { %v11705_v6 = vpop.f32.mrb[9].mxu0  ;;  %v11593_v1 = vpop.f32.mrb[241].mxu1 }
 0xa66   : > { %v11706_v11 = vadd.f32 %v11705_v6, %v11704_v58  ;;  %v11707_v63 = vpop.f32.mrb[10].mxu0  ;;  %v17475_v49 = vadd.f32 %v11593_v1, %v11592_v56  ;;  %v11595_v60 = vpop.f32.mrb[242].mxu1 }
 0xa67   : > { %v11708_v33 = vpop.f32.mrb[11].mxu0  ;;  %v11596_v50 = vpop.f32.mrb[243].mxu1 }
 0xa68   : > { %v11709_v31 = vadd.f32 %v11708_v33, %v11707_v63  ;;  %v17477_v39 = vadd.f32 %v11596_v50, %v11595_v60 }
 0xa6a   : > { %v8516_v45 = vpack.c.bf16 %v11709_v31, %v11706_v11  ;;  %v8130_v43 = vpack.c.bf16 %v17477_v39, %v17475_v49 }
 0xa6c   : > { %v11710_v4 = vpop.f32.mrb[12].mxu0  ;;  %12325 = vmatprep.mubr.bf16.mxu1 %v8516_v45  ;;  %v11598_v2 = vpop.f32.mrb[244].mxu1 }
 0xa6d   : > { %v11711_v25 = vpop.f32.mrb[13].mxu0  ;;  %v11599_v32 = vpop.f32.mrb[245].mxu1 }
 0xa6e   : > { %v11712_v40 = vadd.f32 %v11711_v25, %v11710_v4  ;;  %v11713_v10 = vpop.f32.mrb[14].mxu0  ;;  %v17481_v42 = vadd.f32 %v11599_v32, %v11598_v2  ;;  %v11601_v0 = vpop.f32.mrb[246].mxu1 }
 0xa6f   : > { %v11714_v18 = vpop.f32.mrb[15].mxu0  ;;  %v11602_v54 = vpop.f32.mrb[247].mxu1 }
 0xa70   : > { %v11715_v5 = vadd.f32 %v11714_v18, %v11713_v10  ;;  %v17483_v59 = vadd.f32 %v11602_v54, %v11601_v0 }
 0xa72   : > { %v8517_v8 = vpack.c.bf16 %v11715_v5, %v11712_v40  ;;  %v8131_v46 = vpack.c.bf16 %v17483_v59, %v17481_v42 }
 0xa74   : > { %v11716_v34 = vpop.f32.mrb[40].mxu0  ;;  %12326 = vmatmul.mubr.bf16.gmra.mrb[32].mxu1 %v8517_v8  ;;  %v11604_v61 = vpop.f32.mrb[248].mxu1 }
 0xa75   : > { %v11717_v52 = vpop.f32.mrb[41].mxu0  ;;  %v11605_v28 = vpop.f32.mrb[249].mxu1 }
 0xa76   : > { %v11718_v16 = vadd.f32 %v11717_v52, %v11716_v34  ;;  %v11719_v15 = vpop.f32.mrb[42].mxu0  ;;  %v17487_v3 = vadd.f32 %v11605_v28, %v11604_v61  ;;  %v11607_v14 = vpop.f32.mrb[250].mxu1 }
 0xa77   : > { %v11720_v55 = vpop.f32.mrb[43].mxu0  ;;  %v11608_v58 = vpop.f32.mrb[251].mxu1 }
 0xa78   : > { %v11721_v56 = vadd.f32 %v11720_v55, %v11719_v15  ;;  %v17489_v53 = vadd.f32 %v11608_v58, %v11607_v14 }
 0xa7a   : > { %v8518_v6 = vpack.c.bf16 %v11721_v56, %v11718_v16  ;;  %v8132_v1 = vpack.c.bf16 %v17489_v53, %v17487_v3 }
 0xa7c   : > { %v11722_v17 = vpop.f32.mrb[44].mxu0  ;;  %12329 = vmatprep.mubr.bf16.mxu1 %v8518_v6  ;;  %v11610_v11 = vpop.f32.mrb[252].mxu1 }
 0xa7d   : > { %v11723_v63 = vpop.f32.mrb[45].mxu0  ;;  %v11611_v60 = vpop.f32.mrb[253].mxu1 }
 0xa7e   : > { %v11724_v33 = vadd.f32 %v11723_v63, %v11722_v17  ;;  %v11725_v50 = vpop.f32.mrb[46].mxu0  ;;  %v17493_v31 = vadd.f32 %v11611_v60, %v11610_v11  ;;  %v11613_v45 = vpop.f32.mrb[254].mxu1 }
 0xa7f   : > { %v11726_v4 = vpop.f32.mrb[47].mxu0  ;;  %v11614_v2 = vpop.f32.mrb[255].mxu1 }
 0xa80   : > { %v11727_v25 = vadd.f32 %v11726_v4, %v11725_v50  ;;  %v17495_v32 = vadd.f32 %v11614_v2, %v11613_v45 }
 0xa82   : > { %v8519_v40 = vpack.c.bf16 %v11727_v25, %v11724_v33  ;;  %v8133_v10 = vpack.c.bf16 %v17495_v32, %v17493_v31 }
 0xa84   : > { %v11728_v0 = vpop.f32.mrb[48].mxu0  ;;  %12330 = vmatmul.mubr.bf16.gmra.mrb[36].mxu1 %v8519_v40  ;;  %v11616_v18 = vpop.f32.mrb[0].mxu1 }
 0xa85   : > { %v11729_v54 = vpop.f32.mrb[49].mxu0  ;;  %v11617_v5 = vpop.f32.mrb[1].mxu1 }
 0xa86   : > { %v11730_v8 = vadd.f32 %v11729_v54, %v11728_v0  ;;  %v11731_v34 = vpop.f32.mrb[50].mxu0  ;;  %v17499_v61 = vadd.f32 %v11617_v5, %v11616_v18  ;;  %v11619_v52 = vpop.f32.mrb[2].mxu1 }
 0xa87   : > { %v11732_v28 = vpop.f32.mrb[51].mxu0  ;;  %v11620_v16 = vpop.f32.mrb[3].mxu1 }
 0xa88   : > { %v11733_v15 = vadd.f32 %v11732_v28, %v11731_v34  ;;  %v17501_v14 = vadd.f32 %v11620_v16, %v11619_v52 }
 0xa8a   : > { %v8520_v55 = vpack.c.bf16 %v11733_v15, %v11730_v8  ;;  %v8134_v58 = vpack.c.bf16 %v17501_v14, %v17499_v61 }
 0xa8c   : > { %v11734_v56 = vpop.f32.mrb[52].mxu0  ;;  %12333 = vmatprep.mubr.bf16.mxu1 %v8520_v55  ;;  %v11622_v6 = vpop.f32.mrb[4].mxu1 }
 0xa8d   : > { %v11735_v17 = vpop.f32.mrb[53].mxu0  ;;  %v11623_v11 = vpop.f32.mrb[5].mxu1 }
 0xa8e   : > { %v11736_v63 = vadd.f32 %v11735_v17, %v11734_v56  ;;  %v11737_v60 = vpop.f32.mrb[54].mxu0  ;;  %v17505_v33 = vadd.f32 %v11623_v11, %v11622_v6  ;;  %v11625_v50 = vpop.f32.mrb[6].mxu1 }
 0xa8f   : > { %v11738_v45 = vpop.f32.mrb[55].mxu0  ;;  %v11626_v4 = vpop.f32.mrb[7].mxu1 }
 0xa90   : > { %v11739_v2 = vadd.f32 %v11738_v45, %v11737_v60  ;;  %v17507_v25 = vadd.f32 %v11626_v4, %v11625_v50  ;;  %v9659_v60 = vld [vmem:[%s639_s0 + $0x8] sm:$0xff]  ;;  %v9660_v50 = vld [vmem:[%s639_s0 + $0x10] sm:$0xff]  ;;  %v9661_v45 = vld [vmem:[%s639_s0 + $0x18] sm:$0xff] }
 0xa92   : > { %v8521_v40 = vpack.c.bf16 %v11739_v2, %v11736_v63  ;;  %v8135_v0 = vpack.c.bf16 %v17507_v25, %v17505_v33  ;;  %v9658_v63 = vld [vmem:[%s639_s0] sm:$0xff] }
 0xa93   : > { %v9662_v4 = vpack.c.bf16 %v9659_v60, %v9658_v63 }
 0xa94   : > { %v11740_v18 = vpop.f32.mrb[56].mxu0  ;;  %12334 = vmatmul.mubr.bf16.gmra.mrb[40].mxu1 %v8521_v40  ;;  %v11628_v54 = vpop.f32.mrb[8].mxu1 }
 0xa95   : > { %v11741_v5 = vpop.f32.mrb[57].mxu0  ;;  %v11629_v8 = vpop.f32.mrb[9].mxu1  ;;  %12439 = vmatprep.mubr.msk.bf16.mxu0 %vm9672_vm11, %v9662_v4 }
 0xa96   : > { %v11742_v34 = vadd.f32 %v11741_v5, %v11740_v18  ;;  %v11743_v52 = vpop.f32.mrb[58].mxu0  ;;  %v17511_v28 = vadd.f32 %v11629_v8, %v11628_v54  ;;  %v11631_v16 = vpop.f32.mrb[10].mxu1  ;;  %v9663_v18 = vpack.c.bf16 %v9661_v45, %v9660_v50 }
 0xa97   : > { %v11744_v15 = vpop.f32.mrb[59].mxu0  ;;  %v11632_v55 = vpop.f32.mrb[11].mxu1 }
 0xa98   : > { %v11745_v56 = vadd.f32 %v11744_v15, %v11743_v52  ;;  %v17513_v6 = vadd.f32 %v11632_v55, %v11631_v16  ;;  %12440 = vmatmul.mubr.msk.bf16.vlgmr.msra.gmra.mrb[128].mxu0 %vm9672_vm11, %v9663_v18  ;;  %v13453_v18 = vld [vmem:[%s17794_s12 + $0x88] sm:$0xff]  }
 0xa9a   : > { %v8522_v17 = vpack.c.bf16 %v11745_v56, %v11742_v34  ;;  %v17932_v31 = vpack.c.bf16 %v17513_v6, %v17511_v28 }
 0xa9c   : > { %v11746_v2 = vpop.f32.mrb[60].mxu0  ;;  %12337 = vmatprep.mubr.bf16.mxu1 %v8522_v17  ;;  %v11634_v40 = vpop.f32.mrb[12].mxu1 }
 0xa9d   : > { %v11747_v54 = vpop.f32.mrb[61].mxu0  ;;  %v11635_v5 = vpop.f32.mrb[13].mxu1 }
 0xa9e   : > { %v11748_v8 = vadd.f32 %v11747_v54, %v11746_v2  ;;  %v11749_v52 = vpop.f32.mrb[62].mxu0  ;;  %v17523_v16 = vadd.f32 %v11635_v5, %v11634_v40  ;;  %v11637_v34 = vpop.f32.mrb[14].mxu1 }
 0xa9f   : > { %v11750_v15 = vpop.f32.mrb[63].mxu0  ;;  %v11638_v55 = vpop.f32.mrb[15].mxu1 }
 0xaa0   : > { %v11751_v56 = vadd.f32 %v11750_v15, %v11749_v52  ;;  %v17525_v11 = vadd.f32 %v11638_v55, %v11637_v34 }
 0xaa2   : > { %v8523_v63 = vpack.c.bf16 %v11751_v56, %v11748_v8  ;;  %v8137_v17 = vpack.c.bf16 %v17525_v11, %v17523_v16 }
 0xaa4   : > { %12338 = vmatmul.mubr.bf16.gmra.mrb[44].mxu1 %v8523_v63  ;;  %v11816_v60 = vpop.f32.mrb[64].mxu0 }
 0xaa5   : > { %12357 = vmatprep.mubr.bf16.mxu1 %v8122_v44  ;;  %v11817_v50 = vpop.f32.mrb[65].mxu0  ;;  %v13454_v44 = vld [vmem:[%s17794_s12 + $0x90] sm:$0xff]  }
 0xaa6   : > { %v17532_v45 = vadd.f32 %v11817_v50, %v11816_v60  ;;  %v11819_v4 = vpop.f32.mrb[66].mxu0 }
 0xaa7   : > { %v11820_v2 = vpop.f32.mrb[67].mxu0 }
 0xaa8   : > { %v17534_v40 = vadd.f32 %v11820_v2, %v11819_v4 }
 0xaaa   : > { %v9313_v54 = vpack.c.bf16 %v17534_v40, %v17532_v45 }
 0xaac   : > { %12358 = vmatmul.mubr.bf16.vlgmr.msra.gmra.mrb[16].mxu1 %v8123_v23  ;;  %v11822_v9 = vpop.f32.mrb[68].mxu0 }
 0xaad   : > { %12361 = vmatprep.mubr.bf16.mxu1 %v8124_v19  ;;  %12390 = vmatpush3.bf16.msra.mxu1 %v17453_v12  ;;  %v11823_v24 = vpop.f32.mrb[69].mxu0 }
 0xaae   : > { %12391 = vmatprep.subr.bf16.mxu1 %v13453_v18  ;;  %v17551_v5 = vadd.f32 %v11823_v24, %v11822_v9  ;;  %v11825_v8 = vpop.f32.mrb[70].mxu0 }
 0xaaf   : > { %v11826_v52 = vpop.f32.mrb[71].mxu0 }
 0xab0   : > { %v17553_v34 = vadd.f32 %v11826_v52, %v11825_v8 }
 0xab1   : > { %12392 = vmatpush3.bf16.msra.mxu1 %v13453_v18 }
 0xab2   : > { %12393 = vmatprep.subr.bf16.mxu1 %v13454_v44  ;;  %v9314_v30 = vpack.c.bf16 %v17553_v34, %v17551_v5 }
 0xab4   : > { %12362 = vmatmul.mubr.bf16.gmra.mrb[20].mxu1 %v8125_v27  ;;  %v11828_v23 = vpop.f32.mrb[72].mxu0 }
 0xab5   : > { %12365 = vmatprep.mubr.bf16.mxu1 %v8126_v29  ;;  %12394 = vmatpush3.bf16.msra.mxu1 %v13454_v44  ;;  %v11829_v38 = vpop.f32.mrb[73].mxu0 }
 0xab6   : > { %12395 = vmatprep.subr.bf16.mxu1 %v13455_v37  ;;  %v17569_v19 = vadd.f32 %v11829_v38, %v11828_v23  ;;  %v11831_v12 = vpop.f32.mrb[74].mxu0 }
 0xab7   : > { %v11832_v15 = vpop.f32.mrb[75].mxu0 }
 0xab8   : > { %v17571_v55 = vadd.f32 %v11832_v15, %v11831_v12 }
 0xab9   : > { %12396 = vmatpush3.bf16.msra.mxu1 %v13455_v37 }
 0xaba   : > { %12397 = vmatprep.subr.bf16.mxu1 %v13456_v21  ;;  %v9315_v47 = vpack.c.bf16 %v17571_v55, %v17569_v19 }
 0xabc   : > { %12366 = vmatmul.mubr.bf16.gmra.mrb[24].mxu1 %v8127_v26  ;;  %v11834_v27 = vpop.f32.mrb[76].mxu0 }
 0xabd   : > { %12369 = vmatprep.mubr.bf16.mxu1 %v8128_v57  ;;  %12398 = vmatpush3.bf16.msra.mxu1 %v13456_v21  ;;  %v11835_v35 = vpop.f32.mrb[77].mxu0 }
 0xabe   : > { %12399 = vmatprep.subr.bf16.mxu1 %v13457_v13  ;;  %v17587_v29 = vadd.f32 %v11835_v35, %v11834_v27  ;;  %v11837_v56 = vpop.f32.mrb[78].mxu0 }
 0xabf   : > { %v11838_v63 = vpop.f32.mrb[79].mxu0 }
 0xac0   : > { %v11839_v60 = vadd.f32 %v11838_v63, %v11837_v56 }
 0xac1   : > { %12400 = vmatpush3.bf16.msra.mxu1 %v13457_v13 }
 0xac2   : > { %12401 = vmatprep.subr.bf16.mxu1 %v13458_v20  ;;  %v9316_v51 = vpack.c.bf16 %v11839_v60, %v17587_v29 }
 0xac4   : > { %12370 = vmatmul.mubr.bf16.gmra.mrb[28].mxu1 %v8129_v36  ;;  %v11840_v26 = vpop.f32.mrb[80].mxu0 }
 0xac5   : > { %12373 = vmatprep.mubr.bf16.mxu1 %v8130_v43  ;;  %12402 = vmatpush3.bf16.msra.mxu1 %v13458_v20  ;;  %v11841_v48 = vpop.f32.mrb[81].mxu0 }
 0xac6   : > { %12403 = vmatprep.subr.bf16.mxu1 %v13459_v7  ;;  %v11842_v41 = vadd.f32 %v11841_v48, %v11840_v26  ;;  %v11843_v57 = vpop.f32.mrb[82].mxu0 }
 0xac7   : > { %v11844_v50 = vpop.f32.mrb[83].mxu0 }
 0xac8   : > { %v11845_v4 = vadd.f32 %v11844_v50, %v11843_v57 }
 0xac9   : > { %12404 = vmatpush3.bf16.msra.mxu1 %v13459_v7 }
 0xaca   : > { %v9317_v2 = vpack.c.bf16 %v11845_v4, %v11842_v41 }
 0xacc   : > { %12374 = vmatmul.mubr.bf16.gmra.mrb[32].mxu1 %v8131_v46  ;;  %v11846_v22 = vpop.f32.mrb[84].mxu0 }
 0xacd   : > { %12377 = vmatprep.mubr.bf16.mxu1 %v8132_v1  ;;  %v11847_v62 = vpop.f32.mrb[85].mxu0 }
 0xace   : > { %v11848_v36 = vadd.f32 %v11847_v62, %v11846_v22  ;;  %v11849_v49 = vpop.f32.mrb[86].mxu0 }
 0xacf   : > { %v11850_v39 = vpop.f32.mrb[87].mxu0 }
 0xad0   : > { %v11851_v43 = vadd.f32 %v11850_v39, %v11849_v49 }
 0xad2   : > { %v9318_v18 = vpack.c.bf16 %v11851_v43, %v11848_v36 }
 0xad4   : > { %12378 = vmatmul.mubr.bf16.gmra.mrb[36].mxu1 %v8133_v10  ;;  %v11852_v9 = vpop.f32.mrb[88].mxu0 }
 0xad5   : > { %12381 = vmatprep.mubr.bf16.mxu1 %v8134_v58  ;;  %v11853_v42 = vpop.f32.mrb[89].mxu0 }
 0xad6   : > { %v11854_v59 = vadd.f32 %v11853_v42, %v11852_v9  ;;  %v11855_v46 = vpop.f32.mrb[90].mxu0 }
 0xad7   : > { %v11856_v3 = vpop.f32.mrb[91].mxu0 }
 0xad8   : > { %v11857_v53 = vadd.f32 %v11856_v3, %v11855_v46 }
 0xada   : > { %v9319_v1 = vpack.c.bf16 %v11857_v53, %v11854_v59 }
 0xadc   : > { %12382 = vmatmul.mubr.bf16.gmra.mrb[40].mxu1 %v8135_v0  ;;  %v11858_v24 = vpop.f32.mrb[92].mxu0 }
 0xadd   : > { %12385 = vmatprep.mubr.bf16.mxu1 %v17932_v31  ;;  %v11859_v32 = vpop.f32.mrb[93].mxu0 }
 0xade   : > { %v11860_v10 = vadd.f32 %v11859_v32, %v11858_v24  ;;  %v11861_v44 = vpop.f32.mrb[94].mxu0 }
 0xadf   : > { %v11862_v61 = vpop.f32.mrb[95].mxu0 }
 0xae0   : > { %v11863_v14 = vadd.f32 %v11862_v61, %v11861_v44 }
 0xae2   : > { %v9320_v58 = vpack.c.bf16 %v11863_v14, %v11860_v10  ;;  %v11006_v10 = vld [vmem:[%s17797_s15] ss:$0 sm:$0xff] }
 0xae4   : > { %12386 = vmatmul.mubr.bf16.gmra.mrb[44].mxu1 %v8137_v17  ;;  %v11864_v8 = vpop.f32.mrb[96].mxu0 }
 0xae5   : > { %12405 = vmatprep.mubr.bf16.mxu1 %v9313_v54  ;;  %v11865_v33 = vpop.f32.mrb[97].mxu0 }
 0xae6   : > { %v11866_v25 = vadd.f32 %v11865_v33, %v11864_v8  ;;  %v11867_v0 = vpop.f32.mrb[98].mxu0 }
 0xae7   : > { %v11868_v28 = vpop.f32.mrb[99].mxu0 }
 0xae8   : > { %v11869_v6 = vadd.f32 %v11868_v28, %v11867_v0 }
 0xaea   : > { %v9321_v52 = vpack.c.bf16 %v11869_v6, %v11866_v25  ;;  %v11009_v6 = vld [vmem:[%s17799_s17] ss:$0 sm:$0xff] }
 0xaec   : > { %12406 = vmatmul.mubr.bf16.vlgmr.msra.gmra.mrb[16].mxu1 %v9314_v30  ;;  %v11870_v37 = vpop.f32.mrb[100].mxu0 }
 0xaed   : > { %12409 = vmatprep.mubr.bf16.mxu1 %v9315_v47  ;;  %v11871_v11 = vpop.f32.mrb[101].mxu0 }
 0xaee   : > { %v11872_v16 = vadd.f32 %v11871_v11, %v11870_v37  ;;  %v11873_v17 = vpop.f32.mrb[102].mxu0 }
 0xaef   : > { %v11874_v45 = vpop.f32.mrb[103].mxu0 }
 0xaf0   : > { %v11875_v40 = vadd.f32 %v11874_v45, %v11873_v17 }
 0xaf2   : > { %v9322_v54 = vpack.c.bf16 %v11875_v40, %v11872_v16 }
 0xaf4   : > { %12410 = vmatmul.mubr.bf16.gmra.mrb[20].mxu1 %v9316_v51  ;;  %v11876_v23 = vpop.f32.mrb[104].mxu0 }
 0xaf5   : > { %12413 = vmatprep.mubr.bf16.mxu1 %v9317_v2  ;;  %v11877_v38 = vpop.f32.mrb[105].mxu0 }
 0xaf6   : > { %v11878_v21 = vadd.f32 %v11877_v38, %v11876_v23  ;;  %v11879_v12 = vpop.f32.mrb[106].mxu0 }
 0xaf7   : > { %v11880_v15 = vpop.f32.mrb[107].mxu0 }
 0xaf8   : > { %v11881_v5 = vadd.f32 %v11880_v15, %v11879_v12 }
 0xafa   : > { %v9323_v34 = vpack.c.bf16 %v11881_v5, %v11878_v21  ;;  %v17642_v21 = vld [vmem:[%s17795_s13] ss:$0 sm:$0xff] }
 0xafc   : > { %12414 = vmatmul.mubr.bf16.gmra.mrb[24].mxu1 %v9318_v18  ;;  %v11882_v30 = vpop.f32.mrb[108].mxu0 }
 0xafd   : > { %12417 = vmatprep.mubr.bf16.mxu1 %v9319_v1  ;;  %v11883_v19 = vpop.f32.mrb[109].mxu0 }
 0xafe   : > { %v11884_v55 = vadd.f32 %v11883_v19, %v11882_v30  ;;  %v11885_v13 = vpop.f32.mrb[110].mxu0 }
 0xaff   : > { %v11886_v47 = vpop.f32.mrb[111].mxu0 }
 0xb00   : > { %v11887_v27 = vadd.f32 %v11886_v47, %v11885_v13 }
 0xb02   : > { %v9324_v35 = vpack.c.bf16 %v11887_v27, %v11884_v55 }
 0xb04   : > { %12418 = vmatmul.mubr.bf16.gmra.mrb[28].mxu1 %v9320_v58  ;;  %v11888_v20 = vpop.f32.mrb[112].mxu0 }
 0xb05   : > { %12421 = vmatprep.mubr.bf16.mxu1 %v9321_v52  ;;  %v11889_v29 = vpop.f32.mrb[113].mxu0 }
 0xb06   : > { %v11890_v56 = vadd.f32 %v11889_v29, %v11888_v20  ;;  %v11891_v63 = vpop.f32.mrb[114].mxu0  ;;  %v9742_v29 = vld [vmem:[%s17798_s16 + $0x30] sm:$0xff] }
 0xb07   : > { %v11892_v60 = vpop.f32.mrb[115].mxu0 }
 0xb08   : > { %v11893_v7 = vadd.f32 %v11892_v60, %v11891_v63  ;;  %v9736_v60 = vld [vmem:[%s17798_s16] sm:$0xff] }
 0xb0a   : > { %v9325_v51 = vpack.c.bf16 %v11893_v7, %v11890_v56 }
 0xb0c   : > { %12422 = vmatmul.mubr.bf16.gmra.mrb[32].mxu1 %v9322_v54  ;;  %v11894_v26 = vpop.f32.mrb[116].mxu0 }
 0xb0d   : > { %12425 = vmatprep.mubr.bf16.mxu1 %v9323_v34  ;;  %v11895_v48 = vpop.f32.mrb[117].mxu0 }
 0xb0e   : > { %v11896_v41 = vadd.f32 %v11895_v48, %v11894_v26  ;;  %v11897_v57 = vpop.f32.mrb[118].mxu0  ;;  %v9740_v26 = vld [vmem:[%s17798_s16 + $0x20] sm:$0xff] }
 0xb0f   : > { %v11898_v50 = vpop.f32.mrb[119].mxu0 }
 0xb10   : > { %v11899_v4 = vadd.f32 %v11898_v50, %v11897_v57  ;;  %v9739_v57 = vld [vmem:[%s17798_s16 + $0x18] sm:$0xff] }
 0xb12   : > { %v9326_v2 = vpack.c.bf16 %v11899_v4, %v11896_v41 }
 0xb14   : > { %12426 = vmatmul.mubr.bf16.gmra.mrb[36].mxu1 %v9324_v35  ;;  %v11900_v22 = vpop.f32.mrb[120].mxu0  ;;  %v9738_v35 = vld [vmem:[%s17798_s16 + $0x10] sm:$0xff] }
 0xb15   : > { %v11901_v62 = vpop.f32.mrb[121].mxu0  ;;  %12429 = vmatprep.mubr.bf16.mxu1 %v9325_v51 }
 0xb16   : > { %v11902_v36 = vadd.f32 %v11901_v62, %v11900_v22  ;;  %v11903_v49 = vpop.f32.mrb[122].mxu0 }
 0xb17   : > { %v11904_v39 = vpop.f32.mrb[123].mxu0 }
 0xb18   : > { %v11905_v43 = vadd.f32 %v11904_v39, %v11903_v49 }
 0xb1a   : > { %v9327_v18 = vpack.c.bf16 %v11905_v43, %v11902_v36  ;;  %v9737_v36 = vld [vmem:[%s17798_s16 + $0x8] sm:$0xff] }
 0xb1b   : > { %v9741_v43 = vld [vmem:[%s17798_s16 + $0x28] sm:$0xff] }
 0xb1c   : > { %v11906_v9 = vpop.f32.mrb[124].mxu0  ;;  %12430 = vmatmul.mubr.bf16.gmra.mrb[40].mxu1 %v9326_v2  ;;  %v9743_v2 = vld [vmem:[%s17798_s16 + $0x38] sm:$0xff] }
 0xb1d   : > { %v11907_v42 = vpop.f32.mrb[125].mxu0  ;;  %12433 = vmatprep.mubr.bf16.mxu1 %v9327_v18 }
 0xb1e   : > { %v11908_v59 = vadd.f32 %v11907_v42, %v11906_v9  ;;  %v11909_v46 = vpop.f32.mrb[126].mxu0 }
 0xb1f   : > { %v11910_v3 = vpop.f32.mrb[127].mxu0 }
 0xb20   : > { %v11911_v53 = vadd.f32 %v11910_v3, %v11909_v46 }
 0xb22   : > { %v9328_v1 = vpack.c.bf16 %v11911_v53, %v11908_v59 }
 0xb24   : > { %12434 = vmatmul.mubr.bf16.gmra.mrb[44].mxu1 %v9328_v1 }
 0xb6b   : > { %v12441_v24 = vpop.f32.mrb[128].mxu0 }
 0xb6c   : > { %v9717_v31 = vpop.f32.mrb[129].mxu0  ;;  %v9726_v61 = vadd.f32 %v12441_v24, %v11006_v10 }
 0xb6d   : > { %v12442_v32 = vpop.f32.mrb[130].mxu0  ;;  %v9718_v14 = vadd.f32 %v11006_v10, %v9717_v31 }
 0xb6e   : > { %v9720_v44 = vpop.f32.mrb[131].mxu0  ;;  %v9729_v58 = vadd.f32 %v12442_v32, %v11006_v10  ;;  %v9734_v33 = vmax.f32 %v9726_v61, 0.0 }
 0xb6f   : > { %v9721_v8 = vadd.f32 %v11006_v10, %v9720_v44  ;;  %v9732_v25 = vmax.f32 %v9718_v14, 0.0  ;;  %v9746_v14 = vld [vmem:[%s17798_s16 + $0x50] sm:$0xff] }
 0xb70   : > { %v9735_v0 = vmax.f32 %v9729_v58, 0.0  ;;  %v9850_v52 = vmul.f32 %v11009_v6, %v9734_v33 }
 0xb71   : > { %v9733_v28 = vmax.f32 %v9721_v8, 0.0  ;;  %v9848_v37 = vmul.f32 %v11009_v6, %v9732_v25  ;;  %v9744_v25 = vld [vmem:[%s17798_s16 + $0x40] sm:$0xff] }
 0xb72   : > { %v9851_v11 = vmul.f32 %v11009_v6, %v9735_v0  ;;  %v17635_v40 = vsel %vm9852_vm12, %v9850_v52, 0.0  ;;  %v9747_v52 = vld [vmem:[%s17798_s16 + $0x58] sm:$0xff] }
 0xb73   : > { %v9849_v16 = vmul.f32 %v11009_v6, %v9733_v28  ;;  %v9853_v17 = vsel %vm9852_vm12, %v9848_v37, 0.0 }
 0xb74   : > { %v17637_v54 = vsel %vm9852_vm12, %v9851_v11, 0.0  ;;  %9854 = vadd.xlane.f32.xlu0 %v9853_v17  ;;  %v9745_v17 = vld [vmem:[%s17798_s16 + $0x48] sm:$0xff] }
 0xb75   : > { %v9856_v45 = vsel %vm9852_vm12, %v9849_v16, 0.0 }
 0xb76   : > { %9857 = vadd.xlane.f32.xlu1 %v9856_v45 }
 0xbbf   : > { %v12407_v23 = vpop.f32.mrb[16].mxu1 }
 0xbc0   : > { %v9428_v38 = vpop.f32.mrb[17].mxu1  ;;  %v9596_v5 = vadd.f32 %v12407_v23, %v17642_v21 }
 0xbc1   : > { %v12408_v12 = vpop.f32.mrb[18].mxu1  ;;  %v9594_v34 = vadd.f32 %v17642_v21, %v9428_v38 }
 0xbc2   : > { %v9431_v15 = vpop.f32.mrb[19].mxu1  ;;  %v9597_v30 = vadd.f32 %v12408_v12, %v17642_v21  ;;  %v9628_v13 = vmax.f32 %v9596_v5, 0.0 }
 0xbc3   : > { %v9595_v19 = vadd.f32 %v17642_v21, %v9431_v15  ;;  %v9626_v20 = vmax.f32 %v9594_v34, 0.0 }
 0xbc4   : > { %v9629_v7 = vmax.f32 %v9597_v30, 0.0  ;;  %v9770_v62 = vmul.f32 %v9738_v35, %v9628_v13 }
 0xbc5   : > { %v9627_v50 = vmax.f32 %v9595_v19, 0.0  ;;  %v9768_v18 = vmul.f32 %v9736_v60, %v9626_v20 }
 0xbc6   : > { %v9771_v59 = vmul.f32 %v9739_v57, %v9629_v7  ;;  %v9751_v7 = vld [vmem:[%s17798_s16 + $0x78] sm:$0xff] }
 0xbc7   : > { %v12411_v55 = vpop.f32.mrb[20].mxu1  ;;  %v9769_v53 = vmul.f32 %v9737_v36, %v9627_v50 }
 0xbc8   : > { %v9600_v47 = vadd.f32 %v12411_v55, %v17642_v21  ;;  %v9444_v27 = vpop.f32.mrb[21].mxu1 }
 0xbc9   : > { %v9598_v56 = vadd.f32 %v17642_v21, %v9444_v27  ;;  %v12412_v63 = vpop.f32.mrb[22].mxu1 }
 0xbca   : > { %v9632_v51 = vmax.f32 %v9600_v47, 0.0  ;;  %v9601_v48 = vadd.f32 %v12412_v63, %v17642_v21  ;;  %v9447_v41 = vpop.f32.mrb[23].mxu1  ;;  %v9750_v47 = vld [vmem:[%s17798_s16 + $0x70] sm:$0xff] }
 0xbcb   : > { %v9630_v4 = vmax.f32 %v9598_v56, 0.0  ;;  %v9599_v22 = vadd.f32 %v17642_v21, %v9447_v41  ;;  %v9749_v41 = vld [vmem:[%s17798_s16 + $0x68] sm:$0xff] }
 0xbcc   : > { %v9774_v49 = vmul.f32 %v9742_v29, %v9632_v51  ;;  %v9633_v39 = vmax.f32 %v9601_v48, 0.0  ;;  %v9748_v29 = vld [vmem:[%s17798_s16 + $0x60] sm:$0xff] }
 0xbcd   : > { %v9772_v9 = vmul.f32 %v9740_v26, %v9630_v4  ;;  %v9631_v42 = vmax.f32 %v9599_v22, 0.0 }
 0xbce   : > { %v9802_v46 = vadd.f32 %v9774_v49, %v9770_v62  ;;  %v9775_v3 = vmul.f32 %v9743_v2, %v9633_v39 }
 0xbcf   : > { %v9800_v1 = vadd.f32 %v9772_v9, %v9768_v18  ;;  %v9773_v24 = vmul.f32 %v9741_v43, %v9631_v42  ;;  %v12415_v31 = vpop.f32.mrb[24].mxu1  ;;  %v9754_v9 = vld [vmem:[%s17798_s16 + $0x90] sm:$0xff] }
 0xbd0   : > { %v9803_v32 = vadd.f32 %v9775_v3, %v9771_v59  ;;  %v9604_v10 = vadd.f32 %v12415_v31, %v17642_v21  ;;  %v9460_v44 = vpop.f32.mrb[25].mxu1  ;;  %v9752_v3 = vld [vmem:[%s17798_s16 + $0x80] sm:$0xff]  ;;  %v9755_v31 = vld [vmem:[%s17798_s16 + $0x98] sm:$0xff] }
 0xbd1   : > { %v9801_v61 = vadd.f32 %v9773_v24, %v9769_v53  ;;  %v9602_v58 = vadd.f32 %v17642_v21, %v9460_v44  ;;  %v12416_v8 = vpop.f32.mrb[26].mxu1 }
 0xbd2   : > { %v9636_v33 = vmax.f32 %v9604_v10, 0.0  ;;  %v9605_v0 = vadd.f32 %v12416_v8, %v17642_v21  ;;  %v9463_v28 = vpop.f32.mrb[27].mxu1 }
 0xbd3   : > { %v9634_v6 = vmax.f32 %v9602_v58, 0.0  ;;  %v9603_v37 = vadd.f32 %v17642_v21, %v9463_v28 }
 0xbd4   : > { %v9778_v11 = vmul.f32 %v9746_v14, %v9636_v33  ;;  %v9637_v16 = vmax.f32 %v9605_v0, 0.0 }
 0xbd5   : > { %v9776_v45 = vmul.f32 %v9744_v25, %v9634_v6  ;;  %v9635_v23 = vmax.f32 %v9603_v37, 0.0 }
 0xbd6   : > { %v9806_v38 = vadd.f32 %v9802_v46, %v9778_v11  ;;  %v9779_v12 = vmul.f32 %v9747_v52, %v9637_v16  ;;  %v9758_v16 = vld [vmem:[%s17798_s16 + $0xb0] sm:$0xff] }
 0xbd7   : > { %v9804_v15 = vadd.f32 %v9800_v1, %v9776_v45  ;;  %v9777_v5 = vmul.f32 %v9745_v17, %v9635_v23  ;;  %v12419_v34 = vpop.f32.mrb[28].mxu1 }
 0xbd8   : > { %v9807_v30 = vadd.f32 %v9803_v32, %v9779_v12  ;;  %v9608_v19 = vadd.f32 %v12419_v34, %v17642_v21  ;;  %v9476_v55 = vpop.f32.mrb[29].mxu1  ;;  %v9759_v34 = vld [vmem:[%s17798_s16 + $0xb8] sm:$0xff] }
 0xbd9   : > { %v9805_v13 = vadd.f32 %v9801_v61, %v9777_v5  ;;  %v9606_v27 = vadd.f32 %v17642_v21, %v9476_v55  ;;  %v12420_v35 = vpop.f32.mrb[30].mxu1  ;;  %v9753_v61 = vld [vmem:[%s17798_s16 + $0x88] sm:$0xff] }
 0xbda   : > { %v9640_v20 = vmax.f32 %v9608_v19, 0.0  ;;  %v9609_v56 = vadd.f32 %v12420_v35, %v17642_v21  ;;  %v9479_v63 = vpop.f32.mrb[31].mxu1 }
 0xbdb   : > { %v9638_v60 = vmax.f32 %v9606_v27, 0.0  ;;  %v9607_v51 = vadd.f32 %v17642_v21, %v9479_v63 }
 0xbdc   : > { %v9782_v26 = vmul.f32 %v9750_v47, %v9640_v20  ;;  %v9641_v48 = vmax.f32 %v9609_v56, 0.0 }
 0xbdd   : > { %v9780_v57 = vmul.f32 %v9748_v29, %v9638_v60  ;;  %v9639_v50 = vmax.f32 %v9607_v51, 0.0 }
 0xbde   : > { %v9810_v4 = vadd.f32 %v9806_v38, %v9782_v26  ;;  %v9783_v2 = vmul.f32 %v9751_v7, %v9641_v48  ;;  %v9756_v38 = vld [vmem:[%s17798_s16 + $0xa0] sm:$0xff]  ;;  %v9762_v48 = vld [vmem:[%s17798_s16 + $0xd0] sm:$0xff] }
 0xbdf   : > { %v9808_v22 = vadd.f32 %v9804_v15, %v9780_v57  ;;  %v9781_v62 = vmul.f32 %v9749_v41, %v9639_v50  ;;  %v12423_v36 = vpop.f32.mrb[32].mxu1 }
 0xbe0   : > { %v9811_v49 = vadd.f32 %v9807_v30, %v9783_v2  ;;  %v9612_v39 = vadd.f32 %v12423_v36, %v17642_v21  ;;  %v9492_v43 = vpop.f32.mrb[33].mxu1  ;;  %v9763_v36 = vld [vmem:[%s17798_s16 + $0xd8] sm:$0xff] }
 0xbe1   : > { %v9809_v18 = vadd.f32 %v9805_v13, %v9781_v62  ;;  %v9610_v42 = vadd.f32 %v17642_v21, %v9492_v43  ;;  %v12424_v59 = vpop.f32.mrb[34].mxu1  ;;  %v9757_v13 = vld [vmem:[%s17798_s16 + $0xa8] sm:$0xff] }
 0xbe2   : > { %v9644_v46 = vmax.f32 %v9612_v39, 0.0  ;;  %v9613_v53 = vadd.f32 %v12424_v59, %v17642_v21  ;;  %v9495_v1 = vpop.f32.mrb[35].mxu1 }
 0xbe3   : > { %v9642_v24 = vmax.f32 %v9610_v42, 0.0  ;;  %v9611_v32 = vadd.f32 %v17642_v21, %v9495_v1 }
 0xbe4   : > { %v9786_v10 = vmul.f32 %v9754_v9, %v9644_v46  ;;  %v9645_v44 = vmax.f32 %v9613_v53, 0.0 }
 0xbe5   : > { %v9784_v14 = vmul.f32 %v9752_v3, %v9642_v24  ;;  %v9643_v58 = vmax.f32 %v9611_v32, 0.0 }
 0xbe6   : > { %v9814_v8 = vadd.f32 %v9810_v4, %v9786_v10  ;;  %v9787_v33 = vmul.f32 %v9755_v31, %v9645_v44  ;;  %v9760_v4 = vld [vmem:[%s17798_s16 + $0xc0] sm:$0xff]  ;;  %v9766_v44 = vld [vmem:[%s17798_s16 + $0xf0] sm:$0xff] }
 0xbe7   : > { %v9812_v25 = vadd.f32 %v9808_v22, %v9784_v14  ;;  %v9785_v0 = vmul.f32 %v9753_v61, %v9643_v58  ;;  %v12427_v28 = vpop.f32.mrb[36].mxu1 }
 0xbe8   : > { %v9815_v6 = vadd.f32 %v9811_v49, %v9787_v33  ;;  %v9616_v52 = vadd.f32 %v12427_v28, %v17642_v21  ;;  %v9508_v37 = vpop.f32.mrb[37].mxu1  ;;  %v9767_v28 = vld [vmem:[%s17798_s16 + $0xf8] sm:$0xff] }
 0xbe9   : > { %v9813_v11 = vadd.f32 %v9809_v18, %v9785_v0  ;;  %v9614_v17 = vadd.f32 %v17642_v21, %v9508_v37  ;;  %v12428_v45 = vpop.f32.mrb[38].mxu1  ;;  %v9761_v18 = vld [vmem:[%s17798_s16 + $0xc8] sm:$0xff] }
 0xbea   : > { %v9648_v23 = vmax.f32 %v9616_v52, 0.0  ;;  %v9617_v12 = vadd.f32 %v12428_v45, %v17642_v21  ;;  %v9511_v15 = vpop.f32.mrb[39].mxu1 }
 0xbeb   : > { %v9646_v5 = vmax.f32 %v9614_v17, 0.0  ;;  %v9615_v30 = vadd.f32 %v17642_v21, %v9511_v15 }
 0xbec   : > { %v9790_v19 = vmul.f32 %v9758_v16, %v9648_v23  ;;  %v9649_v55 = vmax.f32 %v9617_v12, 0.0 }
 0xbed   : > { %v9788_v47 = vmul.f32 %v9756_v38, %v9646_v5  ;;  %v9647_v27 = vmax.f32 %v9615_v30, 0.0 }
 0xbee   : > { %v9818_v35 = vadd.f32 %v9814_v8, %v9790_v19  ;;  %v9791_v20 = vmul.f32 %v9759_v34, %v9649_v55  ;;  %v9764_v8 = vld [vmem:[%s17798_s16 + $0xe0] sm:$0xff] }
 0xbef   : > { %v9816_v29 = vadd.f32 %v9812_v25, %v9788_v47  ;;  %v9789_v56 = vmul.f32 %v9757_v13, %v9647_v27  ;;  %v12431_v63 = vpop.f32.mrb[40].mxu1  ;;  %v11010_v27 = vld [vmem:[#allocation2] ss:$0 sm:$0xff] }
 0xbf0   : > { %v9819_v60 = vadd.f32 %v9815_v6, %v9791_v20  ;;  %v9620_v7 = vadd.f32 %v12431_v63, %v17642_v21  ;;  %v9524_v51 = vpop.f32.mrb[41].mxu1 }
 0xbf1   : > { %v9817_v26 = vadd.f32 %v9813_v11, %v9789_v56  ;;  %v9618_v41 = vadd.f32 %v17642_v21, %v9524_v51  ;;  %v12432_v57 = vpop.f32.mrb[42].mxu1  ;;  %v9765_v11 = vld [vmem:[%s17798_s16 + $0xe8] sm:$0xff] }
 0xbf2   : > { %v9652_v50 = vmax.f32 %v9620_v7, 0.0  ;;  %v9621_v2 = vadd.f32 %v12432_v57, %v17642_v21  ;;  %v9527_v22 = vpop.f32.mrb[43].mxu1 }
 0xbf3   : > { %v9650_v62 = vmax.f32 %v9618_v41, 0.0  ;;  %v9619_v49 = vadd.f32 %v17642_v21, %v9527_v22 }
 0xbf4   : > { %v9794_v39 = vmul.f32 %v9762_v48, %v9652_v50  ;;  %v9653_v43 = vmax.f32 %v9621_v2, 0.0 }
 0xbf5   : > { %v9792_v9 = vmul.f32 %v9760_v4, %v9650_v62  ;;  %v9651_v42 = vmax.f32 %v9619_v49, 0.0 }
 0xbf6   : > { %v9822_v59 = vadd.f32 %v9818_v35, %v9794_v39  ;;  %v9795_v46 = vmul.f32 %v9763_v36, %v9653_v43 }
 0xbf7   : > { %v9820_v3 = vadd.f32 %v9816_v29, %v9792_v9  ;;  %v9793_v53 = vmul.f32 %v9761_v18, %v9651_v42  ;;  %v12435_v1 = vpop.f32.mrb[44].mxu1 }
 0xbf8   : > { %v9823_v24 = vadd.f32 %v9819_v60, %v9795_v46  ;;  %v9624_v31 = vadd.f32 %v12435_v1, %v17642_v21  ;;  %v9540_v32 = vpop.f32.mrb[45].mxu1 }
 0xbf9   : > { %v9821_v10 = vadd.f32 %v9817_v26, %v9793_v53  ;;  %v9622_v61 = vadd.f32 %v17642_v21, %v9540_v32  ;;  %v12436_v14 = vpop.f32.mrb[46].mxu1 }
 0xbfa   : > { %v9656_v58 = vmax.f32 %v9624_v31, 0.0  ;;  %v9625_v33 = vadd.f32 %v12436_v14, %v17642_v21  ;;  %v9543_v25 = vpop.f32.mrb[47].mxu1 }
 0xbfb   : > { %v9654_v0 = vmax.f32 %v9622_v61, 0.0  ;;  %v9623_v6 = vadd.f32 %v17642_v21, %v9543_v25 }
 0xbfc   : > { %v9798_v52 = vmul.f32 %v9766_v44, %v9656_v58  ;;  %v9657_v37 = vmax.f32 %v9625_v33, 0.0 }
 0xbfd   : > { %v9796_v16 = vmul.f32 %v9764_v8, %v9654_v0  ;;  %v9655_v17 = vmax.f32 %v9623_v6, 0.0 }
 0xbfe   : > { %v9799_v45 = vmul.f32 %v9767_v28, %v9657_v37  ;;  %v9826_v23 = vadd.f32 %v9822_v59, %v9798_v52 }
 0xbff   : > { %v9797_v38 = vmul.f32 %v9765_v11, %v9655_v17  ;;  %v9824_v12 = vadd.f32 %v9820_v3, %v9796_v16 }
 0xc00   : > { %v9835_v15 = vsel %vm9828_vm13, %v9826_v23, 0.0  ;;  %v9827_v5 = vadd.f32 %v9823_v24, %v9799_v45 }
 0xc01   : > { %9836 = vadd.xlane.f32.xlu0 %v9835_v15  ;;  %v9829_v34 = vsel %vm9828_vm13, %v9824_v12, 0.0  ;;  %v9825_v30 = vadd.f32 %v9821_v10, %v9797_v38  ;;  %v9855_v55 = vpop.xlane.xlu0 %9854 }
 0xc02   : > { %9830 = vadd.xlane.f32.xlu1 %v9829_v34  ;;  %v9838_v19 = vsel %vm9828_vm13, %v9827_v5, 0.0 }
 0xc03   : > { %v9832_v21 = vsel %vm9828_vm13, %v9825_v30, 0.0  ;;  %v9858_v13 = vpop.xlane.xlu1 %9857 }
 0xc05   : > { %9833 = vadd.xlane.f32.xlu0 %v9832_v21 }
 0xc06   : > { %9839 = vadd.xlane.f32.xlu1 %v9838_v19 }
 0xc09   : > { %9860 = vadd.xlane.f32.xlu0 %v17635_v40 }
 0xc0a   : > { %9863 = vadd.xlane.f32.xlu1 %v17637_v54 }
 0xc8e   : > { %v9837_v47 = vpop.xlane.xlu0 %9836 }
 0xc8f   : > { %v9831_v35 = vpop.xlane.xlu1 %9830 }
 0xc90   : > { %v9865_v20 = vadd.f32 %v9855_v55, %v9831_v35 }
 0xc92   : > { %v9876_v29 = vadd.f32 %v11010_v27, %v9865_v20  ;;  %v9834_v56 = vpop.xlane.xlu0 %9833 }
 0xc93   : > { %v9866_v63 = vadd.f32 %v9858_v13, %v9834_v56  ;;  %v9840_v60 = vpop.xlane.xlu1 %9839 }
 0xc94   : > { %9881 = vst.msk [vmem:[%s644_s3] sm:$0xff] %vm9880_vm14, %v9876_v29 }
 0xc95   : > { %v9877_v40 = vadd.f32 %v11010_v27, %v9866_v63 }
 0xc96   : > { %v9861_v7 = vpop.xlane.xlu0 %9860 }
 0xc97   : > { %9882 = vst.msk [vmem:[%s644_s3 + $0x8] sm:$0xff] %vm9880_vm14, %v9877_v40  ;;  %v9867_v54 = vadd.f32 %v9861_v7, %v9837_v47  ;;  %v9864_v51 = vpop.xlane.xlu1 %9863 }
 0xc98   : > { %v9868_v26 = vadd.f32 %v9864_v51, %v9840_v60 }
 0xc99   : > { %v9878_v48 = vadd.f32 %v11010_v27, %v9867_v54 }
 0xc9a   : > { %v9879_v41 = vadd.f32 %v11010_v27, %v9868_v26 }
 0xc9b   : > { %9883 = vst.msk [vmem:[%s644_s3 + $0x10] sm:$0xff] %vm9880_vm14, %v9878_v48 }
 0xc9c   : > { %9884 = vst.msk [vmem:[%s644_s3 + $0x18] sm:$0xff] %vm9880_vm14, %v9879_v41 }
 0xc9d PF: > { %s31_s20 = sadd.s32 1, %s13475_s20  }
 0xc9e   : > { %p28_p4 = scmp.ge.s32.totalorder %s31_s20, 4  }
 0xca0   :  { %30 = sbr.rel (!%p28_p4) target bundleno = 5 (0x5), region = 144 }

</bundles_post_ra>
